<compile_context>
chip_gen: v7x
topology: tpu7x:2x2x1
jax: 0.10.0
libtpu: 0.0.40
codegen_flags: <defaults>
</compile_context>

<pallas_src>
import functools

import jax
import jax.numpy as jnp
from jax.experimental import pallas as pl
from jax.experimental.pallas import tpu as pltpu


N_ACTIONS = 6
K_FLAT = 7 * 7 * 64          # 3136 flattened conv features
HEAD_N_PAD = 128             # lane-dense padded width of the fused head output
CONV_LAYERS = (("conv1", 8, 4), ("conv2", 4, 2), ("conv3", 3, 1))  # (name, k, s)


# ------------------------------ small helpers ------------------------------

def _round_up(x, m):
    return ((x + m - 1) // m) * m


def _vmem_capacity_bytes():
    try:
        return int(pltpu.get_tpu_info().vmem_capacity_bytes)
    except Exception:
        return 64 << 20      # v7x per-TensorCore VMEM (smallest generation)


def _vmem_limit(tile_bytes):
    cap = max(_vmem_capacity_bytes() - (16 << 20), 16 << 20)   # leave headroom
    return int(min(max(tile_bytes + (4 << 20), 16 << 20), cap))


def _image_tile(batch, cap):
    """Images per conv grid step (leading block dim, no alignment needed).
    Keeps grid >= 2 whenever batch >= 2 so both v7x TensorCores get work."""
    return max(1, min(cap, batch // 2 if batch >= 2 else 1))


def _fc_row_tile(batch, cap=256):
    """Rows per FC grid step: block rows either == batch or a multiple of 8,
    split into >= 2 tiles when the batch is large enough (v7x megacore)."""
    if batch <= 8:
        return batch
    return min(cap, _round_up(-(-batch // 2), 8))


def _conv_geometry(h, w, c, k, s):
    """Static geometry for the shifted-slab conv decomposition.
    Requires s | h, s | w, s | k -- true for all three QNet conv layers."""
    assert h % s == 0 and w % s == 0 and k % s == 0, (h, w, k, s)
    hs, ws = h // s, w // s
    ho, wo = (h - k) // s + 1, (w - k) // s + 1
    ks = k // s
    return dict(
        hs=hs, ws=ws, ho=ho, wo=wo, f_in=s * s * c,
        r_in=hs * ws,                       # space-to-depth rows per image
        r_out=ho * ws - (ks - 1),           # rows the kernel emits per image
        shifts=tuple(qh * ws + qw for qh in range(ks) for qw in range(ks)),
    )


def _space_to_depth(x, s):
    """(B,H,W,C) -> (B, (H/s)*(W/s), s*s*C), feature order (dh, dw, c)."""
    b, h, w, c = x.shape
    hs, ws = h // s, w // s
    x = x.reshape(b, hs, s, ws, s, c).transpose(0, 1, 3, 2, 4, 5)
    return x.reshape(b, hs * ws, s * s * c)


def _rows_to_nhwc(y, geo):
    """Kernel output rows (valid row for (oh,ow) at oh*Ws+ow) -> NHWC."""
    b, _, cout = y.shape
    ho, wo, ws, r_out = geo["ho"], geo["wo"], geo["ws"], geo["r_out"]
    y = jnp.pad(y, ((0, 0), (0, ho * ws - r_out), (0, 0)))
    return y.reshape(b, ho, ws, cout)[:, :, :wo, :]


# ----------------------------- conv Pallas kernel ---------------------------

def _conv_kernel(x_ref, w_ref, b_ref, o_ref, *, shifts, f_in, r_out, tb):
    bias = b_ref[...]                                        # (1, Cout) f32
    for j in range(tb):                                      # images in this block
        acc = None
        for i, sh in enumerate(shifts):                      # (k/s)^2 shifted slabs
            d = jnp.dot(x_ref[j, sh:sh + r_out, :],
                        w_ref[i * f_in:(i + 1) * f_in, :],
                        preferred_element_type=jnp.float32)
            acc = d if acc is None else acc + d
        acc = jnp.maximum(acc + bias, 0.0)                   # bias + ReLU in f32
        o_ref[j, :, :] = acc.astype(o_ref.dtype)


def conv2d_relu(x_s2d, w, b, geo, *, images_per_step=8, out_dtype=jnp.bfloat16):
    """Conv2d+ReLU on a space-to-depth'd input.
    x_s2d: (B, r_in, s*s*Cin) bf16, w: (k*k*Cin, Cout) bf16, b: (Cout,) f32.
    Returns (B, r_out, Cout); valid output row for (oh, ow) is oh*Ws + ow."""
    batch = x_s2d.shape[0]
    r_in, r_out, f_in = geo["r_in"], geo["r_out"], geo["f_in"]
    cout = w.shape[1]
    tb = _image_tile(batch, images_per_step)
    grid = (pl.cdiv(batch, tb),)
    tile_bytes = (
        2 * tb * r_in * f_in * x_s2d.dtype.itemsize            # double-buffered in
        + 2 * tb * r_out * cout * jnp.dtype(out_dtype).itemsize  # double-buffered out
        + 2 * w.size * w.dtype.itemsize + 4 * cout              # weights + bias
        + r_out * cout * 4)                                     # f32 accumulator
    return pl.pallas_call(
        functools.partial(_conv_kernel, shifts=geo["shifts"], f_in=f_in,
                          r_out=r_out, tb=tb),
        out_shape=jax.ShapeDtypeStruct((batch, r_out, cout), out_dtype),
        grid=grid,
        in_specs=[
            pl.BlockSpec((tb, r_in, f_in), lambda i: (i, 0, 0)),
            pl.BlockSpec(w.shape, lambda i: (0, 0)),            # weight pinned
            pl.BlockSpec((1, cout), lambda i: (0, 0)),          # bias pinned
        ],
        out_specs=pl.BlockSpec((tb, r_out, cout), lambda i: (i, 0, 0)),
        compiler_params=pltpu.CompilerParams(
            dimension_semantics=("parallel",),
            vmem_limit_bytes=_vmem_limit(tile_bytes)),
    )(x_s2d, w, b.reshape(1, cout).astype(jnp.float32))


# ------------------------------ fused FC kernel -----------------------------

def _fused_fc_kernel(h_ref, wl1_ref, bl1_ref, wh1_ref, bh1_ref,
                     wh2_ref, bh2_ref, q_ref, *, n_actions):
    # l1: (TB,3136) x (3136,512), bf16 operands, f32 accumulation.
    h1 = jnp.dot(h_ref[...], wl1_ref[...], preferred_element_type=jnp.float32)
    h1 = jnp.maximum(h1 + bl1_ref[...], 0.0)
    # Fused value||advantage hidden layers: (TB,512) x (512,512).
    hid = jnp.dot(h1.astype(jnp.bfloat16), wh1_ref[...],
                  preferred_element_type=jnp.float32)
    hid = jnp.maximum(hid + bh1_ref[...], 0.0)
    # Block-diagonal second stage: (TB,512) x (512,128); col 0 = V, 1..6 = A.
    out = jnp.dot(hid.astype(jnp.bfloat16), wh2_ref[...],
                  preferred_element_type=jnp.float32) + bh2_ref[...]
    # Dueling combine in the epilogue (VPU/XLU filler), lane-dense 128 store.
    col = jax.lax.broadcasted_iota(jnp.int32, out.shape, 1)
    is_adv = jnp.logical_and(col >= 1, col <= n_actions)
    a_mean = jnp.sum(jnp.where(is_adv, out, 0.0), axis=1,
                     keepdims=True) * (1.0 / n_actions)
    v = out[:, 0:1]
    q_ref[...] = jnp.where(is_adv, out + v - a_mean, 0.0).astype(q_ref.dtype)


def fused_fc_head(h0, wl1, bl1, wh1, bh1, wh2, bh2, *, n_actions):
    """Fused l1 -> heads -> dueling.  Returns (B,128): cols 1..6 hold Q."""
    batch, k = h0.shape
    tb = _fc_row_tile(batch)
    grid = (pl.cdiv(batch, tb),)
    w_bytes = sum(a.size * a.dtype.itemsize
                  for a in (wl1, bl1, wh1, bh1, wh2, bh2))
    tile_bytes = (2 * w_bytes                                   # double-buffered w
                  + 2 * tb * k * h0.dtype.itemsize              # double-buffered h0
                  + 2 * tb * HEAD_N_PAD * 4                     # double-buffered out
                  + 2 * tb * 512 * 4)                           # f32 intermediates
    return pl.pallas_call(
        functools.partial(_fused_fc_kernel, n_actions=n_actions),
        out_shape=jax.ShapeDtypeStruct((batch, HEAD_N_PAD), jnp.float32),
        grid=grid,
        in_specs=[
            pl.BlockSpec((tb, k), lambda i: (i, 0)),
            pl.BlockSpec(wl1.shape, lambda i: (0, 0)),          # weights / biases
            pl.BlockSpec(bl1.shape, lambda i: (0, 0)),          # stay VMEM-resident
            pl.BlockSpec(wh1.shape, lambda i: (0, 0)),
            pl.BlockSpec(bh1.shape, lambda i: (0, 0)),
            pl.BlockSpec(wh2.shape, lambda i: (0, 0)),
            pl.BlockSpec(bh2.shape, lambda i: (0, 0)),
        ],
        out_specs=pl.BlockSpec((tb, HEAD_N_PAD), lambda i: (i, 0)),
        compiler_params=pltpu.CompilerParams(
            dimension_semantics=("parallel",),
            vmem_limit_bytes=_vmem_limit(tile_bytes)),
    )(h0, wl1, bl1, wh1, bh1, wh2, bh2)


# --------------------------------- parameters -------------------------------

def init_torch_params(key):
    """PyTorch-layout params with PyTorch-style uniform(+-1/sqrt(fan_in)) init."""
    def uni(k, shape, fan_in):
        bound = 1.0 / float(fan_in) ** 0.5
        return jax.random.uniform(k, shape, jnp.float32, -bound, bound)

    keys = jax.random.split(key, 16)
    p = {}
    p["conv1_w"] = uni(keys[0], (32, 4, 8, 8), 4 * 8 * 8)      # Conv2d(4, 32, 8, 4)
    p["conv1_b"] = uni(keys[1], (32,), 4 * 8 * 8)
    p["conv2_w"] = uni(keys[2], (32, 32, 4, 4), 32 * 4 * 4)    # Conv2d(32, 32, 4, 2)
    p["conv2_b"] = uni(keys[3], (32,), 32 * 4 * 4)
    p["conv3_w"] = uni(keys[4], (64, 32, 3, 3), 32 * 3 * 3)    # Conv2d(32, 64, 3, 1)
    p["conv3_b"] = uni(keys[5], (64,), 32 * 3 * 3)
    p["l1_w"] = uni(keys[6], (512, K_FLAT), K_FLAT)            # Linear(3136, 512)
    p["l1_b"] = uni(keys[7], (512,), K_FLAT)
    p["val1_w"] = uni(keys[8], (256, 512), 512)
    p["val1_b"] = uni(keys[9], (256,), 512)
    p["val2_w"] = uni(keys[10], (1, 256), 256)
    p["val2_b"] = uni(keys[11], (1,), 256)
    p["adv1_w"] = uni(keys[12], (256, 512), 512)
    p["adv1_b"] = uni(keys[13], (256,), 512)
    p["adv2_w"] = uni(keys[14], (N_ACTIONS, 256), 256)
    p["adv2_b"] = uni(keys[15], (N_ACTIONS,), 256)
    return p


def prepare_params(tp):
    """One-time conversion: PyTorch layout -> fused / bf16 kernel layout."""
    kp = {}
    # Conv weights: (Cout,Cin,kH,kW) -> rows ordered (qh,qw,dh,dw,cin) with
    # kh = qh*s + dh, kw = qw*s + dw, matching the in-kernel shifted slabs.
    for name, k, s in CONV_LAYERS:
        w = tp[name + "_w"]
        cout, cin = w.shape[0], w.shape[1]
        w = jnp.transpose(w, (2, 3, 1, 0))                  # (kH, kW, Cin, Cout)
        w = w.reshape(k // s, s, k // s, s, cin, cout)      # (qh, dh, qw, dw, ., .)
        w = jnp.transpose(w, (0, 2, 1, 3, 4, 5))            # (qh, qw, dh, dw, ., .)
        kp[name + "_w"] = w.reshape(k * k * cin, cout).astype(jnp.bfloat16)
        kp[name + "_b"] = tp[name + "_b"].astype(jnp.float32)

    # l1 weight: rows permuted from PyTorch CHW flatten order to HWC order
    # (forward flattens the NHWC conv output directly), no contraction pad.
    wl1 = tp["l1_w"].reshape(512, 64, 7, 7)
    wl1 = jnp.transpose(wl1, (2, 3, 1, 0)).reshape(K_FLAT, 512)
    kp["wl1"] = wl1.astype(jnp.bfloat16)
    kp["bl1"] = tp["l1_b"].reshape(1, 512).astype(jnp.float32)

    # Head stage 1: value||advantage hidden layers fused into one (512,512).
    kp["wh1"] = jnp.concatenate([tp["val1_w"].T, tp["adv1_w"].T],
                                axis=1).astype(jnp.bfloat16)
    kp["bh1"] = jnp.concatenate([tp["val1_b"],
                                 tp["adv1_b"]]).reshape(1, 512).astype(jnp.float32)

    # Head stage 2: block-diagonal (512,128): col 0 = V, cols 1..6 = A, rest 0.
    wh2 = jnp.zeros((512, HEAD_N_PAD), jnp.float32)
    wh2 = wh2.at[:256, 0:1].set(tp["val2_w"].T)
    wh2 = wh2.at[256:, 1:1 + N_ACTIONS].set(tp["adv2_w"].T)
    kp["wh2"] = wh2.astype(jnp.bfloat16)
    bh2 = jnp.zeros((HEAD_N_PAD,), jnp.float32)
    bh2 = bh2.at[0].set(tp["val2_b"][0])
    bh2 = bh2.at[1:1 + N_ACTIONS].set(tp["adv2_b"])
    kp["bh2"] = bh2.reshape(1, HEAD_N_PAD)
    return kp


# ----------------------------------- forward --------------------------------

def conv_stack(kp, state_nchw):
    """vis_layers (three Conv2d+ReLU); returns NHWC (B, 7, 7, 64) bf16."""
    x = jnp.transpose(state_nchw, (0, 2, 3, 1)).astype(jnp.bfloat16)  # NHWC bf16
    for name, k, s in CONV_LAYERS:
        b, h, w, c = x.shape
        geo = _conv_geometry(h, w, c, k, s)
        y = conv2d_relu(_space_to_depth(x, s),
                        kp[name + "_w"], kp[name + "_b"], geo)
        x = _rows_to_nhwc(y, geo)
    return x                                               # (B, 7, 7, 64)


def qnet_forward(kp, state_nchw):
    x = conv_stack(kp, state_nchw)
    h0 = x.reshape(x.shape[0], K_FLAT)                     # HWC flatten (wl1 matches)
    q_pad = fused_fc_head(h0, kp["wl1"], kp["bl1"], kp["wh1"], kp["bh1"],
                          kp["wh2"], kp["bh2"], n_actions=N_ACTIONS)
    return q_pad[:, 1:1 + N_ACTIONS]                       # (B, 6) f32


# ------------------------- pure-XLA f32 reference ---------------------------

def conv_reference(tp, state):
    def conv(x, w, b, s):
        y = jax.lax.conv_general_dilated(
            x, w, window_strides=(s, s), padding="VALID",
            dimension_numbers=("NCHW", "OIHW", "NCHW"))
        return jax.nn.relu(y + b[None, :, None, None])
    x = conv(state, tp["conv1_w"], tp["conv1_b"], 4)
    x = conv(x, tp["conv2_w"], tp["conv2_b"], 2)
    return conv(x, tp["conv3_w"], tp["conv3_b"], 1)        # NCHW (B, 64, 7, 7)


def qnet_reference(tp, state):
    x = conv_reference(tp, state)
    h = x.reshape(x.shape[0], -1)
    h = jax.nn.relu(h @ tp["l1_w"].T + tp["l1_b"])
    v = jax.nn.relu(h @ tp["val1_w"].T + tp["val1_b"]) @ tp["val2_w"].T + tp["val2_b"]
    a = jax.nn.relu(h @ tp["adv1_w"].T + tp["adv1_b"]) @ tp["adv2_w"].T + tp["adv2_b"]
    return v + a - a.mean(axis=1, keepdims=True)


# ------------------------------------ main ----------------------------------

if __name__ == "__main__":
    key = jax.random.PRNGKey(0)
    pkey, xkey = jax.random.split(key)
    torch_params = init_torch_params(pkey)
    params = prepare_params(torch_params)
    # 84x84 spatial is what the module's 7*7*64 flatten implies.
    state = jax.random.uniform(xkey, (2, 4, 84, 84), jnp.float32)

    q = jax.block_until_ready(jax.jit(qnet_forward)(params, state))
    assert q.shape == (2, N_ACTIONS) and q.dtype == jnp.float32

    # Numerical checks vs f32 XLA reference (bf16 matmuls => loose tolerance).
    # Feed the bf16-rounded input to the reference so only matmul precision differs.
    state_r = state.astype(jnp.bfloat16).astype(jnp.float32)
    conv_out = jax.block_until_ready(jax.jit(conv_stack)(params, state))
    conv_ref = jax.block_until_ready(jax.jit(conv_reference)(torch_params, state_r))
    conv_err = float(jnp.max(jnp.abs(
        jnp.transpose(conv_out.astype(jnp.float32), (0, 3, 1, 2)) - conv_ref)))
    assert conv_err < 3e-2, f"conv stack mismatch: max abs err {conv_err}"

    q_ref = jax.block_until_ready(jax.jit(qnet_reference)(torch_params, state_r))
    q_err = float(jnp.max(jnp.abs(q - q_ref)))
    assert q_err < 5e-2, f"Q mismatch vs reference: max abs err {q_err}"

    print("KERNEL_OK")
</pallas_src>

<mosaic_0001>
module attributes {stable_mosaic.version = 11 : i64} {
  func.func @_conv_kernel(%arg0: i32, %arg1: memref<1x441x64xbf16, #tpu.memory_space<vmem>>, %arg2: memref<256x32xbf16, #tpu.memory_space<vmem>>, %arg3: memref<1x32xf32, #tpu.memory_space<vmem>>, %arg4: memref<1x419x32xbf16, #tpu.memory_space<vmem>>) attributes {dimension_semantics = [#tpu.dimension_semantics<parallel>], iteration_bounds = array<i64: 2>, scalar_prefetch = 0 : i64, scratch_operands = 0 : i64, tpu.core_type = #tpu.core_type<tc>, window_params = [{transform_indices = @transform_0, window_bounds = array<i64: 1, 441, 64>}, {pipeline_mode = #tpu.pipeline_mode<synchronous>, transform_indices = @transform_1, window_bounds = array<i64: 256, 32>}, {pipeline_mode = #tpu.pipeline_mode<synchronous>, transform_indices = @transform_2, window_bounds = array<i64: 1, 32>}, {transform_indices = @transform_3, window_bounds = array<i64: 1, 419, 32>}]} {
    %c0 = arith.constant 0 : index
    %c0_0 = arith.constant 0 : index
    %0 = vector.load %arg3[%c0, %c0_0] : memref<1x32xf32, #tpu.memory_space<vmem>>, vector<1x32xf32>
    %c0_1 = arith.constant 0 : index
    %c0_2 = arith.constant 0 : index
    %c0_3 = arith.constant 0 : index
    %1 = vector.load %arg1[%c0_1, %c0_2, %c0_3] : memref<1x441x64xbf16, #tpu.memory_space<vmem>>, vector<1x419x64xbf16>
    %2 = vector.shape_cast %1 : vector<1x419x64xbf16> to vector<419x64xbf16>
    %c0_4 = arith.constant 0 : index
    %c0_5 = arith.constant 0 : index
    %3 = vector.load %arg2[%c0_4, %c0_5] : memref<256x32xbf16, #tpu.memory_space<vmem>>, vector<64x32xbf16>
    %cst = arith.constant dense<0.000000e+00> : vector<419x32xf32>
    %4 = tpu.matmul %2, %3, %cst {dimension_numbers = #tpu.dot_dimension_numbers<[1], [0], [0], [1], [0, 0, 1, 1], [], []>} : vector<419x64xbf16>, vector<64x32xbf16>, vector<419x32xf32> -> vector<419x32xf32>
    %c0_6 = arith.constant 0 : index
    %c1 = arith.constant 1 : index
    %c0_7 = arith.constant 0 : index
    %5 = vector.load %arg1[%c0_6, %c1, %c0_7] : memref<1x441x64xbf16, #tpu.memory_space<vmem>>, vector<1x419x64xbf16>
    %6 = vector.shape_cast %5 : vector<1x419x64xbf16> to vector<419x64xbf16>
    %c64 = arith.constant 64 : index
    %c0_8 = arith.constant 0 : index
    %7 = vector.load %arg2[%c64, %c0_8] : memref<256x32xbf16, #tpu.memory_space<vmem>>, vector<64x32xbf16>
    %cst_9 = arith.constant dense<0.000000e+00> : vector<419x32xf32>
    %8 = tpu.matmul %6, %7, %cst_9 {dimension_numbers = #tpu.dot_dimension_numbers<[1], [0], [0], [1], [0, 0, 1, 1], [], []>} : vector<419x64xbf16>, vector<64x32xbf16>, vector<419x32xf32> -> vector<419x32xf32>
    %9 = arith.addf %4, %8 : vector<419x32xf32>
    %c0_10 = arith.constant 0 : index
    %c21 = arith.constant 21 : index
    %c0_11 = arith.constant 0 : index
    %10 = vector.load %arg1[%c0_10, %c21, %c0_11] : memref<1x441x64xbf16, #tpu.memory_space<vmem>>, vector<1x419x64xbf16>
    %11 = vector.shape_cast %10 : vector<1x419x64xbf16> to vector<419x64xbf16>
    %c128 = arith.constant 128 : index
    %c0_12 = arith.constant 0 : index
    %12 = vector.load %arg2[%c128, %c0_12] : memref<256x32xbf16, #tpu.memory_space<vmem>>, vector<64x32xbf16>
    %cst_13 = arith.constant dense<0.000000e+00> : vector<419x32xf32>
    %13 = tpu.matmul %11, %12, %cst_13 {dimension_numbers = #tpu.dot_dimension_numbers<[1], [0], [0], [1], [0, 0, 1, 1], [], []>} : vector<419x64xbf16>, vector<64x32xbf16>, vector<419x32xf32> -> vector<419x32xf32>
    %14 = arith.addf %9, %13 : vector<419x32xf32>
    %c0_14 = arith.constant 0 : index
    %c22 = arith.constant 22 : index
    %c0_15 = arith.constant 0 : index
    %15 = vector.load %arg1[%c0_14, %c22, %c0_15] : memref<1x441x64xbf16, #tpu.memory_space<vmem>>, vector<1x419x64xbf16>
    %16 = vector.shape_cast %15 : vector<1x419x64xbf16> to vector<419x64xbf16>
    %c192 = arith.constant 192 : index
    %c0_16 = arith.constant 0 : index
    %17 = vector.load %arg2[%c192, %c0_16] : memref<256x32xbf16, #tpu.memory_space<vmem>>, vector<64x32xbf16>
    %cst_17 = arith.constant dense<0.000000e+00> : vector<419x32xf32>
    %18 = tpu.matmul %16, %17, %cst_17 {dimension_numbers = #tpu.dot_dimension_numbers<[1], [0], [0], [1], [0, 0, 1, 1], [], []>} : vector<419x64xbf16>, vector<64x32xbf16>, vector<419x32xf32> -> vector<419x32xf32>
    %19 = arith.addf %14, %18 : vector<419x32xf32>
    %20 = vector.broadcast %0 : vector<1x32xf32> to vector<419x32xf32>
    %21 = arith.addf %19, %20 : vector<419x32xf32>
    %cst_18 = arith.constant 0.000000e+00 : f32
    %22 = vector.broadcast %cst_18 : f32 to vector<419x32xf32>
    %23 = arith.maximumf %21, %22 : vector<419x32xf32>
    %24 = arith.truncf %23 : vector<419x32xf32> to vector<419x32xbf16>
    %c0_19 = arith.constant 0 : index
    %c0_20 = arith.constant 0 : index
    %c0_21 = arith.constant 0 : index
    %25 = vector.load %arg4[%c0_19, %c0_20, %c0_21] : memref<1x419x32xbf16, #tpu.memory_space<vmem>>, vector<1x419x32xbf16>
    %26 = vector.shape_cast %25 : vector<1x419x32xbf16> to vector<419x32xbf16>
    %27 = vector.shape_cast %24 : vector<419x32xbf16> to vector<1x419x32xbf16>
    tpu.vector_store %arg4[%c0_19, %c0_20, %c0_21], %27 {strides = array<i32>} : memref<1x419x32xbf16, #tpu.memory_space<vmem>>, vector<1x419x32xbf16>,
    return
  }
  func.func @transform_0(%arg0: i32) -> (i32, i32, i32) {
    %c0_i32 = arith.constant 0 : i32
    %c0_i32_0 = arith.constant 0 : i32
    %c0_i32_1 = arith.constant 0 : i32
    return %arg0, %c0_i32, %c0_i32_0 : i32, i32, i32
  }
  func.func @transform_1(%arg0: i32) -> (i32, i32) {
    %c0_i32 = arith.constant 0 : i32
    %c0_i32_0 = arith.constant 0 : i32
    %c0_i32_1 = arith.constant 0 : i32
    return %c0_i32, %c0_i32_0 : i32, i32
  }
  func.func @transform_2(%arg0: i32) -> (i32, i32) {
    %c0_i32 = arith.constant 0 : i32
    %c0_i32_0 = arith.constant 0 : i32
    %c0_i32_1 = arith.constant 0 : i32
    return %c0_i32, %c0_i32_0 : i32, i32
  }
  func.func @transform_3(%arg0: i32) -> (i32, i32, i32) {
    %c0_i32 = arith.constant 0 : i32
    %c0_i32_0 = arith.constant 0 : i32
    %c0_i32_1 = arith.constant 0 : i32
    return %arg0, %c0_i32, %c0_i32_0 : i32, i32, i32
  }
}

module attributes {stable_mosaic.version = 11 : i64} {
  func.func @_conv_kernel(%arg0: i32, %arg1: memref<1x100x128xbf16, #tpu.memory_space<vmem>>, %arg2: memref<512x32xbf16, #tpu.memory_space<vmem>>, %arg3: memref<1x32xf32, #tpu.memory_space<vmem>>, %arg4: memref<1x89x32xbf16, #tpu.memory_space<vmem>>) attributes {dimension_semantics = [#tpu.dimension_semantics<parallel>], iteration_bounds = array<i64: 2>, scalar_prefetch = 0 : i64, scratch_operands = 0 : i64, tpu.core_type = #tpu.core_type<tc>, window_params = [{transform_indices = @transform_0, window_bounds = array<i64: 1, 100, 128>}, {pipeline_mode = #tpu.pipeline_mode<synchronous>, transform_indices = @transform_1, window_bounds = array<i64: 512, 32>}, {pipeline_mode = #tpu.pipeline_mode<synchronous>, transform_indices = @transform_2, window_bounds = array<i64: 1, 32>}, {transform_indices = @transform_3, window_bounds = array<i64: 1, 89, 32>}]} {
    %c0 = arith.constant 0 : index
    %c0_0 = arith.constant 0 : index
    %0 = vector.load %arg3[%c0, %c0_0] : memref<1x32xf32, #tpu.memory_space<vmem>>, vector<1x32xf32>
    %c0_1 = arith.constant 0 : index
    %c0_2 = arith.constant 0 : index
    %c0_3 = arith.constant 0 : index
    %1 = vector.load %arg1[%c0_1, %c0_2, %c0_3] : memref<1x100x128xbf16, #tpu.memory_space<vmem>>, vector<1x89x128xbf16>
    %2 = vector.shape_cast %1 : vector<1x89x128xbf16> to vector<89x128xbf16>
    %c0_4 = arith.constant 0 : index
    %c0_5 = arith.constant 0 : index
    %3 = vector.load %arg2[%c0_4, %c0_5] : memref<512x32xbf16, #tpu.memory_space<vmem>>, vector<128x32xbf16>
    %cst = arith.constant dense<0.000000e+00> : vector<89x32xf32>
    %4 = tpu.matmul %2, %3, %cst {dimension_numbers = #tpu.dot_dimension_numbers<[1], [0], [0], [1], [0, 0, 1, 1], [], []>} : vector<89x128xbf16>, vector<128x32xbf16>, vector<89x32xf32> -> vector<89x32xf32>
    %c0_6 = arith.constant 0 : index
    %c1 = arith.constant 1 : index
    %c0_7 = arith.constant 0 : index
    %5 = vector.load %arg1[%c0_6, %c1, %c0_7] : memref<1x100x128xbf16, #tpu.memory_space<vmem>>, vector<1x89x128xbf16>
    %6 = vector.shape_cast %5 : vector<1x89x128xbf16> to vector<89x128xbf16>
    %c128 = arith.constant 128 : index
    %c0_8 = arith.constant 0 : index
    %7 = vector.load %arg2[%c128, %c0_8] : memref<512x32xbf16, #tpu.memory_space<vmem>>, vector<128x32xbf16>
    %cst_9 = arith.constant dense<0.000000e+00> : vector<89x32xf32>
    %8 = tpu.matmul %6, %7, %cst_9 {dimension_numbers = #tpu.dot_dimension_numbers<[1], [0], [0], [1], [0, 0, 1, 1], [], []>} : vector<89x128xbf16>, vector<128x32xbf16>, vector<89x32xf32> -> vector<89x32xf32>
    %9 = arith.addf %4, %8 : vector<89x32xf32>
    %c0_10 = arith.constant 0 : index
    %c10 = arith.constant 10 : index
    %c0_11 = arith.constant 0 : index
    %10 = vector.load %arg1[%c0_10, %c10, %c0_11] : memref<1x100x128xbf16, #tpu.memory_space<vmem>>, vector<1x89x128xbf16>
    %11 = vector.shape_cast %10 : vector<1x89x128xbf16> to vector<89x128xbf16>
    %c256 = arith.constant 256 : index
    %c0_12 = arith.constant 0 : index
    %12 = vector.load %arg2[%c256, %c0_12] : memref<512x32xbf16, #tpu.memory_space<vmem>>, vector<128x32xbf16>
    %cst_13 = arith.constant dense<0.000000e+00> : vector<89x32xf32>
    %13 = tpu.matmul %11, %12, %cst_13 {dimension_numbers = #tpu.dot_dimension_numbers<[1], [0], [0], [1], [0, 0, 1, 1], [], []>} : vector<89x128xbf16>, vector<128x32xbf16>, vector<89x32xf32> -> vector<89x32xf32>
    %14 = arith.addf %9, %13 : vector<89x32xf32>
    %c0_14 = arith.constant 0 : index
    %c11 = arith.constant 11 : index
    %c0_15 = arith.constant 0 : index
    %15 = vector.load %arg1[%c0_14, %c11, %c0_15] : memref<1x100x128xbf16, #tpu.memory_space<vmem>>, vector<1x89x128xbf16>
    %16 = vector.shape_cast %15 : vector<1x89x128xbf16> to vector<89x128xbf16>
    %c384 = arith.constant 384 : index
    %c0_16 = arith.constant 0 : index
    %17 = vector.load %arg2[%c384, %c0_16] : memref<512x32xbf16, #tpu.memory_space<vmem>>, vector<128x32xbf16>
    %cst_17 = arith.constant dense<0.000000e+00> : vector<89x32xf32>
    %18 = tpu.matmul %16, %17, %cst_17 {dimension_numbers = #tpu.dot_dimension_numbers<[1], [0], [0], [1], [0, 0, 1, 1], [], []>} : vector<89x128xbf16>, vector<128x32xbf16>, vector<89x32xf32> -> vector<89x32xf32>
    %19 = arith.addf %14, %18 : vector<89x32xf32>
    %20 = vector.broadcast %0 : vector<1x32xf32> to vector<89x32xf32>
    %21 = arith.addf %19, %20 : vector<89x32xf32>
    %cst_18 = arith.constant 0.000000e+00 : f32
    %22 = vector.broadcast %cst_18 : f32 to vector<89x32xf32>
    %23 = arith.maximumf %21, %22 : vector<89x32xf32>
    %24 = arith.truncf %23 : vector<89x32xf32> to vector<89x32xbf16>
    %c0_19 = arith.constant 0 : index
    %c0_20 = arith.constant 0 : index
    %c0_21 = arith.constant 0 : index
    %25 = vector.load %arg4[%c0_19, %c0_20, %c0_21] : memref<1x89x32xbf16, #tpu.memory_space<vmem>>, vector<1x89x32xbf16>
    %26 = vector.shape_cast %25 : vector<1x89x32xbf16> to vector<89x32xbf16>
    %27 = vector.shape_cast %24 : vector<89x32xbf16> to vector<1x89x32xbf16>
    tpu.vector_store %arg4[%c0_19, %c0_20, %c0_21], %27 {strides = array<i32>} : memref<1x89x32xbf16, #tpu.memory_space<vmem>>, vector<1x89x32xbf16>,
    return
  }
  func.func @transform_0(%arg0: i32) -> (i32, i32, i32) {
    %c0_i32 = arith.constant 0 : i32
    %c0_i32_0 = arith.constant 0 : i32
    %c0_i32_1 = arith.constant 0 : i32
    return %arg0, %c0_i32, %c0_i32_0 : i32, i32, i32
  }
  func.func @transform_1(%arg0: i32) -> (i32, i32) {
    %c0_i32 = arith.constant 0 : i32
    %c0_i32_0 = arith.constant 0 : i32
    %c0_i32_1 = arith.constant 0 : i32
    return %c0_i32, %c0_i32_0 : i32, i32
  }
  func.func @transform_2(%arg0: i32) -> (i32, i32) {
    %c0_i32 = arith.constant 0 : i32
    %c0_i32_0 = arith.constant 0 : i32
    %c0_i32_1 = arith.constant 0 : i32
    return %c0_i32, %c0_i32_0 : i32, i32
  }
  func.func @transform_3(%arg0: i32) -> (i32, i32, i32) {
    %c0_i32 = arith.constant 0 : i32
    %c0_i32_0 = arith.constant 0 : i32
    %c0_i32_1 = arith.constant 0 : i32
    return %arg0, %c0_i32, %c0_i32_0 : i32, i32, i32
  }
}

module attributes {stable_mosaic.version = 11 : i64} {
  func.func @_conv_kernel(%arg0: i32, %arg1: memref<1x81x32xbf16, #tpu.memory_space<vmem>>, %arg2: memref<288x64xbf16, #tpu.memory_space<vmem>>, %arg3: memref<1x64xf32, #tpu.memory_space<vmem>>, %arg4: memref<1x61x64xbf16, #tpu.memory_space<vmem>>) attributes {dimension_semantics = [#tpu.dimension_semantics<parallel>], iteration_bounds = array<i64: 2>, scalar_prefetch = 0 : i64, scratch_operands = 0 : i64, tpu.core_type = #tpu.core_type<tc>, window_params = [{transform_indices = @transform_0, window_bounds = array<i64: 1, 81, 32>}, {pipeline_mode = #tpu.pipeline_mode<synchronous>, transform_indices = @transform_1, window_bounds = array<i64: 288, 64>}, {pipeline_mode = #tpu.pipeline_mode<synchronous>, transform_indices = @transform_2, window_bounds = array<i64: 1, 64>}, {transform_indices = @transform_3, window_bounds = array<i64: 1, 61, 64>}]} {
    %c0 = arith.constant 0 : index
    %c0_0 = arith.constant 0 : index
    %0 = vector.load %arg3[%c0, %c0_0] : memref<1x64xf32, #tpu.memory_space<vmem>>, vector<1x64xf32>
    %c0_1 = arith.constant 0 : index
    %c0_2 = arith.constant 0 : index
    %c0_3 = arith.constant 0 : index
    %1 = vector.load %arg1[%c0_1, %c0_2, %c0_3] : memref<1x81x32xbf16, #tpu.memory_space<vmem>>, vector<1x61x32xbf16>
    %2 = vector.shape_cast %1 : vector<1x61x32xbf16> to vector<61x32xbf16>
    %c0_4 = arith.constant 0 : index
    %c0_5 = arith.constant 0 : index
    %3 = vector.load %arg2[%c0_4, %c0_5] : memref<288x64xbf16, #tpu.memory_space<vmem>>, vector<32x64xbf16>
    %cst = arith.constant dense<0.000000e+00> : vector<61x64xf32>
    %4 = tpu.matmul %2, %3, %cst {dimension_numbers = #tpu.dot_dimension_numbers<[1], [0], [0], [1], [0, 0, 1, 1], [], []>} : vector<61x32xbf16>, vector<32x64xbf16>, vector<61x64xf32> -> vector<61x64xf32>
    %c0_6 = arith.constant 0 : index
    %c1 = arith.constant 1 : index
    %c0_7 = arith.constant 0 : index
    %5 = vector.load %arg1[%c0_6, %c1, %c0_7] : memref<1x81x32xbf16, #tpu.memory_space<vmem>>, vector<1x61x32xbf16>
    %6 = vector.shape_cast %5 : vector<1x61x32xbf16> to vector<61x32xbf16>
    %c32 = arith.constant 32 : index
    %c0_8 = arith.constant 0 : index
    %7 = vector.load %arg2[%c32, %c0_8] : memref<288x64xbf16, #tpu.memory_space<vmem>>, vector<32x64xbf16>
    %cst_9 = arith.constant dense<0.000000e+00> : vector<61x64xf32>
    %8 = tpu.matmul %6, %7, %cst_9 {dimension_numbers = #tpu.dot_dimension_numbers<[1], [0], [0], [1], [0, 0, 1, 1], [], []>} : vector<61x32xbf16>, vector<32x64xbf16>, vector<61x64xf32> -> vector<61x64xf32>
    %9 = arith.addf %4, %8 : vector<61x64xf32>
    %c0_10 = arith.constant 0 : index
    %c2 = arith.constant 2 : index
    %c0_11 = arith.constant 0 : index
    %10 = vector.load %arg1[%c0_10, %c2, %c0_11] : memref<1x81x32xbf16, #tpu.memory_space<vmem>>, vector<1x61x32xbf16>
    %11 = vector.shape_cast %10 : vector<1x61x32xbf16> to vector<61x32xbf16>
    %c64 = arith.constant 64 : index
    %c0_12 = arith.constant 0 : index
    %12 = vector.load %arg2[%c64, %c0_12] : memref<288x64xbf16, #tpu.memory_space<vmem>>, vector<32x64xbf16>
    %cst_13 = arith.constant dense<0.000000e+00> : vector<61x64xf32>
    %13 = tpu.matmul %11, %12, %cst_13 {dimension_numbers = #tpu.dot_dimension_numbers<[1], [0], [0], [1], [0, 0, 1, 1], [], []>} : vector<61x32xbf16>, vector<32x64xbf16>, vector<61x64xf32> -> vector<61x64xf32>
    %14 = arith.addf %9, %13 : vector<61x64xf32>
    %c0_14 = arith.constant 0 : index
    %c9 = arith.constant 9 : index
    %c0_15 = arith.constant 0 : index
    %15 = vector.load %arg1[%c0_14, %c9, %c0_15] : memref<1x81x32xbf16, #tpu.memory_space<vmem>>, vector<1x61x32xbf16>
    %16 = vector.shape_cast %15 : vector<1x61x32xbf16> to vector<61x32xbf16>
    %c96 = arith.constant 96 : index
    %c0_16 = arith.constant 0 : index
    %17 = vector.load %arg2[%c96, %c0_16] : memref<288x64xbf16, #tpu.memory_space<vmem>>, vector<32x64xbf16>
    %cst_17 = arith.constant dense<0.000000e+00> : vector<61x64xf32>
    %18 = tpu.matmul %16, %17, %cst_17 {dimension_numbers = #tpu.dot_dimension_numbers<[1], [0], [0], [1], [0, 0, 1, 1], [], []>} : vector<61x32xbf16>, vector<32x64xbf16>, vector<61x64xf32> -> vector<61x64xf32>
    %19 = arith.addf %14, %18 : vector<61x64xf32>
    %c0_18 = arith.constant 0 : index
    %c10 = arith.constant 10 : index
    %c0_19 = arith.constant 0 : index
    %20 = vector.load %arg1[%c0_18, %c10, %c0_19] : memref<1x81x32xbf16, #tpu.memory_space<vmem>>, vector<1x61x32xbf16>
    %21 = vector.shape_cast %20 : vector<1x61x32xbf16> to vector<61x32xbf16>
    %c128 = arith.constant 128 : index
    %c0_20 = arith.constant 0 : index
    %22 = vector.load %arg2[%c128, %c0_20] : memref<288x64xbf16, #tpu.memory_space<vmem>>, vector<32x64xbf16>
    %cst_21 = arith.constant dense<0.000000e+00> : vector<61x64xf32>
    %23 = tpu.matmul %21, %22, %cst_21 {dimension_numbers = #tpu.dot_dimension_numbers<[1], [0], [0], [1], [0, 0, 1, 1], [], []>} : vector<61x32xbf16>, vector<32x64xbf16>, vector<61x64xf32> -> vector<61x64xf32>
    %24 = arith.addf %19, %23 : vector<61x64xf32>
    %c0_22 = arith.constant 0 : index
    %c11 = arith.constant 11 : index
    %c0_23 = arith.constant 0 : index
    %25 = vector.load %arg1[%c0_22, %c11, %c0_23] : memref<1x81x32xbf16, #tpu.memory_space<vmem>>, vector<1x61x32xbf16>
    %26 = vector.shape_cast %25 : vector<1x61x32xbf16> to vector<61x32xbf16>
    %c160 = arith.constant 160 : index
    %c0_24 = arith.constant 0 : index
    %27 = vector.load %arg2[%c160, %c0_24] : memref<288x64xbf16, #tpu.memory_space<vmem>>, vector<32x64xbf16>
    %cst_25 = arith.constant dense<0.000000e+00> : vector<61x64xf32>
    %28 = tpu.matmul %26, %27, %cst_25 {dimension_numbers = #tpu.dot_dimension_numbers<[1], [0], [0], [1], [0, 0, 1, 1], [], []>} : vector<61x32xbf16>, vector<32x64xbf16>, vector<61x64xf32> -> vector<61x64xf32>
    %29 = arith.addf %24, %28 : vector<61x64xf32>
    %c0_26 = arith.constant 0 : index
    %c18 = arith.constant 18 : index
    %c0_27 = arith.constant 0 : index
    %30 = vector.load %arg1[%c0_26, %c18, %c0_27] : memref<1x81x32xbf16, #tpu.memory_space<vmem>>, vector<1x61x32xbf16>
    %31 = vector.shape_cast %30 : vector<1x61x32xbf16> to vector<61x32xbf16>
    %c192 = arith.constant 192 : index
    %c0_28 = arith.constant 0 : index
    %32 = vector.load %arg2[%c192, %c0_28] : memref<288x64xbf16, #tpu.memory_space<vmem>>, vector<32x64xbf16>
    %cst_29 = arith.constant dense<0.000000e+00> : vector<61x64xf32>
    %33 = tpu.matmul %31, %32, %cst_29 {dimension_numbers = #tpu.dot_dimension_numbers<[1], [0], [0], [1], [0, 0, 1, 1], [], []>} : vector<61x32xbf16>, vector<32x64xbf16>, vector<61x64xf32> -> vector<61x64xf32>
    %34 = arith.addf %29, %33 : vector<61x64xf32>
    %c0_30 = arith.constant 0 : index
    %c19 = arith.constant 19 : index
    %c0_31 = arith.constant 0 : index
    %35 = vector.load %arg1[%c0_30, %c19, %c0_31] : memref<1x81x32xbf16, #tpu.memory_space<vmem>>, vector<1x61x32xbf16>
    %36 = vector.shape_cast %35 : vector<1x61x32xbf16> to vector<61x32xbf16>
    %c224 = arith.constant 224 : index
    %c0_32 = arith.constant 0 : index
    %37 = vector.load %arg2[%c224, %c0_32] : memref<288x64xbf16, #tpu.memory_space<vmem>>, vector<32x64xbf16>
    %cst_33 = arith.constant dense<0.000000e+00> : vector<61x64xf32>
    %38 = tpu.matmul %36, %37, %cst_33 {dimension_numbers = #tpu.dot_dimension_numbers<[1], [0], [0], [1], [0, 0, 1, 1], [], []>} : vector<61x32xbf16>, vector<32x64xbf16>, vector<61x64xf32> -> vector<61x64xf32>
    %39 = arith.addf %34, %38 : vector<61x64xf32>
    %c0_34 = arith.constant 0 : index
    %c20 = arith.constant 20 : index
    %c0_35 = arith.constant 0 : index
    %40 = vector.load %arg1[%c0_34, %c20, %c0_35] : memref<1x81x32xbf16, #tpu.memory_space<vmem>>, vector<1x61x32xbf16>
    %41 = vector.shape_cast %40 : vector<1x61x32xbf16> to vector<61x32xbf16>
    %c256 = arith.constant 256 : index
    %c0_36 = arith.constant 0 : index
    %42 = vector.load %arg2[%c256, %c0_36] : memref<288x64xbf16, #tpu.memory_space<vmem>>, vector<32x64xbf16>
    %cst_37 = arith.constant dense<0.000000e+00> : vector<61x64xf32>
    %43 = tpu.matmul %41, %42, %cst_37 {dimension_numbers = #tpu.dot_dimension_numbers<[1], [0], [0], [1], [0, 0, 1, 1], [], []>} : vector<61x32xbf16>, vector<32x64xbf16>, vector<61x64xf32> -> vector<61x64xf32>
    %44 = arith.addf %39, %43 : vector<61x64xf32>
    %45 = vector.broadcast %0 : vector<1x64xf32> to vector<61x64xf32>
    %46 = arith.addf %44, %45 : vector<61x64xf32>
    %cst_38 = arith.constant 0.000000e+00 : f32
    %47 = vector.broadcast %cst_38 : f32 to vector<61x64xf32>
    %48 = arith.maximumf %46, %47 : vector<61x64xf32>
    %49 = arith.truncf %48 : vector<61x64xf32> to vector<61x64xbf16>
    %c0_39 = arith.constant 0 : index
    %c0_40 = arith.constant 0 : index
    %c0_41 = arith.constant 0 : index
    %50 = vector.load %arg4[%c0_39, %c0_40, %c0_41] : memref<1x61x64xbf16, #tpu.memory_space<vmem>>, vector<1x61x64xbf16>
    %51 = vector.shape_cast %50 : vector<1x61x64xbf16> to vector<61x64xbf16>
    %52 = vector.shape_cast %49 : vector<61x64xbf16> to vector<1x61x64xbf16>
    tpu.vector_store %arg4[%c0_39, %c0_40, %c0_41], %52 {strides = array<i32>} : memref<1x61x64xbf16, #tpu.memory_space<vmem>>, vector<1x61x64xbf16>,
    return
  }
  func.func @transform_0(%arg0: i32) -> (i32, i32, i32) {
    %c0_i32 = arith.constant 0 : i32
    %c0_i32_0 = arith.constant 0 : i32
    %c0_i32_1 = arith.constant 0 : i32
    return %arg0, %c0_i32, %c0_i32_0 : i32, i32, i32
  }
  func.func @transform_1(%arg0: i32) -> (i32, i32) {
    %c0_i32 = arith.constant 0 : i32
    %c0_i32_0 = arith.constant 0 : i32
    %c0_i32_1 = arith.constant 0 : i32
    return %c0_i32, %c0_i32_0 : i32, i32
  }
  func.func @transform_2(%arg0: i32) -> (i32, i32) {
    %c0_i32 = arith.constant 0 : i32
    %c0_i32_0 = arith.constant 0 : i32
    %c0_i32_1 = arith.constant 0 : i32
    return %c0_i32, %c0_i32_0 : i32, i32
  }
  func.func @transform_3(%arg0: i32) -> (i32, i32, i32) {
    %c0_i32 = arith.constant 0 : i32
    %c0_i32_0 = arith.constant 0 : i32
    %c0_i32_1 = arith.constant 0 : i32
    return %arg0, %c0_i32, %c0_i32_0 : i32, i32, i32
  }
}

module attributes {stable_mosaic.version = 11 : i64} {
  func.func @_fused_fc_kernel(%arg0: i32, %arg1: memref<2x3136xbf16, #tpu.memory_space<vmem>>, %arg2: memref<3136x512xbf16, #tpu.memory_space<vmem>>, %arg3: memref<1x512xf32, #tpu.memory_space<vmem>>, %arg4: memref<512x512xbf16, #tpu.memory_space<vmem>>, %arg5: memref<1x512xf32, #tpu.memory_space<vmem>>, %arg6: memref<512x128xbf16, #tpu.memory_space<vmem>>, %arg7: memref<1x128xf32, #tpu.memory_space<vmem>>, %arg8: memref<2x128xf32, #tpu.memory_space<vmem>>) attributes {dimension_semantics = [#tpu.dimension_semantics<parallel>], iteration_bounds = array<i64: 1>, scalar_prefetch = 0 : i64, scratch_operands = 0 : i64, tpu.core_type = #tpu.core_type<tc>, window_params = [{transform_indices = @transform_0, window_bounds = array<i64: 2, 3136>}, {pipeline_mode = #tpu.pipeline_mode<synchronous>, transform_indices = @transform_1, window_bounds = array<i64: 3136, 512>}, {pipeline_mode = #tpu.pipeline_mode<synchronous>, transform_indices = @transform_2, window_bounds = array<i64: 1, 512>}, {pipeline_mode = #tpu.pipeline_mode<synchronous>, transform_indices = @transform_3, window_bounds = array<i64: 512, 512>}, {pipeline_mode = #tpu.pipeline_mode<synchronous>, transform_indices = @transform_4, window_bounds = array<i64: 1, 512>}, {pipeline_mode = #tpu.pipeline_mode<synchronous>, transform_indices = @transform_5, window_bounds = array<i64: 512, 128>}, {pipeline_mode = #tpu.pipeline_mode<synchronous>, transform_indices = @transform_6, window_bounds = array<i64: 1, 128>}, {transform_indices = @transform_7, window_bounds = array<i64: 2, 128>}]} {
    %c0 = arith.constant 0 : index
    %c0_0 = arith.constant 0 : index
    %0 = vector.load %arg1[%c0, %c0_0] : memref<2x3136xbf16, #tpu.memory_space<vmem>>, vector<2x3136xbf16>
    %c0_1 = arith.constant 0 : index
    %c0_2 = arith.constant 0 : index
    %1 = vector.load %arg2[%c0_1, %c0_2] : memref<3136x512xbf16, #tpu.memory_space<vmem>>, vector<3136x512xbf16>
    %cst = arith.constant dense<0.000000e+00> : vector<2x512xf32>
    %2 = tpu.matmul %0, %1, %cst {dimension_numbers = #tpu.dot_dimension_numbers<[1], [0], [0], [1], [0, 0, 1, 1], [], []>} : vector<2x3136xbf16>, vector<3136x512xbf16>, vector<2x512xf32> -> vector<2x512xf32>
    %c0_3 = arith.constant 0 : index
    %c0_4 = arith.constant 0 : index
    %3 = vector.load %arg3[%c0_3, %c0_4] : memref<1x512xf32, #tpu.memory_space<vmem>>, vector<1x512xf32>
    %4 = vector.broadcast %3 : vector<1x512xf32> to vector<2x512xf32>
    %5 = arith.addf %2, %4 : vector<2x512xf32>
    %cst_5 = arith.constant 0.000000e+00 : f32
    %6 = vector.broadcast %cst_5 : f32 to vector<2x512xf32>
    %7 = arith.maximumf %5, %6 : vector<2x512xf32>
    %8 = arith.truncf %7 : vector<2x512xf32> to vector<2x512xbf16>
    %c0_6 = arith.constant 0 : index
    %c0_7 = arith.constant 0 : index
    %9 = vector.load %arg4[%c0_6, %c0_7] : memref<512x512xbf16, #tpu.memory_space<vmem>>, vector<512x512xbf16>
    %cst_8 = arith.constant dense<0.000000e+00> : vector<2x512xf32>
    %10 = tpu.matmul %8, %9, %cst_8 {dimension_numbers = #tpu.dot_dimension_numbers<[1], [0], [0], [1], [0, 0, 1, 1], [], []>} : vector<2x512xbf16>, vector<512x512xbf16>, vector<2x512xf32> -> vector<2x512xf32>
    %c0_9 = arith.constant 0 : index
    %c0_10 = arith.constant 0 : index
    %11 = vector.load %arg5[%c0_9, %c0_10] : memref<1x512xf32, #tpu.memory_space<vmem>>, vector<1x512xf32>
    %12 = vector.broadcast %11 : vector<1x512xf32> to vector<2x512xf32>
    %13 = arith.addf %10, %12 : vector<2x512xf32>
    %cst_11 = arith.constant 0.000000e+00 : f32
    %14 = vector.broadcast %cst_11 : f32 to vector<2x512xf32>
    %15 = arith.maximumf %13, %14 : vector<2x512xf32>
    %16 = arith.truncf %15 : vector<2x512xf32> to vector<2x512xbf16>
    %c0_12 = arith.constant 0 : index
    %c0_13 = arith.constant 0 : index
    %17 = vector.load %arg6[%c0_12, %c0_13] : memref<512x128xbf16, #tpu.memory_space<vmem>>, vector<512x128xbf16>
    %cst_14 = arith.constant dense<0.000000e+00> : vector<2x128xf32>
    %18 = tpu.matmul %16, %17, %cst_14 {dimension_numbers = #tpu.dot_dimension_numbers<[1], [0], [0], [1], [0, 0, 1, 1], [], []>} : vector<2x512xbf16>, vector<512x128xbf16>, vector<2x128xf32> -> vector<2x128xf32>
    %c0_15 = arith.constant 0 : index
    %c0_16 = arith.constant 0 : index
    %19 = vector.load %arg7[%c0_15, %c0_16] : memref<1x128xf32, #tpu.memory_space<vmem>>, vector<1x128xf32>
    %20 = vector.broadcast %19 : vector<1x128xf32> to vector<2x128xf32>
    %21 = arith.addf %18, %20 : vector<2x128xf32>
    %22 = tpu.iota {dimensions = array<i32: 1>} : vector<2x128xi32>
    %c1_i32 = arith.constant 1 : i32
    %23 = vector.broadcast %c1_i32 : i32 to vector<2x128xi32>
    %24 = arith.cmpi sge, %22, %23 : vector<2x128xi32>
    %c6_i32 = arith.constant 6 : i32
    %25 = vector.broadcast %c6_i32 : i32 to vector<2x128xi32>
    %26 = arith.cmpi sle, %22, %25 : vector<2x128xi32>
    %27 = arith.andi %24, %26 : vector<2x128xi1>
    %cst_17 = arith.constant 0.000000e+00 : f32
    %28 = vector.broadcast %cst_17 : f32 to vector<2x128xf32>
    %29 = arith.select %27, %21, %28 : vector<2x128xi1>, vector<2x128xf32>
    %cst_18 = arith.constant dense<0.000000e+00> : vector<2xf32>
    %30 = vector.multi_reduction <add>, %29, %cst_18 [1] : vector<2x128xf32> to vector<2xf32>
    %31 = vector.shape_cast %30 : vector<2xf32> to vector<2x1xf32>
    %cst_19 = arith.constant 0.166666672 : f32
    %32 = vector.broadcast %cst_19 : f32 to vector<2x1xf32>
    %33 = arith.mulf %31, %32 : vector<2x1xf32>
    %34 = vector.extract_strided_slice %21 {offsets = [0, 0], sizes = [2, 1], strides = [1, 1]} : vector<2x128xf32> to vector<2x1xf32>
    %35 = vector.broadcast %34 : vector<2x1xf32> to vector<2x128xf32>
    %36 = arith.addf %21, %35 : vector<2x128xf32>
    %37 = vector.broadcast %33 : vector<2x1xf32> to vector<2x128xf32>
    %38 = arith.subf %36, %37 : vector<2x128xf32>
    %cst_20 = arith.constant 0.000000e+00 : f32
    %39 = vector.broadcast %cst_20 : f32 to vector<2x128xf32>
    %40 = arith.select %27, %38, %39 : vector<2x128xi1>, vector<2x128xf32>
    %c0_21 = arith.constant 0 : index
    %c0_22 = arith.constant 0 : index
    %41 = vector.load %arg8[%c0_21, %c0_22] : memref<2x128xf32, #tpu.memory_space<vmem>>, vector<2x128xf32>
    tpu.vector_store %arg8[%c0_21, %c0_22], %40 {strides = array<i32>} : memref<2x128xf32, #tpu.memory_space<vmem>>, vector<2x128xf32>,
    return
  }
  func.func @transform_0(%arg0: i32) -> (i32, i32) {
    %c0_i32 = arith.constant 0 : i32
    %c0_i32_0 = arith.constant 0 : i32
    return %arg0, %c0_i32 : i32, i32
  }
  func.func @transform_1(%arg0: i32) -> (i32, i32) {
    %c0_i32 = arith.constant 0 : i32
    %c0_i32_0 = arith.constant 0 : i32
    %c0_i32_1 = arith.constant 0 : i32
    return %c0_i32, %c0_i32_0 : i32, i32
  }
  func.func @transform_2(%arg0: i32) -> (i32, i32) {
    %c0_i32 = arith.constant 0 : i32
    %c0_i32_0 = arith.constant 0 : i32
    %c0_i32_1 = arith.constant 0 : i32
    return %c0_i32, %c0_i32_0 : i32, i32
  }
  func.func @transform_3(%arg0: i32) -> (i32, i32) {
    %c0_i32 = arith.constant 0 : i32
    %c0_i32_0 = arith.constant 0 : i32
    %c0_i32_1 = arith.constant 0 : i32
    return %c0_i32, %c0_i32_0 : i32, i32
  }
  func.func @transform_4(%arg0: i32) -> (i32, i32) {
    %c0_i32 = arith.constant 0 : i32
    %c0_i32_0 = arith.constant 0 : i32
    %c0_i32_1 = arith.constant 0 : i32
    return %c0_i32, %c0_i32_0 : i32, i32
  }
  func.func @transform_5(%arg0: i32) -> (i32, i32) {
    %c0_i32 = arith.constant 0 : i32
    %c0_i32_0 = arith.constant 0 : i32
    %c0_i32_1 = arith.constant 0 : i32
    return %c0_i32, %c0_i32_0 : i32, i32
  }
  func.func @transform_6(%arg0: i32) -> (i32, i32) {
    %c0_i32 = arith.constant 0 : i32
    %c0_i32_0 = arith.constant 0 : i32
    %c0_i32_1 = arith.constant 0 : i32
    return %c0_i32, %c0_i32_0 : i32, i32
  }
  func.func @transform_7(%arg0: i32) -> (i32, i32) {
    %c0_i32 = arith.constant 0 : i32
    %c0_i32_0 = arith.constant 0 : i32
    return %arg0, %c0_i32 : i32, i32
  }
}

</mosaic_0001>

<bundles_post_ra>
// kernel: qnet_forward.4
= control target key start
LH: loop header
LB: loop body
LE: loop exit
PB: predicated region body
PF: predicated region fallthrough
CT: control target
= control target key end

     0   :  { %s4259_s12 = smov 0   ;;  %s5155_s0 = inlined_call_operand.vmem [shape: bf16[2,441,64], index: 0, kind: input, shape index: {}]   ;;  %s5156_s1 = inlined_call_operand.vmem [shape: bf16[256,32], index: 1, kind: input, shape index: {}]   ;;  %s5157_s2 = inlined_call_operand.vmem [shape: f32[1,32], index: 2, kind: input, shape index: {}]   ;;  %s5158_s3 = inlined_call_operand.vmem [shape: bf16[2,419,32], index: 3, kind: output, shape index: {}]  }
   0x1 LB: > { %s3210_s13 = sadd.s32 4294967295, %s4235_s12   ;;  %p3214_p0 = scmp.ge.s32.totalorder %s4235_s12, 1  ;;  %s4235_s12 = sphi %s4259_s12, %s13_s12  }
   0x2   : > { %p137_p1 = scmp.lt.s32.totalorder %s4235_s12, 3 }
   0x4   : > { %p138_p2 = pnand %p3214_p0, %p137_p1 }
   0x6   : > { %141 = sbr.rel (%p138_p2) target bundleno = 678 (0x2a6), region = 32 }
   0xd   : > { %v4131_v0 = vld [vmem:[%s5156_s1 + $0x20] sm:$0xff]   ;;  %v5159_v1 = vmov 0.0   ;;  %v4133_v3 = vld [vmem:[%s5156_s1 + $0x28] sm:$0xff]   ;;  %vm4238_vm0 = vmmov 0   ;;  %p161_p3 = scmp.lt.s32.totalorder %s3210_s13, 1  ;;  %v4135_v5 = vld [vmem:[%s5156_s1 + $0x30] sm:$0xff]  }
   0xe   : > { %3655 = vmatprep.subr.bf16.mxu0 %v5159_v1  ;;  %3771 = vmatprep.subr.bf16.mxu1 %v5159_v1  ;;  %v4132_v2 = vld [vmem:[%s5156_s1] sm:$0xff]   ;;  %v4134_v4 = vld [vmem:[%s5156_s1 + $0x8] sm:$0xff]   ;;  %v4136_v6 = vld [vmem:[%s5156_s1 + $0x10] sm:$0xff]   ;;  %vm375_vm1 = vsmask.f32 7424  ;;  %vm615_vm2 = vcmask 523264  }
   0xf   : > { %3656 = vmatpush3.bf16.msra.mxu0 %v4131_v0  ;;  %3663 = vmatprep.mubr.msk.bf16.mxu0 %vm4238_vm0, %v5159_v1  ;;  %s5179_s13 = smov (!%p161_p3, %s3210_s13), 1  ;;  %v4137_v7 = vld [vmem:[%s5156_s1 + $0x38] sm:$0xff]   ;;  %v4141_v17 = vld [vmem:[%s5156_s1 + $0x40] sm:$0xff]   ;;  %v4149_v26 = vld [vmem:[%s5156_s1 + $0x48] sm:$0xff]   ;;  %vm2311_vm3 = vcmask 1044480   ;;  %vm3096_vm5 = vcmask 257024  }
  0x10   : > { %3772 = vmatpush3.bf16.msra.mxu1 %v4132_v2  ;;  %3657 = vmatprep.subr.bf16.mxu0 %v5159_v1  ;;  %s4119_s24 = smul.u32 224, %s5179_s13  ;;  %v4138_v8 = vld [vmem:[%s5156_s1 + $0x18] sm:$0xff]   ;;  %v4142_v18 = vld [vmem:[%s5156_s1 + $0x60] sm:$0xff]   ;;  %v4151_v27 = vld [vmem:[%s5156_s1 + $0x68] sm:$0xff]   ;;  %vm1465_vm4 = vsmask.f32 5376 }
  0x11   : > { %3773 = vmatprep.subr.bf16.mxu1 %v5159_v1  ;;  %3779 = vmatprep.mubr.msk.bf16.mxu1 %vm4238_vm0, %v5159_v1  ;;  %v4158_v37 = vld [vmem:[%s5156_s1 + $0x50] sm:$0xff]   ;;  %v4167_v51 = vld [vmem:[%s5156_s1 + $0x58] sm:$0xff]   ;;  %s4120_s27 = smul.u32 212, %s5179_s13  ;;  %vm3149_vm6 = vcmask 254976   ;;  %vm3150_vm7 = vsmask.f32 1280 }
  0x12   : > { %s4304_s4 = scalar_lea.vmem %s5155_s0, %s4119_s24  ;;  %v4159_v38 = vld [vmem:[%s5156_s1 + $0x70] sm:$0xff]   ;;  %v4168_v52 = vld [vmem:[%s5156_s1 + $0x78] sm:$0xff]   ;;  %vm3151_vm8 = vmand %vm3149_vm6, %vm3150_vm7 }
  0x13   : > { %3658 = vmatpush3.bf16.msra.mxu0 %v4133_v3  ;;  %v4139_v9 = vld [vmem:[%s4304_s4] sm:$0xff]   ;;  %v4140_v10 = vld [vmem:[%s4304_s4 + $0x8] sm:$0xff]   ;;  %v4143_v14 = vld [vmem:[%s4304_s4 + $0x10] sm:$0xff]   ;;  %s4941_s30 = scalar_lea.vmem %s5158_s3, %s4120_s27 }
  0x14   : > { %3774 = vmatpush3.bf16.msra.mxu1 %v4134_v4  ;;  %3659 = vmatprep.subr.bf16.mxu0 %v5159_v1  ;;  %v377_v11 = vshrl.u32 %v4139_v9, 16  ;;  %v379_v12 = vshll.u32 %v4139_v9, 16  ;;  %v384_v13 = vshll.u32 %v4140_v10, 16  ;;  %v388_v20 = vshrl.u32 %v4140_v10, 16  ;;  %v4144_v25 = vld [vmem:[%s4304_s4 + $0x18] sm:$0xff]   ;;  %v4145_v31 = vld [vmem:[%s4304_s4 + $0x20] sm:$0xff]  }
  0x15   : > { %3775 = vmatprep.subr.bf16.mxu1 %v5159_v1  ;;  %v392_v21 = vshll.u32 %v4143_v14, 16  ;;  %v396_v29 = vshrl.u32 %v4143_v14, 16  ;;  %v400_v30 = vshll.u32 %v4144_v25, 16  ;;  %v408_v34 = vshll.u32 %v4145_v31, 16  ;;  %v4146_v40 = vld [vmem:[%s4304_s4 + $0x28] sm:$0xff]   ;;  %v4147_v47 = vld [vmem:[%s4304_s4 + $0x30] sm:$0xff]  }
  0x16   : > { %v381_v15 = vrot.slane %v379_v12, 1  ;;  %v386_v16 = vrot.slane %v384_v13, 1  ;;  %v404_v36 = vshrl.u32 %v4144_v25, 16  ;;  %v412_v43 = vshrl.u32 %v4145_v31, 16  ;;  %v4148_v55 = vld [vmem:[%s4304_s4 + $0x38] sm:$0xff]   ;;  %v4150_v61 = vld [vmem:[%s4304_s4 + $0x40] sm:$0xff]  }
  0x17   : > { %3660 = vmatpush3.bf16.msra.mxu0 %v4135_v5  ;;  %v394_v24 = vrot.slane %v392_v21, 1  ;;  %v402_v33 = vrot.slane %v400_v30, 1  ;;  %v410_v39 = vrot.slane %v408_v34, 1  ;;  %v416_v44 = vshll.u32 %v4146_v40, 16  ;;  %v4152_v4 = vld [vmem:[%s4304_s4 + $0x48] sm:$0xff]   ;;  %v4157_v34 = vld [vmem:[%s4304_s4 + $0x70] sm:$0xff]  }
  0x18   : > { %3776 = vmatpush3.bf16.msra.mxu1 %v4136_v6  ;;  %3661 = vmatprep.subr.bf16.mxu0 %v5159_v1  ;;  %v382_v19 = vor.u32 %v381_v15, %v377_v11  ;;  %v390_v23 = vor.u32 %v388_v20, %v386_v16  ;;  %v420_v49 = vshrl.u32 %v4146_v40, 16  ;;  %v424_v50 = vshll.u32 %v4147_v47, 16 }
  0x19   : > { %3777 = vmatprep.subr.bf16.mxu1 %v5159_v1  ;;  %v398_v32 = vor.u32 %v396_v29, %v394_v24  ;;  %v406_v41 = vor.u32 %v404_v36, %v402_v33  ;;  %v414_v45 = vor.u32 %v412_v43, %v410_v39  ;;  %v418_v46 = vrot.slane %v416_v44, 1 }
  0x1a   : > { %v387_v22 = vsel %vm375_vm1, %v382_v19, %v386_v16  ;;  %v395_v28 = vsel %vm375_vm1, %v390_v23, %v394_v24  ;;  %v426_v54 = vrot.slane %v424_v50, 1  ;;  %v428_v57 = vshrl.u32 %v4147_v47, 16  ;;  %v4154_v16 = vld [vmem:[%s4304_s4 + $0x58] sm:$0xff]  }
  0x1b   : > { %3662 = vmatpush3.bf16.msra.mxu0 %v4137_v7  ;;  %v403_v35 = vsel %vm375_vm1, %v398_v32, %v402_v33  ;;  %v411_v42 = vsel %vm375_vm1, %v406_v41, %v410_v39  ;;  %v419_v48 = vsel %vm375_vm1, %v414_v45, %v418_v46  ;;  %v422_v53 = vor.u32 %v420_v49, %v418_v46  ;;  %v4161_v46 = vld [vmem:[%s4304_s4 + $0x80] sm:$0xff]  }
  0x1c   : > { %3778 = vmatpush3.bf16.msra.mxu1 %v4138_v8  ;;  %3887 = vmatprep.subr.bf16.mxu0 %v5159_v1  ;;  %v432_v58 = vshll.u32 %v4148_v55, 16  ;;  %v430_v59 = vor.u32 %v428_v57, %v426_v54  ;;  %v436_v63 = vshrl.u32 %v4148_v55, 16  ;;  %v440_v0 = vshll.u32 %v4150_v61, 16 }
  0x1d   : > { %4003 = vmatprep.subr.bf16.mxu1 %v5159_v1  ;;  %v427_v56 = vsel %vm375_vm1, %v422_v53, %v426_v54  ;;  %v444_v6 = vshrl.u32 %v4150_v61, 16  ;;  %v448_v7 = vshll.u32 %v4152_v4, 16  ;;  %v452_v12 = vshrl.u32 %v4152_v4, 16 }
  0x1e   : > { %3664 = vmatmul.mubr.msk.bf16.vlgmr.msra.gmra.mrb[0].mxu0 %vm615_vm2, %v387_v22  ;;  %v434_v60 = vrot.slane %v432_v58, 1  ;;  %v442_v3 = vrot.slane %v440_v0, 1  ;;  %v464_v19 = vshll.u32 %v4154_v16, 16  ;;  %v4155_v22 = vld [vmem:[%s4304_s4 + $0x60] sm:$0xff]   ;;  %v468_v24 = vshrl.u32 %v4154_v16, 16  ;;  %v4163_v58 = vld [vmem:[%s4304_s4 + $0x90] sm:$0xff]  }
  0x1f   : > { %3780 = vmatmul.mubr.msk.bf16.vlgmr.msra.gmra.mrb[0].mxu1 %vm615_vm2, %v4139_v9  ;;  %3888 = vmatpush3.bf16.msra.mxu0 %v4141_v17  ;;  %v450_v9 = vrot.slane %v448_v7, 1  ;;  %v476_v30 = vshrl.u32 %v4155_v22, 16  ;;  %v504_v49 = vshll.u32 %v4161_v46, 16  ;;  %v508_v54 = vshrl.u32 %v4161_v46, 16  ;;  %v4164_v0 = vld [vmem:[%s4304_s4 + $0x98] sm:$0xff]   ;;  %v4165_v7 = vld [vmem:[%s4304_s4 + $0xa0] sm:$0xff]  }
  0x20   : > { %4004 = vmatpush3.bf16.msra.mxu1 %v4142_v18  ;;  %3667 = vmatprep.mubr.msk.bf16.mxu0 %vm4238_vm0, %v5159_v1  ;;  %v435_v62 = vsel %vm375_vm1, %v430_v59, %v434_v60  ;;  %v438_v2 = vor.u32 %v436_v63, %v434_v60  ;;  %v446_v8 = vor.u32 %v444_v6, %v442_v3  ;;  %v466_v21 = vrot.slane %v464_v19, 1  ;;  %v4169_v19 = vld [vmem:[%s4304_s4 + $0xb0] sm:$0xff]  }
  0x21   : > { %3783 = vmatprep.mubr.msk.bf16.mxu1 %vm4238_vm0, %v5159_v1  ;;  %3889 = vmatprep.subr.bf16.mxu0 %v5159_v1 }
  0x22   : > { %4005 = vmatprep.subr.bf16.mxu1 %v5159_v1  ;;  %v443_v5 = vsel %vm375_vm1, %v438_v2, %v442_v3  ;;  %v451_v11 = vsel %vm375_vm1, %v446_v8, %v450_v9  ;;  %v524_v3 = vshrl.u32 %v4163_v58, 16 }
  0x23   : > { %3890 = vmatpush3.bf16.msra.mxu0 %v4149_v26  ;;  %v470_v26 = vor.u32 %v468_v24, %v466_v21 }
  0x24   : > { %4006 = vmatpush3.bf16.msra.mxu1 %v4151_v27  ;;  %3891 = vmatprep.subr.bf16.mxu0 %v5159_v1 }
  0x25   : > { %4007 = vmatprep.subr.bf16.mxu1 %v5159_v1 }
  0x26   : > { %3668 = vmatmul.mubr.msk.bf16.gmra.mrb[4].mxu0 %vm615_vm2, %v395_v28  ;;  %v4156_v28 = vld [vmem:[%s4304_s4 + $0x68] sm:$0xff]  }
  0x27   : > { %3784 = vmatmul.mubr.msk.bf16.gmra.mrb[4].mxu1 %vm615_vm2, %v4140_v10  ;;  %3671 = vmatprep.mubr.msk.bf16.mxu0 %vm4238_vm0, %v5159_v1  ;;  %v4153_v10 = vld [vmem:[%s4304_s4 + $0x50] sm:$0xff]   ;;  %v484_v36 = vshrl.u32 %v4156_v28, 16 }
  0x28   : > { %3787 = vmatprep.mubr.msk.bf16.mxu1 %vm4238_vm0, %v5159_v1  ;;  %3892 = vmatpush3.bf16.msra.mxu0 %v4158_v37  ;;  %v456_v13 = vshll.u32 %v4153_v10, 16  ;;  %v460_v18 = vshrl.u32 %v4153_v10, 16  ;;  %v488_v37 = vshll.u32 %v4157_v34, 16 }
  0x29   : > { %4008 = vmatpush3.bf16.msra.mxu1 %v4159_v38  ;;  %3893 = vmatprep.subr.bf16.mxu0 %v5159_v1 }
  0x2a   : > { %4009 = vmatprep.subr.bf16.mxu1 %v5159_v1  ;;  %v458_v15 = vrot.slane %v456_v13, 1  ;;  %v490_v39 = vrot.slane %v488_v37, 1  ;;  %v4166_v13 = vld [vmem:[%s4304_s4 + $0xa8] sm:$0xff]  }
  0x2b   : > { %v4172_v37 = vld [vmem:[%s4304_s4 + $0xc8] sm:$0xff]  }
  0x2c   : > { %3894 = vmatpush3.bf16.msra.mxu0 %v4167_v51  ;;  %v462_v20 = vor.u32 %v460_v18, %v458_v15  ;;  %v506_v51 = vrot.slane %v504_v49, 1  ;;  %v4174_v49 = vld [vmem:[%s4304_s4 + $0x8] sm:$0xfc]  }
  0x2d   : > { %4010 = vmatpush3.bf16.msra.mxu1 %v4168_v52  ;;  %v4162_v52 = vld [vmem:[%s4304_s4 + $0x88] sm:$0xff]  }
  0x2e   : > { %3672 = vmatmul.mubr.msk.bf16.gmra.mrb[8].mxu0 %vm615_vm2, %v403_v35  ;;  %v467_v23 = vsel %vm375_vm1, %v462_v20, %v466_v21  ;;  %v516_v60 = vshrl.u32 %v4162_v52, 16  ;;  %v548_v21 = vshrl.u32 %v4166_v13, 16 }
  0x2f   : > { %3788 = vmatmul.mubr.msk.bf16.gmra.mrb[8].mxu1 %vm615_vm2, %v4143_v14  ;;  %3675 = vmatprep.mubr.msk.bf16.mxu0 %vm4238_vm0, %v5159_v1  ;;  %v454_v14 = vor.u32 %v452_v12, %v450_v9  ;;  %v532_v9 = vshrl.u32 %v4164_v0, 16 }
  0x30   : > { %3791 = vmatprep.mubr.msk.bf16.mxu1 %vm4238_vm0, %v5159_v1 }
  0x31   : > { %v459_v17 = vsel %vm375_vm1, %v454_v14, %v458_v15  ;;  %v540_v15 = vshrl.u32 %v4165_v7, 16 }
  0x36   : > { %3676 = vmatmul.mubr.msk.bf16.gmra.mrb[12].mxu0 %vm615_vm2, %v411_v42  ;;  %v492_v42 = vshrl.u32 %v4157_v34, 16 }
  0x37   : > { %3792 = vmatmul.mubr.msk.bf16.gmra.mrb[12].mxu1 %vm615_vm2, %v4144_v25  ;;  %3679 = vmatprep.mubr.msk.bf16.mxu0 %vm4238_vm0, %v5159_v1  ;;  %v472_v25 = vshll.u32 %v4155_v22, 16 }
  0x38   : > { %3795 = vmatprep.mubr.msk.bf16.mxu1 %vm4238_vm0, %v5159_v1  ;;  %v494_v44 = vor.u32 %v492_v42, %v490_v39 }
  0x39   : > { %v474_v27 = vrot.slane %v472_v25, 1  ;;  %v4170_v25 = vld [vmem:[%s4304_s4 + $0xb8] sm:$0xff]  }
  0x3b   : > { %v475_v29 = vsel %vm375_vm1, %v470_v26, %v474_v27  ;;  %v478_v32 = vor.u32 %v476_v30, %v474_v27  ;;  %v556_v27 = vshrl.u32 %v4169_v19, 16 }
  0x3e   : > { %3680 = vmatmul.mubr.msk.bf16.gmra.mrb[16].mxu0 %vm615_vm2, %v419_v48 }
  0x3f   : > { %3796 = vmatmul.mubr.msk.bf16.gmra.mrb[16].mxu1 %vm615_vm2, %v4145_v31  ;;  %3683 = vmatprep.mubr.msk.bf16.mxu0 %vm4238_vm0, %v5159_v1  ;;  %v480_v31 = vshll.u32 %v4156_v28, 16 }
  0x40   : > { %3799 = vmatprep.mubr.msk.bf16.mxu1 %vm4238_vm0, %v5159_v1 }
  0x41   : > { %v482_v33 = vrot.slane %v480_v31, 1  ;;  %v4171_v31 = vld [vmem:[%s4304_s4 + $0xc0] sm:$0xff]  }
  0x43   : > { %v483_v35 = vsel %vm375_vm1, %v478_v32, %v482_v33  ;;  %v486_v38 = vor.u32 %v484_v36, %v482_v33  ;;  %v564_v33 = vshrl.u32 %v4170_v25, 16 }
  0x45   : > { %v491_v41 = vsel %vm375_vm1, %v486_v38, %v490_v39  ;;  %v572_v39 = vshrl.u32 %v4171_v31, 16 }
  0x46   : > { %3684 = vmatmul.mubr.msk.bf16.gmra.mrb[20].mxu0 %vm615_vm2, %v427_v56  ;;  %v510_v56 = vor.u32 %v508_v54, %v506_v51  ;;  %v1470_v54 = vshll.u32 %v4174_v49, 16 }
  0x47   : > { %3800 = vmatmul.mubr.msk.bf16.gmra.mrb[20].mxu1 %vm615_vm2, %v4146_v40  ;;  %3687 = vmatprep.mubr.msk.bf16.mxu0 %vm4238_vm0, %v5159_v1  ;;  %v4160_v40 = vld [vmem:[%s4304_s4 + $0x78] sm:$0xff]  }
  0x48   : > { %3803 = vmatprep.mubr.msk.bf16.mxu1 %vm4238_vm0, %v5159_v1  ;;  %v496_v43 = vshll.u32 %v4160_v40, 16  ;;  %v500_v48 = vshrl.u32 %v4160_v40, 16 }
  0x4a   : > { %v498_v45 = vrot.slane %v496_v43, 1  ;;  %v4173_v43 = vld [vmem:[%s4304_s4 + $0xd0] ss:$0 sps:$4 sm:$0x33]  }
  0x4c   : > { %v502_v50 = vor.u32 %v500_v48, %v498_v45 }
  0x4e   : > { %3688 = vmatmul.mubr.msk.bf16.gmra.mrb[24].mxu0 %vm615_vm2, %v435_v62  ;;  %v507_v53 = vsel %vm375_vm1, %v502_v50, %v506_v51  ;;  %v4175_v51 = vld [vmem:[%s4304_s4 + $0x10] sm:$0xff]  }
  0x4f   : > { %3804 = vmatmul.mubr.msk.bf16.gmra.mrb[24].mxu1 %vm615_vm2, %v4147_v47  ;;  %3691 = vmatprep.mubr.msk.bf16.mxu0 %vm4238_vm0, %v5159_v1  ;;  %v499_v47 = vsel %vm375_vm1, %v494_v44, %v498_v45  ;;  %v580_v45 = vshrl.u32 %v4172_v37, 16 }
  0x50   : > { %3807 = vmatprep.mubr.msk.bf16.mxu1 %vm4238_vm0, %v5159_v1 }
  0x56   : > { %3692 = vmatmul.mubr.msk.bf16.gmra.mrb[28].mxu0 %vm615_vm2, %v443_v5 }
  0x57   : > { %3808 = vmatmul.mubr.msk.bf16.gmra.mrb[28].mxu1 %vm615_vm2, %v4148_v55  ;;  %3695 = vmatprep.mubr.msk.bf16.mxu0 %vm4238_vm0, %v5159_v1  ;;  %v512_v55 = vshll.u32 %v4162_v52, 16 }
  0x58   : > { %3811 = vmatprep.mubr.msk.bf16.mxu1 %vm4238_vm0, %v5159_v1 }
  0x59   : > { %v514_v57 = vrot.slane %v512_v55, 1  ;;  %v1475_v55 = vshrl.u32 %v4175_v51, 16 }
  0x5b   : > { %v515_v59 = vsel %vm375_vm1, %v510_v56, %v514_v57  ;;  %v518_v62 = vor.u32 %v516_v60, %v514_v57  ;;  %v1478_v56 = vshll.u32 %v4175_v51, 16  ;;  %v4176_v60 = vld [vmem:[%s4304_s4 + $0x8] sm:$0xf8]  }
  0x5e   : > { %3696 = vmatmul.mubr.msk.bf16.gmra.mrb[32].mxu0 %vm615_vm2, %v451_v11 }
  0x5f   : > { %3812 = vmatmul.mubr.msk.bf16.gmra.mrb[32].mxu1 %vm615_vm2, %v4150_v61  ;;  %3699 = vmatprep.mubr.msk.bf16.mxu0 %vm4238_vm0, %v5159_v1  ;;  %v520_v61 = vshll.u32 %v4163_v58, 16 }
  0x60   : > { %3815 = vmatprep.mubr.msk.bf16.mxu1 %vm4238_vm0, %v5159_v1 }
  0x61   : > { %v522_v63 = vrot.slane %v520_v61, 1  ;;  %v4177_v61 = vld [vmem:[%s4304_s4 + $0x10] sm:$0xff]  }
  0x63   : > { %v523_v2 = vsel %vm375_vm1, %v518_v62, %v522_v63  ;;  %v526_v5 = vor.u32 %v524_v3, %v522_v63  ;;  %v1477_v62 = vrot.slane %v1475_v55, 2  ;;  %v1480_v63 = vrot.slane %v1478_v56, 3  ;;  %v4183_v55 = vld [vmem:[%s4304_s4 + $0x28] sm:$0xff]  }
  0x64   : > { %v2312_v3 = vrot.slane %v4176_v60, 3 }
  0x66   : > { %3700 = vmatmul.mubr.msk.bf16.gmra.mrb[36].mxu0 %vm615_vm2, %v459_v17 }
  0x67   : > { %3816 = vmatmul.mubr.msk.bf16.gmra.mrb[36].mxu1 %vm615_vm2, %v4152_v4  ;;  %3703 = vmatprep.mubr.msk.bf16.mxu0 %vm4238_vm0, %v5159_v1  ;;  %v528_v4 = vshll.u32 %v4164_v0, 16 }
  0x68   : > { %3819 = vmatprep.mubr.msk.bf16.mxu1 %vm4238_vm0, %v5159_v1 }
  0x69   : > { %v530_v6 = vrot.slane %v528_v4, 1  ;;  %v2313_v4 = vrot.slane %v4177_v61, 3  ;;  %v4184_v61 = vld [vmem:[%s4304_s4 + $0x30] sm:$0xff]  }
  0x6b   : > { %v531_v8 = vsel %vm375_vm1, %v526_v5, %v530_v6  ;;  %v534_v11 = vor.u32 %v532_v9, %v530_v6  ;;  %v1481_v5 = vor.u32 %v1480_v63, %v1477_v62 }
  0x6e   : > { %3704 = vmatmul.mubr.msk.bf16.gmra.mrb[40].mxu0 %vm615_vm2, %v467_v23 }
  0x6f   : > { %3820 = vmatmul.mubr.msk.bf16.gmra.mrb[40].mxu1 %vm615_vm2, %v4153_v10  ;;  %3707 = vmatprep.mubr.msk.bf16.mxu0 %vm4238_vm0, %v5159_v1  ;;  %v536_v10 = vshll.u32 %v4165_v7, 16 }
  0x70   : > { %3823 = vmatprep.mubr.msk.bf16.mxu1 %vm4238_vm0, %v5159_v1 }
  0x71   : > { %v538_v12 = vrot.slane %v536_v10, 1 }
  0x73   : > { %v539_v14 = vsel %vm375_vm1, %v534_v11, %v538_v12  ;;  %v542_v17 = vor.u32 %v540_v15, %v538_v12  ;;  %v4179_v15 = vld [vmem:[%s4304_s4 + $0x18] sm:$0xff]  }
  0x76   : > { %3708 = vmatmul.mubr.msk.bf16.gmra.mrb[44].mxu0 %vm615_vm2, %v475_v29 }
  0x77   : > { %3824 = vmatmul.mubr.msk.bf16.gmra.mrb[44].mxu1 %vm615_vm2, %v4154_v16  ;;  %3711 = vmatprep.mubr.msk.bf16.mxu0 %vm4238_vm0, %v5159_v1  ;;  %v544_v16 = vshll.u32 %v4166_v13, 16 }
  0x78   : > { %3827 = vmatprep.mubr.msk.bf16.mxu1 %vm4238_vm0, %v5159_v1 }
  0x79   : > { %v546_v18 = vrot.slane %v544_v16, 1 }
  0x7b   : > { %v547_v20 = vsel %vm375_vm1, %v542_v17, %v546_v18  ;;  %v550_v23 = vor.u32 %v548_v21, %v546_v18  ;;  %v4180_v21 = vld [vmem:[%s4304_s4 + $0x20] sm:$0xff]  }
  0x7e   : > { %3712 = vmatmul.mubr.msk.bf16.gmra.mrb[48].mxu0 %vm615_vm2, %v483_v35 }
  0x7f   : > { %3828 = vmatmul.mubr.msk.bf16.gmra.mrb[48].mxu1 %vm615_vm2, %v4155_v22  ;;  %3715 = vmatprep.mubr.msk.bf16.mxu0 %vm4238_vm0, %v5159_v1  ;;  %v552_v22 = vshll.u32 %v4169_v19, 16 }
  0x80   : > { %3831 = vmatprep.mubr.msk.bf16.mxu1 %vm4238_vm0, %v5159_v1 }
  0x81   : > { %v554_v24 = vrot.slane %v552_v22, 1 }
  0x83   : > { %v555_v26 = vsel %vm375_vm1, %v550_v23, %v554_v24  ;;  %v558_v29 = vor.u32 %v556_v27, %v554_v24  ;;  %v2315_v24 = vrot.slane %v4179_v15, 3  ;;  %v1496_v27 = vshll.u32 %v4180_v21, 16 }
  0x86   : > { %3716 = vmatmul.mubr.msk.bf16.gmra.mrb[52].mxu0 %vm615_vm2, %v491_v41 }
  0x87   : > { %3832 = vmatmul.mubr.msk.bf16.gmra.mrb[52].mxu1 %vm615_vm2, %v4156_v28  ;;  %3719 = vmatprep.mubr.msk.bf16.mxu0 %vm4238_vm0, %v5159_v1  ;;  %v560_v28 = vshll.u32 %v4170_v25, 16 }
  0x88   : > { %3835 = vmatprep.mubr.msk.bf16.mxu1 %vm4238_vm0, %v5159_v1 }
  0x89   : > { %v562_v30 = vrot.slane %v560_v28, 1 }
  0x8b   : > { %v563_v32 = vsel %vm375_vm1, %v558_v29, %v562_v30  ;;  %v566_v35 = vor.u32 %v564_v33, %v562_v30 }
  0x8e   : > { %3720 = vmatmul.mubr.msk.bf16.gmra.mrb[56].mxu0 %vm615_vm2, %v499_v47 }
  0x8f   : > { %3836 = vmatmul.mubr.msk.bf16.gmra.mrb[56].mxu1 %vm615_vm2, %v4157_v34  ;;  %3723 = vmatprep.mubr.msk.bf16.mxu0 %vm4238_vm0, %v5159_v1  ;;  %v568_v34 = vshll.u32 %v4171_v31, 16 }
  0x90   : > { %3839 = vmatprep.mubr.msk.bf16.mxu1 %vm4238_vm0, %v5159_v1 }
  0x91   : > { %v570_v36 = vrot.slane %v568_v34, 1  ;;  %v2316_v34 = vsel %vm2311_vm3, %v2313_v4, %v2315_v24 }
  0x93   : > { %v571_v38 = vsel %vm375_vm1, %v566_v35, %v570_v36  ;;  %v574_v41 = vor.u32 %v572_v39, %v570_v36  ;;  %v4181_v35 = vld [vmem:[%s4304_s4 + $0x20] sm:$0xff]  }
  0x96   : > { %3724 = vmatmul.mubr.msk.bf16.gmra.mrb[60].mxu0 %vm615_vm2, %v507_v53  ;;  %v1467_v53 = vshrl.u32 %v4174_v49, 16 }
  0x97   : > { %3840 = vmatmul.mubr.msk.bf16.gmra.mrb[60].mxu1 %vm615_vm2, %v4160_v40  ;;  %3727 = vmatprep.mubr.msk.bf16.mxu0 %vm4238_vm0, %v5159_v1  ;;  %v576_v40 = vshll.u32 %v4172_v37, 16 }
  0x98   : > { %3843 = vmatprep.mubr.msk.bf16.mxu1 %vm4238_vm0, %v5159_v1 }
  0x99   : > { %v578_v42 = vrot.slane %v576_v40, 1  ;;  %v1498_v40 = vrot.slane %v1496_v27, 3 }
  0x9b   : > { %v579_v44 = vsel %vm375_vm1, %v574_v41, %v578_v42  ;;  %v582_v47 = vor.u32 %v580_v45, %v578_v42  ;;  %v4182_v41 = vld [vmem:[%s4304_s4 + $0x28] sm:$0xff]  }
  0x9e   : > { %3728 = vmatmul.mubr.msk.bf16.gmra.mrb[64].mxu0 %vm615_vm2, %v515_v59  ;;  %v1472_v59 = vrot.slane %v1470_v54, 3 }
  0x9f   : > { %3844 = vmatmul.mubr.msk.bf16.gmra.mrb[64].mxu1 %vm615_vm2, %v4161_v46  ;;  %3731 = vmatprep.mubr.msk.bf16.mxu0 %vm4238_vm0, %v5159_v1  ;;  %v584_v46 = vshll.u32 %v4173_v43, 16 }
  0xa0   : > { %3847 = vmatprep.mubr.msk.bf16.mxu1 %vm4238_vm0, %v5159_v1 }
  0xa1   : > { %v586_v48 = vrot.slane %v584_v46, 1  ;;  %v1502_v46 = vshrl.u32 %v4182_v41, 16 }
  0xa3   : > { %v587_v50 = vsel %vm375_vm1, %v582_v47, %v586_v48  ;;  %v1505_v47 = vshll.u32 %v4182_v41, 16  ;;  %v4188_v41 = vld [vmem:[%s4304_s4 + $0x40] sm:$0xff]  }
  0xa5   : > { %v1507_v60 = vrot.slane %v1505_v47, 3  ;;  %v1529_v47 = vshrl.u32 %v4188_v41, 16 }
  0xa6   : > { %3732 = vmatmul.mubr.msk.bf16.gmra.mrb[68].mxu0 %vm615_vm2, %v523_v2 }
  0xa7   : > { %3848 = vmatmul.mubr.msk.bf16.gmra.mrb[68].mxu1 %vm615_vm2, %v4162_v52  ;;  %3735 = vmatprep.mubr.msk.bf16.mxu0 %vm4238_vm0, %v5159_v1  ;;  %v588_v52 = vshrl.u32 %v4173_v43, 16 }
  0xa8   : > { %3851 = vmatprep.mubr.msk.bf16.mxu1 %vm4238_vm0, %v5159_v1 }
  0xa9   : > { %v590_v57 = vor.u32 %v588_v52, %v586_v48 }
  0xae   : > { %3736 = vmatmul.mubr.msk.bf16.gmra.mrb[72].mxu0 %vm615_vm2, %v531_v8 }
  0xaf   : > { %3852 = vmatmul.mubr.msk.bf16.gmra.mrb[72].mxu1 %vm615_vm2, %v4163_v58  ;;  %3739 = vmatprep.mubr.msk.bf16.mxu0 %vm4238_vm0, %v5159_v1  ;;  %v1469_v58 = vrot.slane %v1467_v53, 2 }
  0xb0   : > { %3855 = vmatprep.mubr.msk.bf16.mxu1 %vm4238_vm0, %v5159_v1 }
  0xb1   : > { %v1473_v2 = vor.u32 %v1472_v59, %v1469_v58  ;;  %v1504_v59 = vrot.slane %v1502_v46, 2 }
  0xb3   : > { %v1482_v18 = vsel %vm1465_vm4, %v1473_v2, %v1481_v5  ;;  %v1508_v2 = vor.u32 %v1507_v60, %v1504_v59 }
  0xb6   : > { %3740 = vmatmul.mubr.msk.bf16.gmra.mrb[76].mxu0 %vm615_vm2, %v539_v14  ;;  %v2314_v14 = vsel %vm2311_vm3, %v2312_v3, %v2313_v4  ;;  %v1511_v3 = vshrl.u32 %v4184_v61, 16  ;;  %v1514_v4 = vshll.u32 %v4184_v61, 16  ;;  %v1531_v61 = vrot.slane %v1529_v47, 2 }
  0xb7   : > { %3856 = vmatmul.mubr.msk.bf16.gmra.mrb[76].mxu1 %vm615_vm2, %v4164_v0  ;;  %3743 = vmatprep.mubr.msk.bf16.mxu0 %vm4238_vm0, %v5159_v1  ;;  %v4178_v0 = vld [vmem:[%s4304_s4 + $0x18] sm:$0xff]  }
  0xb8   : > { %3859 = vmatprep.mubr.msk.bf16.mxu1 %vm4238_vm0, %v5159_v1  ;;  %v1484_v6 = vshrl.u32 %v4178_v0, 16 }
  0xbe   : > { %3744 = vmatmul.mubr.msk.bf16.gmra.mrb[80].mxu0 %vm615_vm2, %v547_v20 }
  0xbf   : > { %3860 = vmatmul.mubr.msk.bf16.gmra.mrb[80].mxu1 %vm615_vm2, %v4165_v7  ;;  %3747 = vmatprep.mubr.msk.bf16.mxu0 %vm4238_vm0, %v5159_v1  ;;  %v1487_v7 = vshll.u32 %v4178_v0, 16  ;;  %v2319_v0 = vrot.slane %v4183_v55, 3 }
  0xc0   : > { %3863 = vmatprep.mubr.msk.bf16.mxu1 %vm4238_vm0, %v5159_v1 }
  0xc1   : > { %v1489_v20 = vrot.slane %v1487_v7, 3 }
  0xc6   : > { %3748 = vmatmul.mubr.msk.bf16.gmra.mrb[84].mxu0 %vm615_vm2, %v555_v26  ;;  %v1493_v26 = vshrl.u32 %v4180_v21, 16 }
  0xc7   : > { %3864 = vmatmul.mubr.msk.bf16.gmra.mrb[84].mxu1 %vm615_vm2, %v4166_v13  ;;  %3751 = vmatprep.mubr.msk.bf16.mxu0 %vm4238_vm0, %v5159_v1 }
  0xc8   : > { %3867 = vmatprep.mubr.msk.bf16.mxu1 %vm4238_vm0, %v5159_v1  ;;  %v1495_v39 = vrot.slane %v1493_v26, 2 }
  0xca   : > { %v1499_v45 = vor.u32 %v1498_v40, %v1495_v39 }
  0xce   : > { %3752 = vmatmul.mubr.msk.bf16.gmra.mrb[88].mxu0 %vm615_vm2, %v563_v32 }
  0xcf   : > { %3868 = vmatmul.mubr.msk.bf16.gmra.mrb[88].mxu1 %vm615_vm2, %v4169_v19  ;;  %3755 = vmatprep.mubr.msk.bf16.mxu0 %vm4238_vm0, %v5159_v1  ;;  %v1486_v19 = vrot.slane %v1484_v6, 2 }
  0xd0   : > { %3871 = vmatprep.mubr.msk.bf16.mxu1 %vm4238_vm0, %v5159_v1 }
  0xd6   : > { %3756 = vmatmul.mubr.msk.bf16.gmra.mrb[92].mxu0 %vm615_vm2, %v571_v38 }
  0xd7   : > { %3872 = vmatmul.mubr.msk.bf16.gmra.mrb[92].mxu1 %vm615_vm2, %v4170_v25  ;;  %3759 = vmatprep.mubr.msk.bf16.mxu0 %vm4238_vm0, %v5159_v1  ;;  %v1490_v25 = vor.u32 %v1489_v20, %v1486_v19  ;;  %v4186_v19 = vld [vmem:[%s4304_s4 + $0x38] sm:$0xff]  }
  0xd8   : > { %3875 = vmatprep.mubr.msk.bf16.mxu1 %vm4238_vm0, %v5159_v1  ;;  %v1523_v26 = vshll.u32 %v4186_v19, 16 }
  0xd9   : > { %v1491_v38 = vsel %vm1465_vm4, %v1481_v5, %v1490_v25  ;;  %v1500_v58 = vsel %vm1465_vm4, %v1490_v25, %v1499_v45  ;;  %v1520_v25 = vshrl.u32 %v4186_v19, 16 }
  0xda   : > { %v1525_v40 = vrot.slane %v1523_v26, 3 }
  0xdb   : > { %v1522_v39 = vrot.slane %v1520_v25, 2  ;;  %v4192_v25 = vld [vmem:[%s4304_s4 + $0x50] sm:$0xff]  }
  0xdd   : > { %v1526_v46 = vor.u32 %v1525_v40, %v1522_v39 }
  0xde   : > { %3760 = vmatmul.mubr.msk.bf16.gmra.mrb[96].mxu0 %vm615_vm2, %v579_v44  ;;  %v2317_v44 = vrot.slane %v4181_v35, 3  ;;  %v4187_v35 = vld [vmem:[%s4304_s4 + $0x38] sm:$0xff]  }
  0xdf   : > { %3876 = vmatmul.mubr.msk.bf16.gmra.mrb[96].mxu1 %vm615_vm2, %v4171_v31  ;;  %3763 = vmatprep.mubr.msk.bf16.mxu0 %vm4238_vm0, %v5159_v1 }
  0xe0   : > { %3879 = vmatprep.mubr.msk.bf16.mxu1 %vm4238_vm0, %v5159_v1  ;;  %v2318_v54 = vsel %vm2311_vm3, %v2315_v24, %v2317_v44 }
  0xe6   : > { %3764 = vmatmul.mubr.msk.bf16.gmra.mrb[100].mxu0 %vm615_vm2, %v587_v50 }
  0xe7   : > { %3880 = vmatmul.mubr.msk.bf16.gmra.mrb[100].mxu1 %vm615_vm2, %v4172_v37  ;;  %3767 = vmatprep.mubr.msk.bf16.mxu0 %vm4238_vm0, %v5159_v1 }
  0xe8   : > { %3883 = vmatprep.mubr.msk.bf16.mxu1 %vm4238_vm0, %v5159_v1 }
  0xee   : > { %3768 = vmatmul.mubr.msk.bf16.gmra.mrb[104].mxu0 %vm615_vm2, %v590_v57 }
  0xef   : > { %3884 = vmatmul.mubr.msk.bf16.gmra.mrb[104].mxu1 %vm615_vm2, %v4173_v43  ;;  %3895 = vmatprep.mubr.msk.bf16.mxu0 %vm4238_vm0, %v5159_v1 }
  0xf0   : > { %4011 = vmatprep.mubr.msk.bf16.mxu1 %vm4238_vm0, %v5159_v1 }
  0xf1   : > { %v731_v9 = vpop.f32.mrb[0].mxu0 }
  0xf2   : > { %v1057_v8 = vpop.f32.mrb[0].mxu1  ;;  %v3665_v12 = vpop.f32.mrb[1].mxu0 }
  0xf3   : > { %v3781_v10 = vpop.f32.mrb[1].mxu1  ;;  %v4563_v11 = vadd.f32 %v1057_v8, %v731_v9  ;;  %v734_v16 = vpop.f32.mrb[2].mxu0  ;;  %v2320_v12 = vsel %vm2311_vm3, %v2317_v44, %v2319_v0 }
  0xf4   : > { %v1060_v13 = vpop.f32.mrb[2].mxu1  ;;  %v3666_v23 = vpop.f32.mrb[3].mxu0 }
  0xf5   : > { %v3782_v17 = vpop.f32.mrb[3].mxu1  ;;  %v4569_v22 = vadd.f32 %v1060_v13, %v734_v16  ;;  %v4185_v13 = vld [vmem:[%s4304_s4 + $0x30] sm:$0xff]   ;;  %v1509_v16 = vsel %vm1465_vm4, %v1499_v45, %v1508_v2  ;;  %v2323_v45 = vrot.slane %v4187_v35, 3 }
  0xf6   : > { %3896 = vmatmul.mubr.msk.bf16.vlgmr.msra.gmra.mrb[108].mxu0 %vm615_vm2, %v1482_v18  ;;  %v1513_v17 = vrot.slane %v1511_v3, 2  ;;  %v1516_v18 = vrot.slane %v1514_v4, 3  ;;  %v2321_v23 = vrot.slane %v4185_v13, 3 }
  0xf7   : > { %4012 = vmatmul.mubr.msk.bf16.vlgmr.msra.gmra.mrb[108].mxu1 %vm615_vm2, %v2314_v14  ;;  %3899 = vmatprep.mubr.msk.bf16.mxu0 %vm4238_vm0, %v5159_v1 }
  0xf8   : > { %4015 = vmatprep.mubr.msk.bf16.mxu1 %vm4238_vm0, %v5159_v1  ;;  %v1517_v24 = vor.u32 %v1516_v18, %v1513_v17  ;;  %v4191_v17 = vld [vmem:[%s4304_s4 + $0x48] sm:$0xff]  }
  0xf9   : > { %v739_v29 = vpop.f32.mrb[4].mxu0 }
  0xfa   : > { %v1065_v28 = vpop.f32.mrb[4].mxu1  ;;  %v3669_v32 = vpop.f32.mrb[5].mxu0  ;;  %v1527_v60 = vsel %vm1465_vm4, %v1517_v24, %v1526_v46 }
  0xfb   : > { %v3785_v30 = vpop.f32.mrb[5].mxu1  ;;  %v4577_v31 = vadd.f32 %v1065_v28, %v739_v29  ;;  %v742_v36 = vpop.f32.mrb[6].mxu0 }
  0xfc   : > { %v1068_v33 = vpop.f32.mrb[6].mxu1  ;;  %v3670_v43 = vpop.f32.mrb[7].mxu0 }
  0xfd   : > { %v3786_v37 = vpop.f32.mrb[7].mxu1  ;;  %v4583_v42 = vadd.f32 %v1068_v33, %v742_v36 }
  0xfe   : > { %3900 = vmatmul.mubr.msk.bf16.gmra.mrb[112].mxu0 %vm615_vm2, %v1491_v38  ;;  %v1518_v38 = vsel %vm1465_vm4, %v1508_v2, %v1517_v24 }
  0xff   : > { %4016 = vmatmul.mubr.msk.bf16.gmra.mrb[112].mxu1 %vm615_vm2, %v2316_v34  ;;  %3903 = vmatprep.mubr.msk.bf16.mxu0 %vm4238_vm0, %v5159_v1  ;;  %v2322_v34 = vsel %vm2311_vm3, %v2319_v0, %v2321_v23  ;;  %v4190_v0 = vld [vmem:[%s4304_s4 + $0x48] sm:$0xff]  }
 0x100   : > { %4019 = vmatprep.mubr.msk.bf16.mxu1 %vm4238_vm0, %v5159_v1 }
 0x101   : > { %v747_v49 = vpop.f32.mrb[8].mxu0 }
 0x102   : > { %v1073_v48 = vpop.f32.mrb[8].mxu1  ;;  %v3673_v52 = vpop.f32.mrb[9].mxu0 }
 0x103   : > { %v3789_v50 = vpop.f32.mrb[9].mxu1  ;;  %v4591_v51 = vadd.f32 %v1073_v48, %v747_v49  ;;  %v750_v56 = vpop.f32.mrb[10].mxu0  ;;  %v1532_v48 = vshll.u32 %v4188_v41, 16  ;;  %v4193_v41 = vld [vmem:[%s4304_s4 + $0x50] sm:$0xff]  }
 0x104   : > { %v1076_v53 = vpop.f32.mrb[10].mxu1  ;;  %v3674_v63 = vpop.f32.mrb[11].mxu0 }
 0x105   : > { %v3790_v57 = vpop.f32.mrb[11].mxu1  ;;  %v4597_v62 = vadd.f32 %v1076_v53, %v750_v56  ;;  %v2324_v56 = vsel %vm2311_vm3, %v2321_v23, %v2323_v45  ;;  %v1534_v63 = vrot.slane %v1532_v48, 3 }
 0x106   : > { %3904 = vmatmul.mubr.msk.bf16.gmra.mrb[116].mxu0 %vm615_vm2, %v1500_v58  ;;  %v4189_v57 = vld [vmem:[%s4304_s4 + $0x40] sm:$0xff]  }
 0x107   : > { %4020 = vmatmul.mubr.msk.bf16.gmra.mrb[116].mxu1 %vm615_vm2, %v2318_v54  ;;  %3907 = vmatprep.mubr.msk.bf16.mxu0 %vm4238_vm0, %v5159_v1  ;;  %v2325_v4 = vrot.slane %v4189_v57, 3 }
 0x108   : > { %4023 = vmatprep.mubr.msk.bf16.mxu1 %vm4238_vm0, %v5159_v1 }
 0x109   : > { %v755_v6 = vpop.f32.mrb[12].mxu0 }
 0x10a   : > { %v1081_v5 = vpop.f32.mrb[12].mxu1  ;;  %v3677_v9 = vpop.f32.mrb[13].mxu0 }
 0x10b   : > { %v3793_v7 = vpop.f32.mrb[13].mxu1  ;;  %v4605_v8 = vadd.f32 %v1081_v5, %v755_v6  ;;  %v758_v14 = vpop.f32.mrb[14].mxu0  ;;  %v1535_v5 = vor.u32 %v1534_v63, %v1531_v61  ;;  %v1538_v6 = vshrl.u32 %v4190_v0, 16 }
 0x10c   : > { %v1084_v10 = vpop.f32.mrb[14].mxu1  ;;  %v3678_v21 = vpop.f32.mrb[15].mxu0  ;;  %v1541_v7 = vshll.u32 %v4190_v0, 16 }
 0x10d   : > { %v3794_v15 = vpop.f32.mrb[15].mxu1  ;;  %v4611_v20 = vadd.f32 %v1084_v10, %v758_v14  ;;  %v1536_v21 = vsel %vm1465_vm4, %v1526_v46, %v1535_v5  ;;  %v1540_v23 = vrot.slane %v1538_v6, 2 }
 0x10e   : > { %3908 = vmatmul.mubr.msk.bf16.gmra.mrb[120].mxu0 %vm615_vm2, %v1509_v16  ;;  %v2326_v16 = vsel %vm2311_vm3, %v2323_v45, %v2325_v4  ;;  %v1543_v24 = vrot.slane %v1541_v7, 3 }
 0x10f   : > { %4024 = vmatmul.mubr.msk.bf16.gmra.mrb[120].mxu1 %vm615_vm2, %v2320_v12  ;;  %3911 = vmatprep.mubr.msk.bf16.mxu0 %vm4238_vm0, %v5159_v1 }
 0x110   : > { %4027 = vmatprep.mubr.msk.bf16.mxu1 %vm4238_vm0, %v5159_v1 }
 0x111   : > { %v763_v28 = vpop.f32.mrb[16].mxu0 }
 0x112   : > { %v1089_v27 = vpop.f32.mrb[16].mxu1  ;;  %v3681_v32 = vpop.f32.mrb[17].mxu0 }
 0x113   : > { %v3797_v29 = vpop.f32.mrb[17].mxu1  ;;  %v4619_v30 = vadd.f32 %v1089_v27, %v763_v28  ;;  %v766_v36 = vpop.f32.mrb[18].mxu0  ;;  %v2327_v28 = vrot.slane %v4191_v17, 3  ;;  %v1547_v32 = vshrl.u32 %v4192_v25, 16 }
 0x114   : > { %v1092_v33 = vpop.f32.mrb[18].mxu1  ;;  %v3682_v44 = vpop.f32.mrb[19].mxu0  ;;  %v1544_v29 = vor.u32 %v1543_v24, %v1540_v23 }
 0x115   : > { %v3798_v37 = vpop.f32.mrb[19].mxu1  ;;  %v4625_v43 = vadd.f32 %v1092_v33, %v766_v36  ;;  %v1550_v33 = vshll.u32 %v4192_v25, 16  ;;  %v2328_v40 = vsel %vm2311_vm3, %v2325_v4, %v2327_v28  ;;  %v1549_v47 = vrot.slane %v1547_v32, 2  ;;  %v4195_v4 = vld [vmem:[%s4304_s4 + $0x58] sm:$0xff]   ;;  %v4197_v32 = vld [vmem:[%s4304_s4 + $0x60] sm:$0xff]  }
 0x116   : > { %3912 = vmatmul.mubr.msk.bf16.gmra.mrb[124].mxu0 %vm615_vm2, %v1518_v38  ;;  %v1545_v46 = vsel %vm1465_vm4, %v1535_v5, %v1544_v29 }
 0x117   : > { %4028 = vmatmul.mubr.msk.bf16.gmra.mrb[124].mxu1 %vm615_vm2, %v2322_v34  ;;  %3915 = vmatprep.mubr.msk.bf16.mxu0 %vm4238_vm0, %v5159_v1  ;;  %v1552_v48 = vrot.slane %v1550_v33, 3 }
 0x118   : > { %4031 = vmatprep.mubr.msk.bf16.mxu1 %vm4238_vm0, %v5159_v1 }
 0x119   : > { %v771_v50 = vpop.f32.mrb[20].mxu0 }
 0x11a   : > { %v1097_v49 = vpop.f32.mrb[20].mxu1  ;;  %v3685_v54 = vpop.f32.mrb[21].mxu0 }
 0x11b   : > { %v3801_v52 = vpop.f32.mrb[21].mxu1  ;;  %v4633_v53 = vadd.f32 %v1097_v49, %v771_v50  ;;  %v774_v58 = vpop.f32.mrb[22].mxu0  ;;  %v4194_v49 = vld [vmem:[%s4304_s4 + $0x58] sm:$0xff]   ;;  %v2329_v54 = vrot.slane %v4193_v41, 3 }
 0x11c   : > { %v1100_v55 = vpop.f32.mrb[22].mxu1  ;;  %v3686_v3 = vpop.f32.mrb[23].mxu0  ;;  %v1559_v57 = vshll.u32 %v4194_v49, 16 }
 0x11d   : > { %v3802_v59 = vpop.f32.mrb[23].mxu1  ;;  %v4639_v2 = vadd.f32 %v1100_v55, %v774_v58  ;;  %v1553_v55 = vor.u32 %v1552_v48, %v1549_v47  ;;  %v2330_v3 = vsel %vm2311_vm3, %v2327_v28, %v2329_v54 }
 0x11e   : > { %3916 = vmatmul.mubr.msk.bf16.gmra.mrb[128].mxu0 %vm615_vm2, %v1527_v60 }
 0x11f   : > { %4032 = vmatmul.mubr.msk.bf16.gmra.mrb[128].mxu1 %vm615_vm2, %v2324_v56  ;;  %3919 = vmatprep.mubr.msk.bf16.mxu0 %vm4238_vm0, %v5159_v1  ;;  %v1556_v56 = vshrl.u32 %v4194_v49, 16  ;;  %v1554_v7 = vsel %vm1465_vm4, %v1544_v29, %v1553_v55 }
 0x120   : > { %4035 = vmatprep.mubr.msk.bf16.mxu1 %vm4238_vm0, %v5159_v1 }
 0x121   : > { %v779_v10 = vpop.f32.mrb[24].mxu0 }
 0x122   : > { %v1105_v9 = vpop.f32.mrb[24].mxu1  ;;  %v3689_v14 = vpop.f32.mrb[25].mxu0 }
 0x123   : > { %v3805_v12 = vpop.f32.mrb[25].mxu1  ;;  %v4647_v13 = vadd.f32 %v1105_v9, %v779_v10  ;;  %v782_v18 = vpop.f32.mrb[26].mxu0  ;;  %v1558_v9 = vrot.slane %v1556_v56, 2  ;;  %v1561_v10 = vrot.slane %v1559_v57, 3 }
 0x124   : > { %v1108_v15 = vpop.f32.mrb[26].mxu1  ;;  %v3690_v27 = vpop.f32.mrb[27].mxu0  ;;  %v4196_v12 = vld [vmem:[%s4304_s4 + $0x60] sm:$0xff]  }
 0x125   : > { %v3806_v19 = vpop.f32.mrb[27].mxu1  ;;  %v4653_v26 = vadd.f32 %v1108_v15, %v782_v18  ;;  %v1562_v17 = vor.u32 %v1561_v10, %v1558_v9  ;;  %v1565_v18 = vshrl.u32 %v4196_v12, 16 }
 0x126   : > { %3920 = vmatmul.mubr.msk.bf16.gmra.mrb[132].mxu0 %vm615_vm2, %v1536_v21  ;;  %v1568_v19 = vshll.u32 %v4196_v12, 16 }
 0x127   : > { %4036 = vmatmul.mubr.msk.bf16.gmra.mrb[132].mxu1 %vm615_vm2, %v2326_v16  ;;  %3923 = vmatprep.mubr.msk.bf16.mxu0 %vm4238_vm0, %v5159_v1  ;;  %v2331_v16 = vrot.slane %v4195_v4, 3  ;;  %v4200_v4 = vld [vmem:[%s4304_s4 + $0x70] sm:$0xff]  }
 0x128   : > { %4039 = vmatprep.mubr.msk.bf16.mxu1 %vm4238_vm0, %v5159_v1  ;;  %v1583_v10 = vshrl.u32 %v4200_v4, 16  ;;  %v1586_v12 = vshll.u32 %v4200_v4, 16 }
 0x129   : > { %v787_v35 = vpop.f32.mrb[28].mxu0  ;;  %v2332_v29 = vsel %vm2311_vm3, %v2329_v54, %v2331_v16 }
 0x12a   : > { %v1113_v34 = vpop.f32.mrb[28].mxu1  ;;  %v3693_v38 = vpop.f32.mrb[29].mxu0 }
 0x12b   : > { %v3809_v36 = vpop.f32.mrb[29].mxu1  ;;  %v4661_v37 = vadd.f32 %v1113_v34, %v787_v35  ;;  %v790_v44 = vpop.f32.mrb[30].mxu0  ;;  %v1563_v35 = vsel %vm1465_vm4, %v1553_v55, %v1562_v17  ;;  %v1570_v38 = vrot.slane %v1568_v19, 3 }
 0x12c   : > { %v1116_v39 = vpop.f32.mrb[30].mxu1  ;;  %v3694_v52 = vpop.f32.mrb[31].mxu0  ;;  %v1567_v36 = vrot.slane %v1565_v18, 2 }
 0x12d   : > { %v3810_v45 = vpop.f32.mrb[31].mxu1  ;;  %v4667_v50 = vadd.f32 %v1116_v39, %v790_v44  ;;  %v4198_v39 = vld [vmem:[%s4304_s4 + $0x68] sm:$0xff]   ;;  %v2333_v44 = vrot.slane %v4197_v32, 3  ;;  %v1585_v32 = vrot.slane %v1583_v10, 2 }
 0x12e   : > { %3924 = vmatmul.mubr.msk.bf16.gmra.mrb[136].mxu0 %vm615_vm2, %v1545_v46  ;;  %v1571_v45 = vor.u32 %v1570_v38, %v1567_v36  ;;  %v1574_v46 = vshrl.u32 %v4198_v39, 16  ;;  %v1577_v47 = vshll.u32 %v4198_v39, 16 }
 0x12f   : > { %4040 = vmatmul.mubr.msk.bf16.gmra.mrb[136].mxu1 %vm615_vm2, %v2328_v40  ;;  %3927 = vmatprep.mubr.msk.bf16.mxu0 %vm4238_vm0, %v5159_v1  ;;  %v2334_v57 = vsel %vm2311_vm3, %v2331_v16, %v2333_v44 }
 0x130   : > { %4043 = vmatprep.mubr.msk.bf16.mxu1 %vm4238_vm0, %v5159_v1 }
 0x131   : > { %v795_v59 = vpop.f32.mrb[32].mxu0 }
 0x132   : > { %v1121_v58 = vpop.f32.mrb[32].mxu1  ;;  %v3697_v63 = vpop.f32.mrb[33].mxu0 }
 0x133   : > { %v3813_v60 = vpop.f32.mrb[33].mxu1  ;;  %v4675_v61 = vadd.f32 %v1121_v58, %v795_v59  ;;  %v798_v5 = vpop.f32.mrb[34].mxu0  ;;  %v4199_v58 = vld [vmem:[%s4304_s4 + $0x68] sm:$0xff]   ;;  %v1572_v63 = vsel %vm1465_vm4, %v1562_v17, %v1571_v45 }
 0x134   : > { %v1124_v0 = vpop.f32.mrb[34].mxu1  ;;  %v3698_v15 = vpop.f32.mrb[35].mxu0 }
 0x135   : > { %v3814_v6 = vpop.f32.mrb[35].mxu1  ;;  %v4681_v14 = vadd.f32 %v1124_v0, %v798_v5  ;;  %v1576_v0 = vrot.slane %v1574_v46, 2 }
 0x136   : > { %3928 = vmatmul.mubr.msk.bf16.gmra.mrb[140].mxu0 %vm615_vm2, %v1554_v7  ;;  %v2335_v7 = vrot.slane %v4199_v58, 3 }
 0x137   : > { %4044 = vmatmul.mubr.msk.bf16.gmra.mrb[140].mxu1 %vm615_vm2, %v2330_v3  ;;  %3931 = vmatprep.mubr.msk.bf16.mxu0 %vm4238_vm0, %v5159_v1  ;;  %v1579_v3 = vrot.slane %v1577_v47, 3 }
 0x138   : > { %4047 = vmatprep.mubr.msk.bf16.mxu1 %vm4238_vm0, %v5159_v1 }
 0x139   : > { %v803_v23 = vpop.f32.mrb[36].mxu0  ;;  %v1580_v9 = vor.u32 %v1579_v3, %v1576_v0  ;;  %v4204_v0 = vld [vmem:[%s4304_s4 + $0x80] sm:$0xff]  }
 0x13a   : > { %v1129_v21 = vpop.f32.mrb[36].mxu1  ;;  %v3701_v27 = vpop.f32.mrb[37].mxu0  ;;  %v1604_v10 = vshll.u32 %v4204_v0, 16 }
 0x13b   : > { %v3817_v24 = vpop.f32.mrb[37].mxu1  ;;  %v4689_v25 = vadd.f32 %v1129_v21, %v803_v23  ;;  %v806_v33 = vpop.f32.mrb[38].mxu0  ;;  %v2336_v23 = vsel %vm2311_vm3, %v2333_v44, %v2335_v7 }
 0x13c   : > { %v1132_v28 = vpop.f32.mrb[38].mxu1  ;;  %v3702_v41 = vpop.f32.mrb[39].mxu0  ;;  %v4201_v24 = vld [vmem:[%s4304_s4 + $0x70] sm:$0xff]  }
 0x13d   : > { %v3818_v34 = vpop.f32.mrb[39].mxu1  ;;  %v4695_v40 = vadd.f32 %v1132_v28, %v806_v33  ;;  %v1588_v33 = vrot.slane %v1586_v12, 3  ;;  %v2337_v38 = vrot.slane %v4201_v24, 3  ;;  %v4205_v24 = vld [vmem:[%s4304_s4 + $0x80] sm:$0xff]  }
 0x13e   : > { %3932 = vmatmul.mubr.msk.bf16.gmra.mrb[144].mxu0 %vm615_vm2, %v1563_v35  ;;  %v4202_v34 = vld [vmem:[%s4304_s4 + $0x78] sm:$0xff]  }
 0x13f   : > { %4048 = vmatmul.mubr.msk.bf16.gmra.mrb[144].mxu1 %vm615_vm2, %v2332_v29  ;;  %3935 = vmatprep.mubr.msk.bf16.mxu0 %vm4238_vm0, %v5159_v1  ;;  %v1581_v29 = vsel %vm1465_vm4, %v1571_v45, %v1580_v9  ;;  %v1589_v39 = vor.u32 %v1588_v33, %v1585_v32  ;;  %v1592_v41 = vshrl.u32 %v4202_v34, 16  ;;  %v1595_v44 = vshll.u32 %v4202_v34, 16  ;;  %v4206_v34 = vld [vmem:[%s4304_s4 + $0x88] sm:$0xff]  }
 0x140   : > { %4051 = vmatprep.mubr.msk.bf16.mxu1 %vm4238_vm0, %v5159_v1  ;;  %v1606_v33 = vrot.slane %v1604_v10, 3 }
 0x141   : > { %v811_v49 = vpop.f32.mrb[40].mxu0 }
 0x142   : > { %v1137_v48 = vpop.f32.mrb[40].mxu1  ;;  %v3705_v55 = vpop.f32.mrb[41].mxu0 }
 0x143   : > { %v3821_v52 = vpop.f32.mrb[41].mxu1  ;;  %v4703_v54 = vadd.f32 %v1137_v48, %v811_v49  ;;  %v814_v59 = vpop.f32.mrb[42].mxu0  ;;  %v2338_v55 = vsel %vm2311_vm3, %v2335_v7, %v2337_v38 }
 0x144   : > { %v1140_v56 = vpop.f32.mrb[42].mxu1  ;;  %v3706_v6 = vpop.f32.mrb[43].mxu0 }
 0x145   : > { %v3822_v60 = vpop.f32.mrb[43].mxu1  ;;  %v4709_v5 = vadd.f32 %v1140_v56, %v814_v59  ;;  %v4203_v56 = vld [vmem:[%s4304_s4 + $0x78] sm:$0xff]   ;;  %v1590_v59 = vsel %vm1465_vm4, %v1580_v9, %v1589_v39  ;;  %v1601_v9 = vshrl.u32 %v4204_v0, 16 }
 0x146   : > { %3936 = vmatmul.mubr.msk.bf16.gmra.mrb[148].mxu0 %vm615_vm2, %v1572_v63  ;;  %v1594_v60 = vrot.slane %v1592_v41, 2  ;;  %v1597_v63 = vrot.slane %v1595_v44, 3  ;;  %v2339_v6 = vrot.slane %v4203_v56, 3 }
 0x147   : > { %4052 = vmatmul.mubr.msk.bf16.gmra.mrb[148].mxu1 %vm615_vm2, %v2334_v57  ;;  %3939 = vmatprep.mubr.msk.bf16.mxu0 %vm4238_vm0, %v5159_v1  ;;  %v1603_v32 = vrot.slane %v1601_v9, 2  ;;  %v4208_v9 = vld [vmem:[%s4304_s4 + $0x90] sm:$0xff]  }
 0x148   : > { %4055 = vmatprep.mubr.msk.bf16.mxu1 %vm4238_vm0, %v5159_v1  ;;  %v1598_v7 = vor.u32 %v1597_v63, %v1594_v60 }
 0x149   : > { %v819_v16 = vpop.f32.mrb[44].mxu0  ;;  %v1607_v44 = vor.u32 %v1606_v33, %v1603_v32  ;;  %v4209_v32 = vld [vmem:[%s4304_s4 + $0x90] sm:$0xff]  }
 0x14a   : > { %v1145_v15 = vpop.f32.mrb[44].mxu1  ;;  %v3709_v19 = vpop.f32.mrb[45].mxu0 }
 0x14b   : > { %v3825_v17 = vpop.f32.mrb[45].mxu1  ;;  %v4717_v18 = vadd.f32 %v1145_v15, %v819_v16  ;;  %v822_v27 = vpop.f32.mrb[46].mxu0  ;;  %v1608_v63 = vsel %vm1465_vm4, %v1598_v7, %v1607_v44 }
 0x14c   : > { %v1148_v21 = vpop.f32.mrb[46].mxu1  ;;  %v3710_v36 = vpop.f32.mrb[47].mxu0 }
 0x14d   : > { %v3826_v28 = vpop.f32.mrb[47].mxu1  ;;  %v4723_v35 = vadd.f32 %v1148_v21, %v822_v27 }
 0x14e   : > { %3940 = vmatmul.mubr.msk.bf16.gmra.mrb[152].mxu0 %vm615_vm2, %v1581_v29  ;;  %v1599_v29 = vsel %vm1465_vm4, %v1589_v39, %v1598_v7  ;;  %v1610_v39 = vshrl.u32 %v4206_v34, 16  ;;  %v1619_v7 = vshrl.u32 %v4208_v9, 16 }
 0x14f   : > { %4056 = vmatmul.mubr.msk.bf16.gmra.mrb[152].mxu1 %vm615_vm2, %v2336_v23  ;;  %3943 = vmatprep.mubr.msk.bf16.mxu0 %vm4238_vm0, %v5159_v1  ;;  %v2340_v23 = vsel %vm2311_vm3, %v2337_v38, %v2339_v6  ;;  %v2341_v38 = vrot.slane %v4205_v24, 3 }
 0x150   : > { %4059 = vmatprep.mubr.msk.bf16.mxu1 %vm4238_vm0, %v5159_v1  ;;  %v1612_v0 = vrot.slane %v1610_v39, 2  ;;  %v1621_v39 = vrot.slane %v1619_v7, 2 }
 0x151   : > { %v827_v46 = vpop.f32.mrb[48].mxu0 }
 0x152   : > { %v1153_v45 = vpop.f32.mrb[48].mxu1  ;;  %v3713_v49 = vpop.f32.mrb[49].mxu0 }
 0x153   : > { %v3829_v47 = vpop.f32.mrb[49].mxu1  ;;  %v4731_v48 = vadd.f32 %v1153_v45, %v827_v46  ;;  %v830_v57 = vpop.f32.mrb[50].mxu0  ;;  %v1613_v45 = vshll.u32 %v4206_v34, 16 }
 0x154   : > { %v1156_v52 = vpop.f32.mrb[50].mxu1  ;;  %v3714_v4 = vpop.f32.mrb[51].mxu0 }
 0x155   : > { %v3830_v58 = vpop.f32.mrb[51].mxu1  ;;  %v4737_v3 = vadd.f32 %v1156_v52, %v830_v57  ;;  %v2342_v57 = vsel %vm2311_vm3, %v2339_v6, %v2341_v38  ;;  %v1615_v4 = vrot.slane %v1613_v45, 3 }
 0x156   : > { %3944 = vmatmul.mubr.msk.bf16.gmra.mrb[156].mxu0 %vm615_vm2, %v1590_v59  ;;  %v4207_v58 = vld [vmem:[%s4304_s4 + $0x88] sm:$0xff]  }
 0x157   : > { %4060 = vmatmul.mubr.msk.bf16.gmra.mrb[156].mxu1 %vm615_vm2, %v2338_v55  ;;  %3947 = vmatprep.mubr.msk.bf16.mxu0 %vm4238_vm0, %v5159_v1  ;;  %v2343_v6 = vrot.slane %v4207_v58, 3 }
 0x158   : > { %4063 = vmatprep.mubr.msk.bf16.mxu1 %vm4238_vm0, %v5159_v1 }
 0x159   : > { %v835_v15 = vpop.f32.mrb[52].mxu0 }
 0x15a   : > { %v1161_v12 = vpop.f32.mrb[52].mxu1  ;;  %v3717_v19 = vpop.f32.mrb[53].mxu0 }
 0x15b   : > { %v3833_v16 = vpop.f32.mrb[53].mxu1  ;;  %v4745_v17 = vadd.f32 %v1161_v12, %v835_v15  ;;  %v838_v27 = vpop.f32.mrb[54].mxu0  ;;  %v1616_v15 = vor.u32 %v1615_v4, %v1612_v0 }
 0x15c   : > { %v1164_v21 = vpop.f32.mrb[54].mxu1  ;;  %v3718_v41 = vpop.f32.mrb[55].mxu0  ;;  %v1622_v16 = vshll.u32 %v4208_v9, 16  ;;  %v4211_v9 = vld [vmem:[%s4304_s4 + $0x98] sm:$0xff]  }
 0x15d   : > { %v3834_v28 = vpop.f32.mrb[55].mxu1  ;;  %v4751_v36 = vadd.f32 %v1164_v21, %v838_v27  ;;  %v1617_v41 = vsel %vm1465_vm4, %v1607_v44, %v1616_v15 }
 0x15e   : > { %3948 = vmatmul.mubr.msk.bf16.gmra.mrb[160].mxu0 %vm615_vm2, %v1599_v29  ;;  %v2344_v29 = vsel %vm2311_vm3, %v2341_v38, %v2343_v6  ;;  %v1624_v45 = vrot.slane %v1622_v16, 3  ;;  %v2345_v38 = vrot.slane %v4209_v32, 3 }
 0x15f   : > { %4064 = vmatmul.mubr.msk.bf16.gmra.mrb[160].mxu1 %vm615_vm2, %v2340_v23  ;;  %3951 = vmatprep.mubr.msk.bf16.mxu0 %vm4238_vm0, %v5159_v1 }
 0x160   : > { %4067 = vmatprep.mubr.msk.bf16.mxu1 %vm4238_vm0, %v5159_v1  ;;  %v2346_v4 = vsel %vm2311_vm3, %v2343_v6, %v2345_v38  ;;  %v2347_v6 = vrot.slane %v4211_v9, 3 }
 0x161   : > { %v843_v47 = vpop.f32.mrb[56].mxu0 }
 0x162   : > { %v1169_v46 = vpop.f32.mrb[56].mxu1  ;;  %v3721_v55 = vpop.f32.mrb[57].mxu0 }
 0x163   : > { %v3837_v49 = vpop.f32.mrb[57].mxu1  ;;  %v4759_v52 = vadd.f32 %v1169_v46, %v843_v47  ;;  %v846_v59 = vpop.f32.mrb[58].mxu0  ;;  %v4210_v46 = vld [vmem:[%s4304_s4 + $0x98] sm:$0xff]   ;;  %v1625_v55 = vor.u32 %v1624_v45, %v1621_v39 }
 0x164   : > { %v1172_v56 = vpop.f32.mrb[58].mxu1  ;;  %v3722_v12 = vpop.f32.mrb[59].mxu0  ;;  %v1628_v44 = vshrl.u32 %v4210_v46, 16 }
 0x165   : > { %v3838_v60 = vpop.f32.mrb[59].mxu1  ;;  %v4765_v10 = vadd.f32 %v1172_v56, %v846_v59  ;;  %v1631_v56 = vshll.u32 %v4210_v46, 16  ;;  %v1626_v16 = vsel %vm1465_vm4, %v1616_v15, %v1625_v55 }
 0x166   : > { %3952 = vmatmul.mubr.msk.bf16.gmra.mrb[164].mxu0 %vm615_vm2, %v1608_v63 }
 0x167   : > { %4068 = vmatmul.mubr.msk.bf16.gmra.mrb[164].mxu1 %vm615_vm2, %v2342_v57  ;;  %3955 = vmatprep.mubr.msk.bf16.mxu0 %vm4238_vm0, %v5159_v1 }
 0x168   : > { %4071 = vmatprep.mubr.msk.bf16.mxu1 %vm4238_vm0, %v5159_v1 }
 0x169   : > { %v851_v21 = vpop.f32.mrb[60].mxu0 }
 0x16a   : > { %v1177_v19 = vpop.f32.mrb[60].mxu1  ;;  %v3725_v27 = vpop.f32.mrb[61].mxu0 }
 0x16b   : > { %v3841_v23 = vpop.f32.mrb[61].mxu1  ;;  %v4773_v24 = vadd.f32 %v1177_v19, %v851_v21  ;;  %v854_v33 = vpop.f32.mrb[62].mxu0  ;;  %v1630_v19 = vrot.slane %v1628_v44, 2  ;;  %v1633_v21 = vrot.slane %v1631_v56, 3  ;;  %v4213_v44 = vld [vmem:[%s4304_s4 + $0xa0] sm:$0xff]  }
 0x16c   : > { %v1180_v28 = vpop.f32.mrb[62].mxu1  ;;  %v3726_v49 = vpop.f32.mrb[63].mxu0  ;;  %v4212_v23 = vld [vmem:[%s4304_s4 + $0xa0] sm:$0xff]  }
 0x16d   : > { %v3842_v34 = vpop.f32.mrb[63].mxu1  ;;  %v4779_v47 = vadd.f32 %v1180_v28, %v854_v33  ;;  %v1637_v15 = vshrl.u32 %v4212_v23, 16  ;;  %v1640_v32 = vshll.u32 %v4212_v23, 16  ;;  %v2348_v49 = vsel %vm2311_vm3, %v2345_v38, %v2347_v6 }
 0x16e   : > { %3956 = vmatmul.mubr.msk.bf16.gmra.mrb[168].mxu0 %vm615_vm2, %v1617_v41  ;;  %v2349_v38 = vrot.slane %v4213_v44, 3  ;;  %v4216_v44 = vld [vmem:[%s4304_s4 + $0xb0] sm:$0xff]  }
 0x16f   : > { %4072 = vmatmul.mubr.msk.bf16.gmra.mrb[168].mxu1 %vm615_vm2, %v2344_v29  ;;  %3959 = vmatprep.mubr.msk.bf16.mxu0 %vm4238_vm0, %v5159_v1  ;;  %v1634_v29 = vor.u32 %v1633_v21, %v1630_v19 }
 0x170   : > { %4075 = vmatprep.mubr.msk.bf16.mxu1 %vm4238_vm0, %v5159_v1 }
 0x171   : > { %v859_v58 = vpop.f32.mrb[64].mxu0 }
 0x172   : > { %v1185_v57 = vpop.f32.mrb[64].mxu1  ;;  %v3729_v63 = vpop.f32.mrb[65].mxu0 }
 0x173   : > { %v3845_v59 = vpop.f32.mrb[65].mxu1  ;;  %v4787_v60 = vadd.f32 %v1185_v57, %v859_v58  ;;  %v862_v12 = vpop.f32.mrb[66].mxu0  ;;  %v1635_v58 = vsel %vm1465_vm4, %v1625_v55, %v1634_v29  ;;  %v1642_v63 = vrot.slane %v1640_v32, 3  ;;  %v2350_v32 = vsel %vm2311_vm3, %v2347_v6, %v2349_v38 }
 0x174   : > { %v1188_v0 = vpop.f32.mrb[66].mxu1  ;;  %v3730_v28 = vpop.f32.mrb[67].mxu0  ;;  %v1639_v59 = vrot.slane %v1637_v15, 2 }
 0x175   : > { %v3846_v7 = vpop.f32.mrb[67].mxu1  ;;  %v4793_v27 = vadd.f32 %v1188_v0, %v862_v12  ;;  %v4214_v0 = vld [vmem:[%s4304_s4 + $0xa8] sm:$0xff]  }
 0x176   : > { %3960 = vmatmul.mubr.msk.bf16.gmra.mrb[172].mxu0 %vm615_vm2, %v1626_v16  ;;  %v1643_v12 = vor.u32 %v1642_v63, %v1639_v59  ;;  %v1646_v55 = vshrl.u32 %v4214_v0, 16  ;;  %v1649_v7 = vshll.u32 %v4214_v0, 16  ;;  %v1658_v59 = vshll.u32 %v4216_v44, 16 }
 0x177   : > { %4076 = vmatmul.mubr.msk.bf16.gmra.mrb[172].mxu1 %vm615_vm2, %v2346_v4  ;;  %3963 = vmatprep.mubr.msk.bf16.mxu0 %vm4238_vm0, %v5159_v1 }
 0x178   : > { %4079 = vmatprep.mubr.msk.bf16.mxu1 %vm4238_vm0, %v5159_v1 }
 0x179   : > { %v867_v34 = vpop.f32.mrb[68].mxu0 }
 0x17a   : > { %v1193_v33 = vpop.f32.mrb[68].mxu1  ;;  %v3733_v45 = vpop.f32.mrb[69].mxu0 }
 0x17b   : > { %v3849_v41 = vpop.f32.mrb[69].mxu1  ;;  %v4801_v39 = vadd.f32 %v1193_v33, %v867_v34  ;;  %v870_v56 = vpop.f32.mrb[70].mxu0  ;;  %v4215_v33 = vld [vmem:[%s4304_s4 + $0xa8] sm:$0xff]   ;;  %v1644_v45 = vsel %vm1465_vm4, %v1634_v29, %v1643_v12  ;;  %v1655_v29 = vshrl.u32 %v4216_v44, 16 }
 0x17c   : > { %v1196_v46 = vpop.f32.mrb[70].mxu1  ;;  %v3734_v9 = vpop.f32.mrb[71].mxu0  ;;  %v2351_v6 = vrot.slane %v4215_v33, 3 }
 0x17d   : > { %v3850_v57 = vpop.f32.mrb[71].mxu1  ;;  %v4807_v4 = vadd.f32 %v1196_v46, %v870_v56  ;;  %v1648_v46 = vrot.slane %v1646_v55, 2  ;;  %v1657_v33 = vrot.slane %v1655_v29, 2 }
 0x17e   : > { %3964 = vmatmul.mubr.msk.bf16.gmra.mrb[176].mxu0 %vm615_vm2, %v1635_v58 }
 0x17f   : > { %4080 = vmatmul.mubr.msk.bf16.gmra.mrb[176].mxu1 %vm615_vm2, %v2348_v49  ;;  %3967 = vmatprep.mubr.msk.bf16.mxu0 %vm4238_vm0, %v5159_v1  ;;  %v1651_v49 = vrot.slane %v1649_v7, 3 }
 0x180   : > { %4083 = vmatprep.mubr.msk.bf16.mxu1 %vm4238_vm0, %v5159_v1 }
 0x181   : > { %v875_v19 = vpop.f32.mrb[72].mxu0  ;;  %v1652_v58 = vor.u32 %v1651_v49, %v1648_v46 }
 0x182   : > { %v1201_v16 = vpop.f32.mrb[72].mxu1  ;;  %v3737_v28 = vpop.f32.mrb[73].mxu0 }
 0x183   : > { %v3853_v21 = vpop.f32.mrb[73].mxu1  ;;  %v4815_v23 = vadd.f32 %v1201_v16, %v875_v19  ;;  %v878_v34 = vpop.f32.mrb[74].mxu0  ;;  %v2352_v19 = vsel %vm2311_vm3, %v2349_v38, %v2351_v6 }
 0x184   : > { %v1204_v15 = vpop.f32.mrb[74].mxu1  ;;  %v3738_v57 = vpop.f32.mrb[75].mxu0  ;;  %v4217_v21 = vld [vmem:[%s4304_s4 + $0xb0] sm:$0xff]  }
 0x185   : > { %v3854_v41 = vpop.f32.mrb[75].mxu1  ;;  %v4821_v56 = vadd.f32 %v1204_v15, %v878_v34  ;;  %v1660_v34 = vrot.slane %v1658_v59, 3  ;;  %v2353_v38 = vrot.slane %v4217_v21, 3 }
 0x186   : > { %3968 = vmatmul.mubr.msk.bf16.gmra.mrb[180].mxu0 %vm615_vm2, %v1644_v45  ;;  %v4218_v41 = vld [vmem:[%s4304_s4 + $0xb8] sm:$0xff]  }
 0x187   : > { %4084 = vmatmul.mubr.msk.bf16.gmra.mrb[180].mxu1 %vm615_vm2, %v2350_v32  ;;  %3971 = vmatprep.mubr.msk.bf16.mxu0 %vm4238_vm0, %v5159_v1  ;;  %v1653_v32 = vsel %vm1465_vm4, %v1643_v12, %v1652_v58  ;;  %v1661_v49 = vor.u32 %v1660_v34, %v1657_v33  ;;  %v1664_v12 = vshrl.u32 %v4218_v41, 16  ;;  %v1667_v44 = vshll.u32 %v4218_v41, 16  ;;  %v4220_v33 = vld [vmem:[%s4304_s4 + $0xc0] sm:$0xff]  }
 0x188   : > { %4087 = vmatprep.mubr.msk.bf16.mxu1 %vm4238_vm0, %v5159_v1 }
 0x189   : > { %v883_v0 = vpop.f32.mrb[76].mxu0  ;;  %v1662_v21 = vsel %vm1465_vm4, %v1652_v58, %v1661_v49  ;;  %v1673_v58 = vshrl.u32 %v4220_v33, 16 }
 0x18a   : > { %v1209_v63 = vpop.f32.mrb[76].mxu1  ;;  %v3741_v7 = vpop.f32.mrb[77].mxu0 }
 0x18b   : > { %v3857_v9 = vpop.f32.mrb[77].mxu1  ;;  %v4829_v55 = vadd.f32 %v1209_v63, %v883_v0  ;;  %v886_v28 = vpop.f32.mrb[78].mxu0  ;;  %v2354_v7 = vsel %vm2311_vm3, %v2351_v6, %v2353_v38 }
 0x18c   : > { %v1212_v16 = vpop.f32.mrb[78].mxu1  ;;  %v3742_v46 = vpop.f32.mrb[79].mxu0 }
 0x18d   : > { %v3858_v15 = vpop.f32.mrb[79].mxu1  ;;  %v4835_v45 = vadd.f32 %v1212_v16, %v886_v28  ;;  %v4219_v16 = vld [vmem:[%s4304_s4 + $0xb8] sm:$0xff]  }
 0x18e   : > { %3972 = vmatmul.mubr.msk.bf16.gmra.mrb[184].mxu0 %vm615_vm2, %v1653_v32  ;;  %v1666_v15 = vrot.slane %v1664_v12, 2  ;;  %v1669_v32 = vrot.slane %v1667_v44, 3  ;;  %v2355_v6 = vrot.slane %v4219_v16, 3  ;;  %v1676_v12 = vshll.u32 %v4220_v33, 16 }
 0x18f   : > { %4088 = vmatmul.mubr.msk.bf16.gmra.mrb[184].mxu1 %vm615_vm2, %v2352_v19  ;;  %3975 = vmatprep.mubr.msk.bf16.mxu0 %vm4238_vm0, %v5159_v1 }
 0x190   : > { %4091 = vmatprep.mubr.msk.bf16.mxu1 %vm4238_vm0, %v5159_v1  ;;  %v1670_v46 = vor.u32 %v1669_v32, %v1666_v15  ;;  %v4222_v15 = vld [vmem:[%s4304_s4 + $0xc8] sm:$0xff]  }
 0x191   : > { %v891_v29 = vpop.f32.mrb[80].mxu0 }
 0x192   : > { %v1217_v57 = vpop.f32.mrb[80].mxu1  ;;  %v3745_v0 = vpop.f32.mrb[81].mxu0  ;;  %v1671_v16 = vsel %vm1465_vm4, %v1661_v49, %v1670_v46  ;;  %v1682_v49 = vshrl.u32 %v4222_v15, 16 }
 0x193   : > { %v3861_v59 = vpop.f32.mrb[81].mxu1  ;;  %v4843_v63 = vadd.f32 %v1217_v57, %v891_v29  ;;  %v894_v19 = vpop.f32.mrb[82].mxu0 }
 0x194   : > { %v1220_v9 = vpop.f32.mrb[82].mxu1  ;;  %v3746_v41 = vpop.f32.mrb[83].mxu0 }
 0x195   : > { %5161 = vst [vmem:[#allocation2_spill] sm:$0xff] %v4843_v63  ;;  %v3862_v28 = vpop.f32.mrb[83].mxu1  ;;  %v4849_v34 = vadd.f32 %v1220_v9, %v894_v19  ;;  %v4221_v19 = vld [vmem:[%s4304_s4 + $0xc0] sm:$0xff]   ;;  %v1675_v41 = vrot.slane %v1673_v58, 2  ;;  %v1685_v58 = vshll.u32 %v4222_v15, 16 }
 0x196   : > { %3976 = vmatmul.mubr.msk.bf16.gmra.mrb[188].mxu0 %vm615_vm2, %v1662_v21 }
 0x197   : > { %5162 = vst [vmem:[#allocation3_spill] sm:$0xff] %v4849_v34  ;;  %4092 = vmatmul.mubr.msk.bf16.gmra.mrb[188].mxu1 %vm615_vm2, %v2354_v7  ;;  %3979 = vmatprep.mubr.msk.bf16.mxu0 %vm4238_vm0, %v5159_v1  ;;  %v2356_v7 = vsel %vm2311_vm3, %v2353_v38, %v2355_v6  ;;  %v2357_v38 = vrot.slane %v4221_v19, 3  ;;  %v1687_v34 = vrot.slane %v1685_v58, 3 }
 0x198   : > { %4095 = vmatprep.mubr.msk.bf16.mxu1 %vm4238_vm0, %v5159_v1  ;;  %v1678_v1 = vrot.slane %v1676_v12, 3 }
 0x199   : > { %v899_v57 = vpop.f32.mrb[84].mxu0 }
 0x19a   : > { %v1225_v44 = vpop.f32.mrb[84].mxu1  ;;  %v3749_v0 = vpop.f32.mrb[85].mxu0 }
 0x19b   : > { %v3865_v29 = vpop.f32.mrb[85].mxu1  ;;  %v4857_v59 = vadd.f32 %v1225_v44, %v899_v57  ;;  %v902_v28 = vpop.f32.mrb[86].mxu0  ;;  %v5165_v44 = vmov 0.0   ;;  %v1679_v57 = vor.u32 %v1678_v1, %v1675_v41  ;;  %v4224_v1 = vld [vmem:[%s4304_s4 + $0xd0] sm:$0xff]  }
 0x19c   : > { %v1228_v9 = vpop.f32.mrb[86].mxu1  ;;  %v3750_v33 = vpop.f32.mrb[87].mxu0 }
 0x19d   : > { %5163 = vst [vmem:[#allocation4_spill] sm:$0xff] %v4857_v59  ;;  %v3866_v21 = vpop.f32.mrb[87].mxu1  ;;  %v4863_v32 = vadd.f32 %v1228_v9, %v902_v28  ;;  %v1680_v19 = vsel %vm1465_vm4, %v1670_v46, %v1679_v57  ;;  %v1684_v59 = vrot.slane %v1682_v49, 2  ;;  %v1691_v46 = vshrl.u32 %v4224_v1, 16 }
 0x19e   : > { %3980 = vmatmul.mubr.msk.bf16.gmra.mrb[192].mxu0 %vm615_vm2, %v1671_v16  ;;  %v2358_v21 = vsel %vm2311_vm3, %v2355_v6, %v2357_v38  ;;  %v4223_v16 = vld [vmem:[%s4304_s4 + $0xc8] sm:$0xff]   ;;  %v1694_v49 = vshll.u32 %v4224_v1, 16 }
 0x19f   : > { %5164 = vst [vmem:[#allocation5_spill] sm:$0xff] %v4863_v32  ;;  %4096 = vmatmul.mubr.msk.bf16.gmra.mrb[192].mxu1 %vm615_vm2, %v2356_v7  ;;  %3983 = vmatprep.mubr.msk.bf16.mxu0 %vm4238_vm0, %v5165_v44  ;;  %v2359_v6 = vrot.slane %v4223_v16, 3 }
 0x1a0   : > { %4099 = vmatprep.mubr.msk.bf16.mxu1 %vm4238_vm0, %v5165_v44 }
 0x1a1   : > { %v907_v29 = vpop.f32.mrb[88].mxu0 }
 0x1a2   : > { %v1233_v12 = vpop.f32.mrb[88].mxu1  ;;  %v3753_v28 = vpop.f32.mrb[89].mxu0 }
 0x1a3   : > { %v3869_v0 = vpop.f32.mrb[89].mxu1  ;;  %v4871_v9 = vadd.f32 %v1233_v12, %v907_v29  ;;  %v910_v33 = vpop.f32.mrb[90].mxu0 }
 0x1a4   : > { %v1236_v7 = vpop.f32.mrb[90].mxu1  ;;  %v3754_v15 = vpop.f32.mrb[91].mxu0 }
 0x1a5   : > { %5166 = vst [vmem:[#allocation6_spill] sm:$0xff] %v4871_v9  ;;  %v3870_v32 = vpop.f32.mrb[91].mxu1  ;;  %v4877_v41 = vadd.f32 %v1236_v7, %v910_v33  ;;  %v4225_v33 = vld [vmem:[%s4304_s4 + $0xd0] sm:$0xff]   ;;  %v1696_v9 = vrot.slane %v1694_v49, 3 }
 0x1a6   : > { %3984 = vmatmul.mubr.msk.bf16.gmra.mrb[196].mxu0 %vm615_vm2, %v1680_v19  ;;  %v1688_v32 = vor.u32 %v1687_v34, %v1684_v59  ;;  %v4226_v34 = vld [vmem:[%s4304_s4 + $0xd8] ss:$0 sps:$4 sm:$0xff]  }
 0x1a7   : > { %5167 = vst [vmem:[#allocation7_spill] sm:$0xff] %v4877_v41  ;;  %4100 = vmatmul.mubr.msk.bf16.gmra.mrb[196].mxu1 %vm615_vm2, %v2358_v21  ;;  %3987 = vmatprep.mubr.msk.bf16.mxu0 %vm4238_vm0, %v5165_v44  ;;  %v2360_v21 = vsel %vm2311_vm3, %v2357_v38, %v2359_v6  ;;  %v1693_v41 = vrot.slane %v1691_v46, 2  ;;  %v2361_v38 = vrot.slane %v4225_v33, 3  ;;  %v1703_v46 = vshll.u32 %v4226_v34, 16 }
 0x1a8   : > { %4103 = vmatprep.mubr.msk.bf16.mxu1 %vm4238_vm0, %v5165_v44  ;;  %v1689_v16 = vsel %vm1465_vm4, %v1679_v57, %v1688_v32  ;;  %v1700_v57 = vshrl.u32 %v4226_v34, 16 }
 0x1a9   : > { %v915_v12 = vpop.f32.mrb[92].mxu0 }
 0x1aa   : > { %v1241_v58 = vpop.f32.mrb[92].mxu1  ;;  %v3757_v28 = vpop.f32.mrb[93].mxu0 }
 0x1ab   : > { %v3873_v29 = vpop.f32.mrb[93].mxu1  ;;  %v4885_v0 = vadd.f32 %v1241_v58, %v915_v12  ;;  %v918_v19 = vpop.f32.mrb[94].mxu0  ;;  %v1697_v58 = vor.u32 %v1696_v9, %v1693_v41 }
 0x1ac   : > { %v1244_v7 = vpop.f32.mrb[94].mxu1  ;;  %v3758_v1 = vpop.f32.mrb[95].mxu0 }
 0x1ad   : > { %5168 = vst [vmem:[#allocation8_spill] sm:$0xff] %v4885_v0  ;;  %v3874_v15 = vpop.f32.mrb[95].mxu1  ;;  %v4891_v59 = vadd.f32 %v1244_v7, %v918_v19  ;;  %v1698_v33 = vsel %vm1465_vm4, %v1688_v32, %v1697_v58  ;;  %v1705_v0 = vrot.slane %v1703_v46, 3 }
 0x1ae   : > { %3988 = vmatmul.mubr.msk.bf16.gmra.mrb[200].mxu0 %vm615_vm2, %v1689_v16  ;;  %v4227_v15 = vld [vmem:[%s4304_s4 + $0xd8] sm:$0x1f]  }
 0x1af   : > { %5169 = vst [vmem:[#allocation9_spill] sm:$0xff] %v4891_v59  ;;  %4104 = vmatmul.mubr.msk.bf16.gmra.mrb[200].mxu1 %vm615_vm2, %v2360_v21  ;;  %3991 = vmatprep.mubr.msk.bf16.mxu0 %vm4238_vm0, %v5165_v44  ;;  %v2362_v21 = vsel %vm2311_vm3, %v2359_v6, %v2361_v38  ;;  %v1702_v59 = vrot.slane %v1700_v57, 2  ;;  %v2363_v41 = vrot.slane %v4227_v15, 3 }
 0x1b0   : > { %4107 = vmatprep.mubr.msk.bf16.mxu1 %vm4238_vm0, %v5165_v44 }
 0x1b1   : > { %v923_v12 = vpop.f32.mrb[96].mxu0  ;;  %v1706_v6 = vor.u32 %v1705_v0, %v1702_v59 }
 0x1b2   : > { %v1249_v49 = vpop.f32.mrb[96].mxu1  ;;  %v3761_v7 = vpop.f32.mrb[97].mxu0 }
 0x1b3   : > { %v3877_v29 = vpop.f32.mrb[97].mxu1  ;;  %v4899_v28 = vadd.f32 %v1249_v49, %v923_v12  ;;  %v926_v16 = vpop.f32.mrb[98].mxu0 }
 0x1b4   : > { %v1252_v19 = vpop.f32.mrb[98].mxu1  ;;  %v3762_v9 = vpop.f32.mrb[99].mxu0  ;;  %v2364_v29 = vsel %vm2311_vm3, %v2361_v38, %v2363_v41 }
 0x1b5   : > { %v3878_v1 = vpop.f32.mrb[99].mxu1  ;;  %v4904_v63 = vadd.f32 %v1252_v19, %v926_v16 }
 0x1b6   : > { %3992 = vmatmul.mubr.msk.bf16.gmra.mrb[204].mxu0 %vm615_vm2, %v1698_v33 }
 0x1b7   : > { %4108 = vmatmul.mubr.msk.bf16.gmra.mrb[204].mxu1 %vm615_vm2, %v2362_v21  ;;  %3995 = vmatprep.mubr.msk.bf16.mxu0 %vm4238_vm0, %v5165_v44  ;;  %v1707_v21 = vsel %vm1465_vm4, %v1697_v58, %v1706_v6 }
 0x1b8   : > { %4111 = vmatprep.mubr.msk.bf16.mxu1 %vm4238_vm0, %v5165_v44 }
 0x1b9   : > { %v931_v49 = vpop.f32.mrb[100].mxu0 }
 0x1ba   : > { %v1257_v34 = vpop.f32.mrb[100].mxu1  ;;  %v3765_v46 = vpop.f32.mrb[101].mxu0 }
 0x1bb   : > { %v3881_v32 = vpop.f32.mrb[101].mxu1  ;;  %v4912_v57 = vadd.f32 %v1257_v34, %v931_v49  ;;  %v934_v7 = vpop.f32.mrb[102].mxu0 }
 0x1bc   : > { %v1260_v12 = vpop.f32.mrb[102].mxu1  ;;  %v3766_v15 = vpop.f32.mrb[103].mxu0 }
 0x1bd   : > { %v3882_v19 = vpop.f32.mrb[103].mxu1  ;;  %v4916_v16 = vadd.f32 %v1260_v12, %v934_v7 }
 0x1be   : > { %3996 = vmatmul.mubr.msk.bf16.gmra.mrb[208].mxu0 %vm615_vm2, %v1707_v21  ;;  %v4932_v19 = vld [vmem:[%s5157_s2] ss:$0 sm:$0xff] }
 0x1bf   : > { %4112 = vmatmul.mubr.msk.bf16.gmra.mrb[208].mxu1 %vm615_vm2, %v2364_v29  ;;  %3999 = vmatprep.mubr.msk.bf16.mxu0 %vm4238_vm0, %v5165_v44 }
 0x1c0   : > { %4115 = vmatprep.mubr.msk.bf16.mxu1 %vm4238_vm0, %v5165_v44 }
 0x1c1   : > { %v939_v59 = vpop.f32.mrb[104].mxu0 }
 0x1c2   : > { %v1265_v0 = vpop.f32.mrb[104].mxu1  ;;  %v3769_v33 = vpop.f32.mrb[105].mxu0 }
 0x1c3   : > { %v3885_v38 = vpop.f32.mrb[105].mxu1  ;;  %v4924_v1 = vadd.f32 %v1265_v0, %v939_v59  ;;  %v942_v9 = vpop.f32.mrb[106].mxu0 }
 0x1c4   : > { %v1268_v58 = vpop.f32.mrb[106].mxu1  ;;  %v3770_v49 = vpop.f32.mrb[107].mxu0 }
 0x1c5   : > { %v3886_v34 = vpop.f32.mrb[107].mxu1 }
 0x1c6   : > { %4000 = vmatmul.mubr.msk.bf16.gmra.mrb[212].mxu0 %vm615_vm2, %v1706_v6 }
 0x1c7   : > { %4116 = vmatmul.mubr.msk.bf16.gmra.mrb[212].mxu1 %vm615_vm2, %v2363_v41 }
 0x1c9   : > { %v1847_v46 = vpop.f32.mrb[108].mxu0 }
 0x1ca   : > { %v2504_v32 = vpop.f32.mrb[108].mxu1  ;;  %v2061_v44 = vadd.f32 %v1847_v46, %v4563_v11  ;;  %v3897_v29 = vpop.f32.mrb[109].mxu0 }
 0x1cb   : > { %v4013_v12 = vpop.f32.mrb[109].mxu1  ;;  %v1850_v21 = vpop.f32.mrb[110].mxu0 }
 0x1cc   : > { %v2507_v7 = vpop.f32.mrb[110].mxu1  ;;  %v2718_v0 = vadd.f32 %v2504_v32, %v2061_v44  ;;  %v2062_v59 = vadd.f32 %v1850_v21, %v4569_v22  ;;  %v3898_v41 = vpop.f32.mrb[111].mxu0 }
 0x1cd   : > { %v4014_v15 = vpop.f32.mrb[111].mxu1 }
 0x1ce   : > { %v2777_v6 = vadd.f32 %v4932_v19, %v2718_v0  ;;  %v2719_v38 = vadd.f32 %v2507_v7, %v2062_v59 }
 0x1d0   : > { %v2830_v33 = vmax.f32 %v2777_v6, 0.0  ;;  %v2778_v11 = vadd.f32 %v4932_v19, %v2719_v38 }
 0x1d1   : > { %v1855_v9 = vpop.f32.mrb[112].mxu0 }
 0x1d2   : > { %v2512_v58 = vpop.f32.mrb[112].mxu1  ;;  %v3478_v22 = vpack.c.bf16 %v2830_v33, %v2830_v33  ;;  %v2831_v49 = vmax.f32 %v2778_v11, 0.0  ;;  %v2063_v32 = vadd.f32 %v1855_v9, %v4577_v31  ;;  %v3901_v46 = vpop.f32.mrb[113].mxu0 }
 0x1d3   : > { %v4017_v34 = vpop.f32.mrb[113].mxu1  ;;  %v1858_v44 = vpop.f32.mrb[114].mxu0 }
 0x1d4   : > { %v2515_v12 = vpop.f32.mrb[114].mxu1  ;;  %3097 = vst.msk [vmem:[%s4941_s30] sm:$0xf] %vm3096_vm5, %v3478_v22  ;;  %v3479_v7 = vpack.c.bf16 %v2831_v49, %v2831_v49  ;;  %v2720_v21 = vadd.f32 %v2512_v58, %v2063_v32  ;;  %v2064_v15 = vadd.f32 %v1858_v44, %v4583_v42  ;;  %v3902_v0 = vpop.f32.mrb[115].mxu0 }
 0x1d5   : > { %v4018_v29 = vpop.f32.mrb[115].mxu1 }
 0x1d6   : > { %3098 = vst.msk [vmem:[%s4941_s30 + $0x4] sm:$0xf] %vm3096_vm5, %v3479_v7  ;;  %v2779_v59 = vadd.f32 %v4932_v19, %v2720_v21  ;;  %v2721_v41 = vadd.f32 %v2515_v12, %v2064_v15 }
 0x1d8   : > { %v2832_v6 = vmax.f32 %v2779_v59, 0.0  ;;  %v2780_v31 = vadd.f32 %v4932_v19, %v2721_v41 }
 0x1d9   : > { %v1863_v33 = vpop.f32.mrb[116].mxu0 }
 0x1da   : > { %v2520_v38 = vpop.f32.mrb[116].mxu1  ;;  %v3480_v9 = vpack.c.bf16 %v2832_v6, %v2832_v6  ;;  %v2833_v34 = vmax.f32 %v2780_v31, 0.0  ;;  %v2065_v58 = vadd.f32 %v1863_v33, %v4591_v51  ;;  %v3905_v22 = vpop.f32.mrb[117].mxu0 }
 0x1db   : > { %v4021_v11 = vpop.f32.mrb[117].mxu1  ;;  %v1866_v49 = vpop.f32.mrb[118].mxu0 }
 0x1dc   : > { %v2523_v42 = vpop.f32.mrb[118].mxu1  ;;  %3099 = vst.msk [vmem:[%s4941_s30 + $0x8] sm:$0xf] %vm3096_vm5, %v3480_v9  ;;  %v3481_v46 = vpack.c.bf16 %v2833_v34, %v2833_v34  ;;  %v2722_v44 = vadd.f32 %v2520_v38, %v2065_v58  ;;  %v2066_v12 = vadd.f32 %v1866_v49, %v4597_v62  ;;  %v3906_v29 = vpop.f32.mrb[119].mxu0 }
 0x1dd   : > { %v4022_v32 = vpop.f32.mrb[119].mxu1 }
 0x1de   : > { %3100 = vst.msk [vmem:[%s4941_s30 + $0xc] sm:$0xf] %vm3096_vm5, %v3481_v46  ;;  %v2781_v7 = vadd.f32 %v4932_v19, %v2722_v44  ;;  %v2723_v21 = vadd.f32 %v2523_v42, %v2066_v12 }
 0x1e0   : > { %v2834_v15 = vmax.f32 %v2781_v7, 0.0  ;;  %v2782_v51 = vadd.f32 %v4932_v19, %v2723_v21 }
 0x1e1   : > { %v1871_v59 = vpop.f32.mrb[120].mxu0 }
 0x1e2   : > { %v2528_v0 = vpop.f32.mrb[120].mxu1  ;;  %v3482_v6 = vpack.c.bf16 %v2834_v15, %v2834_v15  ;;  %v2835_v31 = vmax.f32 %v2782_v51, 0.0  ;;  %v2067_v38 = vadd.f32 %v1871_v59, %v4605_v8  ;;  %v3909_v33 = vpop.f32.mrb[121].mxu0 }
 0x1e3   : > { %v4025_v41 = vpop.f32.mrb[121].mxu1  ;;  %v1874_v11 = vpop.f32.mrb[122].mxu0 }
 0x1e4   : > { %v2531_v62 = vpop.f32.mrb[122].mxu1  ;;  %3101 = vst.msk [vmem:[%s4941_s30 + $0x10] sm:$0xf] %vm3096_vm5, %v3482_v6  ;;  %v3483_v34 = vpack.c.bf16 %v2835_v31, %v2835_v31  ;;  %v2724_v58 = vadd.f32 %v2528_v0, %v2067_v38  ;;  %v2068_v22 = vadd.f32 %v1874_v11, %v4611_v20  ;;  %v3910_v42 = vpop.f32.mrb[123].mxu0 }
 0x1e5   : > { %v4026_v9 = vpop.f32.mrb[123].mxu1 }
 0x1e6   : > { %3102 = vst.msk [vmem:[%s4941_s30 + $0x14] sm:$0xf] %vm3096_vm5, %v3483_v34  ;;  %v2783_v49 = vadd.f32 %v4932_v19, %v2724_v58  ;;  %v2725_v32 = vadd.f32 %v2531_v62, %v2068_v22 }
 0x1e8   : > { %v2836_v46 = vmax.f32 %v2783_v49, 0.0  ;;  %v2784_v8 = vadd.f32 %v4932_v19, %v2725_v32 }
 0x1e9   : > { %v1879_v12 = vpop.f32.mrb[124].mxu0 }
 0x1ea   : > { %v2536_v44 = vpop.f32.mrb[124].mxu1  ;;  %v3484_v7 = vpack.c.bf16 %v2836_v46, %v2836_v46  ;;  %v2837_v21 = vmax.f32 %v2784_v8, 0.0  ;;  %v2069_v15 = vadd.f32 %v1879_v12, %v4619_v30  ;;  %v3913_v51 = vpop.f32.mrb[125].mxu0 }
 0x1eb   : > { %v4029_v29 = vpop.f32.mrb[125].mxu1  ;;  %v1882_v0 = vpop.f32.mrb[126].mxu0 }
 0x1ec   : > { %v2539_v20 = vpop.f32.mrb[126].mxu1  ;;  %3103 = vst.msk [vmem:[%s4941_s30 + $0x18] sm:$0xf] %vm3096_vm5, %v3484_v7  ;;  %v3485_v41 = vpack.c.bf16 %v2837_v21, %v2837_v21  ;;  %v2726_v6 = vadd.f32 %v2536_v44, %v2069_v15  ;;  %v2070_v31 = vadd.f32 %v1882_v0, %v4625_v43  ;;  %v3914_v38 = vpop.f32.mrb[127].mxu0 }
 0x1ed   : > { %v4030_v59 = vpop.f32.mrb[127].mxu1 }
 0x1ee   : > { %3104 = vst.msk [vmem:[%s4941_s30 + $0x1c] sm:$0xf] %vm3096_vm5, %v3485_v41  ;;  %v2785_v33 = vadd.f32 %v4932_v19, %v2726_v6  ;;  %v2727_v62 = vadd.f32 %v2539_v20, %v2070_v31 }
 0x1f0   : > { %v2838_v11 = vmax.f32 %v2785_v33, 0.0  ;;  %v2786_v30 = vadd.f32 %v4932_v19, %v2727_v62 }
 0x1f1   : > { %v1887_v34 = vpop.f32.mrb[128].mxu0 }
 0x1f2   : > { %v2544_v9 = vpop.f32.mrb[128].mxu1  ;;  %v3486_v22 = vpack.c.bf16 %v2838_v11, %v2838_v11  ;;  %v2839_v42 = vmax.f32 %v2786_v30, 0.0  ;;  %v2071_v49 = vadd.f32 %v1887_v34, %v4633_v53  ;;  %v3917_v32 = vpop.f32.mrb[129].mxu0 }
 0x1f3   : > { %v4033_v58 = vpop.f32.mrb[129].mxu1  ;;  %v1890_v46 = vpop.f32.mrb[130].mxu0 }
 0x1f4   : > { %v2547_v43 = vpop.f32.mrb[130].mxu1  ;;  %3105 = vst.msk [vmem:[%s4941_s30 + $0x20] sm:$0xf] %vm3096_vm5, %v3486_v22  ;;  %v3487_v44 = vpack.c.bf16 %v2839_v42, %v2839_v42  ;;  %v2728_v12 = vadd.f32 %v2544_v9, %v2071_v49  ;;  %v2072_v29 = vadd.f32 %v1890_v46, %v4639_v2  ;;  %v3918_v7 = vpop.f32.mrb[131].mxu0 }
 0x1f5   : > { %v4034_v8 = vpop.f32.mrb[131].mxu1 }
 0x1f6   : > { %3106 = vst.msk [vmem:[%s4941_s30 + $0x24] sm:$0xf] %vm3096_vm5, %v3487_v44  ;;  %v2787_v21 = vadd.f32 %v4932_v19, %v2728_v12  ;;  %v2729_v15 = vadd.f32 %v2547_v43, %v2072_v29 }
 0x1f8   : > { %v2840_v51 = vmax.f32 %v2787_v21, 0.0  ;;  %v2788_v53 = vadd.f32 %v4932_v19, %v2729_v15 }
 0x1f9   : > { %v1895_v0 = vpop.f32.mrb[132].mxu0 }
 0x1fa   : > { %v2552_v20 = vpop.f32.mrb[132].mxu1  ;;  %v3488_v41 = vpack.c.bf16 %v2840_v51, %v2840_v51  ;;  %v2841_v6 = vmax.f32 %v2788_v53, 0.0  ;;  %v2073_v31 = vadd.f32 %v1895_v0, %v4647_v13  ;;  %v3921_v38 = vpop.f32.mrb[133].mxu0 }
 0x1fb   : > { %v4037_v59 = vpop.f32.mrb[133].mxu1  ;;  %v1898_v33 = vpop.f32.mrb[134].mxu0 }
 0x1fc   : > { %v2555_v2 = vpop.f32.mrb[134].mxu1  ;;  %3107 = vst.msk [vmem:[%s4941_s30 + $0x28] sm:$0xf] %vm3096_vm5, %v3488_v41  ;;  %v3489_v11 = vpack.c.bf16 %v2841_v6, %v2841_v6  ;;  %v2730_v30 = vadd.f32 %v2552_v20, %v2073_v31  ;;  %v2074_v9 = vadd.f32 %v1898_v33, %v4653_v26  ;;  %v3922_v34 = vpop.f32.mrb[135].mxu0 }
 0x1fd   : > { %v4038_v62 = vpop.f32.mrb[135].mxu1 }
 0x1fe   : > { %3108 = vst.msk [vmem:[%s4941_s30 + $0x2c] sm:$0xf] %vm3096_vm5, %v3489_v11  ;;  %v2789_v58 = vadd.f32 %v4932_v19, %v2730_v30  ;;  %v2731_v22 = vadd.f32 %v2555_v2, %v2074_v9 }
 0x200   : > { %v2842_v42 = vmax.f32 %v2789_v58, 0.0  ;;  %v2790_v13 = vadd.f32 %v4932_v19, %v2731_v22 }
 0x201   : > { %v1903_v32 = vpop.f32.mrb[136].mxu0 }
 0x202   : > { %v2560_v49 = vpop.f32.mrb[136].mxu1  ;;  %v3490_v46 = vpack.c.bf16 %v2842_v42, %v2842_v42  ;;  %v2843_v8 = vmax.f32 %v2790_v13, 0.0  ;;  %v2075_v44 = vadd.f32 %v1903_v32, %v4661_v37  ;;  %v3925_v12 = vpop.f32.mrb[137].mxu0 }
 0x203   : > { %v4041_v43 = vpop.f32.mrb[137].mxu1  ;;  %v1906_v29 = vpop.f32.mrb[138].mxu0 }
 0x204   : > { %v2563_v26 = vpop.f32.mrb[138].mxu1  ;;  %3109 = vst.msk [vmem:[%s4941_s30 + $0x30] sm:$0xf] %vm3096_vm5, %v3490_v46  ;;  %v3491_v21 = vpack.c.bf16 %v2843_v8, %v2843_v8  ;;  %v2732_v15 = vadd.f32 %v2560_v49, %v2075_v44  ;;  %v2076_v51 = vadd.f32 %v1906_v29, %v4667_v50  ;;  %v3926_v53 = vpop.f32.mrb[139].mxu0 }
 0x205   : > { %v4042_v7 = vpop.f32.mrb[139].mxu1 }
 0x206   : > { %3110 = vst.msk [vmem:[%s4941_s30 + $0x34] sm:$0xf] %vm3096_vm5, %v3491_v21  ;;  %v2791_v20 = vadd.f32 %v4932_v19, %v2732_v15  ;;  %v2733_v0 = vadd.f32 %v2563_v26, %v2076_v51 }
 0x208   : > { %v2844_v59 = vmax.f32 %v2791_v20, 0.0  ;;  %v2792_v37 = vadd.f32 %v4932_v19, %v2733_v0 }
 0x209   : > { %v1911_v6 = vpop.f32.mrb[140].mxu0 }
 0x20a   : > { %v2568_v41 = vpop.f32.mrb[140].mxu1  ;;  %v3492_v38 = vpack.c.bf16 %v2844_v59, %v2844_v59  ;;  %v2845_v2 = vmax.f32 %v2792_v37, 0.0  ;;  %v2077_v33 = vadd.f32 %v1911_v6, %v4675_v61  ;;  %v3929_v62 = vpop.f32.mrb[141].mxu0 }
 0x20b   : > { %v4045_v31 = vpop.f32.mrb[141].mxu1  ;;  %v1914_v11 = vpop.f32.mrb[142].mxu0 }
 0x20c   : > { %v2571_v50 = vpop.f32.mrb[142].mxu1  ;;  %3111 = vst.msk [vmem:[%s4941_s30 + $0x38] sm:$0xf] %vm3096_vm5, %v3492_v38  ;;  %v3493_v9 = vpack.c.bf16 %v2845_v2, %v2845_v2  ;;  %v2734_v34 = vadd.f32 %v2568_v41, %v2077_v33  ;;  %v2078_v58 = vadd.f32 %v1914_v11, %v4681_v14  ;;  %v3930_v22 = vpop.f32.mrb[143].mxu0 }
 0x20d   : > { %v4046_v30 = vpop.f32.mrb[143].mxu1 }
 0x20e   : > { %3112 = vst.msk [vmem:[%s4941_s30 + $0x3c] sm:$0xf] %vm3096_vm5, %v3493_v9  ;;  %v2793_v42 = vadd.f32 %v4932_v19, %v2734_v34  ;;  %v2735_v13 = vadd.f32 %v2571_v50, %v2078_v58 }
 0x210   : > { %v2846_v49 = vmax.f32 %v2793_v42, 0.0  ;;  %v2794_v61 = vadd.f32 %v4932_v19, %v2735_v13 }
 0x211   : > { %v1919_v43 = vpop.f32.mrb[144].mxu0 }
 0x212   : > { %v2576_v32 = vpop.f32.mrb[144].mxu1  ;;  %v3494_v8 = vpack.c.bf16 %v2846_v49, %v2846_v49  ;;  %v2847_v44 = vmax.f32 %v2794_v61, 0.0  ;;  %v2079_v12 = vadd.f32 %v1919_v43, %v4689_v25  ;;  %v3933_v26 = vpop.f32.mrb[145].mxu0 }
 0x213   : > { %v4049_v46 = vpop.f32.mrb[145].mxu1  ;;  %v1922_v29 = vpop.f32.mrb[146].mxu0 }
 0x214   : > { %v2579_v14 = vpop.f32.mrb[146].mxu1  ;;  %3113 = vst.msk [vmem:[%s4941_s30 + $0x40] sm:$0xf] %vm3096_vm5, %v3494_v8  ;;  %v3495_v21 = vpack.c.bf16 %v2847_v44, %v2847_v44  ;;  %v2736_v15 = vadd.f32 %v2576_v32, %v2079_v12  ;;  %v2080_v51 = vadd.f32 %v1922_v29, %v4695_v40  ;;  %v3934_v53 = vpop.f32.mrb[147].mxu0 }
 0x215   : > { %v4050_v7 = vpop.f32.mrb[147].mxu1 }
 0x216   : > { %3114 = vst.msk [vmem:[%s4941_s30 + $0x44] sm:$0xf] %vm3096_vm5, %v3495_v21  ;;  %v2795_v20 = vadd.f32 %v4932_v19, %v2736_v15  ;;  %v2737_v0 = vadd.f32 %v2579_v14, %v2080_v51 }
 0x218   : > { %v2848_v59 = vmax.f32 %v2795_v20, 0.0  ;;  %v2796_v25 = vadd.f32 %v4932_v19, %v2737_v0 }
 0x219   : > { %v1927_v41 = vpop.f32.mrb[148].mxu0 }
 0x21a   : > { %v2584_v37 = vpop.f32.mrb[148].mxu1  ;;  %v3496_v31 = vpack.c.bf16 %v2848_v59, %v2848_v59  ;;  %v2849_v38 = vmax.f32 %v2796_v25, 0.0  ;;  %v2081_v2 = vadd.f32 %v1927_v41, %v4703_v54  ;;  %v3937_v33 = vpop.f32.mrb[149].mxu0 }
 0x21b   : > { %v4053_v6 = vpop.f32.mrb[149].mxu1  ;;  %v1930_v62 = vpop.f32.mrb[150].mxu0 }
 0x21c   : > { %v2587_v40 = vpop.f32.mrb[150].mxu1  ;;  %3115 = vst.msk [vmem:[%s4941_s30 + $0x48] sm:$0xf] %vm3096_vm5, %v3496_v31  ;;  %v3497_v11 = vpack.c.bf16 %v2849_v38, %v2849_v38  ;;  %v2738_v30 = vadd.f32 %v2584_v37, %v2081_v2  ;;  %v2082_v9 = vadd.f32 %v1930_v62, %v4709_v5  ;;  %v3938_v34 = vpop.f32.mrb[151].mxu0 }
 0x21d   : > { %v4054_v50 = vpop.f32.mrb[151].mxu1 }
 0x21e   : > { %3116 = vst.msk [vmem:[%s4941_s30 + $0x4c] sm:$0xf] %vm3096_vm5, %v3497_v11  ;;  %v2797_v58 = vadd.f32 %v4932_v19, %v2738_v30  ;;  %v2739_v22 = vadd.f32 %v2587_v40, %v2082_v9 }
 0x220   : > { %v2850_v42 = vmax.f32 %v2797_v58, 0.0  ;;  %v2798_v54 = vadd.f32 %v4932_v19, %v2739_v22 }
 0x221   : > { %v1935_v49 = vpop.f32.mrb[152].mxu0 }
 0x222   : > { %v2592_v13 = vpop.f32.mrb[152].mxu1  ;;  %v3498_v32 = vpack.c.bf16 %v2850_v42, %v2850_v42  ;;  %v2851_v43 = vmax.f32 %v2798_v54, 0.0  ;;  %v2083_v46 = vadd.f32 %v1935_v49, %v4717_v18  ;;  %v3941_v8 = vpop.f32.mrb[153].mxu0 }
 0x223   : > { %v4057_v61 = vpop.f32.mrb[153].mxu1  ;;  %v1938_v44 = vpop.f32.mrb[154].mxu0 }
 0x224   : > { %v2595_v5 = vpop.f32.mrb[154].mxu1  ;;  %3117 = vst.msk [vmem:[%s4941_s30 + $0x50] sm:$0xf] %vm3096_vm5, %v3498_v32  ;;  %v3499_v26 = vpack.c.bf16 %v2851_v43, %v2851_v43  ;;  %v2740_v14 = vadd.f32 %v2592_v13, %v2083_v46  ;;  %v2084_v29 = vadd.f32 %v1938_v44, %v4723_v35  ;;  %v3942_v7 = vpop.f32.mrb[155].mxu0 }
 0x225   : > { %v4058_v12 = vpop.f32.mrb[155].mxu1 }
 0x226   : > { %3118 = vst.msk [vmem:[%s4941_s30 + $0x54] sm:$0xf] %vm3096_vm5, %v3499_v26  ;;  %v2799_v21 = vadd.f32 %v4932_v19, %v2740_v14  ;;  %v2741_v15 = vadd.f32 %v2595_v5, %v2084_v29 }
 0x228   : > { %v2852_v51 = vmax.f32 %v2799_v21, 0.0  ;;  %v2800_v18 = vadd.f32 %v4932_v19, %v2741_v15 }
 0x229   : > { %v1943_v20 = vpop.f32.mrb[156].mxu0 }
 0x22a   : > { %v2600_v53 = vpop.f32.mrb[156].mxu1  ;;  %v3500_v59 = vpack.c.bf16 %v2852_v51, %v2852_v51  ;;  %v2853_v25 = vmax.f32 %v2800_v18, 0.0  ;;  %v2085_v37 = vadd.f32 %v1943_v20, %v4731_v48  ;;  %v3945_v41 = vpop.f32.mrb[157].mxu0 }
 0x22b   : > { %v4061_v0 = vpop.f32.mrb[157].mxu1  ;;  %v1946_v6 = vpop.f32.mrb[158].mxu0 }
 0x22c   : > { %v2603_v35 = vpop.f32.mrb[158].mxu1  ;;  %3119 = vst.msk [vmem:[%s4941_s30 + $0x58] sm:$0xf] %vm3096_vm5, %v3500_v59  ;;  %v3501_v38 = vpack.c.bf16 %v2853_v25, %v2853_v25  ;;  %v2742_v2 = vadd.f32 %v2600_v53, %v2085_v37  ;;  %v2086_v33 = vadd.f32 %v1946_v6, %v4737_v3  ;;  %v3946_v40 = vpop.f32.mrb[159].mxu0 }
 0x22d   : > { %v4062_v31 = vpop.f32.mrb[159].mxu1 }
 0x22e   : > { %3120 = vst.msk [vmem:[%s4941_s30 + $0x5c] sm:$0xf] %vm3096_vm5, %v3501_v38  ;;  %v2801_v62 = vadd.f32 %v4932_v19, %v2742_v2  ;;  %v2743_v50 = vadd.f32 %v2603_v35, %v2086_v33 }
 0x230   : > { %v2854_v11 = vmax.f32 %v2801_v62, 0.0  ;;  %v2802_v48 = vadd.f32 %v4932_v19, %v2743_v50 }
 0x231   : > { %v1951_v9 = vpop.f32.mrb[160].mxu0 }
 0x232   : > { %v2608_v30 = vpop.f32.mrb[160].mxu1  ;;  %v3502_v58 = vpack.c.bf16 %v2854_v11, %v2854_v11  ;;  %v2855_v22 = vmax.f32 %v2802_v48, 0.0  ;;  %v2087_v42 = vadd.f32 %v1951_v9, %v4745_v17  ;;  %v3949_v54 = vpop.f32.mrb[161].mxu0 }
 0x233   : > { %v4065_v34 = vpop.f32.mrb[161].mxu1  ;;  %v1954_v13 = vpop.f32.mrb[162].mxu0 }
 0x234   : > { %v2611_v3 = vpop.f32.mrb[162].mxu1  ;;  %3121 = vst.msk [vmem:[%s4941_s30 + $0x60] sm:$0xf] %vm3096_vm5, %v3502_v58  ;;  %v3503_v61 = vpack.c.bf16 %v2855_v22, %v2855_v22  ;;  %v2744_v32 = vadd.f32 %v2608_v30, %v2087_v42  ;;  %v2088_v43 = vadd.f32 %v1954_v13, %v4751_v36  ;;  %v3950_v46 = vpop.f32.mrb[163].mxu0 }
 0x235   : > { %v4066_v49 = vpop.f32.mrb[163].mxu1 }
 0x236   : > { %3122 = vst.msk [vmem:[%s4941_s30 + $0x64] sm:$0xf] %vm3096_vm5, %v3503_v61  ;;  %v2803_v8 = vadd.f32 %v4932_v19, %v2744_v32  ;;  %v2745_v5 = vadd.f32 %v2611_v3, %v2088_v43 }
 0x238   : > { %v2856_v44 = vmax.f32 %v2803_v8, 0.0  ;;  %v2804_v17 = vadd.f32 %v4932_v19, %v2745_v5 }
 0x239   : > { %v1959_v26 = vpop.f32.mrb[164].mxu0 }
 0x23a   : > { %v2616_v12 = vpop.f32.mrb[164].mxu1  ;;  %v3504_v29 = vpack.c.bf16 %v2856_v44, %v2856_v44  ;;  %v2857_v7 = vmax.f32 %v2804_v17, 0.0  ;;  %v2089_v21 = vadd.f32 %v1959_v26, %v4759_v52  ;;  %v3953_v15 = vpop.f32.mrb[165].mxu0 }
 0x23b   : > { %v4069_v14 = vpop.f32.mrb[165].mxu1  ;;  %v1962_v51 = vpop.f32.mrb[166].mxu0 }
 0x23c   : > { %v2619_v36 = vpop.f32.mrb[166].mxu1  ;;  %3123 = vst.msk [vmem:[%s4941_s30 + $0x68] sm:$0xf] %vm3096_vm5, %v3504_v29  ;;  %v3505_v53 = vpack.c.bf16 %v2857_v7, %v2857_v7  ;;  %v2746_v20 = vadd.f32 %v2616_v12, %v2089_v21  ;;  %v2090_v0 = vadd.f32 %v1962_v51, %v4765_v10  ;;  %v3954_v59 = vpop.f32.mrb[167].mxu0 }
 0x23d   : > { %v4070_v18 = vpop.f32.mrb[167].mxu1 }
 0x23e   : > { %3124 = vst.msk [vmem:[%s4941_s30 + $0x6c] sm:$0xf] %vm3096_vm5, %v3505_v53  ;;  %v2805_v25 = vadd.f32 %v4932_v19, %v2746_v20  ;;  %v2747_v37 = vadd.f32 %v2619_v36, %v2090_v0 }
 0x240   : > { %v2858_v41 = vmax.f32 %v2805_v25, 0.0  ;;  %v2806_v52 = vadd.f32 %v4932_v19, %v2747_v37 }
 0x241   : > { %v1967_v6 = vpop.f32.mrb[168].mxu0 }
 0x242   : > { %v2624_v35 = vpop.f32.mrb[168].mxu1  ;;  %v3506_v38 = vpack.c.bf16 %v2858_v41, %v2858_v41  ;;  %v2859_v2 = vmax.f32 %v2806_v52, 0.0  ;;  %v2091_v33 = vadd.f32 %v1967_v6, %v4773_v24  ;;  %v3957_v40 = vpop.f32.mrb[169].mxu0 }
 0x243   : > { %v4073_v31 = vpop.f32.mrb[169].mxu1  ;;  %v1970_v62 = vpop.f32.mrb[170].mxu0 }
 0x244   : > { %v2627_v10 = vpop.f32.mrb[170].mxu1  ;;  %3125 = vst.msk [vmem:[%s4941_s30 + $0x70] sm:$0xf] %vm3096_vm5, %v3506_v38  ;;  %v3507_v11 = vpack.c.bf16 %v2859_v2, %v2859_v2  ;;  %v2748_v48 = vadd.f32 %v2624_v35, %v2091_v33  ;;  %v2092_v30 = vadd.f32 %v1970_v62, %v4779_v47  ;;  %v3958_v9 = vpop.f32.mrb[171].mxu0 }
 0x245   : > { %v4074_v50 = vpop.f32.mrb[171].mxu1 }
 0x246   : > { %3126 = vst.msk [vmem:[%s4941_s30 + $0x74] sm:$0xf] %vm3096_vm5, %v3507_v11  ;;  %v2807_v34 = vadd.f32 %v4932_v19, %v2748_v48  ;;  %v2749_v58 = vadd.f32 %v2627_v10, %v2092_v30 }
 0x248   : > { %v2860_v22 = vmax.f32 %v2807_v34, 0.0  ;;  %v2808_v24 = vadd.f32 %v4932_v19, %v2749_v58 }
 0x249   : > { %v1975_v54 = vpop.f32.mrb[172].mxu0 }
 0x24a   : > { %v2632_v42 = vpop.f32.mrb[172].mxu1  ;;  %v3508_v13 = vpack.c.bf16 %v2860_v22, %v2860_v22  ;;  %v2861_v49 = vmax.f32 %v2808_v24, 0.0  ;;  %v2093_v61 = vadd.f32 %v1975_v54, %v4787_v60  ;;  %v3961_v32 = vpop.f32.mrb[173].mxu0 }
 0x24b   : > { %v4077_v3 = vpop.f32.mrb[173].mxu1  ;;  %v1978_v43 = vpop.f32.mrb[174].mxu0 }
 0x24c   : > { %v2635_v47 = vpop.f32.mrb[174].mxu1  ;;  %3127 = vst.msk [vmem:[%s4941_s30 + $0x78] sm:$0xf] %vm3096_vm5, %v3508_v13  ;;  %v3509_v8 = vpack.c.bf16 %v2861_v49, %v2861_v49  ;;  %v2750_v5 = vadd.f32 %v2632_v42, %v2093_v61  ;;  %v2094_v44 = vadd.f32 %v1978_v43, %v4793_v27  ;;  %v3962_v17 = vpop.f32.mrb[175].mxu0 }
 0x24d   : > { %v4078_v46 = vpop.f32.mrb[175].mxu1 }
 0x24e   : > { %3128 = vst.msk [vmem:[%s4941_s30 + $0x7c] sm:$0xf] %vm3096_vm5, %v3509_v8  ;;  %v2809_v12 = vadd.f32 %v4932_v19, %v2750_v5  ;;  %v2751_v26 = vadd.f32 %v2635_v47, %v2094_v44 }
 0x250   : > { %v2862_v14 = vmax.f32 %v2809_v12, 0.0  ;;  %v2810_v60 = vadd.f32 %v4932_v19, %v2751_v26 }
 0x251   : > { %v1983_v7 = vpop.f32.mrb[176].mxu0 }
 0x252   : > { %v2640_v29 = vpop.f32.mrb[176].mxu1  ;;  %v3510_v15 = vpack.c.bf16 %v2862_v14, %v2862_v14  ;;  %v2863_v36 = vmax.f32 %v2810_v60, 0.0  ;;  %v2095_v51 = vadd.f32 %v1983_v7, %v4801_v39  ;;  %v3965_v18 = vpop.f32.mrb[177].mxu0 }
 0x253   : > { %v4081_v21 = vpop.f32.mrb[177].mxu1  ;;  %v1986_v53 = vpop.f32.mrb[178].mxu0 }
 0x254   : > { %v2643_v27 = vpop.f32.mrb[178].mxu1  ;;  %3129 = vst.msk [vmem:[%s4941_s30 + $0x80] sm:$0xf] %vm3096_vm5, %v3510_v15  ;;  %v3511_v0 = vpack.c.bf16 %v2863_v36, %v2863_v36  ;;  %v2752_v59 = vadd.f32 %v2640_v29, %v2095_v51  ;;  %v2096_v25 = vadd.f32 %v1986_v53, %v4807_v4  ;;  %v3966_v37 = vpop.f32.mrb[179].mxu0  ;;  %v5170_v21 = vld [vmem:[#allocation2_spill] sm:$0xff] }
 0x255   : > { %v4082_v20 = vpop.f32.mrb[179].mxu1 }
 0x256   : > { %3130 = vst.msk [vmem:[%s4941_s30 + $0x84] sm:$0xf] %vm3096_vm5, %v3511_v0  ;;  %v2811_v41 = vadd.f32 %v4932_v19, %v2752_v59  ;;  %v2753_v52 = vadd.f32 %v2643_v27, %v2096_v25  ;;  %v5171_v20 = vld [vmem:[#allocation3_spill] sm:$0xff] }
 0x258   : > { %v2864_v35 = vmax.f32 %v2811_v41, 0.0  ;;  %v2812_v39 = vadd.f32 %v4932_v19, %v2753_v52 }
 0x259   : > { %v1991_v31 = vpop.f32.mrb[180].mxu0 }
 0x25a   : > { %v2648_v6 = vpop.f32.mrb[180].mxu1  ;;  %v3512_v2 = vpack.c.bf16 %v2864_v35, %v2864_v35  ;;  %v2865_v33 = vmax.f32 %v2812_v39, 0.0  ;;  %v2097_v40 = vadd.f32 %v1991_v31, %v4815_v23  ;;  %v3969_v10 = vpop.f32.mrb[181].mxu0 }
 0x25b   : > { %v4085_v38 = vpop.f32.mrb[181].mxu1  ;;  %v1994_v62 = vpop.f32.mrb[182].mxu0 }
 0x25c   : > { %v2651_v4 = vpop.f32.mrb[182].mxu1  ;;  %3131 = vst.msk [vmem:[%s4941_s30 + $0x88] sm:$0xf] %vm3096_vm5, %v3512_v2  ;;  %v3513_v11 = vpack.c.bf16 %v2865_v33, %v2865_v33  ;;  %v2754_v48 = vadd.f32 %v2648_v6, %v2097_v40  ;;  %v2098_v30 = vadd.f32 %v1994_v62, %v4821_v56  ;;  %v3970_v9 = vpop.f32.mrb[183].mxu0  ;;  %v5172_v2 = vld [vmem:[#allocation4_spill] sm:$0xff] }
 0x25d   : > { %v4086_v50 = vpop.f32.mrb[183].mxu1 }
 0x25e   : > { %3132 = vst.msk [vmem:[%s4941_s30 + $0x8c] sm:$0xf] %vm3096_vm5, %v3513_v11  ;;  %v2813_v34 = vadd.f32 %v4932_v19, %v2754_v48  ;;  %v2755_v58 = vadd.f32 %v2651_v4, %v2098_v30  ;;  %v5173_v48 = vld [vmem:[#allocation5_spill] sm:$0xff] }
 0x260   : > { %v2866_v22 = vmax.f32 %v2813_v34, 0.0  ;;  %v2814_v23 = vadd.f32 %v4932_v19, %v2755_v58 }
 0x261   : > { %v1999_v42 = vpop.f32.mrb[184].mxu0 }
 0x262   : > { %v2656_v24 = vpop.f32.mrb[184].mxu1  ;;  %v3514_v3 = vpack.c.bf16 %v2866_v22, %v2866_v22  ;;  %v2867_v13 = vmax.f32 %v2814_v23, 0.0  ;;  %v2099_v49 = vadd.f32 %v1999_v42, %v4829_v55  ;;  %v3973_v61 = vpop.f32.mrb[185].mxu0 }
 0x263   : > { %v4089_v54 = vpop.f32.mrb[185].mxu1  ;;  %v2002_v32 = vpop.f32.mrb[186].mxu0 }
 0x264   : > { %v2659_v56 = vpop.f32.mrb[186].mxu1  ;;  %3133 = vst.msk [vmem:[%s4941_s30 + $0x90] sm:$0xf] %vm3096_vm5, %v3514_v3  ;;  %v3515_v43 = vpack.c.bf16 %v2867_v13, %v2867_v13  ;;  %v2756_v46 = vadd.f32 %v2656_v24, %v2099_v49  ;;  %v2100_v8 = vadd.f32 %v2002_v32, %v4835_v45  ;;  %v3974_v5 = vpop.f32.mrb[187].mxu0  ;;  %v5174_v49 = vld [vmem:[#allocation6_spill] sm:$0xff] }
 0x265   : > { %v4090_v47 = vpop.f32.mrb[187].mxu1  ;;  %v5175_v5 = vld [vmem:[#allocation7_spill] sm:$0xff] }
 0x266   : > { %3134 = vst.msk [vmem:[%s4941_s30 + $0x94] sm:$0xf] %vm3096_vm5, %v3515_v43  ;;  %v2815_v44 = vadd.f32 %v4932_v19, %v2756_v46  ;;  %v2757_v17 = vadd.f32 %v2659_v56, %v2100_v8 }
 0x268   : > { %v2868_v12 = vmax.f32 %v2815_v44, 0.0  ;;  %v2816_v55 = vadd.f32 %v4932_v19, %v2757_v17 }
 0x269   : > { %v2007_v14 = vpop.f32.mrb[188].mxu0 }
 0x26a   : > { %v2664_v26 = vpop.f32.mrb[188].mxu1  ;;  %v3516_v29 = vpack.c.bf16 %v2868_v12, %v2868_v12  ;;  %v2869_v7 = vmax.f32 %v2816_v55, 0.0  ;;  %v2101_v15 = vadd.f32 %v2007_v14, %v5170_v21  ;;  %v3977_v36 = vpop.f32.mrb[189].mxu0 }
 0x26b   : > { %v4093_v60 = vpop.f32.mrb[189].mxu1  ;;  %v2010_v51 = vpop.f32.mrb[190].mxu0  ;;  %v5176_v36 = vld [vmem:[#allocation8_spill] sm:$0xff] }
 0x26c   : > { %v2667_v45 = vpop.f32.mrb[190].mxu1  ;;  %3135 = vst.msk [vmem:[%s4941_s30 + $0x98] sm:$0xf] %vm3096_vm5, %v3516_v29  ;;  %v3517_v27 = vpack.c.bf16 %v2869_v7, %v2869_v7  ;;  %v2758_v53 = vadd.f32 %v2664_v26, %v2101_v15  ;;  %v2102_v0 = vadd.f32 %v2010_v51, %v5171_v20  ;;  %v3978_v59 = vpop.f32.mrb[191].mxu0 }
 0x26d   : > { %v4094_v18 = vpop.f32.mrb[191].mxu1  ;;  %v5177_v59 = vld [vmem:[#allocation9_spill] sm:$0xff] }
 0x26e   : > { %3136 = vst.msk [vmem:[%s4941_s30 + $0x9c] sm:$0xf] %vm3096_vm5, %v3517_v27  ;;  %v2817_v25 = vadd.f32 %v4932_v19, %v2758_v53  ;;  %v2759_v37 = vadd.f32 %v2667_v45, %v2102_v0 }
 0x270   : > { %v2870_v41 = vmax.f32 %v2817_v25, 0.0  ;;  %v2818_v52 = vadd.f32 %v4932_v19, %v2759_v37 }
 0x271   : > { %v2015_v39 = vpop.f32.mrb[192].mxu0 }
 0x272   : > { %v2672_v35 = vpop.f32.mrb[192].mxu1  ;;  %v3518_v31 = vpack.c.bf16 %v2870_v41, %v2870_v41  ;;  %v2871_v38 = vmax.f32 %v2818_v52, 0.0  ;;  %v2103_v33 = vadd.f32 %v2015_v39, %v5172_v2  ;;  %v3981_v40 = vpop.f32.mrb[193].mxu0 }
 0x273   : > { %v4097_v6 = vpop.f32.mrb[193].mxu1  ;;  %v2018_v4 = vpop.f32.mrb[194].mxu0 }
 0x274   : > { %v2675_v10 = vpop.f32.mrb[194].mxu1  ;;  %3137 = vst.msk [vmem:[%s4941_s30 + $0xa0] sm:$0xf] %vm3096_vm5, %v3518_v31  ;;  %v3519_v50 = vpack.c.bf16 %v2871_v38, %v2871_v38  ;;  %v2760_v11 = vadd.f32 %v2672_v35, %v2103_v33  ;;  %v2104_v30 = vadd.f32 %v2018_v4, %v5173_v48  ;;  %v3982_v9 = vpop.f32.mrb[195].mxu0 }
 0x275   : > { %v4098_v62 = vpop.f32.mrb[195].mxu1 }
 0x276   : > { %3138 = vst.msk [vmem:[%s4941_s30 + $0xa4] sm:$0xf] %vm3096_vm5, %v3519_v50  ;;  %v2819_v34 = vadd.f32 %v4932_v19, %v2760_v11  ;;  %v2761_v58 = vadd.f32 %v2675_v10, %v2104_v30 }
 0x278   : > { %v2872_v22 = vmax.f32 %v2819_v34, 0.0  ;;  %v2820_v23 = vadd.f32 %v4932_v19, %v2761_v58 }
 0x279   : > { %v2023_v42 = vpop.f32.mrb[196].mxu0 }
 0x27a   : > { %v2680_v24 = vpop.f32.mrb[196].mxu1  ;;  %v3520_v3 = vpack.c.bf16 %v2872_v22, %v2872_v22  ;;  %v2873_v13 = vmax.f32 %v2820_v23, 0.0  ;;  %v2105_v61 = vadd.f32 %v2023_v42, %v5174_v49  ;;  %v3985_v56 = vpop.f32.mrb[197].mxu0 }
 0x27b   : > { %v4101_v54 = vpop.f32.mrb[197].mxu1  ;;  %v2026_v47 = vpop.f32.mrb[198].mxu0 }
 0x27c   : > { %v2683_v32 = vpop.f32.mrb[198].mxu1  ;;  %3139 = vst.msk [vmem:[%s4941_s30 + $0xa8] sm:$0xf] %vm3096_vm5, %v3520_v3  ;;  %v3521_v46 = vpack.c.bf16 %v2873_v13, %v2873_v13  ;;  %v2762_v8 = vadd.f32 %v2680_v24, %v2105_v61  ;;  %v2106_v44 = vadd.f32 %v2026_v47, %v5175_v5  ;;  %v3986_v17 = vpop.f32.mrb[199].mxu0 }
 0x27d   : > { %v4102_v43 = vpop.f32.mrb[199].mxu1 }
 0x27e   : > { %3140 = vst.msk [vmem:[%s4941_s30 + $0xac] sm:$0xf] %vm3096_vm5, %v3521_v46  ;;  %v2821_v12 = vadd.f32 %v4932_v19, %v2762_v8  ;;  %v2763_v55 = vadd.f32 %v2683_v32, %v2106_v44 }
 0x280   : > { %v2874_v26 = vmax.f32 %v2821_v12, 0.0  ;;  %v2822_v14 = vadd.f32 %v4932_v19, %v2763_v55 }
 0x281   : > { %v2031_v29 = vpop.f32.mrb[200].mxu0 }
 0x282   : > { %v2688_v60 = vpop.f32.mrb[200].mxu1  ;;  %v3522_v21 = vpack.c.bf16 %v2874_v26, %v2874_v26  ;;  %v2875_v15 = vmax.f32 %v2822_v14, 0.0  ;;  %v2107_v45 = vadd.f32 %v2031_v29, %v5176_v36  ;;  %v3989_v51 = vpop.f32.mrb[201].mxu0 }
 0x283   : > { %v4105_v7 = vpop.f32.mrb[201].mxu1  ;;  %v2034_v27 = vpop.f32.mrb[202].mxu0 }
 0x284   : > { %v2691_v18 = vpop.f32.mrb[202].mxu1  ;;  %3141 = vst.msk [vmem:[%s4941_s30 + $0xb0] sm:$0xf] %vm3096_vm5, %v3522_v21  ;;  %v3523_v20 = vpack.c.bf16 %v2875_v15, %v2875_v15  ;;  %v2764_v0 = vadd.f32 %v2688_v60, %v2107_v45  ;;  %v2108_v25 = vadd.f32 %v2034_v27, %v5177_v59  ;;  %v3990_v37 = vpop.f32.mrb[203].mxu0  ;;  %v3152_v27 = vld [vmem:[%s4941_s30 + $0xd0] sm:$0x3] }
 0x285   : > { %v4106_v53 = vpop.f32.mrb[203].mxu1 }
 0x286   : > { %3142 = vst.msk [vmem:[%s4941_s30 + $0xb4] sm:$0xf] %vm3096_vm5, %v3523_v20  ;;  %v2823_v41 = vadd.f32 %v4932_v19, %v2764_v0  ;;  %v2765_v52 = vadd.f32 %v2691_v18, %v2108_v25 }
 0x288   : > { %v2876_v35 = vmax.f32 %v2823_v41, 0.0  ;;  %v2824_v39 = vadd.f32 %v4932_v19, %v2765_v52 }
 0x289   : > { %v2039_v31 = vpop.f32.mrb[204].mxu0 }
 0x28a   : > { %v2696_v6 = vpop.f32.mrb[204].mxu1  ;;  %v3524_v2 = vpack.c.bf16 %v2876_v35, %v2876_v35  ;;  %v2877_v33 = vmax.f32 %v2824_v39, 0.0  ;;  %v2109_v40 = vadd.f32 %v2039_v31, %v4899_v28  ;;  %v3993_v10 = vpop.f32.mrb[205].mxu0 }
 0x28b   : > { %v4109_v38 = vpop.f32.mrb[205].mxu1  ;;  %v2042_v62 = vpop.f32.mrb[206].mxu0 }
 0x28c   : > { %v2699_v4 = vpop.f32.mrb[206].mxu1  ;;  %3143 = vst.msk [vmem:[%s4941_s30 + $0xb8] sm:$0xf] %vm3096_vm5, %v3524_v2  ;;  %v3525_v11 = vpack.c.bf16 %v2877_v33, %v2877_v33  ;;  %v2766_v48 = vadd.f32 %v2696_v6, %v2109_v40  ;;  %v2110_v30 = vadd.f32 %v2042_v62, %v4904_v63  ;;  %v3994_v9 = vpop.f32.mrb[207].mxu0 }
 0x28d   : > { %v4110_v50 = vpop.f32.mrb[207].mxu1 }
 0x28e   : > { %3144 = vst.msk [vmem:[%s4941_s30 + $0xbc] sm:$0xf] %vm3096_vm5, %v3525_v11  ;;  %v2825_v34 = vadd.f32 %v4932_v19, %v2766_v48  ;;  %v2767_v58 = vadd.f32 %v2699_v4, %v2110_v30 }
 0x290   : > { %v2878_v22 = vmax.f32 %v2825_v34, 0.0  ;;  %v2826_v28 = vadd.f32 %v4932_v19, %v2767_v58 }
 0x291   : > { %v2047_v24 = vpop.f32.mrb[208].mxu0 }
 0x292   : > { %v2704_v23 = vpop.f32.mrb[208].mxu1  ;;  %v3526_v54 = vpack.c.bf16 %v2878_v22, %v2878_v22  ;;  %v2879_v3 = vmax.f32 %v2826_v28, 0.0  ;;  %v2111_v13 = vadd.f32 %v2047_v24, %v4912_v57  ;;  %v3997_v49 = vpop.f32.mrb[209].mxu0  ;;  %v4228_v57 = vld [vmem:[%s5157_s2] ss:$0 sm:$0xff] }
 0x293   : > { %v4113_v42 = vpop.f32.mrb[209].mxu1  ;;  %v2050_v61 = vpop.f32.mrb[210].mxu0 }
 0x294   : > { %v2707_v63 = vpop.f32.mrb[210].mxu1  ;;  %3145 = vst.msk [vmem:[%s4941_s30 + $0xc0] sm:$0xf] %vm3096_vm5, %v3526_v54  ;;  %v3527_v32 = vpack.c.bf16 %v2879_v3, %v2879_v3  ;;  %v2768_v47 = vadd.f32 %v2704_v23, %v2111_v13  ;;  %v2112_v43 = vadd.f32 %v2050_v61, %v4916_v16  ;;  %v3998_v46 = vpop.f32.mrb[211].mxu0 }
 0x295   : > { %v4114_v56 = vpop.f32.mrb[211].mxu1 }
 0x296   : > { %3146 = vst.msk [vmem:[%s4941_s30 + $0xc4] sm:$0xf] %vm3096_vm5, %v3527_v32  ;;  %v2827_v8 = vadd.f32 %v4932_v19, %v2768_v47  ;;  %v2769_v5 = vadd.f32 %v2707_v63, %v2112_v43 }
 0x298   : > { %v2880_v44 = vmax.f32 %v2827_v8, 0.0  ;;  %v2828_v17 = vadd.f32 %v4228_v57, %v2769_v5 }
 0x299   : > { %v2055_v55 = vpop.f32.mrb[212].mxu0 }
 0x29a   : > { %v2712_v12 = vpop.f32.mrb[212].mxu1  ;;  %v3528_v14 = vpack.c.bf16 %v2880_v44, %v2880_v44  ;;  %v2881_v60 = vmax.f32 %v2828_v17, 0.0  ;;  %v2113_v16 = vadd.f32 %v2055_v55, %v4924_v1  ;;  %v4001_v29 = vpop.f32.mrb[213].mxu0 }
 0x29b   : > { %v4117_v26 = vpop.f32.mrb[213].mxu1  ;;  %v2058_v19 = vpop.f32.mrb[214].mxu0 }
 0x29c   : > { %v2715_v7 = vpop.f32.mrb[214].mxu1  ;;  %3147 = vst.msk [vmem:[%s4941_s30 + $0xc8] sm:$0xf] %vm3096_vm5, %v3528_v14  ;;  %v3529_v15 = vpack.c.bf16 %v2881_v60, %v2881_v60  ;;  %v2770_v36 = vadd.f32 %v2712_v12, %v2113_v16  ;;  %v4002_v45 = vpop.f32.mrb[215].mxu0 }
 0x29d   : > { %v4118_v21 = vpop.f32.mrb[215].mxu1 }
 0x29e   : > { %3148 = vst.msk [vmem:[%s4941_s30 + $0xcc] sm:$0xf] %vm3096_vm5, %v3529_v15  ;;  %v2829_v51 = vadd.f32 %v4228_v57, %v2770_v36 }
 0x2a0   : > { %v2882_v18 = vmax.f32 %v2829_v51, 0.0 }
 0x2a2   : > { %v3530_v53 = vpack.c.bf16 %v2882_v18, %v2882_v18 }
 0x2a4   : > { %v3153_v1 = vsel %vm3151_vm8, %v3530_v53, %v3152_v27 }
 0x2a5   : > { %3154 = vst [vmem:[%s4941_s30 + $0xd0] sm:$0x3] %v3153_v1 }
 0x2a6 PF: > { %s13_s12 = sadd.s32 1, %s4235_s12  }
 0x2a7   : > { %p10_p4 = scmp.ge.s32.totalorder %s13_s12, 4  }
 0x2a9   :  { %12 = sbr.rel (!%p10_p4) target bundleno = 1 (0x1), region = 62 }

// kernel: qnet_forward.5
= control target key start
LH: loop header
LB: loop body
LE: loop exit
PB: predicated region body
PF: predicated region fallthrough
CT: control target
= control target key end

     0   :  { %s1514_s12 = smov 0   ;;  %s1763_s0 = inlined_call_operand.vmem [shape: bf16[2,100,128], index: 0, kind: input, shape index: {}]   ;;  %s1764_s1 = inlined_call_operand.vmem [shape: bf16[512,32], index: 1, kind: input, shape index: {}]   ;;  %s1765_s2 = inlined_call_operand.vmem [shape: f32[1,32], index: 2, kind: input, shape index: {}]   ;;  %s1766_s3 = inlined_call_operand.vmem [shape: bf16[2,89,32], index: 3, kind: output, shape index: {}]  }
   0x1 LB: > { %s1150_s13 = sadd.s32 4294967295, %s1492_s12   ;;  %p1154_p0 = scmp.ge.s32.totalorder %s1492_s12, 1  ;;  %s1492_s12 = sphi %s1514_s12, %s13_s12  }
   0x2   : > { %p137_p1 = scmp.lt.s32.totalorder %s1492_s12, 3 }
   0x4   : > { %p138_p2 = pnand %p1154_p0, %p137_p1 }
   0x5   : > { %v1442_v0 = vld [vmem:[%s1764_s1 + $0x40] sm:$0xff] (!%p138_p2)   ;;  %v1444_v2 = vld [vmem:[%s1764_s1 + $0x48] sm:$0xff] (!%p138_p2)   ;;  %p161_p3 = scmp.lt.s32.totalorder (!%p138_p2), %s1150_s13, 1  ;;  %v1446_v4 = vld [vmem:[%s1764_s1 + $0x50] sm:$0xff] (!%p138_p2)   ;;  %vm623_vm0 = vcmask (!%p138_p2), 1046528   ;;  %vm1077_vm3 = vcmask (!%p138_p2), 257024  }
   0x6   : > { %141 = sbr.rel (%p138_p2) target bundleno = 311 (0x137), region = 32  ;;  %v1443_v1 = vld [vmem:[%s1764_s1 + $0x80] sm:$0xff] (!%p138_p2)   ;;  %1284 = vmatprep.subr.bf16.mxu1 (!%p138_p2), %v1442_v0  ;;  %v1445_v3 = vld [vmem:[%s1764_s1 + $0x88] sm:$0xff] (!%p138_p2)   ;;  %v1447_v5 = vld [vmem:[%s1764_s1 + $0x90] sm:$0xff] (!%p138_p2)   ;;  %vm247_vm1 = vsmask.f32 (!%p138_p2), 7424 }
   0x7   : > { %1340 = vmatprep.subr.bf16.mxu0 (!%p138_p2), %v1443_v1  ;;  %1285 = vmatpush3.bf16.msra.mxu1 (!%p138_p2), %v1442_v0  ;;  %v1448_v6 = vld [vmem:[%s1764_s1 + $0x58] sm:$0xff] (!%p138_p2)   ;;  %v1450_v8 = vld [vmem:[%s1764_s1 + $0x60] sm:$0xff] (!%p138_p2)   ;;  %v1452_v10 = vld [vmem:[%s1764_s1 + $0x68] sm:$0xff] (!%p138_p2)   ;;  %vm798_vm2 = vsmask.f32 (!%p138_p2), 6400  ;;  %vm1089_vm4 = vcmask (!%p138_p2), 253952  }
   0x8   : > { %1341 = vmatpush3.bf16.msra.mxu0 (!%p138_p2), %v1443_v1  ;;  %1286 = vmatprep.subr.bf16.mxu1 (!%p138_p2), %v1444_v2  ;;  %v1449_v7 = vld [vmem:[%s1764_s1 + $0x98] sm:$0xff] (!%p138_p2)   ;;  %v1451_v9 = vld [vmem:[%s1764_s1 + $0xa0] sm:$0xff] (!%p138_p2)   ;;  %v1453_v11 = vld [vmem:[%s1764_s1 + $0xa8] sm:$0xff] (!%p138_p2)   ;;  %vm1090_vm5 = vsmask.f32 (!%p138_p2), 256 }
   0x9   : > { %1342 = vmatprep.subr.bf16.mxu0 (!%p138_p2), %v1445_v3  ;;  %v1454_v14 = vld [vmem:[%s1764_s1 + $0x70] sm:$0xff] (!%p138_p2)   ;;  %v1456_v24 = vld [vmem:[%s1764_s1 + $0x78] sm:$0xff] (!%p138_p2)   ;;  %v1460_v36 = vld [vmem:[%s1764_s1] sm:$0xff] (!%p138_p2)  }
   0xa   : > { %v1455_v19 = vld [vmem:[%s1764_s1 + $0xb0] sm:$0xff] (!%p138_p2)   ;;  %v1457_v30 = vld [vmem:[%s1764_s1 + $0xb8] sm:$0xff] (!%p138_p2)   ;;  %v1463_v38 = vld [vmem:[%s1764_s1 + $0xc0] sm:$0xff] (!%p138_p2)  }
   0xb   : > { %1287 = vmatpush3.bf16.msra.mxu1 (!%p138_p2), %v1444_v2  ;;  %v1466_v40 = vld [vmem:[%s1764_s1 + $0x8] sm:$0xff] (!%p138_p2)   ;;  %v1468_v50 = vld [vmem:[%s1764_s1 + $0x10] sm:$0xff] (!%p138_p2)   ;;  %v1470_v62 = vld [vmem:[%s1764_s1 + $0x18] sm:$0xff] (!%p138_p2)  }
   0xc   : > { %1343 = vmatpush3.bf16.msra.mxu0 (!%p138_p2), %v1445_v3  ;;  %1288 = vmatprep.subr.bf16.mxu1 (!%p138_p2), %v1446_v4  ;;  %v1467_v45 = vld [vmem:[%s1764_s1 + $0xc8] sm:$0xff] (!%p138_p2)   ;;  %v1469_v55 = vld [vmem:[%s1764_s1 + $0xd0] sm:$0xff] (!%p138_p2)   ;;  %v1471_v1 = vld [vmem:[%s1764_s1 + $0xd8] sm:$0xff] (!%p138_p2)  }
   0xd   : > { %s1768_s13 = smov (!%p161_p3, %s1150_s13), 1  ;;  %1344 = vmatprep.subr.bf16.mxu0 %v1447_v5  ;;  %vm1091_vm6 = vmand %vm1089_vm4, %vm1090_vm5 }
   0xe   : > { %s1432_s30 = smul.u32 52, %s1768_s13 }
   0xf   : > { %1289 = vmatpush3.bf16.msra.mxu1 %v1446_v4  ;;  %s1433_s7 = smul.u32 48, %s1768_s13 }
  0x10   : > { %1345 = vmatpush3.bf16.msra.mxu0 %v1447_v5  ;;  %1290 = vmatprep.subr.bf16.mxu1 %v1448_v6  ;;  %s1561_s14 = scalar_lea.vmem %s1763_s0, %s1432_s30 }
  0x11   : > { %1346 = vmatprep.subr.bf16.mxu0 %v1449_v7  ;;  %v1567_v12 = vld [vmem:[%s1561_s14] sm:$0xff]   ;;  %v1570_v13 = vld [vmem:[%s1561_s14 + $0x8] sm:$0xff]   ;;  %v1593_v27 = vld [vmem:[%s1561_s14 + $0x10] sm:$0xff]   ;;  %s1725_s10 = scalar_lea.vmem %s1766_s3, %s1433_s7 }
  0x12   : > { %v249_v15 = vshrl.u32 %v1567_v12, 16  ;;  %v251_v16 = vshll.u32 %v1567_v12, 16  ;;  %v256_v17 = vshll.u32 %v1570_v13, 16  ;;  %v1579_v18 = vld [vmem:[%s1561_s14 + $0xc] sm:$0xff]   ;;  %v1585_v22 = vld [vmem:[%s1561_s14 + $0x4] sm:$0xfe]  }
  0x13   : > { %1291 = vmatpush3.bf16.msra.mxu1 %v1448_v6  ;;  %v625_v23 = vrot.slane %v1579_v18, 1  ;;  %v624_v26 = vrot.slane %v1585_v22, 1  ;;  %v260_v28 = vshrl.u32 %v1570_v13, 16  ;;  %v1597_v29 = vld [vmem:[%s1561_s14 + $0x14] sm:$0xff]   ;;  %v264_v33 = vshll.u32 %v1593_v27, 16  ;;  %v1622_v44 = vld [vmem:[%s1561_s14 + $0x1c] sm:$0xff]  }
  0x14   : > { %1347 = vmatpush3.bf16.msra.mxu0 %v1449_v7  ;;  %1292 = vmatprep.subr.bf16.mxu1 %v1450_v8  ;;  %v253_v20 = vrot.slane %v251_v16, 1  ;;  %v258_v21 = vrot.slane %v256_v17, 1  ;;  %v627_v37 = vrot.slane %v1597_v29, 1  ;;  %v268_v39 = vshrl.u32 %v1593_v27, 16  ;;  %v1618_v42 = vld [vmem:[%s1561_s14 + $0x18] sm:$0xff]   ;;  %v1629_v48 = vld [vmem:[%s1561_s14 + $0x20] sm:$0xff]  }
  0x15   : > { %1348 = vmatprep.subr.bf16.mxu0 %v1451_v9  ;;  %v626_v32 = vsel %vm623_vm0, %v624_v26, %v625_v23  ;;  %v266_v35 = vrot.slane %v264_v33, 1  ;;  %v272_v47 = vshll.u32 %v1618_v42, 16  ;;  %v276_v49 = vshrl.u32 %v1618_v42, 16  ;;  %v1637_v52 = vld [vmem:[%s1561_s14 + $0x24] sm:$0xff]   ;;  %v1661_v5 = vld [vmem:[%s1561_s14 + $0x2c] sm:$0x3f]  }
  0x16   : > { %v254_v25 = vor.u32 %v253_v20, %v249_v15  ;;  %1356 = vmatprep.mubr.bf16.mxu0 %v626_v32  ;;  %v262_v34 = vor.u32 %v260_v28, %v258_v21  ;;  %v628_v43 = vsel %vm623_vm0, %v625_v23, %v627_v37  ;;  %v629_v51 = vrot.slane %v1622_v44, 1  ;;  %v1657_v3 = vld [vmem:[%s1561_s14 + $0x28] sm:$0x1f]   ;;  %v1475_v15 = vld [vmem:[%s1764_s1 + $0x20] sm:$0xff]  }
  0x17   : > { %1293 = vmatpush3.bf16.msra.mxu1 %v1450_v8  ;;  %v270_v46 = vor.u32 %v268_v39, %v266_v35  ;;  %v274_v53 = vrot.slane %v272_v47, 1  ;;  %v280_v54 = vshll.u32 %v1629_v48, 16  ;;  %v631_v57 = vrot.slane %v1637_v52, 1  ;;  %v1478_v26 = vld [vmem:[%s1764_s1 + $0x28] sm:$0xff]   ;;  %v1485_v39 = vld [vmem:[%s1764_s1 + $0xf8] sm:$0xff]  }
  0x18   : > { %1349 = vmatpush3.bf16.msra.mxu0 %v1451_v9  ;;  %1294 = vmatprep.subr.bf16.mxu1 %v1452_v10  ;;  %v259_v31 = vsel %vm247_vm1, %v254_v25, %v258_v21  ;;  %v267_v41 = vsel %vm247_vm1, %v262_v34, %v266_v35  ;;  %v630_v56 = vsel %vm623_vm0, %v627_v37, %v629_v51  ;;  %v800_v61 = vshrl.u32 %v1585_v22, 16  ;;  %v1479_v28 = vld [vmem:[%s1764_s1 + $0xe8] sm:$0xff]   ;;  %v1483_v34 = vld [vmem:[%s1764_s1 + $0xf0] sm:$0xff]   ;;  %v1484_v37 = vld [vmem:[%s1764_s1 + $0x38] sm:$0xff]  }
  0x19   : > { %1350 = vmatprep.subr.bf16.mxu0 %v1453_v11  ;;  %1300 = vmatprep.mubr.bf16.mxu1 %v259_v31  ;;  %v275_v58 = vsel %vm247_vm1, %v270_v46, %v274_v53  ;;  %v278_v59 = vor.u32 %v276_v49, %v274_v53  ;;  %v282_v60 = vrot.slane %v280_v54, 1  ;;  %v284_v63 = vshrl.u32 %v1629_v48, 16  ;;  %v1482_v31 = vld [vmem:[%s1764_s1 + $0x30] sm:$0xff]  }
  0x1a   : > { %v803_v0 = vshll.u32 %v1585_v22, 16  ;;  %v632_v4 = vsel %vm623_vm0, %v629_v51, %v631_v57  ;;  %v288_v7 = vshll.u32 %v1657_v3, 16  ;;  %v802_v8 = vrot.slane %v800_v61, 1 }
  0x1b   : > { %1295 = vmatpush3.bf16.msra.mxu1 %v1452_v10  ;;  %v283_v2 = vsel %vm247_vm1, %v278_v59, %v282_v60  ;;  %v286_v6 = vor.u32 %v284_v63, %v282_v60  ;;  %v633_v9 = vrot.slane %v1661_v5, 1  ;;  %v292_v10 = vshrl.u32 %v1657_v3, 16 }
  0x1c   : > { %1351 = vmatpush3.bf16.msra.mxu0 %v1453_v11  ;;  %1296 = vmatprep.subr.bf16.mxu1 %v1454_v14  ;;  %v290_v11 = vrot.slane %v288_v7, 1  ;;  %v808_v17 = vshrl.u32 %v1579_v18, 16  ;;  %v811_v21 = vshll.u32 %v1579_v18, 16  ;;  %v817_v32 = vshrl.u32 %v1597_v29, 16 }
  0x1d   : > { %1352 = vmatprep.subr.bf16.mxu0 %v1455_v19  ;;  %v634_v16 = vsel %vm623_vm0, %v631_v57, %v633_v9  ;;  %v820_v33 = vshll.u32 %v1597_v29, 16  ;;  %v826_v35 = vshrl.u32 %v1622_v44, 16  ;;  %v844_v46 = vshrl.u32 %v1661_v5, 16 }
  0x1e   : > { %v291_v20 = vsel %vm247_vm1, %v286_v6, %v290_v11  ;;  %v294_v22 = vor.u32 %v292_v10, %v290_v11  ;;  %v810_v23 = vrot.slane %v808_v17, 1  ;;  %v813_v25 = vrot.slane %v811_v21, 2 }
  0x1f   : > { %1297 = vmatpush3.bf16.msra.mxu1 %v1454_v14  ;;  %v805_v14 = vrot.slane %v803_v0, 2  ;;  %v819_v29 = vrot.slane %v817_v32, 1  ;;  %v847_v47 = vshll.u32 %v1661_v5, 16  ;;  %v846_v54 = vrot.slane %v844_v46, 1 }
  0x20   : > { %1353 = vmatpush3.bf16.msra.mxu0 %v1455_v19  ;;  %1298 = vmatprep.subr.bf16.mxu1 %v1456_v24  ;;  %v1477_v19 = vld [vmem:[%s1764_s1 + $0xe0] sm:$0xff]  }
  0x21   : > { %1354 = vmatprep.subr.bf16.mxu0 %v1457_v30 }
  0x23   : > { %1299 = vmatpush3.bf16.msra.mxu1 %v1456_v24  ;;  %v806_v24 = vor.u32 %v805_v14, %v802_v8 }
  0x24   : > { %1355 = vmatpush3.bf16.msra.mxu0 %v1457_v30  ;;  %1312 = vmatprep.subr.bf16.mxu1 %v1460_v36  ;;  %v814_v30 = vor.u32 %v813_v25, %v810_v23 }
  0x25   : > { %1368 = vmatprep.subr.bf16.mxu0 %v1463_v38 }
  0x26   : > { %1301 = vmatmul.mubr.bf16.vlgmr.msra.gmra.mrb[0].mxu1 %v267_v41  ;;  %v815_v18 = vsel %vm798_vm2, %v806_v24, %v814_v30 }
  0x27   : > { %1313 = vmatpush3.bf16.msra.mxu1 %v1460_v36  ;;  %1357 = vmatmul.mubr.bf16.vlgmr.msra.gmra.mrb[0].mxu0 %v628_v43  ;;  %v829_v36 = vshll.u32 %v1622_v44, 16  ;;  %v835_v43 = vshrl.u32 %v1637_v52, 16  ;;  %v838_v44 = vshll.u32 %v1637_v52, 16 }
  0x28   : > { %1369 = vmatpush3.bf16.msra.mxu0 %v1463_v38  ;;  %1314 = vmatprep.subr.bf16.mxu1 %v1466_v40  ;;  %v822_v38 = vrot.slane %v820_v33, 2 }
  0x29   : > { %1370 = vmatprep.subr.bf16.mxu0 %v1467_v45  ;;  %1360 = vmatprep.mubr.bf16.mxu0 %v630_v56  ;;  %v840_v51 = vrot.slane %v838_v44, 2 }
  0x2a   : > { %1304 = vmatprep.mubr.bf16.mxu1 %v275_v58  ;;  %v823_v41 = vor.u32 %v822_v38, %v819_v29 }
  0x2b   : > { %1315 = vmatpush3.bf16.msra.mxu1 %v1466_v40  ;;  %v831_v40 = vrot.slane %v829_v36, 2 }
  0x2c   : > { %1371 = vmatpush3.bf16.msra.mxu0 %v1467_v45  ;;  %1316 = vmatprep.subr.bf16.mxu1 %v1468_v50  ;;  %v824_v49 = vsel %vm798_vm2, %v814_v30, %v823_v41 }
  0x2d   : > { %1372 = vmatprep.subr.bf16.mxu0 %v1469_v55 }
  0x2e   : > { %1305 = vmatmul.mubr.bf16.gmra.mrb[4].mxu1 %v283_v2 }
  0x2f   : > { %1317 = vmatpush3.bf16.msra.mxu1 %v1468_v50  ;;  %1361 = vmatmul.mubr.bf16.gmra.mrb[4].mxu0 %v632_v4  ;;  %v837_v50 = vrot.slane %v835_v43, 1 }
  0x30   : > { %1373 = vmatpush3.bf16.msra.mxu0 %v1469_v55  ;;  %1318 = vmatprep.subr.bf16.mxu1 %v1470_v62  ;;  %v849_v55 = vrot.slane %v847_v47, 2 }
  0x31   : > { %1374 = vmatprep.subr.bf16.mxu0 %v1471_v1  ;;  %1364 = vmatprep.mubr.bf16.mxu0 %v634_v16  ;;  %v841_v52 = vor.u32 %v840_v51, %v837_v50 }
  0x32   : > { %1308 = vmatprep.mubr.bf16.mxu1 %v291_v20  ;;  %v850_v56 = vor.u32 %v849_v55, %v846_v54 }
  0x33   : > { %1319 = vmatpush3.bf16.msra.mxu1 %v1470_v62 }
  0x34   : > { %1375 = vmatpush3.bf16.msra.mxu0 %v1471_v1  ;;  %1320 = vmatprep.subr.bf16.mxu1 %v1475_v15  ;;  %v851_v58 = vsel %vm798_vm2, %v841_v52, %v850_v56 }
  0x35   : > { %1376 = vmatprep.subr.bf16.mxu0 %v1477_v19 }
  0x36   : > { %1309 = vmatmul.mubr.bf16.gmra.mrb[8].mxu1 %v294_v22 }
  0x37   : > { %1321 = vmatpush3.bf16.msra.mxu1 %v1475_v15  ;;  %1365 = vmatmul.mubr.bf16.gmra.mrb[8].mxu0 %v633_v9 }
  0x38   : > { %1377 = vmatpush3.bf16.msra.mxu0 %v1477_v19  ;;  %1322 = vmatprep.subr.bf16.mxu1 %v1478_v26 }
  0x39   : > { %1378 = vmatprep.subr.bf16.mxu0 %v1479_v28  ;;  %1328 = vmatprep.mubr.bf16.mxu1 %v1567_v12  ;;  %v828_v12 = vrot.slane %v826_v35, 1 }
  0x3a   : > { %1384 = vmatprep.mubr.bf16.mxu0 %v815_v18 }
  0x3b   : > { %1323 = vmatpush3.bf16.msra.mxu1 %v1478_v26  ;;  %v832_v45 = vor.u32 %v831_v40, %v828_v12 }
  0x3c   : > { %1379 = vmatpush3.bf16.msra.mxu0 %v1479_v28  ;;  %1324 = vmatprep.subr.bf16.mxu1 %v1482_v31 }
  0x3d   : > { %1380 = vmatprep.subr.bf16.mxu0 %v1483_v34  ;;  %v833_v53 = vsel %vm798_vm2, %v823_v41, %v832_v45  ;;  %v842_v57 = vsel %vm798_vm2, %v832_v45, %v841_v52 }
  0x3f   : > { %1325 = vmatpush3.bf16.msra.mxu1 %v1482_v31 }
  0x40   : > { %1381 = vmatpush3.bf16.msra.mxu0 %v1483_v34  ;;  %1326 = vmatprep.subr.bf16.mxu1 %v1484_v37 }
  0x41   : > { %1382 = vmatprep.subr.bf16.mxu0 %v1485_v39 }
  0x43   : > { %1327 = vmatpush3.bf16.msra.mxu1 %v1484_v37 }
  0x44   : > { %1383 = vmatpush3.bf16.msra.mxu0 %v1485_v39 }
  0x46   : > { %1329 = vmatmul.mubr.bf16.vlgmr.msra.gmra.mrb[0].mxu1 %v1570_v13 }
  0x47   : > { %1385 = vmatmul.mubr.bf16.vlgmr.msra.gmra.mrb[0].mxu0 %v824_v49  ;;  %1332 = vmatprep.mubr.bf16.mxu1 %v1593_v27  ;;  %v1716_v27 = vld [vmem:[%s1765_s2] ss:$0 sm:$0xff] }
  0x48   : > { %1388 = vmatprep.mubr.bf16.mxu0 %v833_v53 }
  0x4e   : > { %1333 = vmatmul.mubr.bf16.gmra.mrb[4].mxu1 %v1618_v42 }
  0x4f   : > { %1389 = vmatmul.mubr.bf16.gmra.mrb[4].mxu0 %v842_v57  ;;  %1336 = vmatprep.mubr.bf16.mxu1 %v1629_v48 }
  0x50   : > { %1392 = vmatprep.mubr.bf16.mxu0 %v851_v58 }
  0x56   : > { %1337 = vmatmul.mubr.bf16.gmra.mrb[8].mxu1 %v1657_v3 }
  0x57   : > { %1393 = vmatmul.mubr.bf16.gmra.mrb[8].mxu0 %v850_v56 }
 0x119   : > { %v1330_v13 = vpop.f32.mrb[0].mxu1 }
 0x11a   : > { %v1386_v59 = vpop.f32.mrb[0].mxu0  ;;  %v518_v60 = vpop.f32.mrb[1].mxu1 }
 0x11b   : > { %v1396_v61 = vadd.f32 %v1386_v59, %v1330_v13  ;;  %v940_v62 = vpop.f32.mrb[1].mxu0  ;;  %v1331_v63 = vpop.f32.mrb[2].mxu1 }
 0x11c   : > { %v1397_v42 = vadd.f32 %v940_v62, %v518_v60  ;;  %v1387_v0 = vpop.f32.mrb[2].mxu0  ;;  %v521_v1 = vpop.f32.mrb[3].mxu1 }
 0x11d   : > { %v1007_v48 = vadd.f32 %v1396_v61, %v1716_v27  ;;  %v1398_v2 = vadd.f32 %v1387_v0, %v1331_v63  ;;  %v943_v3 = vpop.f32.mrb[3].mxu0 }
 0x11e   : > { %v1005_v4 = vadd.f32 %v1397_v42, %v1716_v27  ;;  %v1399_v5 = vadd.f32 %v943_v3, %v521_v1  ;;  %v1092_v42 = vld [vmem:[%s1725_s10 + $0x2c] sm:$0x1] }
 0x11f   : > { %v1019_v6 = vmax.f32 %v1007_v48, 0.0  ;;  %v1008_v7 = vadd.f32 %v1398_v2, %v1716_v27 }
 0x120   : > { %v1017_v8 = vmax.f32 %v1005_v4, 0.0  ;;  %v1006_v9 = vadd.f32 %v1399_v5, %v1716_v27 }
 0x121   : > { %v1218_v10 = vpack.c.bf16 %v1019_v6, %v1019_v6  ;;  %v1020_v11 = vmax.f32 %v1008_v7, 0.0  ;;  %v1334_v14 = vpop.f32.mrb[4].mxu1 }
 0x122   : > { %v1216_v15 = vpack.c.bf16 %v1017_v8, %v1017_v8  ;;  %v1018_v16 = vmax.f32 %v1006_v9, 0.0  ;;  %v1390_v17 = vpop.f32.mrb[4].mxu0  ;;  %v534_v19 = vpop.f32.mrb[5].mxu1 }
 0x123   : > { %1080 = vst.msk [vmem:[%s1725_s10 + $0x8] sm:$0xf] %vm1077_vm3, %v1218_v10  ;;  %v1219_v20 = vpack.c.bf16 %v1020_v11, %v1020_v11  ;;  %v1400_v21 = vadd.f32 %v1390_v17, %v1334_v14  ;;  %v956_v22 = vpop.f32.mrb[5].mxu0  ;;  %v1335_v23 = vpop.f32.mrb[6].mxu1 }
 0x124   : > { %1078 = vst.msk [vmem:[%s1725_s10] sm:$0xf] %vm1077_vm3, %v1216_v15  ;;  %v1217_v24 = vpack.c.bf16 %v1018_v16, %v1018_v16  ;;  %v1401_v25 = vadd.f32 %v956_v22, %v534_v19  ;;  %v1391_v26 = vpop.f32.mrb[6].mxu0  ;;  %v537_v28 = vpop.f32.mrb[7].mxu1 }
 0x125   : > { %1081 = vst.msk [vmem:[%s1725_s10 + $0xc] sm:$0xf] %vm1077_vm3, %v1219_v20  ;;  %v1011_v30 = vadd.f32 %v1400_v21, %v1716_v27  ;;  %v1402_v18 = vadd.f32 %v1391_v26, %v1335_v23  ;;  %v959_v31 = vpop.f32.mrb[7].mxu0 }
 0x126   : > { %1079 = vst.msk [vmem:[%s1725_s10 + $0x4] sm:$0xf] %vm1077_vm3, %v1217_v24  ;;  %v1009_v32 = vadd.f32 %v1401_v25, %v1716_v27  ;;  %v1403_v33 = vadd.f32 %v959_v31, %v537_v28 }
 0x127   : > { %v1023_v34 = vmax.f32 %v1011_v30, 0.0  ;;  %v1012_v35 = vadd.f32 %v1402_v18, %v1716_v27 }
 0x128   : > { %v1021_v36 = vmax.f32 %v1009_v32, 0.0  ;;  %v1010_v37 = vadd.f32 %v1403_v33, %v1716_v27 }
 0x129   : > { %v1222_v29 = vpack.c.bf16 %v1023_v34, %v1023_v34  ;;  %v1024_v38 = vmax.f32 %v1012_v35, 0.0  ;;  %v1338_v39 = vpop.f32.mrb[8].mxu1 }
 0x12a   : > { %v1220_v12 = vpack.c.bf16 %v1021_v36, %v1021_v36  ;;  %v1022_v40 = vmax.f32 %v1010_v37, 0.0  ;;  %v1394_v41 = vpop.f32.mrb[8].mxu0  ;;  %v550_v43 = vpop.f32.mrb[9].mxu1 }
 0x12b   : > { %1084 = vst.msk [vmem:[%s1725_s10 + $0x18] sm:$0xf] %vm1077_vm3, %v1222_v29  ;;  %v1223_v44 = vpack.c.bf16 %v1024_v38, %v1024_v38  ;;  %v1404_v45 = vadd.f32 %v1394_v41, %v1338_v39  ;;  %v972_v46 = vpop.f32.mrb[9].mxu0  ;;  %v1339_v47 = vpop.f32.mrb[10].mxu1 }
 0x12c   : > { %1082 = vst.msk [vmem:[%s1725_s10 + $0x10] sm:$0xf] %vm1077_vm3, %v1220_v12  ;;  %v1221_v49 = vpack.c.bf16 %v1022_v40, %v1022_v40  ;;  %v1405_v50 = vadd.f32 %v972_v46, %v550_v43  ;;  %v1395_v51 = vpop.f32.mrb[10].mxu0  ;;  %v553_v53 = vpop.f32.mrb[11].mxu1 }
 0x12d   : > { %1085 = vst.msk [vmem:[%s1725_s10 + $0x1c] sm:$0xf] %vm1077_vm3, %v1223_v44  ;;  %v1015_v54 = vadd.f32 %v1404_v45, %v1716_v27  ;;  %v1406_v55 = vadd.f32 %v1395_v51, %v1339_v47  ;;  %v975_v52 = vpop.f32.mrb[11].mxu0 }
 0x12e   : > { %1083 = vst.msk [vmem:[%s1725_s10 + $0x14] sm:$0xf] %vm1077_vm3, %v1221_v49  ;;  %v1013_v56 = vadd.f32 %v1405_v50, %v1716_v27  ;;  %v1407_v57 = vadd.f32 %v975_v52, %v553_v53 }
 0x12f   : > { %v1027_v58 = vmax.f32 %v1015_v54, 0.0  ;;  %v1016_v13 = vadd.f32 %v1406_v55, %v1716_v27 }
 0x130   : > { %v1025_v59 = vmax.f32 %v1013_v56, 0.0  ;;  %v1014_v60 = vadd.f32 %v1407_v57, %v1716_v27 }
 0x131   : > { %v1226_v61 = vpack.c.bf16 %v1027_v58, %v1027_v58  ;;  %v1028_v62 = vmax.f32 %v1016_v13, 0.0 }
 0x132   : > { %v1224_v63 = vpack.c.bf16 %v1025_v59, %v1025_v59  ;;  %v1026_v0 = vmax.f32 %v1014_v60, 0.0 }
 0x133   : > { %1088 = vst.msk [vmem:[%s1725_s10 + $0x28] sm:$0xf] %vm1077_vm3, %v1226_v61  ;;  %v1227_v1 = vpack.c.bf16 %v1028_v62, %v1028_v62 }
 0x134   : > { %1086 = vst.msk [vmem:[%s1725_s10 + $0x20] sm:$0xf] %vm1077_vm3, %v1224_v63  ;;  %v1225_v48 = vpack.c.bf16 %v1026_v0, %v1026_v0 }
 0x135   : > { %v1093_v2 = vsel %vm1091_vm6, %v1227_v1, %v1092_v42 }
 0x136   : > { %1094 = vst [vmem:[%s1725_s10 + $0x2c] sm:$0x1] %v1093_v2  ;;  %1087 = vst.msk [vmem:[%s1725_s10 + $0x24] sm:$0xf] %vm1077_vm3, %v1225_v48 }
 0x137 PF: > { %s13_s12 = sadd.s32 1, %s1492_s12  }
 0x138   : > { %p10_p4 = scmp.ge.s32.totalorder %s13_s12, 4  }
 0x13a   :  { %12 = sbr.rel (!%p10_p4) target bundleno = 1 (0x1), region = 62 }

// kernel: qnet_forward.6
= control target key start
LH: loop header
LB: loop body
LE: loop exit
PB: predicated region body
PF: predicated region fallthrough
CT: control target
= control target key end

     0   :  { %s1883_s12 = smov 0   ;;  %s2163_s0 = inlined_call_operand.vmem [shape: bf16[2,81,32], index: 0, kind: input, shape index: {}]   ;;  %s2164_s1 = inlined_call_operand.vmem [shape: bf16[288,64], index: 1, kind: input, shape index: {}]   ;;  %s2165_s2 = inlined_call_operand.vmem [shape: f32[1,64], index: 2, kind: input, shape index: {}]   ;;  %s2166_s3 = inlined_call_operand.vmem [shape: bf16[2,61,64], index: 3, kind: output, shape index: {}]  }
   0x1 LB: > { %s1474_s13 = sadd.s32 4294967295, %s1861_s12   ;;  %p1478_p0 = scmp.ge.s32.totalorder %s1861_s12, 1  ;;  %s1861_s12 = sphi %s1883_s12, %s13_s12  }
   0x2   : > { %p137_p1 = scmp.lt.s32.totalorder %s1861_s12, 3 }
   0x4   : > { %p138_p2 = pnand %p1478_p0, %p137_p1 }
   0x5   : > { %v1894_v0 = vld [vmem:[%s2164_s1 + $0x40] sm:$0xff] (!%p138_p2)   ;;  %p161_p3 = scmp.lt.s32.totalorder (!%p138_p2), %s1474_s13, 1  ;;  %v1817_v1 = vld [vmem:[%s2164_s1 + $0x10] sm:$0xff] (!%p138_p2)   ;;  %v1903_v2 = vld [vmem:[%s2164_s1 + $0x48] sm:$0xff] (!%p138_p2)   ;;  %vm253_vm0 = vcmask (!%p138_p2), 261120   ;;  %vm428_vm2 = vcmask (!%p138_p2), 1046528  }
   0x6   : > { %141 = sbr.rel (%p138_p2) target bundleno = 321 (0x141), region = 32  ;;  %1679 = vmatprep.subr.bf16.mxu0 (!%p138_p2), %v1894_v0  ;;  %1631 = vmatprep.subr.bf16.mxu1 (!%p138_p2), %v1817_v1  ;;  %v1819_v3 = vld [vmem:[%s2164_s1 + $0x18] sm:$0xff] (!%p138_p2)   ;;  %v1916_v4 = vld [vmem:[%s2164_s1] sm:$0xff] (!%p138_p2)   ;;  %v1827_v5 = vld [vmem:[%s2164_s1 + $0x50] sm:$0xff] (!%p138_p2)   ;;  %vm209_vm1 = vsmask.f32 (!%p138_p2), 7424 }
   0x7   : > { %1680 = vmatpush3.bf16.msra.mxu0 (!%p138_p2), %v1894_v0  ;;  %1632 = vmatpush3.bf16.msra.mxu1 (!%p138_p2), %v1817_v1  ;;  %v1829_v25 = vld [vmem:[%s2164_s1 + $0x58] sm:$0xff] (!%p138_p2)   ;;  %vm813_vm3 = vsmask.f32 (!%p138_p2), 6400  ;;  %v1832_v40 = vld [vmem:[%s2164_s1 + $0x60] sm:$0xff] (!%p138_p2)   ;;  %v1831_v48 = vld [vmem:[%s2164_s1 + $0x8] sm:$0xff] (!%p138_p2)   ;;  %vm1244_vm4 = vcmask (!%p138_p2), 1045504  }
   0x8   : > { %1681 = vmatprep.subr.bf16.mxu0 (!%p138_p2), %v1903_v2  ;;  %1633 = vmatprep.subr.bf16.mxu1 (!%p138_p2), %v1819_v3  ;;  %v1833_v62 = vld [vmem:[%s2164_s1 + $0x20] sm:$0xff] (!%p138_p2)   ;;  %vm1405_vm5 = vcmask (!%p138_p2), 519168   ;;  %vm1413_vm6 = vcmask (!%p138_p2), 518144   ;;  %vm1414_vm7 = vsmask.f32 (!%p138_p2), 2304 }
   0x9   : > { %vm1415_vm8 = vmand (!%p138_p2), %vm1413_vm6, %vm1414_vm7 }
   0xb   : > { %1682 = vmatpush3.bf16.msra.mxu0 (!%p138_p2), %v1903_v2  ;;  %1634 = vmatpush3.bf16.msra.mxu1 (!%p138_p2), %v1819_v3 }
   0xc   : > { %1691 = vmatprep.subr.bf16.mxu0 (!%p138_p2), %v1827_v5  ;;  %1643 = vmatprep.subr.bf16.mxu1 (!%p138_p2), %v1916_v4 }
   0xd   : > { %s2168_s13 = smov (!%p161_p3, %s1474_s13), 1 }
   0xe   : > { %s1807_s22 = smul.u32 44, %s2168_s13  ;;  %s1568_s4 = sshll.u32 %s2168_s13, 5 }
   0xf   : > { %s2142_s7 = scalar_lea.vmem %s2166_s3, %s1568_s4 }
  0x10   : > { %s1921_s27 = scalar_lea.vmem %s2163_s0, %s1807_s22 }
  0x11   : > { %v1928_v6 = vld [vmem:[%s1921_s27 + $0x8] sm:$0xf]  ;;  %v1931_v7 = vld [vmem:[%s1921_s27 + $0xc] sm:$0xff]   ;;  %v693_v8 = vld [vmem:[%s1921_s27 + $0x4] sm:$0xe] }
  0x12   : > { %v1516_v9 = vcombine.low %v693_v8, %v1928_v6  ;;  %v1936_v10 = vld [vmem:[%s1921_s27 + $0x14] sm:$0xff]   ;;  %v706_v11 = vrot.slane %v1931_v7, 1  ;;  %v173_v12 = vld [vmem:[%s1921_s27] sm:$0xf]  ;;  %v1942_v13 = vld [vmem:[%s1921_s27 + $0x4] sm:$0xf] }
  0x13   : > { %v1945_v14 = vld [vmem:[%s1921_s27 + $0x8] sm:$0xff]   ;;  %v708_v16 = vrot.slane %v1936_v10, 1  ;;  %v1949_v17 = vcombine.low %v173_v12, %v1942_v13  ;;  %v1960_v24 = vld [vmem:[%s1921_s27 + $0x10] sm:$0xff]   ;;  %v1966_v26 = vld [vmem:[%s1921_s27 + $0x18] sm:$0xf]  ;;  %v573_v34 = vshll.u32 %v1931_v7, 16 }
  0x14   : > { %v705_v15 = vrot.slane %v1516_v9, 1  ;;  %v218_v18 = vshll.u32 %v1945_v14, 16  ;;  %v222_v19 = vshrl.u32 %v1945_v14, 16  ;;  %v180_v28 = vld [vmem:[%s1921_s27 + $0x1c] sm:$0x7]  ;;  %v226_v30 = vshll.u32 %v1960_v24, 16 }
  0x15   : > { %v709_v21 = vsel %vm428_vm2, %v706_v11, %v708_v16  ;;  %v211_v22 = vshrl.u32 %v1949_v17, 16  ;;  %v213_v23 = vshll.u32 %v1949_v17, 16  ;;  %v1973_v31 = vcombine.low %v1966_v26, %v180_v28  ;;  %v1992_v49 = vld [vmem:[%s1921_s27 + $0x1c] sm:$0xf]  ;;  %v694_v54 = vld [vmem:[%s1921_s27 + $0x20] sm:$0xf] }
  0x16   : > { %v707_v20 = vsel %vm428_vm2, %v705_v15, %v706_v11  ;;  %v220_v27 = vrot.slane %v218_v18, 1  ;;  %v230_v32 = vshrl.u32 %v1960_v24, 16  ;;  %v577_v35 = vshrl.u32 %v1931_v7, 16  ;;  %v1838_v11 = vld [vmem:[%s1921_s27 + $0x10] sm:$0xff]   ;;  %v1837_v12 = vld [vmem:[%s1921_s27 + $0x8] sm:$0xfe]  }
  0x17   : > { %1683 = vmatprep.mubr.msk.bf16.mxu0 %vm253_vm0, %v707_v20  ;;  %v215_v29 = vrot.slane %v213_v23, 1  ;;  %v228_v37 = vrot.slane %v226_v30, 1  ;;  %v234_v38 = vshll.u32 %v1973_v31, 16  ;;  %v815_v39 = vshrl.u32 %v1516_v9, 16  ;;  %v1840_v23 = vld [vmem:[%s2164_s1 + $0x70] sm:$0xff]   ;;  %v1843_v30 = vld [vmem:[%s1921_s27 + $0x20] sm:$0xff]  }
  0x18   : > { %1684 = vmatmul.mubr.msk.bf16.vlgmr.msra.gmra.mrb[0].mxu0 %vm253_vm0, %v709_v21  ;;  %v224_v33 = vor.u32 %v222_v19, %v220_v27  ;;  %v818_v41 = vshll.u32 %v1516_v9, 16  ;;  %v822_v42 = vrot.slane %v577_v35, 1  ;;  %v823_v43 = vrot.slane %v573_v34, 2  ;;  %v1835_v19 = vld [vmem:[%s2164_s1 + $0x68] sm:$0xff]  }
  0x19   : > { %1692 = vmatpush3.bf16.msra.mxu0 %v1827_v5  ;;  %v216_v36 = vor.u32 %v215_v29, %v211_v22  ;;  %v232_v46 = vor.u32 %v230_v32, %v228_v37  ;;  %v236_v47 = vrot.slane %v234_v38, 1  ;;  %v817_v50 = vrot.slane %v815_v39, 1  ;;  %v1836_v29 = vld [vmem:[%s2164_s1 + $0x28] sm:$0xff]   ;;  %v533_v32 = vld [vmem:[%s1921_s27 + $0x4] sm:$0xf] }
  0x1a   : > { %1693 = vmatprep.subr.bf16.mxu0 %v1829_v25  ;;  %v229_v45 = vsel %vm209_vm1, %v224_v33, %v228_v37  ;;  %v820_v51 = vrot.slane %v818_v41, 2  ;;  %v824_v52 = vor.u32 %v823_v43, %v822_v42  ;;  %v581_v53 = vshll.u32 %v1936_v10, 16  ;;  %v1842_v41 = vld [vmem:[%s2164_s1 + $0x30] sm:$0xff]   ;;  %v417_v43 = vld [vmem:[%s1921_s27 + $0x1c] sm:$0xf] }
  0x1b   : > { %v221_v44 = vsel %vm209_vm1, %v216_v36, %v220_v27  ;;  %v237_v55 = vsel %vm209_vm1, %v232_v46, %v236_v47  ;;  %v238_v56 = vshrl.u32 %v1973_v31, 16  ;;  %v585_v57 = vshrl.u32 %v1936_v10, 16  ;;  %v1839_v27 = vld [vmem:[%s1921_s27 + $0x18] sm:$0xff]  }
  0x1c   : > { %1635 = vmatprep.mubr.msk.bf16.mxu1 %vm253_vm0, %v221_v44  ;;  %v2002_v58 = vcombine.low %v1992_v49, %v694_v54  ;;  %v821_v59 = vor.u32 %v820_v51, %v817_v50  ;;  %v827_v60 = vrot.slane %v581_v53, 2  ;;  %v969_v21 = vrot.slane %v1838_v11, 1 }
  0x1d   : > { %1694 = vmatpush3.bf16.msra.mxu0 %v1829_v25  ;;  %1636 = vmatmul.mubr.msk.bf16.vlgmr.msra.gmra.mrb[0].mxu1 %vm253_vm0, %v229_v45  ;;  %v826_v61 = vrot.slane %v585_v57, 1  ;;  %v968_v22 = vrot.slane %v1837_v12, 1  ;;  %v416_v25 = vld [vmem:[%s1921_s27] sm:$0xe]  ;;  %v971_v33 = vrot.slane %v1839_v27, 1  ;;  %v1077_v36 = vshrl.u32 %v1837_v12, 16 }
  0x1e   : > { %1703 = vmatprep.subr.bf16.mxu0 %v1832_v40  ;;  %1644 = vmatpush3.bf16.msra.mxu1 %v1916_v4  ;;  %v831_v63 = vshrl.u32 %v2002_v58, 16  ;;  %v834_v1 = vshll.u32 %v2002_v58, 16  ;;  %v825_v3 = vsel %vm813_vm3, %v821_v59, %v824_v52  ;;  %v240_v4 = vor.u32 %v238_v56, %v236_v47 }
  0x1f   : > { %1639 = vmatprep.mubr.msk.bf16.mxu1 %vm253_vm0, %v237_v55  ;;  %1645 = vmatprep.subr.bf16.mxu1 %v1831_v48  ;;  %v828_v5 = vor.u32 %v827_v60, %v826_v61  ;;  %v970_v28 = vsel %vm428_vm2, %v968_v22, %v969_v21  ;;  %v1080_v37 = vshll.u32 %v1837_v12, 16  ;;  %v1085_v38 = vshrl.u32 %v1838_v11, 16 }
  0x20   : > { %1695 = vmatprep.mubr.msk.bf16.mxu0 %vm253_vm0, %v825_v3  ;;  %v833_v8 = vrot.slane %v831_v63, 1  ;;  %v836_v9 = vrot.slane %v834_v1, 2  ;;  %v1088_v39 = vshll.u32 %v1838_v11, 16  ;;  %v973_v42 = vrot.slane %v1843_v30, 1  ;;  %v1846_v11 = vld [vmem:[%s2164_s1 + $0x38] sm:$0xff]  }
  0x21   : > { %v829_v15 = vsel %vm813_vm3, %v824_v52, %v828_v5  ;;  %v1506_v44 = vcombine.low %v533_v32, %v1928_v6  ;;  %v972_v45 = vsel %vm428_vm2, %v969_v21, %v971_v33  ;;  %v1079_v46 = vrot.slane %v1077_v36, 1  ;;  %v1844_v52 = vld [vmem:[%s2164_s1 + $0x78] sm:$0xff]   ;;  %v1848_v32 = vld [vmem:[%s2164_s1 + $0x88] sm:$0xff]  }
  0x22   : > { %1646 = vmatpush3.bf16.msra.mxu1 %v1831_v48  ;;  %v837_v18 = vor.u32 %v836_v9, %v833_v8  ;;  %v1082_v47 = vrot.slane %v1080_v37, 2  ;;  %v1087_v48 = vrot.slane %v1085_v38, 1  ;;  %v1090_v50 = vrot.slane %v1088_v39, 2 }
  0x23   : > { %1655 = vmatprep.subr.bf16.mxu1 %v1833_v62  ;;  %v1499_v54 = vcombine.low %v1966_v26, %v417_v43  ;;  %v710_v6 = vrot.slane %v2002_v58, 1  ;;  %v1094_v55 = vshrl.u32 %v1839_v27, 16  ;;  %v1097_v56 = vshll.u32 %v1839_v27, 16 }
  0x24   : > { %1696 = vmatmul.mubr.msk.bf16.vlgmr.msra.gmra.mrb[0].mxu0 %vm253_vm0, %v829_v15  ;;  %v838_v20 = vsel %vm813_vm3, %v828_v5, %v837_v18  ;;  %v432_v26 = vrot.slane %v1960_v24, 1  ;;  %v1083_v60 = vor.u32 %v1082_v47, %v1079_v46  ;;  %v1091_v61 = vor.u32 %v1090_v50, %v1087_v48 }
  0x25   : > { %1640 = vmatmul.mubr.msk.bf16.gmra.mrb[4].mxu1 %vm253_vm0, %v240_v4  ;;  %1704 = vmatpush3.bf16.msra.mxu0 %v1832_v40  ;;  %v430_v40 = vrot.slane %v1945_v14, 1  ;;  %v2069_v59 = vsel %vm428_vm2, %v708_v16, %v710_v6  ;;  %v568_v63 = vshll.u32 %v1506_v44, 16  ;;  %v1103_v1 = vshrl.u32 %v1843_v30, 16 }
  0x26   : > { %1647 = vmatprep.mubr.msk.bf16.mxu1 %vm253_vm0, %v1949_v17  ;;  %1699 = vmatprep.mubr.msk.bf16.mxu0 %vm253_vm0, %v838_v20  ;;  %v1498_v17 = vcombine.low %v416_v25, %v1942_v13  ;;  %v1106_v3 = vshll.u32 %v1843_v30, 16  ;;  %v1096_v16 = vrot.slane %v1094_v55, 1  ;;  %v1099_v4 = vrot.slane %v1097_v56, 2 }
  0x27   : > { %1705 = vmatprep.subr.bf16.mxu0 %v1835_v19  ;;  %v433_v5 = vsel %vm428_vm2, %v430_v40, %v432_v26  ;;  %v1092_v8 = vsel %vm813_vm3, %v1083_v60, %v1091_v61  ;;  %v570_v12 = vrot.slane %v568_v63, 1  ;;  %v1105_v15 = vrot.slane %v1103_v1, 1 }
  0x28   : > { %v429_v13 = vrot.slane %v1498_v17, 1  ;;  %v1100_v20 = vor.u32 %v1099_v4, %v1096_v16  ;;  %v575_v22 = vrot.slane %v573_v34, 1 }
  0x29   : > { %1706 = vmatpush3.bf16.msra.mxu0 %v1835_v19  ;;  %v540_v19 = vld [vmem:[%s1921_s27 + $0x20] sm:$0x7] }
  0x2a   : > { %1715 = vmatprep.subr.bf16.mxu0 %v1840_v23  ;;  %v431_v51 = vsel %vm428_vm2, %v429_v13, %v430_v40  ;;  %v1509_v25 = vcombine.low %v1992_v49, %v540_v19  ;;  %v1101_v27 = vsel %vm813_vm3, %v1091_v61, %v1100_v20  ;;  %v583_v49 = vrot.slane %v581_v53, 1  ;;  %v1852_v13 = vld [vmem:[%s1921_s27 + $0x18] sm:$0xff]  }
  0x2c   : > { %1700 = vmatmul.mubr.msk.bf16.gmra.mrb[4].mxu0 %vm253_vm0, %v837_v18  ;;  %v1108_v18 = vrot.slane %v1106_v3, 2  ;;  %v589_v34 = vshll.u32 %v1509_v25, 16  ;;  %v587_v38 = vor.u32 %v585_v57, %v583_v49  ;;  %v593_v10 = vshrl.u32 %v1509_v25, 16 }
  0x2d   : > { %1648 = vmatmul.mubr.msk.bf16.vlgmr.msra.gmra.mrb[0].mxu1 %vm253_vm0, %v1945_v14  ;;  %1707 = vmatprep.mubr.msk.bf16.mxu0 %vm253_vm0, %v970_v28  ;;  %v974_v14 = vsel %vm428_vm2, %v971_v33, %v973_v42  ;;  %v1850_v28 = vld [vmem:[%s1921_s27 + $0x8] sm:$0xfc]   ;;  %v579_v33 = vor.u32 %v577_v35, %v575_v22  ;;  %v1853_v35 = vld [vmem:[%s1921_s27 + $0x20] sm:$0xff]   ;;  %v1248_v57 = vrot.slane %v1852_v13, 2 }
  0x2e   : > { %1656 = vmatpush3.bf16.msra.mxu1 %v1833_v62  ;;  %1651 = vmatprep.mubr.msk.bf16.mxu1 %vm253_vm0, %v1960_v24  ;;  %v434_v62 = vrot.slane %v1499_v54, 1  ;;  %v566_v24 = vshrl.u32 %v1506_v44, 16  ;;  %v1245_v36 = vrot.slane %v1850_v28, 2  ;;  %v591_v39 = vrot.slane %v589_v34, 1 }
  0x2f   : > { %1657 = vmatprep.subr.bf16.mxu1 %v1836_v29  ;;  %v584_v53 = vsel %vm209_vm1, %v579_v33, %v583_v49  ;;  %v1854_v44 = vld [vmem:[%s1921_s27 + $0x28] ss:$0 sps:$4 sm:$0x11]  }
  0x30   : > { %v435_v9 = vsel %vm428_vm2, %v432_v26, %v434_v62  ;;  %v571_v21 = vor.u32 %v570_v12, %v566_v24  ;;  %v592_v40 = vsel %vm209_vm1, %v587_v38, %v591_v39 }
  0x32   : > { %1658 = vmatpush3.bf16.msra.mxu1 %v1836_v29  ;;  %v1851_v29 = vld [vmem:[%s1921_s27 + $0x10] sm:$0xff]   ;;  %v576_v17 = vsel %vm209_vm1, %v571_v21, %v575_v22 }
  0x33   : > { %1667 = vmatprep.subr.bf16.mxu1 %v1842_v41  ;;  %v1246_v37 = vrot.slane %v1851_v29, 2 }
  0x34   : > { %1708 = vmatmul.mubr.msk.bf16.vlgmr.msra.gmra.mrb[0].mxu0 %vm253_vm0, %v972_v45 }
  0x35   : > { %1652 = vmatmul.mubr.msk.bf16.gmra.mrb[4].mxu1 %vm253_vm0, %v1973_v31  ;;  %1716 = vmatpush3.bf16.msra.mxu0 %v1840_v23  ;;  %v1847_v31 = vld [vmem:[%s2164_s1 + $0x80] sm:$0xff]   ;;  %v1109_v23 = vor.u32 %v1108_v18, %v1105_v15  ;;  %v1247_v7 = vsel %vm1244_vm4, %v1245_v36, %v1246_v37  ;;  %v1249_v43 = vsel %vm1244_vm4, %v1246_v37, %v1248_v57  ;;  %v1416_v36 = vld [vmem:[%s2142_s7 + $0x1c] sm:$0x7] }
  0x36   : > { %1659 = vmatprep.mubr.msk.bf16.mxu1 %vm253_vm0, %v431_v51  ;;  %1711 = vmatprep.mubr.msk.bf16.mxu0 %vm253_vm0, %v974_v14  ;;  %v1557_v51 = vld [vmem:[%s2165_s2] ss:$0 sm:$0xff] }
  0x37   : > { %1717 = vmatprep.subr.bf16.mxu0 %v1844_v52  ;;  %v1110_v30 = vsel %vm813_vm3, %v1100_v20, %v1109_v23 }
  0x39   : > { %1718 = vmatpush3.bf16.msra.mxu0 %v1844_v52 }
  0x3a   : > { %1727 = vmatprep.subr.bf16.mxu0 %v1847_v31 }
  0x3c   : > { %1712 = vmatmul.mubr.msk.bf16.gmra.mrb[4].mxu0 %vm253_vm0, %v973_v42  ;;  %v595_v42 = vor.u32 %v593_v10, %v591_v39 }
  0x3d   : > { %1660 = vmatmul.mubr.msk.bf16.vlgmr.msra.gmra.mrb[0].mxu1 %vm253_vm0, %v433_v5  ;;  %1719 = vmatprep.mubr.msk.bf16.mxu0 %vm253_vm0, %v1092_v8 }
  0x3e   : > { %1668 = vmatpush3.bf16.msra.mxu1 %v1842_v41  ;;  %1663 = vmatprep.mubr.msk.bf16.mxu1 %vm253_vm0, %v435_v9  ;;  %v1250_v41 = vrot.slane %v1853_v35, 2 }
  0x3f   : > { %1669 = vmatprep.subr.bf16.mxu1 %v1846_v11 }
  0x40   : > { %v1251_v45 = vsel %vm1244_vm4, %v1248_v57, %v1250_v41 }
  0x42   : > { %1670 = vmatpush3.bf16.msra.mxu1 %v1846_v11 }
  0x43   : > { %1739 = vmatprep.subr.bf16.mxu1 %v1894_v0 }
  0x44   : > { %1720 = vmatmul.mubr.msk.bf16.vlgmr.msra.gmra.mrb[0].mxu0 %vm253_vm0, %v1101_v27 }
  0x45   : > { %1664 = vmatmul.mubr.msk.bf16.gmra.mrb[4].mxu1 %vm253_vm0, %v434_v62  ;;  %1728 = vmatpush3.bf16.msra.mxu0 %v1847_v31 }
  0x46   : > { %1671 = vmatprep.mubr.msk.bf16.mxu1 %vm253_vm0, %v576_v17  ;;  %1723 = vmatprep.mubr.msk.bf16.mxu0 %vm253_vm0, %v1110_v30 }
  0x47   : > { %1729 = vmatprep.subr.bf16.mxu0 %v1848_v32 }
  0x49   : > { %1730 = vmatpush3.bf16.msra.mxu0 %v1848_v32 }
  0x4c   : > { %1724 = vmatmul.mubr.msk.bf16.gmra.mrb[4].mxu0 %vm253_vm0, %v1109_v23 }
  0x4d   : > { %1672 = vmatmul.mubr.msk.bf16.vlgmr.msra.gmra.mrb[0].mxu1 %vm253_vm0, %v584_v53  ;;  %1731 = vmatprep.mubr.msk.bf16.mxu0 %vm253_vm0, %v1247_v7 }
  0x4e   : > { %1741 = vmatpush3.bf16.msra.mxu1 %v1894_v0  ;;  %1675 = vmatprep.mubr.msk.bf16.mxu1 %vm253_vm0, %v592_v40  ;;  %v1252_v0 = vrot.slane %v1854_v44, 2 }
  0x4f   : > { %1740 = vmatprep.subr.bf16.mxu1 %v1903_v2 }
  0x50   : > { %v1253_v46 = vsel %vm1244_vm4, %v1250_v41, %v1252_v0 }
  0x52   : > { %1742 = vmatpush3.bf16.msra.mxu1 %v1903_v2 }
  0x54   : > { %1732 = vmatmul.mubr.msk.bf16.vlgmr.msra.gmra.mrb[0].mxu0 %vm253_vm0, %v1249_v43 }
  0x55   : > { %1676 = vmatmul.mubr.msk.bf16.gmra.mrb[4].mxu1 %vm253_vm0, %v595_v42  ;;  %1735 = vmatprep.mubr.msk.bf16.mxu0 %vm253_vm0, %v1251_v45 }
  0x56   : > { %1687 = vmatprep.mubr.msk.bf16.mxu1 %vm253_vm0, %v2069_v59 }
  0x5c   : > { %1736 = vmatmul.mubr.msk.bf16.gmra.mrb[4].mxu0 %vm253_vm0, %v1253_v46 }
  0x61   : > { %1688 = vmatmul.mubr.msk.bf16.vlgmr.msra.gmra.mrb[4].mxu1 %vm253_vm0, %v710_v6 }
 0x120   : > { %v1673_v2 = vpop.f32.mrb[0].mxu1 }
 0x121   : > { %v654_v47 = vpop.f32.mrb[1].mxu1 }
 0x122   : > { %v1674_v48 = vpop.f32.mrb[2].mxu1 }
 0x123   : > { %v657_v50 = vpop.f32.mrb[3].mxu1 }
 0x127   : > { %v1733_v14 = vpop.f32.mrb[0].mxu0 }
 0x128   : > { %v1743_v52 = vadd.f32 %v1733_v14, %v1673_v2  ;;  %v1312_v54 = vpop.f32.mrb[1].mxu0 }
 0x129   : > { %v1744_v55 = vadd.f32 %v1312_v54, %v654_v47  ;;  %v1734_v56 = vpop.f32.mrb[2].mxu0 }
 0x12a   : > { %v1359_v59 = vadd.f32 %v1743_v52, %v1557_v51  ;;  %v1745_v26 = vadd.f32 %v1734_v56, %v1674_v48  ;;  %v1315_v60 = vpop.f32.mrb[3].mxu0 }
 0x12b   : > { %v1357_v58 = vadd.f32 %v1744_v55, %v1557_v51  ;;  %v1746_v61 = vadd.f32 %v1315_v60, %v657_v50 }
 0x12c   : > { %v1367_v6 = vmax.f32 %v1359_v59, 0.0  ;;  %v1360_v31 = vadd.f32 %v1745_v26, %v1557_v51 }
 0x12d   : > { %v1365_v62 = vmax.f32 %v1357_v58, 0.0  ;;  %v1358_v63 = vadd.f32 %v1746_v61, %v1557_v51 }
 0x12e   : > { %v1571_v1 = vpack.c.bf16 %v1367_v6, %v1367_v6  ;;  %v1368_v3 = vmax.f32 %v1360_v31, 0.0 }
 0x12f   : > { %v1569_v16 = vpack.c.bf16 %v1365_v62, %v1365_v62  ;;  %v1366_v4 = vmax.f32 %v1358_v63, 0.0  ;;  %v1737_v5 = vpop.f32.mrb[4].mxu0 }
 0x130   : > { %1408 = vst.msk [vmem:[%s2142_s7 + $0x8] sm:$0xf] %vm1405_vm5, %v1571_v1  ;;  %v1572_v8 = vpack.c.bf16 %v1368_v3, %v1368_v3  ;;  %v1328_v24 = vpop.f32.mrb[5].mxu0 }
 0x131   : > { %1406 = vst.msk [vmem:[%s2142_s7] sm:$0xf] %vm1405_vm5, %v1569_v16  ;;  %v1570_v9 = vpack.c.bf16 %v1366_v4, %v1366_v4  ;;  %v1738_v11 = vpop.f32.mrb[6].mxu0 }
 0x132   : > { %1409 = vst.msk [vmem:[%s2142_s7 + $0xc] sm:$0xf] %vm1405_vm5, %v1572_v8  ;;  %v1331_v12 = vpop.f32.mrb[7].mxu0 }
 0x133   : > { %1407 = vst.msk [vmem:[%s2142_s7 + $0x4] sm:$0xf] %vm1405_vm5, %v1570_v9 }
 0x134   : > { %v1689_v15 = vpop.f32.mrb[4].mxu1 }
 0x135   : > { %v1747_v18 = vadd.f32 %v1737_v5, %v1689_v15  ;;  %v786_v19 = vpop.f32.mrb[5].mxu1 }
 0x136   : > { %v1748_v20 = vadd.f32 %v1328_v24, %v786_v19  ;;  %v1690_v21 = vpop.f32.mrb[6].mxu1 }
 0x137   : > { %v1363_v22 = vadd.f32 %v1747_v18, %v1557_v51  ;;  %v1749_v23 = vadd.f32 %v1738_v11, %v1690_v21  ;;  %v789_v25 = vpop.f32.mrb[7].mxu1 }
 0x138   : > { %v1361_v27 = vadd.f32 %v1748_v20, %v1557_v51  ;;  %v1750_v28 = vadd.f32 %v1331_v12, %v789_v25 }
 0x139   : > { %v1371_v29 = vmax.f32 %v1363_v22, 0.0  ;;  %v1364_v17 = vadd.f32 %v1749_v23, %v1557_v51 }
 0x13a   : > { %v1369_v30 = vmax.f32 %v1361_v27, 0.0  ;;  %v1362_v32 = vadd.f32 %v1750_v28, %v1557_v51 }
 0x13b   : > { %v1575_v34 = vpack.c.bf16 %v1371_v29, %v1371_v29  ;;  %v1372_v49 = vmax.f32 %v1364_v17, 0.0 }
 0x13c   : > { %v1573_v33 = vpack.c.bf16 %v1369_v30, %v1369_v30  ;;  %v1370_v37 = vmax.f32 %v1362_v32, 0.0 }
 0x13d   : > { %1412 = vst.msk [vmem:[%s2142_s7 + $0x18] sm:$0xf] %vm1405_vm5, %v1575_v34  ;;  %v1576_v38 = vpack.c.bf16 %v1372_v49, %v1372_v49 }
 0x13e   : > { %1410 = vst.msk [vmem:[%s2142_s7 + $0x10] sm:$0xf] %vm1405_vm5, %v1573_v33  ;;  %v1574_v39 = vpack.c.bf16 %v1370_v37, %v1370_v37 }
 0x13f   : > { %v1417_v13 = vsel %vm1415_vm8, %v1576_v38, %v1416_v36 }
 0x140   : > { %1418 = vst [vmem:[%s2142_s7 + $0x1c] sm:$0x7] %v1417_v13  ;;  %1411 = vst.msk [vmem:[%s2142_s7 + $0x14] sm:$0xf] %vm1405_vm5, %v1574_v39 }
 0x141 PF: > { %s13_s12 = sadd.s32 1, %s1861_s12  }
 0x142   : > { %p10_p4 = scmp.ge.s32.totalorder %s13_s12, 4  }
 0x144   :  { %12 = sbr.rel (!%p10_p4) target bundleno = 1 (0x1), region = 62 }

// kernel: qnet_forward.7
= control target key start
LH: loop header
LB: loop body
LE: loop exit
PB: predicated region body
PF: predicated region fallthrough
CT: control target
= control target key end

     0   :  { %v817_v36 = vlaneseq  ;;  %v9865_v37 = vmov 1966171168   ;;  %vm4946_vm0 = vcmask 523264   ;;  %vm7335_vm4 = vcmask 1041408   ;;  %s12924_s1 = inlined_call_operand.vmem [shape: bf16[3136,512], index: 1, kind: input, shape index: {}]   ;;  %s12925_s0 = inlined_call_operand.vmem [shape: bf16[2,3136], index: 0, kind: input, shape index: {}]   ;;  %s12926_s3 = inlined_call_operand.vmem [shape: bf16[512,512], index: 3, kind: input, shape index: {}]   ;;  %s12927_s5 = inlined_call_operand.vmem [shape: bf16[512,128], index: 5, kind: input, shape index: {}]   ;;  %s12928_s2 = inlined_call_operand.vmem [shape: f32[1,512], index: 2, kind: input, shape index: {}]   ;;  %s12929_s4 = inlined_call_operand.vmem [shape: f32[1,512], index: 4, kind: input, shape index: {}]   ;;  %s12930_s6 = inlined_call_operand.vmem [shape: f32[1,128], index: 6, kind: input, shape index: {}]   ;;  %s12931_s7 = inlined_call_operand.vmem [shape: f32[2,128], index: 7, kind: output, shape index: {}]  }
   0x1   :  { %v8460_v0 = vld [vmem:[%s12924_s1 + $0x4] ss:$16 sps:$4 sm:$0xff]   ;;  %v8462_v1 = vld [vmem:[%s12924_s1 + $0xc] ss:$16 sps:$4 sm:$0xff]   ;;  %v8464_v2 = vld [vmem:[%s12924_s1] ss:$16 sps:$4 sm:$0xff]   ;;  %v843_v38 = vunpack.c.l.s4 %v9865_v37 }
   0x2   :  { %4950 = vmatprep.subr.bf16.mxu0 %v8460_v0  ;;  %v8465_v3 = vld [vmem:[%s12924_s1 + $0x8] ss:$16 sps:$4 sm:$0xff]   ;;  %5483 = vmatprep.subr.bf16.mxu1 %v8462_v1  ;;  %v8466_v4 = vld [vmem:[%s12924_s1 + $0x24] ss:$16 sps:$4 sm:$0xff]   ;;  %v8468_v5 = vld [vmem:[%s12924_s1 + $0x2c] ss:$16 sps:$4 sm:$0xff]  }
   0x3   :  { %4951 = vmatpush1.bf16.msra.mxu0 %v8464_v2  ;;  %5484 = vmatpush1.bf16.msra.mxu1 %v8465_v3  ;;  %v8470_v6 = vld [vmem:[%s12924_s1 + $0x20] ss:$16 sps:$4 sm:$0xff]   ;;  %v8471_v7 = vld [vmem:[%s12924_s1 + $0x28] ss:$16 sps:$4 sm:$0xff]   ;;  %v8472_v8 = vld [vmem:[%s12924_s1 + $0x44] ss:$16 sps:$4 sm:$0xff]   ;;  %v844_v43 = vunpack.c.0.s8 %v843_v38 }
   0x4   :  { %4952 = vmatprep.subr.bf16.mxu0 %v8466_v4  ;;  %5485 = vmatprep.subr.bf16.mxu1 %v8468_v5  ;;  %v8474_v9 = vld [vmem:[%s12924_s1 + $0x4c] ss:$16 sps:$4 sm:$0xff]   ;;  %v8476_v10 = vld [vmem:[%s12924_s1 + $0x40] ss:$16 sps:$4 sm:$0xff]   ;;  %v8477_v11 = vld [vmem:[%s12924_s1 + $0x48] ss:$16 sps:$4 sm:$0xff]  }
   0x5   :  { %v8478_v12 = vld [vmem:[%s12924_s1 + $0x64] ss:$16 sps:$4 sm:$0xff]   ;;  %v8480_v13 = vld [vmem:[%s12924_s1 + $0x6c] ss:$16 sps:$4 sm:$0xff]   ;;  %v8482_v14 = vld [vmem:[%s12924_s1 + $0x60] ss:$16 sps:$4 sm:$0xff]  }
   0x6   :  { %v8483_v15 = vld [vmem:[%s12924_s1 + $0x68] ss:$16 sps:$4 sm:$0xff]   ;;  %v8484_v16 = vld [vmem:[%s12924_s1 + $0x84] ss:$16 sps:$4 sm:$0xff]   ;;  %v8486_v17 = vld [vmem:[%s12924_s1 + $0x8c] ss:$16 sps:$4 sm:$0xff]  }
   0x7   :  { %4953 = vmatpush1.bf16.msra.mxu0 %v8470_v6  ;;  %5486 = vmatpush1.bf16.msra.mxu1 %v8471_v7  ;;  %v8488_v18 = vld [vmem:[%s12924_s1 + $0x80] ss:$16 sps:$4 sm:$0xff]   ;;  %v8489_v19 = vld [vmem:[%s12924_s1 + $0x88] ss:$16 sps:$4 sm:$0xff]   ;;  %v8490_v20 = vld [vmem:[%s12924_s1 + $0xa4] ss:$16 sps:$4 sm:$0xff]  }
   0x8   :  { %4954 = vmatprep.subr.bf16.mxu0 %v8472_v8  ;;  %5487 = vmatprep.subr.bf16.mxu1 %v8474_v9  ;;  %v8492_v21 = vld [vmem:[%s12924_s1 + $0xac] ss:$16 sps:$4 sm:$0xff]   ;;  %v8494_v22 = vld [vmem:[%s12924_s1 + $0xa0] ss:$16 sps:$4 sm:$0xff]   ;;  %v8495_v23 = vld [vmem:[%s12924_s1 + $0xa8] ss:$16 sps:$4 sm:$0xff]  }
   0x9   :  { %v8496_v24 = vld [vmem:[%s12924_s1 + $0xc4] ss:$16 sps:$4 sm:$0xff]   ;;  %v8498_v25 = vld [vmem:[%s12924_s1 + $0xcc] ss:$16 sps:$4 sm:$0xff]   ;;  %v8500_v26 = vld [vmem:[%s12924_s1 + $0xc0] ss:$16 sps:$4 sm:$0xff]  }
   0xa   :  { %v8501_v27 = vld [vmem:[%s12924_s1 + $0xc8] ss:$16 sps:$4 sm:$0xff]   ;;  %v8502_v28 = vld [vmem:[%s12924_s1 + $0xe4] ss:$16 sps:$4 sm:$0xff]   ;;  %v8504_v29 = vld [vmem:[%s12924_s1 + $0xec] ss:$16 sps:$4 sm:$0xff]  }
   0xb   :  { %4955 = vmatpush1.bf16.msra.mxu0 %v8476_v10  ;;  %5488 = vmatpush1.bf16.msra.mxu1 %v8477_v11  ;;  %v8506_v30 = vld [vmem:[%s12924_s1 + $0xe0] ss:$16 sps:$4 sm:$0xff]   ;;  %v8507_v31 = vld [vmem:[%s12924_s1 + $0xe8] ss:$16 sps:$4 sm:$0xff]   ;;  %v8508_v32 = vld [vmem:[%s12924_s1 + $0x104] ss:$16 sps:$4 sm:$0xff]  }
   0xc   :  { %4956 = vmatprep.subr.bf16.mxu0 %v8478_v12  ;;  %5489 = vmatprep.subr.bf16.mxu1 %v8480_v13  ;;  %v8510_v33 = vld [vmem:[%s12924_s1 + $0x10c] ss:$16 sps:$4 sm:$0xff]   ;;  %v8512_v34 = vld [vmem:[%s12924_s1 + $0x100] ss:$16 sps:$4 sm:$0xff]   ;;  %v8513_v35 = vld [vmem:[%s12924_s1 + $0x108] ss:$16 sps:$4 sm:$0xff]  }
   0xd   :  { %v8514_v39 = vld [vmem:[%s12924_s1 + $0x124] ss:$16 sps:$4 sm:$0xff]   ;;  %v8516_v40 = vld [vmem:[%s12924_s1 + $0x12c] ss:$16 sps:$4 sm:$0xff]   ;;  %v8518_v41 = vld [vmem:[%s12924_s1 + $0x120] ss:$16 sps:$4 sm:$0xff]  }
   0xe   :  { %v10025_v42 = vshrl.u32 %v817_v36, 7  ;;  %v8519_v44 = vld [vmem:[%s12924_s1 + $0x128] ss:$16 sps:$4 sm:$0xff]   ;;  %v8520_v45 = vld [vmem:[%s12924_s1 + $0x144] ss:$16 sps:$4 sm:$0xff]  }
   0xf   :  { %4957 = vmatpush1.bf16.msra.mxu0 %v8482_v14  ;;  %5490 = vmatpush1.bf16.msra.mxu1 %v8483_v15  ;;  %v8522_v46 = vld [vmem:[%s12924_s1 + $0x14c] ss:$16 sps:$4 sm:$0xff]   ;;  %v8524_v47 = vld [vmem:[%s12924_s1 + $0x140] ss:$16 sps:$4 sm:$0xff]   ;;  %v8525_v48 = vld [vmem:[%s12924_s1 + $0x148] ss:$16 sps:$4 sm:$0xff]  }
  0x10   :  { %4958 = vmatprep.subr.bf16.mxu0 %v8484_v16  ;;  %5491 = vmatprep.subr.bf16.mxu1 %v8486_v17  ;;  %v10043_v49 = vsub.s32 %v844_v43, %v10025_v42  ;;  %v8526_v50 = vld [vmem:[%s12924_s1 + $0x164] ss:$16 sps:$4 sm:$0xff]   ;;  %v8528_v51 = vld [vmem:[%s12924_s1 + $0x16c] ss:$16 sps:$4 sm:$0xff]   ;;  %v8530_v53 = vld [vmem:[%s12924_s1 + $0x160] ss:$16 sps:$4 sm:$0xff]  }
  0x11   :  { %v10054_v52 = vld [vmem:[%s12925_s0] sm:$0xff]  ;;  %v8531_v55 = vld [vmem:[%s12924_s1 + $0x168] ss:$16 sps:$4 sm:$0xff]   ;;  %v8534_v57 = vld [vmem:[%s12924_s1 + $0x18c] ss:$16 sps:$4 sm:$0xff]  }
  0x12   :  { %v848_v54 = vrot.slane %v10054_v52, %v10043_v49  ;;  %v8532_v56 = vld [vmem:[%s12924_s1 + $0x184] ss:$16 sps:$4 sm:$0xff]   ;;  %v8536_v59 = vld [vmem:[%s12924_s1 + $0x180] ss:$16 sps:$4 sm:$0xff]   ;;  %v8537_v61 = vld [vmem:[%s12924_s1 + $0x188] ss:$16 sps:$4 sm:$0xff]  }
  0x13   :  { %4959 = vmatpush1.bf16.msra.mxu0 %v8488_v18  ;;  %5492 = vmatpush1.bf16.msra.mxu1 %v8489_v19  ;;  %v8538_v62 = vld [vmem:[%s12924_s1 + $0x1a4] ss:$16 sps:$4 sm:$0xff]   ;;  %v8540_v63 = vld [vmem:[%s12924_s1 + $0x1ac] ss:$16 sps:$4 sm:$0xff]   ;;  %v8542_v0 = vld [vmem:[%s12924_s1 + $0x1a0] ss:$16 sps:$4 sm:$0xff]  }
  0x14   :  { %4960 = vmatprep.subr.bf16.mxu0 %v8490_v20  ;;  %5493 = vmatprep.subr.bf16.mxu1 %v8492_v21  ;;  %v856_v58 = vcombine.high %v848_v54, %v848_v54  ;;  %v8543_v1 = vld [vmem:[%s12924_s1 + $0x1a8] ss:$16 sps:$4 sm:$0xff]   ;;  %v8544_v2 = vld [vmem:[%s12924_s1 + $0x1c4] ss:$16 sps:$4 sm:$0xff]   ;;  %v8546_v3 = vld [vmem:[%s12924_s1 + $0x1cc] ss:$16 sps:$4 sm:$0xff]   ;;  %v10123_v13 = vrot.slane %v848_v54, %v10043_v49 }
  0x15   :  { %v8548_v4 = vld [vmem:[%s12924_s1 + $0x1c0] ss:$16 sps:$4 sm:$0xff]   ;;  %v8549_v5 = vld [vmem:[%s12924_s1 + $0x1c8] ss:$16 sps:$4 sm:$0xff]   ;;  %v8550_v6 = vld [vmem:[%s12924_s1 + $0x1e4] ss:$16 sps:$4 sm:$0xff]  }
  0x16   :  { %v878_v60 = vrot.slane %v856_v58, %v10043_v49  ;;  %v8552_v7 = vld [vmem:[%s12924_s1 + $0x1ec] ss:$16 sps:$4 sm:$0xff]   ;;  %v8554_v8 = vld [vmem:[%s12924_s1 + $0x1e0] ss:$16 sps:$4 sm:$0xff]   ;;  %v8555_v9 = vld [vmem:[%s12924_s1 + $0x1e8] ss:$16 sps:$4 sm:$0xff]  }
  0x17   :  { %4961 = vmatpush1.bf16.msra.mxu0 %v8494_v22  ;;  %5494 = vmatpush1.bf16.msra.mxu1 %v8495_v23  ;;  %v8558_v10 = vld [vmem:[%s12924_s1 + $0x204] ss:$16 sps:$4 sm:$0xff]   ;;  %v8561_v11 = vld [vmem:[%s12924_s1 + $0x20c] ss:$16 sps:$4 sm:$0xff]   ;;  %v8556_v12 = vld [vmem:[%s12924_s1 + $0x200] ss:$16 sps:$4 sm:$0xff]  }
  0x18   :  { %4962 = vmatprep.subr.bf16.mxu0 %v8496_v24  ;;  %5495 = vmatprep.subr.bf16.mxu1 %v8498_v25  ;;  %v8559_v14 = vld [vmem:[%s12924_s1 + $0x208] ss:$16 sps:$4 sm:$0xff]   ;;  %v8564_v15 = vld [vmem:[%s12924_s1 + $0x224] ss:$16 sps:$4 sm:$0xff]   ;;  %v8567_v16 = vld [vmem:[%s12924_s1 + $0x22c] ss:$16 sps:$4 sm:$0xff]   ;;  %v888_v17 = vcombine.high %v878_v60, %v878_v60 }
  0x19   :  { %4982 = vmatprep.mubr.bf16.mxu0 %v878_v60  ;;  %5515 = vmatprep.mubr.bf16.mxu1 %v878_v60  ;;  %v8562_v18 = vld [vmem:[%s12924_s1 + $0x220] ss:$16 sps:$4 sm:$0xff]   ;;  %v8565_v19 = vld [vmem:[%s12924_s1 + $0x228] ss:$16 sps:$4 sm:$0xff]   ;;  %v8570_v20 = vld [vmem:[%s12924_s1 + $0x244] ss:$16 sps:$4 sm:$0xff]  }
  0x1a   :  { %v8573_v21 = vld [vmem:[%s12924_s1 + $0x24c] ss:$16 sps:$4 sm:$0xff]   ;;  %v8568_v22 = vld [vmem:[%s12924_s1 + $0x240] ss:$16 sps:$4 sm:$0xff]   ;;  %v8571_v23 = vld [vmem:[%s12924_s1 + $0x248] ss:$16 sps:$4 sm:$0xff]  }
  0x1b   :  { %4963 = vmatpush1.bf16.msra.mxu0 %v8500_v26  ;;  %5496 = vmatpush1.bf16.msra.mxu1 %v8501_v27  ;;  %v8576_v24 = vld [vmem:[%s12924_s1 + $0x264] ss:$16 sps:$4 sm:$0xff]   ;;  %v8579_v25 = vld [vmem:[%s12924_s1 + $0x26c] ss:$16 sps:$4 sm:$0xff]   ;;  %v8574_v26 = vld [vmem:[%s12924_s1 + $0x260] ss:$16 sps:$4 sm:$0xff]  }
  0x1c   :  { %4964 = vmatprep.subr.bf16.mxu0 %v8502_v28  ;;  %5497 = vmatprep.subr.bf16.mxu1 %v8504_v29  ;;  %v8577_v27 = vld [vmem:[%s12924_s1 + $0x268] ss:$16 sps:$4 sm:$0xff]   ;;  %v8582_v28 = vld [vmem:[%s12924_s1 + $0x284] ss:$16 sps:$4 sm:$0xff]   ;;  %v8585_v29 = vld [vmem:[%s12924_s1 + $0x28c] ss:$16 sps:$4 sm:$0xff]  }
  0x1d   :  { %v8594_v37 = vld [vmem:[%s12924_s1 + $0x2c4] ss:$16 sps:$4 sm:$0xff]   ;;  %v8597_v38 = vld [vmem:[%s12924_s1 + $0x2cc] ss:$16 sps:$4 sm:$0xff]   ;;  %v8610_v54 = vld [vmem:[%s12924_s1 + $0x320] ss:$16 sps:$4 sm:$0xff]  }
  0x1e   :  { %v8603_v43 = vld [vmem:[%s12924_s1 + $0x2ec] ss:$16 sps:$4 sm:$0xff]   ;;  %v8616_v58 = vld [vmem:[%s12924_s1 + $0x340] ss:$16 sps:$4 sm:$0xff]   ;;  %v8624_v60 = vld [vmem:[%s12924_s1 + $0x364] ss:$16 sps:$4 sm:$0xff]  }
  0x1f   :  { %4965 = vmatpush1.bf16.msra.mxu0 %v8506_v30  ;;  %5498 = vmatpush1.bf16.msra.mxu1 %v8507_v31  ;;  %v8580_v30 = vld [vmem:[%s12924_s1 + $0x280] ss:$16 sps:$4 sm:$0xff]   ;;  %v8583_v31 = vld [vmem:[%s12924_s1 + $0x288] ss:$16 sps:$4 sm:$0xff]  }
  0x20   :  { %4966 = vmatprep.subr.bf16.mxu0 %v8508_v32  ;;  %5499 = vmatprep.subr.bf16.mxu1 %v8510_v33  ;;  %v8588_v32 = vld [vmem:[%s12924_s1 + $0x2a4] ss:$16 sps:$4 sm:$0xff]   ;;  %v8591_v33 = vld [vmem:[%s12924_s1 + $0x2ac] ss:$16 sps:$4 sm:$0xff]  }
  0x23   :  { %4967 = vmatpush1.bf16.msra.mxu0 %v8512_v34  ;;  %5500 = vmatpush1.bf16.msra.mxu1 %v8513_v35  ;;  %v8586_v34 = vld [vmem:[%s12924_s1 + $0x2a0] ss:$16 sps:$4 sm:$0xff]   ;;  %v8589_v35 = vld [vmem:[%s12924_s1 + $0x2a8] ss:$16 sps:$4 sm:$0xff]  }
  0x24   :  { %4968 = vmatprep.subr.bf16.mxu0 %v8514_v39  ;;  %5501 = vmatprep.subr.bf16.mxu1 %v8516_v40  ;;  %v8592_v39 = vld [vmem:[%s12924_s1 + $0x2c0] ss:$16 sps:$4 sm:$0xff]   ;;  %v8595_v40 = vld [vmem:[%s12924_s1 + $0x2c8] ss:$16 sps:$4 sm:$0xff]  }
  0x27   :  { %4969 = vmatpush1.bf16.msra.mxu0 %v8518_v41  ;;  %5502 = vmatpush1.bf16.msra.mxu1 %v8519_v44  ;;  %v8600_v41 = vld [vmem:[%s12924_s1 + $0x2e4] ss:$16 sps:$4 sm:$0xff]   ;;  %v8598_v44 = vld [vmem:[%s12924_s1 + $0x2e0] ss:$16 sps:$4 sm:$0xff]  }
  0x28   :  { %4970 = vmatprep.subr.bf16.mxu0 %v8520_v45  ;;  %5503 = vmatprep.subr.bf16.mxu1 %v8522_v46  ;;  %v8601_v45 = vld [vmem:[%s12924_s1 + $0x2e8] ss:$16 sps:$4 sm:$0xff]   ;;  %v8606_v46 = vld [vmem:[%s12924_s1 + $0x304] ss:$16 sps:$4 sm:$0xff]  }
  0x2b   :  { %4971 = vmatpush1.bf16.msra.mxu0 %v8524_v47  ;;  %5504 = vmatpush1.bf16.msra.mxu1 %v8525_v48  ;;  %v8609_v47 = vld [vmem:[%s12924_s1 + $0x30c] ss:$16 sps:$4 sm:$0xff]   ;;  %v8604_v48 = vld [vmem:[%s12924_s1 + $0x300] ss:$16 sps:$4 sm:$0xff]  }
  0x2c   :  { %4972 = vmatprep.subr.bf16.mxu0 %v8526_v50  ;;  %5505 = vmatprep.subr.bf16.mxu1 %v8528_v51  ;;  %v8607_v50 = vld [vmem:[%s12924_s1 + $0x308] ss:$16 sps:$4 sm:$0xff]   ;;  %v8612_v51 = vld [vmem:[%s12924_s1 + $0x324] ss:$16 sps:$4 sm:$0xff]  }
  0x2f   :  { %4973 = vmatpush1.bf16.msra.mxu0 %v8530_v53  ;;  %5506 = vmatpush1.bf16.msra.mxu1 %v8531_v55  ;;  %v8615_v53 = vld [vmem:[%s12924_s1 + $0x32c] ss:$16 sps:$4 sm:$0xff]   ;;  %v8613_v55 = vld [vmem:[%s12924_s1 + $0x328] ss:$16 sps:$4 sm:$0xff]  }
  0x30   :  { %4974 = vmatprep.subr.bf16.mxu0 %v8532_v56  ;;  %5507 = vmatprep.subr.bf16.mxu1 %v8534_v57  ;;  %v8618_v56 = vld [vmem:[%s12924_s1 + $0x344] ss:$16 sps:$4 sm:$0xff]   ;;  %v8621_v57 = vld [vmem:[%s12924_s1 + $0x34c] ss:$16 sps:$4 sm:$0xff]  }
  0x33   :  { %4975 = vmatpush1.bf16.msra.mxu0 %v8536_v59  ;;  %5508 = vmatpush1.bf16.msra.mxu1 %v8537_v61  ;;  %v8619_v59 = vld [vmem:[%s12924_s1 + $0x348] ss:$16 sps:$4 sm:$0xff]   ;;  %v8627_v61 = vld [vmem:[%s12924_s1 + $0x36c] ss:$16 sps:$4 sm:$0xff]  }
  0x34   :  { %4976 = vmatprep.subr.bf16.mxu0 %v8538_v62  ;;  %5509 = vmatprep.subr.bf16.mxu1 %v8540_v63  ;;  %v8622_v62 = vld [vmem:[%s12924_s1 + $0x360] ss:$16 sps:$4 sm:$0xff]   ;;  %v8625_v63 = vld [vmem:[%s12924_s1 + $0x368] ss:$16 sps:$4 sm:$0xff]  }
  0x37   :  { %4977 = vmatpush1.bf16.msra.mxu0 %v8542_v0  ;;  %5510 = vmatpush1.bf16.msra.mxu1 %v8543_v1  ;;  %v8630_v0 = vld [vmem:[%s12924_s1 + $0x384] ss:$16 sps:$4 sm:$0xff]   ;;  %v8633_v1 = vld [vmem:[%s12924_s1 + $0x38c] ss:$16 sps:$4 sm:$0xff]  }
  0x38   :  { %4978 = vmatprep.subr.bf16.mxu0 %v8544_v2  ;;  %5511 = vmatprep.subr.bf16.mxu1 %v8546_v3  ;;  %v8628_v2 = vld [vmem:[%s12924_s1 + $0x380] ss:$16 sps:$4 sm:$0xff]   ;;  %v8631_v3 = vld [vmem:[%s12924_s1 + $0x388] ss:$16 sps:$4 sm:$0xff]  }
  0x3b   :  { %4979 = vmatpush1.bf16.msra.mxu0 %v8548_v4  ;;  %5512 = vmatpush1.bf16.msra.mxu1 %v8549_v5  ;;  %v8636_v4 = vld [vmem:[%s12924_s1 + $0x3a4] ss:$16 sps:$4 sm:$0xff]   ;;  %v8639_v5 = vld [vmem:[%s12924_s1 + $0x3ac] ss:$16 sps:$4 sm:$0xff]  }
  0x3c   :  { %4980 = vmatprep.subr.bf16.mxu0 %v8550_v6  ;;  %5513 = vmatprep.subr.bf16.mxu1 %v8552_v7  ;;  %v8634_v6 = vld [vmem:[%s12924_s1 + $0x3a0] ss:$16 sps:$4 sm:$0xff]   ;;  %v8637_v7 = vld [vmem:[%s12924_s1 + $0x3a8] ss:$16 sps:$4 sm:$0xff]  }
  0x3f   :  { %4981 = vmatpush1.bf16.msra.mxu0 %v8554_v8  ;;  %5514 = vmatpush1.bf16.msra.mxu1 %v8555_v9  ;;  %v8642_v8 = vld [vmem:[%s12924_s1 + $0x3c4] ss:$16 sps:$4 sm:$0xff]   ;;  %v8645_v9 = vld [vmem:[%s12924_s1 + $0x3cc] ss:$16 sps:$4 sm:$0xff]  }
  0x40   :  { %4991 = vmatprep.subr.bf16.mxu0 %v8558_v10  ;;  %5524 = vmatprep.subr.bf16.mxu1 %v8561_v11  ;;  %v841_v10 = vcombine.high %v10054_v52, %v10054_v52  ;;  %v8640_v11 = vld [vmem:[%s12924_s1 + $0x3c0] ss:$16 sps:$4 sm:$0xff]   ;;  %v8651_v52 = vld [vmem:[%s12924_s1 + $0x3ec] ss:$16 sps:$4 sm:$0xff]  }
  0x42   :  { %4983 = vmatmul.mubr.bf16.vlgmr.msra.gmra.mrb[0].mxu0 %v10123_v13  ;;  %5516 = vmatmul.mubr.bf16.vlgmr.msra.gmra.mrb[0].mxu1 %v10123_v13 }
  0x43   :  { %4992 = vmatpush1.bf16.msra.mxu0 %v8556_v12  ;;  %5525 = vmatpush1.bf16.msra.mxu1 %v8559_v14  ;;  %v8643_v12 = vld [vmem:[%s12924_s1 + $0x3c8] ss:$16 sps:$4 sm:$0xff]   ;;  %v8648_v14 = vld [vmem:[%s12924_s1 + $0x3e4] ss:$16 sps:$4 sm:$0xff]  }
  0x44   :  { %4993 = vmatprep.subr.bf16.mxu0 %v8564_v15  ;;  %5526 = vmatprep.subr.bf16.mxu1 %v8567_v16  ;;  %v10307_v15 = vrot.slane %v841_v10, %v10043_v49  ;;  %v8646_v16 = vld [vmem:[%s12924_s1 + $0x3e0] ss:$16 sps:$4 sm:$0xff]  }
  0x45   :  { %5023 = vmatprep.mubr.bf16.mxu0 %v888_v17  ;;  %5556 = vmatprep.mubr.bf16.mxu1 %v888_v17  ;;  %v8649_v17 = vld [vmem:[%s12924_s1 + $0x3e8] ss:$16 sps:$4 sm:$0xff]   ;;  %v8724_v10 = vld [vmem:[%s12924_s1 + $0x580] ss:$16 sps:$4 sm:$0xff]  }
  0x47   :  { %4994 = vmatpush1.bf16.msra.mxu0 %v8562_v18  ;;  %5527 = vmatpush1.bf16.msra.mxu1 %v8565_v19  ;;  %v8654_v18 = vld [vmem:[%s12924_s1 + $0x404] ss:$16 sps:$4 sm:$0xff]   ;;  %v8657_v19 = vld [vmem:[%s12924_s1 + $0x40c] ss:$16 sps:$4 sm:$0xff]  }
  0x48   :  { %4995 = vmatprep.subr.bf16.mxu0 %v8570_v20  ;;  %5528 = vmatprep.subr.bf16.mxu1 %v8573_v21  ;;  %v857_v20 = vcombine.high %v10307_v15, %v10307_v15  ;;  %v8652_v21 = vld [vmem:[%s12924_s1 + $0x400] ss:$16 sps:$4 sm:$0xff]  }
  0x4b   :  { %4996 = vmatpush1.bf16.msra.mxu0 %v8568_v22  ;;  %5529 = vmatpush1.bf16.msra.mxu1 %v8571_v23  ;;  %v886_v22 = vcombine.high %v10123_v13, %v10123_v13  ;;  %v8655_v23 = vld [vmem:[%s12924_s1 + $0x408] ss:$16 sps:$4 sm:$0xff]   ;;  %v8658_v13 = vld [vmem:[%s12924_s1 + $0x420] ss:$16 sps:$4 sm:$0xff]  }
  0x4c   :  { %4997 = vmatprep.subr.bf16.mxu0 %v8576_v24  ;;  %5530 = vmatprep.subr.bf16.mxu1 %v8579_v25  ;;  %v8660_v24 = vld [vmem:[%s12924_s1 + $0x424] ss:$16 sps:$4 sm:$0xff]   ;;  %v8663_v25 = vld [vmem:[%s12924_s1 + $0x42c] ss:$16 sps:$4 sm:$0xff]  }
  0x4f   :  { %4998 = vmatpush1.bf16.msra.mxu0 %v8574_v26  ;;  %5531 = vmatpush1.bf16.msra.mxu1 %v8577_v27  ;;  %v10338_v26 = vrot.slane %v857_v20, %v10043_v49  ;;  %v8661_v27 = vld [vmem:[%s12924_s1 + $0x428] ss:$16 sps:$4 sm:$0xff]  }
  0x50   :  { %4999 = vmatprep.subr.bf16.mxu0 %v8582_v28  ;;  %5532 = vmatprep.subr.bf16.mxu1 %v8585_v29  ;;  %v8666_v28 = vld [vmem:[%s12924_s1 + $0x444] ss:$16 sps:$4 sm:$0xff]   ;;  %v8669_v29 = vld [vmem:[%s12924_s1 + $0x44c] ss:$16 sps:$4 sm:$0xff]   ;;  %v8739_v20 = vld [vmem:[%s12924_s1 + $0x5c8] ss:$16 sps:$4 sm:$0xff]  }
  0x53   :  { %5000 = vmatpush1.bf16.msra.mxu0 %v8580_v30  ;;  %5533 = vmatpush1.bf16.msra.mxu1 %v8583_v31  ;;  %v8664_v30 = vld [vmem:[%s12924_s1 + $0x440] ss:$16 sps:$4 sm:$0xff]   ;;  %v8667_v31 = vld [vmem:[%s12924_s1 + $0x448] ss:$16 sps:$4 sm:$0xff]  }
  0x54   :  { %5001 = vmatprep.subr.bf16.mxu0 %v8588_v32  ;;  %5534 = vmatprep.subr.bf16.mxu1 %v8591_v33  ;;  %v8672_v32 = vld [vmem:[%s12924_s1 + $0x464] ss:$16 sps:$4 sm:$0xff]   ;;  %v8675_v33 = vld [vmem:[%s12924_s1 + $0x46c] ss:$16 sps:$4 sm:$0xff]  }
  0x57   :  { %5002 = vmatpush1.bf16.msra.mxu0 %v8586_v34  ;;  %5535 = vmatpush1.bf16.msra.mxu1 %v8589_v35  ;;  %v8670_v34 = vld [vmem:[%s12924_s1 + $0x460] ss:$16 sps:$4 sm:$0xff]   ;;  %v8673_v35 = vld [vmem:[%s12924_s1 + $0x468] ss:$16 sps:$4 sm:$0xff]  }
  0x58   :  { %5003 = vmatprep.subr.bf16.mxu0 %v8594_v37  ;;  %5536 = vmatprep.subr.bf16.mxu1 %v8597_v38  ;;  %v8678_v37 = vld [vmem:[%s12924_s1 + $0x484] ss:$16 sps:$4 sm:$0xff]   ;;  %v8681_v38 = vld [vmem:[%s12924_s1 + $0x48c] ss:$16 sps:$4 sm:$0xff]  }
  0x5b   :  { %5004 = vmatpush1.bf16.msra.mxu0 %v8592_v39  ;;  %5537 = vmatpush1.bf16.msra.mxu1 %v8595_v40  ;;  %v8676_v39 = vld [vmem:[%s12924_s1 + $0x480] ss:$16 sps:$4 sm:$0xff]   ;;  %v8679_v40 = vld [vmem:[%s12924_s1 + $0x488] ss:$16 sps:$4 sm:$0xff]  }
  0x5c   :  { %5005 = vmatprep.subr.bf16.mxu0 %v8600_v41  ;;  %5538 = vmatprep.subr.bf16.mxu1 %v8603_v43  ;;  %v8684_v41 = vld [vmem:[%s12924_s1 + $0x4a4] ss:$16 sps:$4 sm:$0xff]   ;;  %v8687_v43 = vld [vmem:[%s12924_s1 + $0x4ac] ss:$16 sps:$4 sm:$0xff]  }
  0x5f   :  { %5006 = vmatpush1.bf16.msra.mxu0 %v8598_v44  ;;  %5539 = vmatpush1.bf16.msra.mxu1 %v8601_v45  ;;  %v8682_v44 = vld [vmem:[%s12924_s1 + $0x4a0] ss:$16 sps:$4 sm:$0xff]   ;;  %v8685_v45 = vld [vmem:[%s12924_s1 + $0x4a8] ss:$16 sps:$4 sm:$0xff]  }
  0x60   :  { %5007 = vmatprep.subr.bf16.mxu0 %v8606_v46  ;;  %5540 = vmatprep.subr.bf16.mxu1 %v8609_v47  ;;  %v8690_v46 = vld [vmem:[%s12924_s1 + $0x4c4] ss:$16 sps:$4 sm:$0xff]   ;;  %v8693_v47 = vld [vmem:[%s12924_s1 + $0x4cc] ss:$16 sps:$4 sm:$0xff]  }
  0x63   :  { %5008 = vmatpush1.bf16.msra.mxu0 %v8604_v48  ;;  %5541 = vmatpush1.bf16.msra.mxu1 %v8607_v50  ;;  %v8688_v48 = vld [vmem:[%s12924_s1 + $0x4c0] ss:$16 sps:$4 sm:$0xff]   ;;  %v8691_v50 = vld [vmem:[%s12924_s1 + $0x4c8] ss:$16 sps:$4 sm:$0xff]  }
  0x64   :  { %5009 = vmatprep.subr.bf16.mxu0 %v8612_v51  ;;  %5542 = vmatprep.subr.bf16.mxu1 %v8615_v53  ;;  %v8696_v51 = vld [vmem:[%s12924_s1 + $0x4e4] ss:$16 sps:$4 sm:$0xff]   ;;  %v8699_v53 = vld [vmem:[%s12924_s1 + $0x4ec] ss:$16 sps:$4 sm:$0xff]  }
  0x67   :  { %5010 = vmatpush1.bf16.msra.mxu0 %v8610_v54  ;;  %5543 = vmatpush1.bf16.msra.mxu1 %v8613_v55  ;;  %v8694_v54 = vld [vmem:[%s12924_s1 + $0x4e0] ss:$16 sps:$4 sm:$0xff]   ;;  %v8697_v55 = vld [vmem:[%s12924_s1 + $0x4e8] ss:$16 sps:$4 sm:$0xff]  }
  0x68   :  { %5011 = vmatprep.subr.bf16.mxu0 %v8618_v56  ;;  %5544 = vmatprep.subr.bf16.mxu1 %v8621_v57  ;;  %v8702_v56 = vld [vmem:[%s12924_s1 + $0x504] ss:$16 sps:$4 sm:$0xff]   ;;  %v8705_v57 = vld [vmem:[%s12924_s1 + $0x50c] ss:$16 sps:$4 sm:$0xff]  }
  0x6b   :  { %5012 = vmatpush1.bf16.msra.mxu0 %v8616_v58  ;;  %5545 = vmatpush1.bf16.msra.mxu1 %v8619_v59  ;;  %v8700_v58 = vld [vmem:[%s12924_s1 + $0x500] ss:$16 sps:$4 sm:$0xff]   ;;  %v8703_v59 = vld [vmem:[%s12924_s1 + $0x508] ss:$16 sps:$4 sm:$0xff]  }
  0x6c   :  { %5013 = vmatprep.subr.bf16.mxu0 %v8624_v60  ;;  %5546 = vmatprep.subr.bf16.mxu1 %v8627_v61  ;;  %v8708_v60 = vld [vmem:[%s12924_s1 + $0x524] ss:$16 sps:$4 sm:$0xff]   ;;  %v8711_v61 = vld [vmem:[%s12924_s1 + $0x52c] ss:$16 sps:$4 sm:$0xff]  }
  0x6f   :  { %5014 = vmatpush1.bf16.msra.mxu0 %v8622_v62  ;;  %5547 = vmatpush1.bf16.msra.mxu1 %v8625_v63  ;;  %v8706_v62 = vld [vmem:[%s12924_s1 + $0x520] ss:$16 sps:$4 sm:$0xff]   ;;  %v8709_v63 = vld [vmem:[%s12924_s1 + $0x528] ss:$16 sps:$4 sm:$0xff]  }
  0x70   :  { %5015 = vmatprep.subr.bf16.mxu0 %v8630_v0  ;;  %5548 = vmatprep.subr.bf16.mxu1 %v8633_v1  ;;  %v8714_v0 = vld [vmem:[%s12924_s1 + $0x544] ss:$16 sps:$4 sm:$0xff]   ;;  %v8717_v1 = vld [vmem:[%s12924_s1 + $0x54c] ss:$16 sps:$4 sm:$0xff]  }
  0x73   :  { %5016 = vmatpush1.bf16.msra.mxu0 %v8628_v2  ;;  %5549 = vmatpush1.bf16.msra.mxu1 %v8631_v3  ;;  %v8712_v2 = vld [vmem:[%s12924_s1 + $0x540] ss:$16 sps:$4 sm:$0xff]   ;;  %v8715_v3 = vld [vmem:[%s12924_s1 + $0x548] ss:$16 sps:$4 sm:$0xff]  }
  0x74   :  { %5017 = vmatprep.subr.bf16.mxu0 %v8636_v4  ;;  %5550 = vmatprep.subr.bf16.mxu1 %v8639_v5  ;;  %v8720_v4 = vld [vmem:[%s12924_s1 + $0x564] ss:$16 sps:$4 sm:$0xff]   ;;  %v8723_v5 = vld [vmem:[%s12924_s1 + $0x56c] ss:$16 sps:$4 sm:$0xff]  }
  0x77   :  { %5018 = vmatpush1.bf16.msra.mxu0 %v8634_v6  ;;  %5551 = vmatpush1.bf16.msra.mxu1 %v8637_v7  ;;  %v8718_v6 = vld [vmem:[%s12924_s1 + $0x560] ss:$16 sps:$4 sm:$0xff]   ;;  %v8721_v7 = vld [vmem:[%s12924_s1 + $0x568] ss:$16 sps:$4 sm:$0xff]  }
  0x78   :  { %5019 = vmatprep.subr.bf16.mxu0 %v8642_v8  ;;  %5552 = vmatprep.subr.bf16.mxu1 %v8645_v9  ;;  %v8726_v8 = vld [vmem:[%s12924_s1 + $0x584] ss:$16 sps:$4 sm:$0xff]   ;;  %v8729_v9 = vld [vmem:[%s12924_s1 + $0x58c] ss:$16 sps:$4 sm:$0xff]  }
  0x7b   :  { %5020 = vmatpush1.bf16.msra.mxu0 %v8640_v11  ;;  %5553 = vmatpush1.bf16.msra.mxu1 %v8643_v12  ;;  %v8727_v11 = vld [vmem:[%s12924_s1 + $0x588] ss:$16 sps:$4 sm:$0xff]   ;;  %v8732_v12 = vld [vmem:[%s12924_s1 + $0x5a4] ss:$16 sps:$4 sm:$0xff]  }
  0x7c   :  { %5021 = vmatprep.subr.bf16.mxu0 %v8648_v14  ;;  %5554 = vmatprep.subr.bf16.mxu1 %v8651_v52  ;;  %v8735_v14 = vld [vmem:[%s12924_s1 + $0x5ac] ss:$16 sps:$4 sm:$0xff]   ;;  %v8730_v52 = vld [vmem:[%s12924_s1 + $0x5a0] ss:$16 sps:$4 sm:$0xff]  }
  0x7f   :  { %5022 = vmatpush1.bf16.msra.mxu0 %v8646_v16  ;;  %5555 = vmatpush1.bf16.msra.mxu1 %v8649_v17  ;;  %v8733_v16 = vld [vmem:[%s12924_s1 + $0x5a8] ss:$16 sps:$4 sm:$0xff]   ;;  %v8738_v17 = vld [vmem:[%s12924_s1 + $0x5c4] ss:$16 sps:$4 sm:$0xff]  }
  0x80   :  { %5032 = vmatprep.subr.bf16.mxu0 %v8654_v18  ;;  %5565 = vmatprep.subr.bf16.mxu1 %v8657_v19  ;;  %v8741_v18 = vld [vmem:[%s12924_s1 + $0x5cc] ss:$16 sps:$4 sm:$0xff]   ;;  %v8736_v19 = vld [vmem:[%s12924_s1 + $0x5c0] ss:$16 sps:$4 sm:$0xff]  }
  0x82   :  { %5024 = vmatmul.mubr.bf16.vlgmr.msra.gmra.mrb[0].mxu0 %v886_v22  ;;  %5557 = vmatmul.mubr.bf16.vlgmr.msra.gmra.mrb[0].mxu1 %v886_v22  ;;  %v8747_v22 = vld [vmem:[%s12924_s1 + $0x5ec] ss:$16 sps:$4 sm:$0xff]  }
  0x83   :  { %5033 = vmatpush1.bf16.msra.mxu0 %v8652_v21  ;;  %5566 = vmatpush1.bf16.msra.mxu1 %v8655_v23  ;;  %v8744_v21 = vld [vmem:[%s12924_s1 + $0x5e4] ss:$16 sps:$4 sm:$0xff]   ;;  %v8742_v23 = vld [vmem:[%s12924_s1 + $0x5e0] ss:$16 sps:$4 sm:$0xff]  }
  0x84   :  { %5034 = vmatprep.subr.bf16.mxu0 %v8660_v24  ;;  %5567 = vmatprep.subr.bf16.mxu1 %v8663_v25  ;;  %v8745_v24 = vld [vmem:[%s12924_s1 + $0x5e8] ss:$16 sps:$4 sm:$0xff]   ;;  %v8751_v25 = vld [vmem:[%s12924_s1 + $0x604] ss:$16 sps:$4 sm:$0xff]  }
  0x85   :  { %5064 = vmatprep.mubr.bf16.mxu0 %v10338_v26  ;;  %5597 = vmatprep.mubr.bf16.mxu1 %v10338_v26 }
  0x87   :  { %5035 = vmatpush1.bf16.msra.mxu0 %v8658_v13  ;;  %5568 = vmatpush1.bf16.msra.mxu1 %v8661_v27  ;;  %v8754_v13 = vld [vmem:[%s12924_s1 + $0x60c] ss:$16 sps:$4 sm:$0xff]   ;;  %v8749_v27 = vld [vmem:[%s12924_s1 + $0x600] ss:$16 sps:$4 sm:$0xff]  }
  0x88   :  { %5036 = vmatprep.subr.bf16.mxu0 %v8666_v28  ;;  %5569 = vmatprep.subr.bf16.mxu1 %v8669_v29  ;;  %v10527_v28 = vrot.slane %v10307_v15, %v10043_v49  ;;  %v8752_v29 = vld [vmem:[%s12924_s1 + $0x608] ss:$16 sps:$4 sm:$0xff]   ;;  %v889_v15 = vcombine.high %v10338_v26, %v10338_v26  ;;  %v8763_v26 = vld [vmem:[%s12924_s1 + $0x644] ss:$16 sps:$4 sm:$0xff]  }
  0x8b   :  { %5037 = vmatpush1.bf16.msra.mxu0 %v8664_v30  ;;  %5570 = vmatpush1.bf16.msra.mxu1 %v8667_v31  ;;  %v8757_v30 = vld [vmem:[%s12924_s1 + $0x624] ss:$16 sps:$4 sm:$0xff]   ;;  %v8760_v31 = vld [vmem:[%s12924_s1 + $0x62c] ss:$16 sps:$4 sm:$0xff]  }
  0x8c   :  { %5038 = vmatprep.subr.bf16.mxu0 %v8672_v32  ;;  %5571 = vmatprep.subr.bf16.mxu1 %v8675_v33  ;;  %v8755_v32 = vld [vmem:[%s12924_s1 + $0x620] ss:$16 sps:$4 sm:$0xff]   ;;  %v8758_v33 = vld [vmem:[%s12924_s1 + $0x628] ss:$16 sps:$4 sm:$0xff]  }
  0x8f   :  { %5039 = vmatpush1.bf16.msra.mxu0 %v8670_v34  ;;  %5572 = vmatpush1.bf16.msra.mxu1 %v8673_v35  ;;  %v8766_v34 = vld [vmem:[%s12924_s1 + $0x64c] ss:$16 sps:$4 sm:$0xff]   ;;  %v8761_v35 = vld [vmem:[%s12924_s1 + $0x640] ss:$16 sps:$4 sm:$0xff]  }
  0x90   :  { %5040 = vmatprep.subr.bf16.mxu0 %v8678_v37  ;;  %5573 = vmatprep.subr.bf16.mxu1 %v8681_v38  ;;  %v8764_v37 = vld [vmem:[%s12924_s1 + $0x648] ss:$16 sps:$4 sm:$0xff]   ;;  %v8769_v38 = vld [vmem:[%s12924_s1 + $0x664] ss:$16 sps:$4 sm:$0xff]  }
  0x93   :  { %5041 = vmatpush1.bf16.msra.mxu0 %v8676_v39  ;;  %5574 = vmatpush1.bf16.msra.mxu1 %v8679_v40  ;;  %v8772_v39 = vld [vmem:[%s12924_s1 + $0x66c] ss:$16 sps:$4 sm:$0xff]   ;;  %v8767_v40 = vld [vmem:[%s12924_s1 + $0x660] ss:$16 sps:$4 sm:$0xff]  }
  0x94   :  { %5042 = vmatprep.subr.bf16.mxu0 %v8684_v41  ;;  %5575 = vmatprep.subr.bf16.mxu1 %v8687_v43  ;;  %v8770_v41 = vld [vmem:[%s12924_s1 + $0x668] ss:$16 sps:$4 sm:$0xff]   ;;  %v8775_v43 = vld [vmem:[%s12924_s1 + $0x684] ss:$16 sps:$4 sm:$0xff]  }
  0x97   :  { %5043 = vmatpush1.bf16.msra.mxu0 %v8682_v44  ;;  %5576 = vmatpush1.bf16.msra.mxu1 %v8685_v45  ;;  %v8778_v44 = vld [vmem:[%s12924_s1 + $0x68c] ss:$16 sps:$4 sm:$0xff]   ;;  %v8773_v45 = vld [vmem:[%s12924_s1 + $0x680] ss:$16 sps:$4 sm:$0xff]  }
  0x98   :  { %5044 = vmatprep.subr.bf16.mxu0 %v8690_v46  ;;  %5577 = vmatprep.subr.bf16.mxu1 %v8693_v47  ;;  %v8776_v46 = vld [vmem:[%s12924_s1 + $0x688] ss:$16 sps:$4 sm:$0xff]   ;;  %v8781_v47 = vld [vmem:[%s12924_s1 + $0x6a4] ss:$16 sps:$4 sm:$0xff]  }
  0x9b   :  { %5045 = vmatpush1.bf16.msra.mxu0 %v8688_v48  ;;  %5578 = vmatpush1.bf16.msra.mxu1 %v8691_v50  ;;  %v8784_v48 = vld [vmem:[%s12924_s1 + $0x6ac] ss:$16 sps:$4 sm:$0xff]   ;;  %v8779_v50 = vld [vmem:[%s12924_s1 + $0x6a0] ss:$16 sps:$4 sm:$0xff]  }
  0x9c   :  { %5046 = vmatprep.subr.bf16.mxu0 %v8696_v51  ;;  %5579 = vmatprep.subr.bf16.mxu1 %v8699_v53  ;;  %v8782_v51 = vld [vmem:[%s12924_s1 + $0x6a8] ss:$16 sps:$4 sm:$0xff]   ;;  %v8787_v53 = vld [vmem:[%s12924_s1 + $0x6c4] ss:$16 sps:$4 sm:$0xff]  }
  0x9f   :  { %5047 = vmatpush1.bf16.msra.mxu0 %v8694_v54  ;;  %5580 = vmatpush1.bf16.msra.mxu1 %v8697_v55  ;;  %v8790_v54 = vld [vmem:[%s12924_s1 + $0x6cc] ss:$16 sps:$4 sm:$0xff]   ;;  %v8785_v55 = vld [vmem:[%s12924_s1 + $0x6c0] ss:$16 sps:$4 sm:$0xff]  }
  0xa0   :  { %5048 = vmatprep.subr.bf16.mxu0 %v8702_v56  ;;  %5581 = vmatprep.subr.bf16.mxu1 %v8705_v57  ;;  %v8788_v56 = vld [vmem:[%s12924_s1 + $0x6c8] ss:$16 sps:$4 sm:$0xff]   ;;  %v8793_v57 = vld [vmem:[%s12924_s1 + $0x6e4] ss:$16 sps:$4 sm:$0xff]  }
  0xa3   :  { %5049 = vmatpush1.bf16.msra.mxu0 %v8700_v58  ;;  %5582 = vmatpush1.bf16.msra.mxu1 %v8703_v59  ;;  %v8796_v58 = vld [vmem:[%s12924_s1 + $0x6ec] ss:$16 sps:$4 sm:$0xff]   ;;  %v8791_v59 = vld [vmem:[%s12924_s1 + $0x6e0] ss:$16 sps:$4 sm:$0xff]  }
  0xa4   :  { %5050 = vmatprep.subr.bf16.mxu0 %v8708_v60  ;;  %5583 = vmatprep.subr.bf16.mxu1 %v8711_v61  ;;  %v8794_v60 = vld [vmem:[%s12924_s1 + $0x6e8] ss:$16 sps:$4 sm:$0xff]   ;;  %v8799_v61 = vld [vmem:[%s12924_s1 + $0x704] ss:$16 sps:$4 sm:$0xff]  }
  0xa7   :  { %5051 = vmatpush1.bf16.msra.mxu0 %v8706_v62  ;;  %5584 = vmatpush1.bf16.msra.mxu1 %v8709_v63  ;;  %v8802_v62 = vld [vmem:[%s12924_s1 + $0x70c] ss:$16 sps:$4 sm:$0xff]   ;;  %v8797_v63 = vld [vmem:[%s12924_s1 + $0x700] ss:$16 sps:$4 sm:$0xff]  }
  0xa8   :  { %5052 = vmatprep.subr.bf16.mxu0 %v8714_v0  ;;  %5585 = vmatprep.subr.bf16.mxu1 %v8717_v1  ;;  %v8800_v0 = vld [vmem:[%s12924_s1 + $0x708] ss:$16 sps:$4 sm:$0xff]   ;;  %v8805_v1 = vld [vmem:[%s12924_s1 + $0x724] ss:$16 sps:$4 sm:$0xff]  }
  0xab   :  { %5053 = vmatpush1.bf16.msra.mxu0 %v8712_v2  ;;  %5586 = vmatpush1.bf16.msra.mxu1 %v8715_v3  ;;  %v8808_v2 = vld [vmem:[%s12924_s1 + $0x72c] ss:$16 sps:$4 sm:$0xff]   ;;  %v8803_v3 = vld [vmem:[%s12924_s1 + $0x720] ss:$16 sps:$4 sm:$0xff]  }
  0xac   :  { %5054 = vmatprep.subr.bf16.mxu0 %v8720_v4  ;;  %5587 = vmatprep.subr.bf16.mxu1 %v8723_v5  ;;  %v8806_v4 = vld [vmem:[%s12924_s1 + $0x728] ss:$16 sps:$4 sm:$0xff]   ;;  %v8811_v5 = vld [vmem:[%s12924_s1 + $0x744] ss:$16 sps:$4 sm:$0xff]  }
  0xaf   :  { %5055 = vmatpush1.bf16.msra.mxu0 %v8718_v6  ;;  %5588 = vmatpush1.bf16.msra.mxu1 %v8721_v7  ;;  %v8814_v6 = vld [vmem:[%s12924_s1 + $0x74c] ss:$16 sps:$4 sm:$0xff]   ;;  %v8809_v7 = vld [vmem:[%s12924_s1 + $0x740] ss:$16 sps:$4 sm:$0xff]  }
  0xb0   :  { %5056 = vmatprep.subr.bf16.mxu0 %v8726_v8  ;;  %5589 = vmatprep.subr.bf16.mxu1 %v8729_v9  ;;  %v8812_v8 = vld [vmem:[%s12924_s1 + $0x748] ss:$16 sps:$4 sm:$0xff]   ;;  %v8817_v9 = vld [vmem:[%s12924_s1 + $0x764] ss:$16 sps:$4 sm:$0xff]  }
  0xb3   :  { %5057 = vmatpush1.bf16.msra.mxu0 %v8724_v10  ;;  %5590 = vmatpush1.bf16.msra.mxu1 %v8727_v11  ;;  %v8820_v10 = vld [vmem:[%s12924_s1 + $0x76c] ss:$16 sps:$4 sm:$0xff]   ;;  %v8815_v11 = vld [vmem:[%s12924_s1 + $0x760] ss:$16 sps:$4 sm:$0xff]  }
  0xb4   :  { %5058 = vmatprep.subr.bf16.mxu0 %v8732_v12  ;;  %5591 = vmatprep.subr.bf16.mxu1 %v8735_v14  ;;  %v8818_v12 = vld [vmem:[%s12924_s1 + $0x768] ss:$16 sps:$4 sm:$0xff]   ;;  %v8823_v14 = vld [vmem:[%s12924_s1 + $0x784] ss:$16 sps:$4 sm:$0xff]  }
  0xb7   :  { %5059 = vmatpush1.bf16.msra.mxu0 %v8730_v52  ;;  %5592 = vmatpush1.bf16.msra.mxu1 %v8733_v16  ;;  %v8826_v52 = vld [vmem:[%s12924_s1 + $0x78c] ss:$16 sps:$4 sm:$0xff]   ;;  %v8821_v16 = vld [vmem:[%s12924_s1 + $0x780] ss:$16 sps:$4 sm:$0xff]  }
  0xb8   :  { %5060 = vmatprep.subr.bf16.mxu0 %v8738_v17  ;;  %5593 = vmatprep.subr.bf16.mxu1 %v8741_v18  ;;  %v8824_v17 = vld [vmem:[%s12924_s1 + $0x788] ss:$16 sps:$4 sm:$0xff]   ;;  %v8829_v18 = vld [vmem:[%s12924_s1 + $0x7a4] ss:$16 sps:$4 sm:$0xff]  }
  0xbb   :  { %5061 = vmatpush1.bf16.msra.mxu0 %v8736_v19  ;;  %5594 = vmatpush1.bf16.msra.mxu1 %v8739_v20  ;;  %v8832_v19 = vld [vmem:[%s12924_s1 + $0x7ac] ss:$16 sps:$4 sm:$0xff]   ;;  %v8827_v20 = vld [vmem:[%s12924_s1 + $0x7a0] ss:$16 sps:$4 sm:$0xff]  }
  0xbc   :  { %5062 = vmatprep.subr.bf16.mxu0 %v8744_v21  ;;  %5595 = vmatprep.subr.bf16.mxu1 %v8747_v22  ;;  %v8830_v21 = vld [vmem:[%s12924_s1 + $0x7a8] ss:$16 sps:$4 sm:$0xff]   ;;  %v8835_v22 = vld [vmem:[%s12924_s1 + $0x7c4] ss:$16 sps:$4 sm:$0xff]  }
  0xbf   :  { %5063 = vmatpush1.bf16.msra.mxu0 %v8742_v23  ;;  %5596 = vmatpush1.bf16.msra.mxu1 %v8745_v24  ;;  %v8838_v23 = vld [vmem:[%s12924_s1 + $0x7cc] ss:$16 sps:$4 sm:$0xff]  }
  0xc0   :  { %5073 = vmatprep.subr.bf16.mxu0 %v8751_v25  ;;  %5606 = vmatprep.subr.bf16.mxu1 %v8754_v13  ;;  %v10701_v24 = vld.sshfl [vmem:[%s12925_s0 + $0x8] sm:$0xff pattern:$0x75316420]  ;;  %v8833_v25 = vld [vmem:[%s12924_s1 + $0x7c0] ss:$16 sps:$4 sm:$0xff]  }
  0xc1   :  { %v8836_v13 = vld [vmem:[%s12924_s1 + $0x7c8] ss:$16 sps:$4 sm:$0xff]  }
  0xc2   :  { %5065 = vmatmul.mubr.bf16.vlgmr.msra.gmra.mrb[0].mxu0 %v10527_v28  ;;  %5598 = vmatmul.mubr.bf16.vlgmr.msra.gmra.mrb[0].mxu1 %v10527_v28 }
  0xc3   :  { %5074 = vmatpush1.bf16.msra.mxu0 %v8749_v27  ;;  %5607 = vmatpush1.bf16.msra.mxu1 %v8752_v29  ;;  %v8841_v27 = vld [vmem:[%s12924_s1 + $0x7e4] ss:$16 sps:$4 sm:$0xff]   ;;  %v8844_v29 = vld [vmem:[%s12924_s1 + $0x7ec] ss:$16 sps:$4 sm:$0xff]  }
  0xc4   :  { %5075 = vmatprep.subr.bf16.mxu0 %v8757_v30  ;;  %5608 = vmatprep.subr.bf16.mxu1 %v8760_v31  ;;  %v8839_v30 = vld [vmem:[%s12924_s1 + $0x7e0] ss:$16 sps:$4 sm:$0xff]   ;;  %v8842_v31 = vld [vmem:[%s12924_s1 + $0x7e8] ss:$16 sps:$4 sm:$0xff]  }
  0xc5   :  { %5105 = vmatprep.mubr.bf16.mxu0 %v889_v15  ;;  %5638 = vmatprep.mubr.bf16.mxu1 %v889_v15  ;;  %v8847_v15 = vld [vmem:[%s12924_s1 + $0x804] ss:$16 sps:$4 sm:$0xff]  }
  0xc7   :  { %5076 = vmatpush1.bf16.msra.mxu0 %v8755_v32  ;;  %5609 = vmatpush1.bf16.msra.mxu1 %v8758_v33  ;;  %v8850_v32 = vld [vmem:[%s12924_s1 + $0x80c] ss:$16 sps:$4 sm:$0xff]   ;;  %v905_v33 = vcombine.high %v10701_v24, %v10701_v24 }
  0xc8   :  { %5077 = vmatprep.subr.bf16.mxu0 %v8763_v26  ;;  %5610 = vmatprep.subr.bf16.mxu1 %v8766_v34  ;;  %v887_v26 = vcombine.high %v10527_v28, %v10527_v28  ;;  %v8845_v34 = vld [vmem:[%s12924_s1 + $0x800] ss:$16 sps:$4 sm:$0xff]   ;;  %v8856_v28 = vld [vmem:[%s12924_s1 + $0x82c] ss:$16 sps:$4 sm:$0xff]  }
  0xcb   :  { %5078 = vmatpush1.bf16.msra.mxu0 %v8761_v35  ;;  %5611 = vmatpush1.bf16.msra.mxu1 %v8764_v37  ;;  %v8848_v35 = vld [vmem:[%s12924_s1 + $0x808] ss:$16 sps:$4 sm:$0xff]   ;;  %v8853_v37 = vld [vmem:[%s12924_s1 + $0x824] ss:$16 sps:$4 sm:$0xff]  }
  0xcc   :  { %5079 = vmatprep.subr.bf16.mxu0 %v8769_v38  ;;  %5612 = vmatprep.subr.bf16.mxu1 %v8772_v39  ;;  %v10744_v38 = vrot.slane %v905_v33, %v10043_v49  ;;  %v8851_v39 = vld [vmem:[%s12924_s1 + $0x820] ss:$16 sps:$4 sm:$0xff]   ;;  %v8932_v33 = vld [vmem:[%s12924_s1 + $0x9c8] ss:$16 sps:$4 sm:$0xff]  }
  0xcf   :  { %5080 = vmatpush1.bf16.msra.mxu0 %v8767_v40  ;;  %5613 = vmatpush1.bf16.msra.mxu1 %v8770_v41  ;;  %v8854_v40 = vld [vmem:[%s12924_s1 + $0x828] ss:$16 sps:$4 sm:$0xff]   ;;  %v8859_v41 = vld [vmem:[%s12924_s1 + $0x844] ss:$16 sps:$4 sm:$0xff]  }
  0xd0   :  { %5081 = vmatprep.subr.bf16.mxu0 %v8775_v43  ;;  %5614 = vmatprep.subr.bf16.mxu1 %v8778_v44  ;;  %v8862_v43 = vld [vmem:[%s12924_s1 + $0x84c] ss:$16 sps:$4 sm:$0xff]   ;;  %v8857_v44 = vld [vmem:[%s12924_s1 + $0x840] ss:$16 sps:$4 sm:$0xff]  }
  0xd3   :  { %5082 = vmatpush1.bf16.msra.mxu0 %v8773_v45  ;;  %5615 = vmatpush1.bf16.msra.mxu1 %v8776_v46  ;;  %v8860_v45 = vld [vmem:[%s12924_s1 + $0x848] ss:$16 sps:$4 sm:$0xff]   ;;  %v8865_v46 = vld [vmem:[%s12924_s1 + $0x864] ss:$16 sps:$4 sm:$0xff]  }
  0xd4   :  { %5083 = vmatprep.subr.bf16.mxu0 %v8781_v47  ;;  %5616 = vmatprep.subr.bf16.mxu1 %v8784_v48  ;;  %v8868_v47 = vld [vmem:[%s12924_s1 + $0x86c] ss:$16 sps:$4 sm:$0xff]   ;;  %v8863_v48 = vld [vmem:[%s12924_s1 + $0x860] ss:$16 sps:$4 sm:$0xff]  }
  0xd7   :  { %5084 = vmatpush1.bf16.msra.mxu0 %v8779_v50  ;;  %5617 = vmatpush1.bf16.msra.mxu1 %v8782_v51  ;;  %v8866_v50 = vld [vmem:[%s12924_s1 + $0x868] ss:$16 sps:$4 sm:$0xff]   ;;  %v8871_v51 = vld [vmem:[%s12924_s1 + $0x884] ss:$16 sps:$4 sm:$0xff]  }
  0xd8   :  { %5085 = vmatprep.subr.bf16.mxu0 %v8787_v53  ;;  %5618 = vmatprep.subr.bf16.mxu1 %v8790_v54  ;;  %v8874_v53 = vld [vmem:[%s12924_s1 + $0x88c] ss:$16 sps:$4 sm:$0xff]   ;;  %v8869_v54 = vld [vmem:[%s12924_s1 + $0x880] ss:$16 sps:$4 sm:$0xff]  }
  0xdb   :  { %5086 = vmatpush1.bf16.msra.mxu0 %v8785_v55  ;;  %5619 = vmatpush1.bf16.msra.mxu1 %v8788_v56  ;;  %v8872_v55 = vld [vmem:[%s12924_s1 + $0x888] ss:$16 sps:$4 sm:$0xff]   ;;  %v8877_v56 = vld [vmem:[%s12924_s1 + $0x8a4] ss:$16 sps:$4 sm:$0xff]  }
  0xdc   :  { %5087 = vmatprep.subr.bf16.mxu0 %v8793_v57  ;;  %5620 = vmatprep.subr.bf16.mxu1 %v8796_v58  ;;  %v8880_v57 = vld [vmem:[%s12924_s1 + $0x8ac] ss:$16 sps:$4 sm:$0xff]   ;;  %v8875_v58 = vld [vmem:[%s12924_s1 + $0x8a0] ss:$16 sps:$4 sm:$0xff]  }
  0xdf   :  { %5088 = vmatpush1.bf16.msra.mxu0 %v8791_v59  ;;  %5621 = vmatpush1.bf16.msra.mxu1 %v8794_v60  ;;  %v8878_v59 = vld [vmem:[%s12924_s1 + $0x8a8] ss:$16 sps:$4 sm:$0xff]   ;;  %v8883_v60 = vld [vmem:[%s12924_s1 + $0x8c4] ss:$16 sps:$4 sm:$0xff]  }
  0xe0   :  { %5089 = vmatprep.subr.bf16.mxu0 %v8799_v61  ;;  %5622 = vmatprep.subr.bf16.mxu1 %v8802_v62  ;;  %v8886_v61 = vld [vmem:[%s12924_s1 + $0x8cc] ss:$16 sps:$4 sm:$0xff]   ;;  %v8881_v62 = vld [vmem:[%s12924_s1 + $0x8c0] ss:$16 sps:$4 sm:$0xff]  }
  0xe3   :  { %5090 = vmatpush1.bf16.msra.mxu0 %v8797_v63  ;;  %5623 = vmatpush1.bf16.msra.mxu1 %v8800_v0  ;;  %v8884_v63 = vld [vmem:[%s12924_s1 + $0x8c8] ss:$16 sps:$4 sm:$0xff]   ;;  %v8889_v0 = vld [vmem:[%s12924_s1 + $0x8e4] ss:$16 sps:$4 sm:$0xff]  }
  0xe4   :  { %5091 = vmatprep.subr.bf16.mxu0 %v8805_v1  ;;  %5624 = vmatprep.subr.bf16.mxu1 %v8808_v2  ;;  %v8892_v1 = vld [vmem:[%s12924_s1 + $0x8ec] ss:$16 sps:$4 sm:$0xff]   ;;  %v8887_v2 = vld [vmem:[%s12924_s1 + $0x8e0] ss:$16 sps:$4 sm:$0xff]  }
  0xe7   :  { %5092 = vmatpush1.bf16.msra.mxu0 %v8803_v3  ;;  %5625 = vmatpush1.bf16.msra.mxu1 %v8806_v4  ;;  %v8890_v3 = vld [vmem:[%s12924_s1 + $0x8e8] ss:$16 sps:$4 sm:$0xff]   ;;  %v8895_v4 = vld [vmem:[%s12924_s1 + $0x904] ss:$16 sps:$4 sm:$0xff]  }
  0xe8   :  { %5093 = vmatprep.subr.bf16.mxu0 %v8811_v5  ;;  %5626 = vmatprep.subr.bf16.mxu1 %v8814_v6  ;;  %v8898_v5 = vld [vmem:[%s12924_s1 + $0x90c] ss:$16 sps:$4 sm:$0xff]   ;;  %v8893_v6 = vld [vmem:[%s12924_s1 + $0x900] ss:$16 sps:$4 sm:$0xff]  }
  0xeb   :  { %5094 = vmatpush1.bf16.msra.mxu0 %v8809_v7  ;;  %5627 = vmatpush1.bf16.msra.mxu1 %v8812_v8  ;;  %v8896_v7 = vld [vmem:[%s12924_s1 + $0x908] ss:$16 sps:$4 sm:$0xff]   ;;  %v8901_v8 = vld [vmem:[%s12924_s1 + $0x924] ss:$16 sps:$4 sm:$0xff]  }
  0xec   :  { %5095 = vmatprep.subr.bf16.mxu0 %v8817_v9  ;;  %5628 = vmatprep.subr.bf16.mxu1 %v8820_v10  ;;  %v8904_v9 = vld [vmem:[%s12924_s1 + $0x92c] ss:$16 sps:$4 sm:$0xff]   ;;  %v8899_v10 = vld [vmem:[%s12924_s1 + $0x920] ss:$16 sps:$4 sm:$0xff]  }
  0xef   :  { %5096 = vmatpush1.bf16.msra.mxu0 %v8815_v11  ;;  %5629 = vmatpush1.bf16.msra.mxu1 %v8818_v12  ;;  %v8902_v11 = vld [vmem:[%s12924_s1 + $0x928] ss:$16 sps:$4 sm:$0xff]   ;;  %v8907_v12 = vld [vmem:[%s12924_s1 + $0x944] ss:$16 sps:$4 sm:$0xff]  }
  0xf0   :  { %5097 = vmatprep.subr.bf16.mxu0 %v8823_v14  ;;  %5630 = vmatprep.subr.bf16.mxu1 %v8826_v52  ;;  %v8910_v14 = vld [vmem:[%s12924_s1 + $0x94c] ss:$16 sps:$4 sm:$0xff]   ;;  %v8905_v52 = vld [vmem:[%s12924_s1 + $0x940] ss:$16 sps:$4 sm:$0xff]  }
  0xf3   :  { %5098 = vmatpush1.bf16.msra.mxu0 %v8821_v16  ;;  %5631 = vmatpush1.bf16.msra.mxu1 %v8824_v17  ;;  %v8908_v16 = vld [vmem:[%s12924_s1 + $0x948] ss:$16 sps:$4 sm:$0xff]   ;;  %v8913_v17 = vld [vmem:[%s12924_s1 + $0x964] ss:$16 sps:$4 sm:$0xff]  }
  0xf4   :  { %5099 = vmatprep.subr.bf16.mxu0 %v8829_v18  ;;  %5632 = vmatprep.subr.bf16.mxu1 %v8832_v19  ;;  %v8916_v18 = vld [vmem:[%s12924_s1 + $0x96c] ss:$16 sps:$4 sm:$0xff]   ;;  %v8911_v19 = vld [vmem:[%s12924_s1 + $0x960] ss:$16 sps:$4 sm:$0xff]  }
  0xf7   :  { %5100 = vmatpush1.bf16.msra.mxu0 %v8827_v20  ;;  %5633 = vmatpush1.bf16.msra.mxu1 %v8830_v21  ;;  %v8914_v20 = vld [vmem:[%s12924_s1 + $0x968] ss:$16 sps:$4 sm:$0xff]   ;;  %v8919_v21 = vld [vmem:[%s12924_s1 + $0x984] ss:$16 sps:$4 sm:$0xff]  }
  0xf8   :  { %5101 = vmatprep.subr.bf16.mxu0 %v8835_v22  ;;  %5634 = vmatprep.subr.bf16.mxu1 %v8838_v23  ;;  %v8922_v22 = vld [vmem:[%s12924_s1 + $0x98c] ss:$16 sps:$4 sm:$0xff]   ;;  %v8917_v23 = vld [vmem:[%s12924_s1 + $0x980] ss:$16 sps:$4 sm:$0xff]  }
  0xfb   :  { %5102 = vmatpush1.bf16.msra.mxu0 %v8833_v25  ;;  %5635 = vmatpush1.bf16.msra.mxu1 %v8836_v13  ;;  %v8920_v25 = vld [vmem:[%s12924_s1 + $0x988] ss:$16 sps:$4 sm:$0xff]   ;;  %v8925_v13 = vld [vmem:[%s12924_s1 + $0x9a4] ss:$16 sps:$4 sm:$0xff]  }
  0xfc   :  { %5103 = vmatprep.subr.bf16.mxu0 %v8841_v27  ;;  %5636 = vmatprep.subr.bf16.mxu1 %v8844_v29  ;;  %v8928_v27 = vld [vmem:[%s12924_s1 + $0x9ac] ss:$16 sps:$4 sm:$0xff]   ;;  %v8923_v29 = vld [vmem:[%s12924_s1 + $0x9a0] ss:$16 sps:$4 sm:$0xff]  }
  0xff   :  { %5104 = vmatpush1.bf16.msra.mxu0 %v8839_v30  ;;  %5637 = vmatpush1.bf16.msra.mxu1 %v8842_v31  ;;  %v8926_v30 = vld [vmem:[%s12924_s1 + $0x9a8] ss:$16 sps:$4 sm:$0xff]   ;;  %v8931_v31 = vld [vmem:[%s12924_s1 + $0x9c4] ss:$16 sps:$4 sm:$0xff]  }
 0x100   :  { %5114 = vmatprep.subr.bf16.mxu0 %v8847_v15  ;;  %5647 = vmatprep.subr.bf16.mxu1 %v8850_v32  ;;  %v8934_v15 = vld [vmem:[%s12924_s1 + $0x9cc] ss:$16 sps:$4 sm:$0xff]   ;;  %v8929_v32 = vld [vmem:[%s12924_s1 + $0x9c0] ss:$16 sps:$4 sm:$0xff]  }
 0x102   :  { %5106 = vmatmul.mubr.bf16.vlgmr.msra.gmra.mrb[0].mxu0 %v887_v26  ;;  %5639 = vmatmul.mubr.bf16.vlgmr.msra.gmra.mrb[0].mxu1 %v887_v26  ;;  %v8937_v26 = vld [vmem:[%s12924_s1 + $0x9e4] ss:$16 sps:$4 sm:$0xff]  }
 0x103   :  { %5115 = vmatpush1.bf16.msra.mxu0 %v8845_v34  ;;  %5648 = vmatpush1.bf16.msra.mxu1 %v8848_v35  ;;  %v8940_v34 = vld [vmem:[%s12924_s1 + $0x9ec] ss:$16 sps:$4 sm:$0xff]   ;;  %v8935_v35 = vld [vmem:[%s12924_s1 + $0x9e0] ss:$16 sps:$4 sm:$0xff]  }
 0x104   :  { %5116 = vmatprep.subr.bf16.mxu0 %v8853_v37  ;;  %5649 = vmatprep.subr.bf16.mxu1 %v8856_v28  ;;  %v8938_v37 = vld [vmem:[%s12924_s1 + $0x9e8] ss:$16 sps:$4 sm:$0xff]   ;;  %v8943_v28 = vld [vmem:[%s12924_s1 + $0xa04] ss:$16 sps:$4 sm:$0xff]  }
 0x105   :  { %5146 = vmatprep.mubr.bf16.mxu0 %v10744_v38  ;;  %5679 = vmatprep.mubr.bf16.mxu1 %v10744_v38 }
 0x107   :  { %5117 = vmatpush1.bf16.msra.mxu0 %v8851_v39  ;;  %5650 = vmatpush1.bf16.msra.mxu1 %v8854_v40  ;;  %v8946_v39 = vld [vmem:[%s12924_s1 + $0xa0c] ss:$16 sps:$4 sm:$0xff]   ;;  %v10930_v40 = vrot.slane %v10701_v24, %v10043_v49 }
 0x108   :  { %5118 = vmatprep.subr.bf16.mxu0 %v8859_v41  ;;  %5651 = vmatprep.subr.bf16.mxu1 %v8862_v43  ;;  %v8941_v41 = vld [vmem:[%s12924_s1 + $0xa00] ss:$16 sps:$4 sm:$0xff]   ;;  %v8944_v43 = vld [vmem:[%s12924_s1 + $0xa08] ss:$16 sps:$4 sm:$0xff]   ;;  %v8952_v24 = vld [vmem:[%s12924_s1 + $0xa2c] ss:$16 sps:$4 sm:$0xff]  }
 0x10b   :  { %5119 = vmatpush1.bf16.msra.mxu0 %v8857_v44  ;;  %5652 = vmatpush1.bf16.msra.mxu1 %v8860_v45  ;;  %v8949_v44 = vld [vmem:[%s12924_s1 + $0xa24] ss:$16 sps:$4 sm:$0xff]   ;;  %v937_v45 = vcombine.high %v10744_v38, %v10744_v38 }
 0x10c   :  { %5120 = vmatprep.subr.bf16.mxu0 %v8865_v46  ;;  %5653 = vmatprep.subr.bf16.mxu1 %v8868_v47  ;;  %v8947_v46 = vld [vmem:[%s12924_s1 + $0xa20] ss:$16 sps:$4 sm:$0xff]   ;;  %v8950_v47 = vld [vmem:[%s12924_s1 + $0xa28] ss:$16 sps:$4 sm:$0xff]   ;;  %v8955_v38 = vld [vmem:[%s12924_s1 + $0xa44] ss:$16 sps:$4 sm:$0xff]  }
 0x10f   :  { %5121 = vmatpush1.bf16.msra.mxu0 %v8863_v48  ;;  %5654 = vmatpush1.bf16.msra.mxu1 %v8866_v50  ;;  %v8958_v48 = vld [vmem:[%s12924_s1 + $0xa4c] ss:$16 sps:$4 sm:$0xff]   ;;  %v8953_v50 = vld [vmem:[%s12924_s1 + $0xa40] ss:$16 sps:$4 sm:$0xff]  }
 0x110   :  { %5122 = vmatprep.subr.bf16.mxu0 %v8871_v51  ;;  %5655 = vmatprep.subr.bf16.mxu1 %v8874_v53  ;;  %v8956_v51 = vld [vmem:[%s12924_s1 + $0xa48] ss:$16 sps:$4 sm:$0xff]   ;;  %v8961_v53 = vld [vmem:[%s12924_s1 + $0xa64] ss:$16 sps:$4 sm:$0xff]  }
 0x113   :  { %5123 = vmatpush1.bf16.msra.mxu0 %v8869_v54  ;;  %5656 = vmatpush1.bf16.msra.mxu1 %v8872_v55  ;;  %v8964_v54 = vld [vmem:[%s12924_s1 + $0xa6c] ss:$16 sps:$4 sm:$0xff]   ;;  %v8959_v55 = vld [vmem:[%s12924_s1 + $0xa60] ss:$16 sps:$4 sm:$0xff]  }
 0x114   :  { %5124 = vmatprep.subr.bf16.mxu0 %v8877_v56  ;;  %5657 = vmatprep.subr.bf16.mxu1 %v8880_v57  ;;  %v8962_v56 = vld [vmem:[%s12924_s1 + $0xa68] ss:$16 sps:$4 sm:$0xff]   ;;  %v8967_v57 = vld [vmem:[%s12924_s1 + $0xa84] ss:$16 sps:$4 sm:$0xff]  }
 0x117   :  { %5125 = vmatpush1.bf16.msra.mxu0 %v8875_v58  ;;  %5658 = vmatpush1.bf16.msra.mxu1 %v8878_v59  ;;  %v8970_v58 = vld [vmem:[%s12924_s1 + $0xa8c] ss:$16 sps:$4 sm:$0xff]   ;;  %v8965_v59 = vld [vmem:[%s12924_s1 + $0xa80] ss:$16 sps:$4 sm:$0xff]  }
 0x118   :  { %5126 = vmatprep.subr.bf16.mxu0 %v8883_v60  ;;  %5659 = vmatprep.subr.bf16.mxu1 %v8886_v61  ;;  %v8968_v60 = vld [vmem:[%s12924_s1 + $0xa88] ss:$16 sps:$4 sm:$0xff]   ;;  %v8973_v61 = vld [vmem:[%s12924_s1 + $0xaa4] ss:$16 sps:$4 sm:$0xff]  }
 0x11b   :  { %5127 = vmatpush1.bf16.msra.mxu0 %v8881_v62  ;;  %5660 = vmatpush1.bf16.msra.mxu1 %v8884_v63  ;;  %v8976_v62 = vld [vmem:[%s12924_s1 + $0xaac] ss:$16 sps:$4 sm:$0xff]   ;;  %v8971_v63 = vld [vmem:[%s12924_s1 + $0xaa0] ss:$16 sps:$4 sm:$0xff]  }
 0x11c   :  { %5128 = vmatprep.subr.bf16.mxu0 %v8889_v0  ;;  %5661 = vmatprep.subr.bf16.mxu1 %v8892_v1  ;;  %v8974_v0 = vld [vmem:[%s12924_s1 + $0xaa8] ss:$16 sps:$4 sm:$0xff]   ;;  %v8979_v1 = vld [vmem:[%s12924_s1 + $0xac4] ss:$16 sps:$4 sm:$0xff]  }
 0x11f   :  { %5129 = vmatpush1.bf16.msra.mxu0 %v8887_v2  ;;  %5662 = vmatpush1.bf16.msra.mxu1 %v8890_v3  ;;  %v8982_v2 = vld [vmem:[%s12924_s1 + $0xacc] ss:$16 sps:$4 sm:$0xff]   ;;  %v8977_v3 = vld [vmem:[%s12924_s1 + $0xac0] ss:$16 sps:$4 sm:$0xff]  }
 0x120   :  { %5130 = vmatprep.subr.bf16.mxu0 %v8895_v4  ;;  %5663 = vmatprep.subr.bf16.mxu1 %v8898_v5  ;;  %v8980_v4 = vld [vmem:[%s12924_s1 + $0xac8] ss:$16 sps:$4 sm:$0xff]   ;;  %v8985_v5 = vld [vmem:[%s12924_s1 + $0xae4] ss:$16 sps:$4 sm:$0xff]  }
 0x123   :  { %5131 = vmatpush1.bf16.msra.mxu0 %v8893_v6  ;;  %5664 = vmatpush1.bf16.msra.mxu1 %v8896_v7  ;;  %v8988_v6 = vld [vmem:[%s12924_s1 + $0xaec] ss:$16 sps:$4 sm:$0xff]   ;;  %v8983_v7 = vld [vmem:[%s12924_s1 + $0xae0] ss:$16 sps:$4 sm:$0xff]  }
 0x124   :  { %5132 = vmatprep.subr.bf16.mxu0 %v8901_v8  ;;  %5665 = vmatprep.subr.bf16.mxu1 %v8904_v9  ;;  %v8986_v8 = vld [vmem:[%s12924_s1 + $0xae8] ss:$16 sps:$4 sm:$0xff]   ;;  %v8991_v9 = vld [vmem:[%s12924_s1 + $0xb04] ss:$16 sps:$4 sm:$0xff]  }
 0x127   :  { %5133 = vmatpush1.bf16.msra.mxu0 %v8899_v10  ;;  %5666 = vmatpush1.bf16.msra.mxu1 %v8902_v11  ;;  %v8994_v10 = vld [vmem:[%s12924_s1 + $0xb0c] ss:$16 sps:$4 sm:$0xff]   ;;  %v8989_v11 = vld [vmem:[%s12924_s1 + $0xb00] ss:$16 sps:$4 sm:$0xff]  }
 0x128   :  { %5134 = vmatprep.subr.bf16.mxu0 %v8907_v12  ;;  %5667 = vmatprep.subr.bf16.mxu1 %v8910_v14  ;;  %v8992_v12 = vld [vmem:[%s12924_s1 + $0xb08] ss:$16 sps:$4 sm:$0xff]   ;;  %v8997_v14 = vld [vmem:[%s12924_s1 + $0xb24] ss:$16 sps:$4 sm:$0xff]  }
 0x12b   :  { %5135 = vmatpush1.bf16.msra.mxu0 %v8905_v52  ;;  %5668 = vmatpush1.bf16.msra.mxu1 %v8908_v16  ;;  %v9000_v52 = vld [vmem:[%s12924_s1 + $0xb2c] ss:$16 sps:$4 sm:$0xff]   ;;  %v8995_v16 = vld [vmem:[%s12924_s1 + $0xb20] ss:$16 sps:$4 sm:$0xff]  }
 0x12c   :  { %5136 = vmatprep.subr.bf16.mxu0 %v8913_v17  ;;  %5669 = vmatprep.subr.bf16.mxu1 %v8916_v18  ;;  %v8998_v17 = vld [vmem:[%s12924_s1 + $0xb28] ss:$16 sps:$4 sm:$0xff]   ;;  %v9003_v18 = vld [vmem:[%s12924_s1 + $0xb44] ss:$16 sps:$4 sm:$0xff]  }
 0x12f   :  { %5137 = vmatpush1.bf16.msra.mxu0 %v8911_v19  ;;  %5670 = vmatpush1.bf16.msra.mxu1 %v8914_v20  ;;  %v9006_v19 = vld [vmem:[%s12924_s1 + $0xb4c] ss:$16 sps:$4 sm:$0xff]   ;;  %v9001_v20 = vld [vmem:[%s12924_s1 + $0xb40] ss:$16 sps:$4 sm:$0xff]  }
 0x130   :  { %5138 = vmatprep.subr.bf16.mxu0 %v8919_v21  ;;  %5671 = vmatprep.subr.bf16.mxu1 %v8922_v22  ;;  %v9004_v21 = vld [vmem:[%s12924_s1 + $0xb48] ss:$16 sps:$4 sm:$0xff]   ;;  %v9009_v22 = vld [vmem:[%s12924_s1 + $0xb64] ss:$16 sps:$4 sm:$0xff]  }
 0x133   :  { %5139 = vmatpush1.bf16.msra.mxu0 %v8917_v23  ;;  %5672 = vmatpush1.bf16.msra.mxu1 %v8920_v25  ;;  %v9012_v23 = vld [vmem:[%s12924_s1 + $0xb6c] ss:$16 sps:$4 sm:$0xff]   ;;  %v9007_v25 = vld [vmem:[%s12924_s1 + $0xb60] ss:$16 sps:$4 sm:$0xff]  }
 0x134   :  { %5140 = vmatprep.subr.bf16.mxu0 %v8925_v13  ;;  %5673 = vmatprep.subr.bf16.mxu1 %v8928_v27  ;;  %v9010_v13 = vld [vmem:[%s12924_s1 + $0xb68] ss:$16 sps:$4 sm:$0xff]   ;;  %v9015_v27 = vld [vmem:[%s12924_s1 + $0xb84] ss:$16 sps:$4 sm:$0xff]  }
 0x137   :  { %5141 = vmatpush1.bf16.msra.mxu0 %v8923_v29  ;;  %5674 = vmatpush1.bf16.msra.mxu1 %v8926_v30  ;;  %v9018_v29 = vld [vmem:[%s12924_s1 + $0xb8c] ss:$16 sps:$4 sm:$0xff]   ;;  %v9013_v30 = vld [vmem:[%s12924_s1 + $0xb80] ss:$16 sps:$4 sm:$0xff]  }
 0x138   :  { %5142 = vmatprep.subr.bf16.mxu0 %v8931_v31  ;;  %5675 = vmatprep.subr.bf16.mxu1 %v8934_v15  ;;  %v9016_v31 = vld [vmem:[%s12924_s1 + $0xb88] ss:$16 sps:$4 sm:$0xff]   ;;  %v9021_v15 = vld [vmem:[%s12924_s1 + $0xba4] ss:$16 sps:$4 sm:$0xff]  }
 0x13b   :  { %5143 = vmatpush1.bf16.msra.mxu0 %v8929_v32  ;;  %5676 = vmatpush1.bf16.msra.mxu1 %v8932_v33  ;;  %v9024_v32 = vld [vmem:[%s12924_s1 + $0xbac] ss:$16 sps:$4 sm:$0xff]   ;;  %v9019_v33 = vld [vmem:[%s12924_s1 + $0xba0] ss:$16 sps:$4 sm:$0xff]  }
 0x13c   :  { %5144 = vmatprep.subr.bf16.mxu0 %v8937_v26  ;;  %5677 = vmatprep.subr.bf16.mxu1 %v8940_v34  ;;  %v9022_v26 = vld [vmem:[%s12924_s1 + $0xba8] ss:$16 sps:$4 sm:$0xff]   ;;  %v9027_v34 = vld [vmem:[%s12924_s1 + $0xbc4] ss:$16 sps:$4 sm:$0xff]  }
 0x13f   :  { %5145 = vmatpush1.bf16.msra.mxu0 %v8935_v35  ;;  %5678 = vmatpush1.bf16.msra.mxu1 %v8938_v37  ;;  %v9030_v35 = vld [vmem:[%s12924_s1 + $0xbcc] ss:$16 sps:$4 sm:$0xff]  }
 0x140   :  { %5155 = vmatprep.subr.bf16.mxu0 %v8943_v28  ;;  %5688 = vmatprep.subr.bf16.mxu1 %v8946_v39  ;;  %v9863_v37 = vld [vmem:[%s12925_s0 + $0x8] sm:$0xff]  ;;  %v9025_v39 = vld [vmem:[%s12924_s1 + $0xbc0] ss:$16 sps:$4 sm:$0xff]  }
 0x141   :  { %v890_v28 = vcombine.high %v9863_v37, %v9863_v37  ;;  %v9114_v37 = vld [vmem:[%s12924_s1 + $0xd8c] ss:$16 sps:$4 sm:$0xff]  }
 0x142   :  { %5147 = vmatmul.mubr.bf16.vlgmr.msra.gmra.mrb[0].mxu0 %v10930_v40  ;;  %5680 = vmatmul.mubr.bf16.vlgmr.msra.gmra.mrb[0].mxu1 %v10930_v40 }
 0x143   :  { %5156 = vmatpush1.bf16.msra.mxu0 %v8941_v41  ;;  %5689 = vmatpush1.bf16.msra.mxu1 %v8944_v43  ;;  %v9028_v41 = vld [vmem:[%s12924_s1 + $0xbc8] ss:$16 sps:$4 sm:$0xff]   ;;  %v9033_v43 = vld [vmem:[%s12924_s1 + $0xbe4] ss:$16 sps:$4 sm:$0xff]  }
 0x144   :  { %5157 = vmatprep.subr.bf16.mxu0 %v8949_v44  ;;  %5690 = vmatprep.subr.bf16.mxu1 %v8952_v24  ;;  %v9036_v44 = vld [vmem:[%s12924_s1 + $0xbec] ss:$16 sps:$4 sm:$0xff]   ;;  %v11120_v24 = vrot.slane %v890_v28, %v10043_v49  ;;  %v9109_v28 = vld [vmem:[%s12924_s1 + $0xd80] ss:$16 sps:$4 sm:$0xff]  }
 0x145   :  { %5187 = vmatprep.mubr.bf16.mxu0 %v937_v45  ;;  %5720 = vmatprep.mubr.bf16.mxu1 %v937_v45  ;;  %v9031_v45 = vld [vmem:[%s12924_s1 + $0xbe0] ss:$16 sps:$4 sm:$0xff]  }
 0x147   :  { %5158 = vmatpush1.bf16.msra.mxu0 %v8947_v46  ;;  %5691 = vmatpush1.bf16.msra.mxu1 %v8950_v47  ;;  %v9034_v46 = vld [vmem:[%s12924_s1 + $0xbe8] ss:$16 sps:$4 sm:$0xff]   ;;  %v9039_v47 = vld [vmem:[%s12924_s1 + $0xc04] ss:$16 sps:$4 sm:$0xff]  }
 0x148   :  { %5159 = vmatprep.subr.bf16.mxu0 %v8955_v38  ;;  %5692 = vmatprep.subr.bf16.mxu1 %v8958_v48  ;;  %v9042_v38 = vld [vmem:[%s12924_s1 + $0xc0c] ss:$16 sps:$4 sm:$0xff]   ;;  %v906_v48 = vcombine.high %v11120_v24, %v11120_v24 }
 0x14b   :  { %5160 = vmatpush1.bf16.msra.mxu0 %v8953_v50  ;;  %5693 = vmatpush1.bf16.msra.mxu1 %v8956_v51  ;;  %v935_v50 = vcombine.high %v10930_v40, %v10930_v40  ;;  %v9037_v51 = vld [vmem:[%s12924_s1 + $0xc00] ss:$16 sps:$4 sm:$0xff]   ;;  %v9048_v40 = vld [vmem:[%s12924_s1 + $0xc2c] ss:$16 sps:$4 sm:$0xff]  }
 0x14c   :  { %5161 = vmatprep.subr.bf16.mxu0 %v8961_v53  ;;  %5694 = vmatprep.subr.bf16.mxu1 %v8964_v54  ;;  %v9040_v53 = vld [vmem:[%s12924_s1 + $0xc08] ss:$16 sps:$4 sm:$0xff]   ;;  %v9045_v54 = vld [vmem:[%s12924_s1 + $0xc24] ss:$16 sps:$4 sm:$0xff]  }
 0x14f   :  { %5162 = vmatpush1.bf16.msra.mxu0 %v8959_v55  ;;  %5695 = vmatpush1.bf16.msra.mxu1 %v8962_v56  ;;  %v11151_v55 = vrot.slane %v906_v48, %v10043_v49  ;;  %v9043_v56 = vld [vmem:[%s12924_s1 + $0xc20] ss:$16 sps:$4 sm:$0xff]   ;;  %v9124_v48 = vld [vmem:[%s12924_s1 + $0xdc8] ss:$16 sps:$4 sm:$0xff]  }
 0x150   :  { %5163 = vmatprep.subr.bf16.mxu0 %v8967_v57  ;;  %5696 = vmatprep.subr.bf16.mxu1 %v8970_v58  ;;  %v9046_v57 = vld [vmem:[%s12924_s1 + $0xc28] ss:$16 sps:$4 sm:$0xff]   ;;  %v9051_v58 = vld [vmem:[%s12924_s1 + $0xc44] ss:$16 sps:$4 sm:$0xff]  }
 0x153   :  { %5164 = vmatpush1.bf16.msra.mxu0 %v8965_v59  ;;  %5697 = vmatpush1.bf16.msra.mxu1 %v8968_v60  ;;  %v9054_v59 = vld [vmem:[%s12924_s1 + $0xc4c] ss:$16 sps:$4 sm:$0xff]   ;;  %v9049_v60 = vld [vmem:[%s12924_s1 + $0xc40] ss:$16 sps:$4 sm:$0xff]  }
 0x154   :  { %5165 = vmatprep.subr.bf16.mxu0 %v8973_v61  ;;  %5698 = vmatprep.subr.bf16.mxu1 %v8976_v62  ;;  %v9052_v61 = vld [vmem:[%s12924_s1 + $0xc48] ss:$16 sps:$4 sm:$0xff]   ;;  %v9057_v62 = vld [vmem:[%s12924_s1 + $0xc64] ss:$16 sps:$4 sm:$0xff]  }
 0x157   :  { %5166 = vmatpush1.bf16.msra.mxu0 %v8971_v63  ;;  %5699 = vmatpush1.bf16.msra.mxu1 %v8974_v0  ;;  %v9060_v63 = vld [vmem:[%s12924_s1 + $0xc6c] ss:$16 sps:$4 sm:$0xff]   ;;  %v9055_v0 = vld [vmem:[%s12924_s1 + $0xc60] ss:$16 sps:$4 sm:$0xff]  }
 0x158   :  { %5167 = vmatprep.subr.bf16.mxu0 %v8979_v1  ;;  %5700 = vmatprep.subr.bf16.mxu1 %v8982_v2  ;;  %v9058_v1 = vld [vmem:[%s12924_s1 + $0xc68] ss:$16 sps:$4 sm:$0xff]   ;;  %v9063_v2 = vld [vmem:[%s12924_s1 + $0xc84] ss:$16 sps:$4 sm:$0xff]  }
 0x15b   :  { %5168 = vmatpush1.bf16.msra.mxu0 %v8977_v3  ;;  %5701 = vmatpush1.bf16.msra.mxu1 %v8980_v4  ;;  %v9066_v3 = vld [vmem:[%s12924_s1 + $0xc8c] ss:$16 sps:$4 sm:$0xff]   ;;  %v9061_v4 = vld [vmem:[%s12924_s1 + $0xc80] ss:$16 sps:$4 sm:$0xff]  }
 0x15c   :  { %5169 = vmatprep.subr.bf16.mxu0 %v8985_v5  ;;  %5702 = vmatprep.subr.bf16.mxu1 %v8988_v6  ;;  %v9064_v5 = vld [vmem:[%s12924_s1 + $0xc88] ss:$16 sps:$4 sm:$0xff]   ;;  %v9069_v6 = vld [vmem:[%s12924_s1 + $0xca4] ss:$16 sps:$4 sm:$0xff]  }
 0x15f   :  { %5170 = vmatpush1.bf16.msra.mxu0 %v8983_v7  ;;  %5703 = vmatpush1.bf16.msra.mxu1 %v8986_v8  ;;  %v9072_v7 = vld [vmem:[%s12924_s1 + $0xcac] ss:$16 sps:$4 sm:$0xff]   ;;  %v9067_v8 = vld [vmem:[%s12924_s1 + $0xca0] ss:$16 sps:$4 sm:$0xff]  }
 0x160   :  { %5171 = vmatprep.subr.bf16.mxu0 %v8991_v9  ;;  %5704 = vmatprep.subr.bf16.mxu1 %v8994_v10  ;;  %v9070_v9 = vld [vmem:[%s12924_s1 + $0xca8] ss:$16 sps:$4 sm:$0xff]   ;;  %v9075_v10 = vld [vmem:[%s12924_s1 + $0xcc4] ss:$16 sps:$4 sm:$0xff]  }
 0x163   :  { %5172 = vmatpush1.bf16.msra.mxu0 %v8989_v11  ;;  %5705 = vmatpush1.bf16.msra.mxu1 %v8992_v12  ;;  %v9078_v11 = vld [vmem:[%s12924_s1 + $0xccc] ss:$16 sps:$4 sm:$0xff]   ;;  %v9073_v12 = vld [vmem:[%s12924_s1 + $0xcc0] ss:$16 sps:$4 sm:$0xff]  }
 0x164   :  { %5173 = vmatprep.subr.bf16.mxu0 %v8997_v14  ;;  %5706 = vmatprep.subr.bf16.mxu1 %v9000_v52  ;;  %v9076_v14 = vld [vmem:[%s12924_s1 + $0xcc8] ss:$16 sps:$4 sm:$0xff]   ;;  %v9081_v52 = vld [vmem:[%s12924_s1 + $0xce4] ss:$16 sps:$4 sm:$0xff]  }
 0x167   :  { %5174 = vmatpush1.bf16.msra.mxu0 %v8995_v16  ;;  %5707 = vmatpush1.bf16.msra.mxu1 %v8998_v17  ;;  %v9084_v16 = vld [vmem:[%s12924_s1 + $0xcec] ss:$16 sps:$4 sm:$0xff]   ;;  %v9079_v17 = vld [vmem:[%s12924_s1 + $0xce0] ss:$16 sps:$4 sm:$0xff]  }
 0x168   :  { %5175 = vmatprep.subr.bf16.mxu0 %v9003_v18  ;;  %5708 = vmatprep.subr.bf16.mxu1 %v9006_v19  ;;  %v9082_v18 = vld [vmem:[%s12924_s1 + $0xce8] ss:$16 sps:$4 sm:$0xff]   ;;  %v9087_v19 = vld [vmem:[%s12924_s1 + $0xd04] ss:$16 sps:$4 sm:$0xff]  }
 0x16b   :  { %5176 = vmatpush1.bf16.msra.mxu0 %v9001_v20  ;;  %5709 = vmatpush1.bf16.msra.mxu1 %v9004_v21  ;;  %v9090_v20 = vld [vmem:[%s12924_s1 + $0xd0c] ss:$16 sps:$4 sm:$0xff]   ;;  %v9085_v21 = vld [vmem:[%s12924_s1 + $0xd00] ss:$16 sps:$4 sm:$0xff]  }
 0x16c   :  { %5177 = vmatprep.subr.bf16.mxu0 %v9009_v22  ;;  %5710 = vmatprep.subr.bf16.mxu1 %v9012_v23  ;;  %v9088_v22 = vld [vmem:[%s12924_s1 + $0xd08] ss:$16 sps:$4 sm:$0xff]   ;;  %v9093_v23 = vld [vmem:[%s12924_s1 + $0xd24] ss:$16 sps:$4 sm:$0xff]  }
 0x16f   :  { %5178 = vmatpush1.bf16.msra.mxu0 %v9007_v25  ;;  %5711 = vmatpush1.bf16.msra.mxu1 %v9010_v13  ;;  %v9096_v25 = vld [vmem:[%s12924_s1 + $0xd2c] ss:$16 sps:$4 sm:$0xff]   ;;  %v9091_v13 = vld [vmem:[%s12924_s1 + $0xd20] ss:$16 sps:$4 sm:$0xff]  }
 0x170   :  { %5179 = vmatprep.subr.bf16.mxu0 %v9015_v27  ;;  %5712 = vmatprep.subr.bf16.mxu1 %v9018_v29  ;;  %v9094_v27 = vld [vmem:[%s12924_s1 + $0xd28] ss:$16 sps:$4 sm:$0xff]   ;;  %v9099_v29 = vld [vmem:[%s12924_s1 + $0xd44] ss:$16 sps:$4 sm:$0xff]  }
 0x173   :  { %5180 = vmatpush1.bf16.msra.mxu0 %v9013_v30  ;;  %5713 = vmatpush1.bf16.msra.mxu1 %v9016_v31  ;;  %v9102_v30 = vld [vmem:[%s12924_s1 + $0xd4c] ss:$16 sps:$4 sm:$0xff]   ;;  %v9097_v31 = vld [vmem:[%s12924_s1 + $0xd40] ss:$16 sps:$4 sm:$0xff]  }
 0x174   :  { %5181 = vmatprep.subr.bf16.mxu0 %v9021_v15  ;;  %5714 = vmatprep.subr.bf16.mxu1 %v9024_v32  ;;  %v9100_v15 = vld [vmem:[%s12924_s1 + $0xd48] ss:$16 sps:$4 sm:$0xff]   ;;  %v9105_v32 = vld [vmem:[%s12924_s1 + $0xd64] ss:$16 sps:$4 sm:$0xff]  }
 0x177   :  { %5182 = vmatpush1.bf16.msra.mxu0 %v9019_v33  ;;  %5715 = vmatpush1.bf16.msra.mxu1 %v9022_v26  ;;  %v9108_v33 = vld [vmem:[%s12924_s1 + $0xd6c] ss:$16 sps:$4 sm:$0xff]   ;;  %v9103_v26 = vld [vmem:[%s12924_s1 + $0xd60] ss:$16 sps:$4 sm:$0xff]  }
 0x178   :  { %5183 = vmatprep.subr.bf16.mxu0 %v9027_v34  ;;  %5716 = vmatprep.subr.bf16.mxu1 %v9030_v35  ;;  %v9106_v34 = vld [vmem:[%s12924_s1 + $0xd68] ss:$16 sps:$4 sm:$0xff]   ;;  %v9111_v35 = vld [vmem:[%s12924_s1 + $0xd84] ss:$16 sps:$4 sm:$0xff]  }
 0x17b   :  { %5184 = vmatpush1.bf16.msra.mxu0 %v9025_v39  ;;  %5717 = vmatpush1.bf16.msra.mxu1 %v9028_v41  ;;  %v9112_v39 = vld [vmem:[%s12924_s1 + $0xd88] ss:$16 sps:$4 sm:$0xff]   ;;  %v9117_v41 = vld [vmem:[%s12924_s1 + $0xda4] ss:$16 sps:$4 sm:$0xff]  }
 0x17c   :  { %5185 = vmatprep.subr.bf16.mxu0 %v9033_v43  ;;  %5718 = vmatprep.subr.bf16.mxu1 %v9036_v44  ;;  %v9120_v43 = vld [vmem:[%s12924_s1 + $0xdac] ss:$16 sps:$4 sm:$0xff]   ;;  %v9115_v44 = vld [vmem:[%s12924_s1 + $0xda0] ss:$16 sps:$4 sm:$0xff]  }
 0x17f   :  { %5186 = vmatpush1.bf16.msra.mxu0 %v9031_v45  ;;  %5719 = vmatpush1.bf16.msra.mxu1 %v9034_v46  ;;  %v9118_v45 = vld [vmem:[%s12924_s1 + $0xda8] ss:$16 sps:$4 sm:$0xff]   ;;  %v9123_v46 = vld [vmem:[%s12924_s1 + $0xdc4] ss:$16 sps:$4 sm:$0xff]  }
 0x180   :  { %5196 = vmatprep.subr.bf16.mxu0 %v9039_v47  ;;  %5729 = vmatprep.subr.bf16.mxu1 %v9042_v38  ;;  %v9126_v47 = vld [vmem:[%s12924_s1 + $0xdcc] ss:$16 sps:$4 sm:$0xff]   ;;  %v9121_v38 = vld [vmem:[%s12924_s1 + $0xdc0] ss:$16 sps:$4 sm:$0xff]  }
 0x182   :  { %5188 = vmatmul.mubr.bf16.vlgmr.msra.gmra.mrb[0].mxu0 %v935_v50  ;;  %5721 = vmatmul.mubr.bf16.vlgmr.msra.gmra.mrb[0].mxu1 %v935_v50  ;;  %v9129_v50 = vld [vmem:[%s12924_s1 + $0xde4] ss:$16 sps:$4 sm:$0xff]  }
 0x183   :  { %5197 = vmatpush1.bf16.msra.mxu0 %v9037_v51  ;;  %5730 = vmatpush1.bf16.msra.mxu1 %v9040_v53  ;;  %v9132_v51 = vld [vmem:[%s12924_s1 + $0xdec] ss:$16 sps:$4 sm:$0xff]   ;;  %v9127_v53 = vld [vmem:[%s12924_s1 + $0xde0] ss:$16 sps:$4 sm:$0xff]  }
 0x184   :  { %5198 = vmatprep.subr.bf16.mxu0 %v9045_v54  ;;  %5731 = vmatprep.subr.bf16.mxu1 %v9048_v40  ;;  %v9130_v54 = vld [vmem:[%s12924_s1 + $0xde8] ss:$16 sps:$4 sm:$0xff]   ;;  %v9136_v40 = vld [vmem:[%s12924_s1 + $0xe04] ss:$16 sps:$4 sm:$0xff]  }
 0x185   :  { %5228 = vmatprep.mubr.bf16.mxu0 %v11151_v55  ;;  %5761 = vmatprep.mubr.bf16.mxu1 %v11151_v55 }
 0x187   :  { %5199 = vmatpush1.bf16.msra.mxu0 %v9043_v56  ;;  %5732 = vmatpush1.bf16.msra.mxu1 %v9046_v57  ;;  %v9139_v56 = vld [vmem:[%s12924_s1 + $0xe0c] ss:$16 sps:$4 sm:$0xff]   ;;  %v11337_v57 = vrot.slane %v11120_v24, %v10043_v49 }
 0x188   :  { %5200 = vmatprep.subr.bf16.mxu0 %v9051_v58  ;;  %5733 = vmatprep.subr.bf16.mxu1 %v9054_v59  ;;  %v9134_v58 = vld [vmem:[%s12924_s1 + $0xe00] ss:$16 sps:$4 sm:$0xff]   ;;  %v9137_v59 = vld [vmem:[%s12924_s1 + $0xe08] ss:$16 sps:$4 sm:$0xff]   ;;  %v9145_v24 = vld [vmem:[%s12924_s1 + $0xe2c] ss:$16 sps:$4 sm:$0xff]  }
 0x18b   :  { %5201 = vmatpush1.bf16.msra.mxu0 %v9049_v60  ;;  %5734 = vmatpush1.bf16.msra.mxu1 %v9052_v61  ;;  %v9142_v60 = vld [vmem:[%s12924_s1 + $0xe24] ss:$16 sps:$4 sm:$0xff]   ;;  %v938_v61 = vcombine.high %v11151_v55, %v11151_v55 }
 0x18c   :  { %5202 = vmatprep.subr.bf16.mxu0 %v9057_v62  ;;  %5735 = vmatprep.subr.bf16.mxu1 %v9060_v63  ;;  %v9140_v62 = vld [vmem:[%s12924_s1 + $0xe20] ss:$16 sps:$4 sm:$0xff]   ;;  %v9143_v63 = vld [vmem:[%s12924_s1 + $0xe28] ss:$16 sps:$4 sm:$0xff]   ;;  %v9148_v55 = vld [vmem:[%s12924_s1 + $0xe44] ss:$16 sps:$4 sm:$0xff]  }
 0x18f   :  { %5203 = vmatpush1.bf16.msra.mxu0 %v9055_v0  ;;  %5736 = vmatpush1.bf16.msra.mxu1 %v9058_v1  ;;  %v9151_v0 = vld [vmem:[%s12924_s1 + $0xe4c] ss:$16 sps:$4 sm:$0xff]   ;;  %v9146_v1 = vld [vmem:[%s12924_s1 + $0xe40] ss:$16 sps:$4 sm:$0xff]  }
 0x190   :  { %5204 = vmatprep.subr.bf16.mxu0 %v9063_v2  ;;  %5737 = vmatprep.subr.bf16.mxu1 %v9066_v3  ;;  %v9149_v2 = vld [vmem:[%s12924_s1 + $0xe48] ss:$16 sps:$4 sm:$0xff]   ;;  %v9154_v3 = vld [vmem:[%s12924_s1 + $0xe64] ss:$16 sps:$4 sm:$0xff]  }
 0x193   :  { %5205 = vmatpush1.bf16.msra.mxu0 %v9061_v4  ;;  %5738 = vmatpush1.bf16.msra.mxu1 %v9064_v5  ;;  %v9157_v4 = vld [vmem:[%s12924_s1 + $0xe6c] ss:$16 sps:$4 sm:$0xff]   ;;  %v9152_v5 = vld [vmem:[%s12924_s1 + $0xe60] ss:$16 sps:$4 sm:$0xff]  }
 0x194   :  { %5206 = vmatprep.subr.bf16.mxu0 %v9069_v6  ;;  %5739 = vmatprep.subr.bf16.mxu1 %v9072_v7  ;;  %v9155_v6 = vld [vmem:[%s12924_s1 + $0xe68] ss:$16 sps:$4 sm:$0xff]   ;;  %v9160_v7 = vld [vmem:[%s12924_s1 + $0xe84] ss:$16 sps:$4 sm:$0xff]  }
 0x197   :  { %5207 = vmatpush1.bf16.msra.mxu0 %v9067_v8  ;;  %5740 = vmatpush1.bf16.msra.mxu1 %v9070_v9  ;;  %v9163_v8 = vld [vmem:[%s12924_s1 + $0xe8c] ss:$16 sps:$4 sm:$0xff]   ;;  %v9158_v9 = vld [vmem:[%s12924_s1 + $0xe80] ss:$16 sps:$4 sm:$0xff]  }
 0x198   :  { %5208 = vmatprep.subr.bf16.mxu0 %v9075_v10  ;;  %5741 = vmatprep.subr.bf16.mxu1 %v9078_v11  ;;  %v9161_v10 = vld [vmem:[%s12924_s1 + $0xe88] ss:$16 sps:$4 sm:$0xff]   ;;  %v9166_v11 = vld [vmem:[%s12924_s1 + $0xea4] ss:$16 sps:$4 sm:$0xff]  }
 0x19b   :  { %5209 = vmatpush1.bf16.msra.mxu0 %v9073_v12  ;;  %5742 = vmatpush1.bf16.msra.mxu1 %v9076_v14  ;;  %v9169_v12 = vld [vmem:[%s12924_s1 + $0xeac] ss:$16 sps:$4 sm:$0xff]   ;;  %v9164_v14 = vld [vmem:[%s12924_s1 + $0xea0] ss:$16 sps:$4 sm:$0xff]  }
 0x19c   :  { %5210 = vmatprep.subr.bf16.mxu0 %v9081_v52  ;;  %5743 = vmatprep.subr.bf16.mxu1 %v9084_v16  ;;  %v9167_v52 = vld [vmem:[%s12924_s1 + $0xea8] ss:$16 sps:$4 sm:$0xff]   ;;  %v9172_v16 = vld [vmem:[%s12924_s1 + $0xec4] ss:$16 sps:$4 sm:$0xff]  }
 0x19f   :  { %5211 = vmatpush1.bf16.msra.mxu0 %v9079_v17  ;;  %5744 = vmatpush1.bf16.msra.mxu1 %v9082_v18  ;;  %v9175_v17 = vld [vmem:[%s12924_s1 + $0xecc] ss:$16 sps:$4 sm:$0xff]   ;;  %v9170_v18 = vld [vmem:[%s12924_s1 + $0xec0] ss:$16 sps:$4 sm:$0xff]  }
 0x1a0   :  { %5212 = vmatprep.subr.bf16.mxu0 %v9087_v19  ;;  %5745 = vmatprep.subr.bf16.mxu1 %v9090_v20  ;;  %v9173_v19 = vld [vmem:[%s12924_s1 + $0xec8] ss:$16 sps:$4 sm:$0xff]   ;;  %v9178_v20 = vld [vmem:[%s12924_s1 + $0xee4] ss:$16 sps:$4 sm:$0xff]  }
 0x1a3   :  { %5213 = vmatpush1.bf16.msra.mxu0 %v9085_v21  ;;  %5746 = vmatpush1.bf16.msra.mxu1 %v9088_v22  ;;  %v9181_v21 = vld [vmem:[%s12924_s1 + $0xeec] ss:$16 sps:$4 sm:$0xff]   ;;  %v9176_v22 = vld [vmem:[%s12924_s1 + $0xee0] ss:$16 sps:$4 sm:$0xff]  }
 0x1a4   :  { %5214 = vmatprep.subr.bf16.mxu0 %v9093_v23  ;;  %5747 = vmatprep.subr.bf16.mxu1 %v9096_v25  ;;  %v9179_v23 = vld [vmem:[%s12924_s1 + $0xee8] ss:$16 sps:$4 sm:$0xff]   ;;  %v9184_v25 = vld [vmem:[%s12924_s1 + $0xf04] ss:$16 sps:$4 sm:$0xff]  }
 0x1a7   :  { %5215 = vmatpush1.bf16.msra.mxu0 %v9091_v13  ;;  %5748 = vmatpush1.bf16.msra.mxu1 %v9094_v27  ;;  %v9187_v13 = vld [vmem:[%s12924_s1 + $0xf0c] ss:$16 sps:$4 sm:$0xff]   ;;  %v9182_v27 = vld [vmem:[%s12924_s1 + $0xf00] ss:$16 sps:$4 sm:$0xff]  }
 0x1a8   :  { %5216 = vmatprep.subr.bf16.mxu0 %v9099_v29  ;;  %5749 = vmatprep.subr.bf16.mxu1 %v9102_v30  ;;  %v9185_v29 = vld [vmem:[%s12924_s1 + $0xf08] ss:$16 sps:$4 sm:$0xff]   ;;  %v9190_v30 = vld [vmem:[%s12924_s1 + $0xf24] ss:$16 sps:$4 sm:$0xff]  }
 0x1ab   :  { %5217 = vmatpush1.bf16.msra.mxu0 %v9097_v31  ;;  %5750 = vmatpush1.bf16.msra.mxu1 %v9100_v15  ;;  %v9193_v31 = vld [vmem:[%s12924_s1 + $0xf2c] ss:$16 sps:$4 sm:$0xff]   ;;  %v9188_v15 = vld [vmem:[%s12924_s1 + $0xf20] ss:$16 sps:$4 sm:$0xff]  }
 0x1ac   :  { %5218 = vmatprep.subr.bf16.mxu0 %v9105_v32  ;;  %5751 = vmatprep.subr.bf16.mxu1 %v9108_v33  ;;  %v9191_v32 = vld [vmem:[%s12924_s1 + $0xf28] ss:$16 sps:$4 sm:$0xff]   ;;  %v9196_v33 = vld [vmem:[%s12924_s1 + $0xf44] ss:$16 sps:$4 sm:$0xff]  }
 0x1af   :  { %5219 = vmatpush1.bf16.msra.mxu0 %v9103_v26  ;;  %5752 = vmatpush1.bf16.msra.mxu1 %v9106_v34  ;;  %v9199_v26 = vld [vmem:[%s12924_s1 + $0xf4c] ss:$16 sps:$4 sm:$0xff]   ;;  %v9194_v34 = vld [vmem:[%s12924_s1 + $0xf40] ss:$16 sps:$4 sm:$0xff]  }
 0x1b0   :  { %5220 = vmatprep.subr.bf16.mxu0 %v9111_v35  ;;  %5753 = vmatprep.subr.bf16.mxu1 %v9114_v37  ;;  %v9197_v35 = vld [vmem:[%s12924_s1 + $0xf48] ss:$16 sps:$4 sm:$0xff]   ;;  %v9202_v37 = vld [vmem:[%s12924_s1 + $0xf64] ss:$16 sps:$4 sm:$0xff]  }
 0x1b3   :  { %5221 = vmatpush1.bf16.msra.mxu0 %v9109_v28  ;;  %5754 = vmatpush1.bf16.msra.mxu1 %v9112_v39  ;;  %v9205_v28 = vld [vmem:[%s12924_s1 + $0xf6c] ss:$16 sps:$4 sm:$0xff]   ;;  %v9200_v39 = vld [vmem:[%s12924_s1 + $0xf60] ss:$16 sps:$4 sm:$0xff]  }
 0x1b4   :  { %5222 = vmatprep.subr.bf16.mxu0 %v9117_v41  ;;  %5755 = vmatprep.subr.bf16.mxu1 %v9120_v43  ;;  %v9203_v41 = vld [vmem:[%s12924_s1 + $0xf68] ss:$16 sps:$4 sm:$0xff]   ;;  %v9208_v43 = vld [vmem:[%s12924_s1 + $0xf84] ss:$16 sps:$4 sm:$0xff]  }
 0x1b7   :  { %5223 = vmatpush1.bf16.msra.mxu0 %v9115_v44  ;;  %5756 = vmatpush1.bf16.msra.mxu1 %v9118_v45  ;;  %v9211_v44 = vld [vmem:[%s12924_s1 + $0xf8c] ss:$16 sps:$4 sm:$0xff]   ;;  %v9206_v45 = vld [vmem:[%s12924_s1 + $0xf80] ss:$16 sps:$4 sm:$0xff]  }
 0x1b8   :  { %5224 = vmatprep.subr.bf16.mxu0 %v9123_v46  ;;  %5757 = vmatprep.subr.bf16.mxu1 %v9126_v47  ;;  %v9209_v46 = vld [vmem:[%s12924_s1 + $0xf88] ss:$16 sps:$4 sm:$0xff]   ;;  %v9214_v47 = vld [vmem:[%s12924_s1 + $0xfa4] ss:$16 sps:$4 sm:$0xff]  }
 0x1bb   :  { %5225 = vmatpush1.bf16.msra.mxu0 %v9121_v38  ;;  %5758 = vmatpush1.bf16.msra.mxu1 %v9124_v48  ;;  %v9217_v38 = vld [vmem:[%s12924_s1 + $0xfac] ss:$16 sps:$4 sm:$0xff]   ;;  %v9212_v48 = vld [vmem:[%s12924_s1 + $0xfa0] ss:$16 sps:$4 sm:$0xff]  }
 0x1bc   :  { %5226 = vmatprep.subr.bf16.mxu0 %v9129_v50  ;;  %5759 = vmatprep.subr.bf16.mxu1 %v9132_v51  ;;  %v9215_v50 = vld [vmem:[%s12924_s1 + $0xfa8] ss:$16 sps:$4 sm:$0xff]   ;;  %v9220_v51 = vld [vmem:[%s12924_s1 + $0xfc4] ss:$16 sps:$4 sm:$0xff]  }
 0x1bf   :  { %5227 = vmatpush1.bf16.msra.mxu0 %v9127_v53  ;;  %5760 = vmatpush1.bf16.msra.mxu1 %v9130_v54  ;;  %v9223_v53 = vld [vmem:[%s12924_s1 + $0xfcc] ss:$16 sps:$4 sm:$0xff]   ;;  %v11514_v54 = vld [vmem:[%s12925_s0 + $0x10] sm:$0xff] }
 0x1c0   :  { %5237 = vmatprep.subr.bf16.mxu0 %v9136_v40  ;;  %5770 = vmatprep.subr.bf16.mxu1 %v9139_v56  ;;  %v9218_v40 = vld [vmem:[%s12924_s1 + $0xfc0] ss:$16 sps:$4 sm:$0xff]   ;;  %v9221_v56 = vld [vmem:[%s12924_s1 + $0xfc8] ss:$16 sps:$4 sm:$0xff]  }
 0x1c2   :  { %5229 = vmatmul.mubr.bf16.vlgmr.msra.gmra.mrb[0].mxu0 %v11337_v57  ;;  %5762 = vmatmul.mubr.bf16.vlgmr.msra.gmra.mrb[0].mxu1 %v11337_v57 }
 0x1c3   :  { %5238 = vmatpush1.bf16.msra.mxu0 %v9134_v58  ;;  %5771 = vmatpush1.bf16.msra.mxu1 %v9137_v59  ;;  %v9226_v58 = vld [vmem:[%s12924_s1 + $0xfe4] ss:$16 sps:$4 sm:$0xff]   ;;  %v9229_v59 = vld [vmem:[%s12924_s1 + $0xfec] ss:$16 sps:$4 sm:$0xff]  }
 0x1c4   :  { %5239 = vmatprep.subr.bf16.mxu0 %v9142_v60  ;;  %5772 = vmatprep.subr.bf16.mxu1 %v9145_v24  ;;  %v11530_v60 = vrot.slane %v11514_v54, %v10043_v49  ;;  %v9224_v24 = vld [vmem:[%s12924_s1 + $0xfe0] ss:$16 sps:$4 sm:$0xff]  }
 0x1c5   :  { %5269 = vmatprep.mubr.bf16.mxu0 %v938_v61  ;;  %5802 = vmatprep.mubr.bf16.mxu1 %v938_v61  ;;  %v9227_v61 = vld [vmem:[%s12924_s1 + $0xfe8] ss:$16 sps:$4 sm:$0xff]  }
 0x1c7   :  { %5240 = vmatpush1.bf16.msra.mxu0 %v9140_v62  ;;  %5773 = vmatpush1.bf16.msra.mxu1 %v9143_v63  ;;  %v9232_v62 = vld [vmem:[%s12924_s1 + $0x1004] ss:$16 sps:$4 sm:$0xff]   ;;  %v9235_v63 = vld [vmem:[%s12924_s1 + $0x100c] ss:$16 sps:$4 sm:$0xff]  }
 0x1c8   :  { %5241 = vmatprep.subr.bf16.mxu0 %v9148_v55  ;;  %5774 = vmatprep.subr.bf16.mxu1 %v9151_v0  ;;  %v954_v55 = vcombine.high %v11530_v60, %v11530_v60  ;;  %v936_v0 = vcombine.high %v11337_v57, %v11337_v57  ;;  %v9241_v57 = vld [vmem:[%s12924_s1 + $0x102c] ss:$16 sps:$4 sm:$0xff]  }
 0x1cb   :  { %5242 = vmatpush1.bf16.msra.mxu0 %v9146_v1  ;;  %5775 = vmatpush1.bf16.msra.mxu1 %v9149_v2  ;;  %v9230_v1 = vld [vmem:[%s12924_s1 + $0x1000] ss:$16 sps:$4 sm:$0xff]   ;;  %v9233_v2 = vld [vmem:[%s12924_s1 + $0x1008] ss:$16 sps:$4 sm:$0xff]  }
 0x1cc   :  { %5243 = vmatprep.subr.bf16.mxu0 %v9154_v3  ;;  %5776 = vmatprep.subr.bf16.mxu1 %v9157_v4  ;;  %v9238_v3 = vld [vmem:[%s12924_s1 + $0x1024] ss:$16 sps:$4 sm:$0xff]   ;;  %v11561_v4 = vrot.slane %v954_v55, %v10043_v49  ;;  %v9314_v55 = vld [vmem:[%s12924_s1 + $0x11c0] ss:$16 sps:$4 sm:$0xff]  }
 0x1cf   :  { %5244 = vmatpush1.bf16.msra.mxu0 %v9152_v5  ;;  %5777 = vmatpush1.bf16.msra.mxu1 %v9155_v6  ;;  %v9236_v5 = vld [vmem:[%s12924_s1 + $0x1020] ss:$16 sps:$4 sm:$0xff]   ;;  %v9239_v6 = vld [vmem:[%s12924_s1 + $0x1028] ss:$16 sps:$4 sm:$0xff]  }
 0x1d0   :  { %5245 = vmatprep.subr.bf16.mxu0 %v9160_v7  ;;  %5778 = vmatprep.subr.bf16.mxu1 %v9163_v8  ;;  %v9244_v7 = vld [vmem:[%s12924_s1 + $0x1044] ss:$16 sps:$4 sm:$0xff]   ;;  %v9247_v8 = vld [vmem:[%s12924_s1 + $0x104c] ss:$16 sps:$4 sm:$0xff]  }
 0x1d3   :  { %5246 = vmatpush1.bf16.msra.mxu0 %v9158_v9  ;;  %5779 = vmatpush1.bf16.msra.mxu1 %v9161_v10  ;;  %v9242_v9 = vld [vmem:[%s12924_s1 + $0x1040] ss:$16 sps:$4 sm:$0xff]   ;;  %v9245_v10 = vld [vmem:[%s12924_s1 + $0x1048] ss:$16 sps:$4 sm:$0xff]  }
 0x1d4   :  { %5247 = vmatprep.subr.bf16.mxu0 %v9166_v11  ;;  %5780 = vmatprep.subr.bf16.mxu1 %v9169_v12  ;;  %v9250_v11 = vld [vmem:[%s12924_s1 + $0x1064] ss:$16 sps:$4 sm:$0xff]   ;;  %v9253_v12 = vld [vmem:[%s12924_s1 + $0x106c] ss:$16 sps:$4 sm:$0xff]  }
 0x1d7   :  { %5248 = vmatpush1.bf16.msra.mxu0 %v9164_v14  ;;  %5781 = vmatpush1.bf16.msra.mxu1 %v9167_v52  ;;  %v9248_v14 = vld [vmem:[%s12924_s1 + $0x1060] ss:$16 sps:$4 sm:$0xff]   ;;  %v9251_v52 = vld [vmem:[%s12924_s1 + $0x1068] ss:$16 sps:$4 sm:$0xff]  }
 0x1d8   :  { %5249 = vmatprep.subr.bf16.mxu0 %v9172_v16  ;;  %5782 = vmatprep.subr.bf16.mxu1 %v9175_v17  ;;  %v9256_v16 = vld [vmem:[%s12924_s1 + $0x1084] ss:$16 sps:$4 sm:$0xff]   ;;  %v9259_v17 = vld [vmem:[%s12924_s1 + $0x108c] ss:$16 sps:$4 sm:$0xff]  }
 0x1db   :  { %5250 = vmatpush1.bf16.msra.mxu0 %v9170_v18  ;;  %5783 = vmatpush1.bf16.msra.mxu1 %v9173_v19  ;;  %v9254_v18 = vld [vmem:[%s12924_s1 + $0x1080] ss:$16 sps:$4 sm:$0xff]   ;;  %v9257_v19 = vld [vmem:[%s12924_s1 + $0x1088] ss:$16 sps:$4 sm:$0xff]  }
 0x1dc   :  { %5251 = vmatprep.subr.bf16.mxu0 %v9178_v20  ;;  %5784 = vmatprep.subr.bf16.mxu1 %v9181_v21  ;;  %v9262_v20 = vld [vmem:[%s12924_s1 + $0x10a4] ss:$16 sps:$4 sm:$0xff]   ;;  %v9265_v21 = vld [vmem:[%s12924_s1 + $0x10ac] ss:$16 sps:$4 sm:$0xff]  }
 0x1df   :  { %5252 = vmatpush1.bf16.msra.mxu0 %v9176_v22  ;;  %5785 = vmatpush1.bf16.msra.mxu1 %v9179_v23  ;;  %v9260_v22 = vld [vmem:[%s12924_s1 + $0x10a0] ss:$16 sps:$4 sm:$0xff]   ;;  %v9263_v23 = vld [vmem:[%s12924_s1 + $0x10a8] ss:$16 sps:$4 sm:$0xff]  }
 0x1e0   :  { %5253 = vmatprep.subr.bf16.mxu0 %v9184_v25  ;;  %5786 = vmatprep.subr.bf16.mxu1 %v9187_v13  ;;  %v9268_v25 = vld [vmem:[%s12924_s1 + $0x10c4] ss:$16 sps:$4 sm:$0xff]   ;;  %v9271_v13 = vld [vmem:[%s12924_s1 + $0x10cc] ss:$16 sps:$4 sm:$0xff]  }
 0x1e3   :  { %5254 = vmatpush1.bf16.msra.mxu0 %v9182_v27  ;;  %5787 = vmatpush1.bf16.msra.mxu1 %v9185_v29  ;;  %v9266_v27 = vld [vmem:[%s12924_s1 + $0x10c0] ss:$16 sps:$4 sm:$0xff]   ;;  %v9269_v29 = vld [vmem:[%s12924_s1 + $0x10c8] ss:$16 sps:$4 sm:$0xff]  }
 0x1e4   :  { %5255 = vmatprep.subr.bf16.mxu0 %v9190_v30  ;;  %5788 = vmatprep.subr.bf16.mxu1 %v9193_v31  ;;  %v9274_v30 = vld [vmem:[%s12924_s1 + $0x10e4] ss:$16 sps:$4 sm:$0xff]   ;;  %v9277_v31 = vld [vmem:[%s12924_s1 + $0x10ec] ss:$16 sps:$4 sm:$0xff]  }
 0x1e7   :  { %5256 = vmatpush1.bf16.msra.mxu0 %v9188_v15  ;;  %5789 = vmatpush1.bf16.msra.mxu1 %v9191_v32  ;;  %v9272_v15 = vld [vmem:[%s12924_s1 + $0x10e0] ss:$16 sps:$4 sm:$0xff]   ;;  %v9275_v32 = vld [vmem:[%s12924_s1 + $0x10e8] ss:$16 sps:$4 sm:$0xff]  }
 0x1e8   :  { %5257 = vmatprep.subr.bf16.mxu0 %v9196_v33  ;;  %5790 = vmatprep.subr.bf16.mxu1 %v9199_v26  ;;  %v9280_v33 = vld [vmem:[%s12924_s1 + $0x1104] ss:$16 sps:$4 sm:$0xff]   ;;  %v9283_v26 = vld [vmem:[%s12924_s1 + $0x110c] ss:$16 sps:$4 sm:$0xff]  }
 0x1eb   :  { %5258 = vmatpush1.bf16.msra.mxu0 %v9194_v34  ;;  %5791 = vmatpush1.bf16.msra.mxu1 %v9197_v35  ;;  %v9278_v34 = vld [vmem:[%s12924_s1 + $0x1100] ss:$16 sps:$4 sm:$0xff]   ;;  %v9281_v35 = vld [vmem:[%s12924_s1 + $0x1108] ss:$16 sps:$4 sm:$0xff]  }
 0x1ec   :  { %5259 = vmatprep.subr.bf16.mxu0 %v9202_v37  ;;  %5792 = vmatprep.subr.bf16.mxu1 %v9205_v28  ;;  %v9286_v37 = vld [vmem:[%s12924_s1 + $0x1124] ss:$16 sps:$4 sm:$0xff]   ;;  %v9289_v28 = vld [vmem:[%s12924_s1 + $0x112c] ss:$16 sps:$4 sm:$0xff]  }
 0x1ef   :  { %5260 = vmatpush1.bf16.msra.mxu0 %v9200_v39  ;;  %5793 = vmatpush1.bf16.msra.mxu1 %v9203_v41  ;;  %v9284_v39 = vld [vmem:[%s12924_s1 + $0x1120] ss:$16 sps:$4 sm:$0xff]   ;;  %v9287_v41 = vld [vmem:[%s12924_s1 + $0x1128] ss:$16 sps:$4 sm:$0xff]  }
 0x1f0   :  { %5261 = vmatprep.subr.bf16.mxu0 %v9208_v43  ;;  %5794 = vmatprep.subr.bf16.mxu1 %v9211_v44  ;;  %v9292_v43 = vld [vmem:[%s12924_s1 + $0x1144] ss:$16 sps:$4 sm:$0xff]   ;;  %v9295_v44 = vld [vmem:[%s12924_s1 + $0x114c] ss:$16 sps:$4 sm:$0xff]  }
 0x1f3   :  { %5262 = vmatpush1.bf16.msra.mxu0 %v9206_v45  ;;  %5795 = vmatpush1.bf16.msra.mxu1 %v9209_v46  ;;  %v9290_v45 = vld [vmem:[%s12924_s1 + $0x1140] ss:$16 sps:$4 sm:$0xff]   ;;  %v9293_v46 = vld [vmem:[%s12924_s1 + $0x1148] ss:$16 sps:$4 sm:$0xff]  }
 0x1f4   :  { %5263 = vmatprep.subr.bf16.mxu0 %v9214_v47  ;;  %5796 = vmatprep.subr.bf16.mxu1 %v9217_v38  ;;  %v9298_v47 = vld [vmem:[%s12924_s1 + $0x1164] ss:$16 sps:$4 sm:$0xff]   ;;  %v9301_v38 = vld [vmem:[%s12924_s1 + $0x116c] ss:$16 sps:$4 sm:$0xff]  }
 0x1f7   :  { %5264 = vmatpush1.bf16.msra.mxu0 %v9212_v48  ;;  %5797 = vmatpush1.bf16.msra.mxu1 %v9215_v50  ;;  %v9296_v48 = vld [vmem:[%s12924_s1 + $0x1160] ss:$16 sps:$4 sm:$0xff]   ;;  %v9299_v50 = vld [vmem:[%s12924_s1 + $0x1168] ss:$16 sps:$4 sm:$0xff]  }
 0x1f8   :  { %5265 = vmatprep.subr.bf16.mxu0 %v9220_v51  ;;  %5798 = vmatprep.subr.bf16.mxu1 %v9223_v53  ;;  %v9304_v51 = vld [vmem:[%s12924_s1 + $0x1184] ss:$16 sps:$4 sm:$0xff]   ;;  %v9307_v53 = vld [vmem:[%s12924_s1 + $0x118c] ss:$16 sps:$4 sm:$0xff]  }
 0x1fb   :  { %5266 = vmatpush1.bf16.msra.mxu0 %v9218_v40  ;;  %5799 = vmatpush1.bf16.msra.mxu1 %v9221_v56  ;;  %v9302_v40 = vld [vmem:[%s12924_s1 + $0x1180] ss:$16 sps:$4 sm:$0xff]   ;;  %v9305_v56 = vld [vmem:[%s12924_s1 + $0x1188] ss:$16 sps:$4 sm:$0xff]  }
 0x1fc   :  { %5267 = vmatprep.subr.bf16.mxu0 %v9226_v58  ;;  %5800 = vmatprep.subr.bf16.mxu1 %v9229_v59  ;;  %v9310_v58 = vld [vmem:[%s12924_s1 + $0x11a4] ss:$16 sps:$4 sm:$0xff]   ;;  %v9313_v59 = vld [vmem:[%s12924_s1 + $0x11ac] ss:$16 sps:$4 sm:$0xff]  }
 0x1ff   :  { %5268 = vmatpush1.bf16.msra.mxu0 %v9224_v24  ;;  %5801 = vmatpush1.bf16.msra.mxu1 %v9227_v61  ;;  %v9308_v24 = vld [vmem:[%s12924_s1 + $0x11a0] ss:$16 sps:$4 sm:$0xff]   ;;  %v9311_v61 = vld [vmem:[%s12924_s1 + $0x11a8] ss:$16 sps:$4 sm:$0xff]  }
 0x200   :  { %5278 = vmatprep.subr.bf16.mxu0 %v9232_v62  ;;  %5811 = vmatprep.subr.bf16.mxu1 %v9235_v63  ;;  %v9316_v62 = vld [vmem:[%s12924_s1 + $0x11c4] ss:$16 sps:$4 sm:$0xff]   ;;  %v9319_v63 = vld [vmem:[%s12924_s1 + $0x11cc] ss:$16 sps:$4 sm:$0xff]  }
 0x202   :  { %5270 = vmatmul.mubr.bf16.vlgmr.msra.gmra.mrb[0].mxu0 %v936_v0  ;;  %5803 = vmatmul.mubr.bf16.vlgmr.msra.gmra.mrb[0].mxu1 %v936_v0  ;;  %v9317_v0 = vld [vmem:[%s12924_s1 + $0x11c8] ss:$16 sps:$4 sm:$0xff]  }
 0x203   :  { %5279 = vmatpush1.bf16.msra.mxu0 %v9230_v1  ;;  %5812 = vmatpush1.bf16.msra.mxu1 %v9233_v2  ;;  %v9322_v1 = vld [vmem:[%s12924_s1 + $0x11e4] ss:$16 sps:$4 sm:$0xff]   ;;  %v9325_v2 = vld [vmem:[%s12924_s1 + $0x11ec] ss:$16 sps:$4 sm:$0xff]  }
 0x204   :  { %5280 = vmatprep.subr.bf16.mxu0 %v9238_v3  ;;  %5813 = vmatprep.subr.bf16.mxu1 %v9241_v57  ;;  %v9320_v3 = vld [vmem:[%s12924_s1 + $0x11e0] ss:$16 sps:$4 sm:$0xff]   ;;  %v9323_v57 = vld [vmem:[%s12924_s1 + $0x11e8] ss:$16 sps:$4 sm:$0xff]  }
 0x205   :  { %5310 = vmatprep.mubr.bf16.mxu0 %v11561_v4  ;;  %5843 = vmatprep.mubr.bf16.mxu1 %v11561_v4 }
 0x207   :  { %5281 = vmatpush1.bf16.msra.mxu0 %v9236_v5  ;;  %5814 = vmatpush1.bf16.msra.mxu1 %v9239_v6  ;;  %v9328_v5 = vld [vmem:[%s12924_s1 + $0x1204] ss:$16 sps:$4 sm:$0xff]   ;;  %v9331_v6 = vld [vmem:[%s12924_s1 + $0x120c] ss:$16 sps:$4 sm:$0xff]  }
 0x208   :  { %5282 = vmatprep.subr.bf16.mxu0 %v9244_v7  ;;  %5815 = vmatprep.subr.bf16.mxu1 %v9247_v8  ;;  %v11747_v7 = vrot.slane %v11530_v60, %v10043_v49  ;;  %v9326_v8 = vld [vmem:[%s12924_s1 + $0x1200] ss:$16 sps:$4 sm:$0xff]   ;;  %v9337_v60 = vld [vmem:[%s12924_s1 + $0x122c] ss:$16 sps:$4 sm:$0xff]  }
 0x20b   :  { %5283 = vmatpush1.bf16.msra.mxu0 %v9242_v9  ;;  %5816 = vmatpush1.bf16.msra.mxu1 %v9245_v10  ;;  %v9329_v9 = vld [vmem:[%s12924_s1 + $0x1208] ss:$16 sps:$4 sm:$0xff]   ;;  %v9334_v10 = vld [vmem:[%s12924_s1 + $0x1224] ss:$16 sps:$4 sm:$0xff]  }
 0x20c   :  { %5284 = vmatprep.subr.bf16.mxu0 %v9250_v11  ;;  %5817 = vmatprep.subr.bf16.mxu1 %v9253_v12  ;;  %v986_v11 = vcombine.high %v11561_v4, %v11561_v4  ;;  %v9332_v12 = vld [vmem:[%s12924_s1 + $0x1220] ss:$16 sps:$4 sm:$0xff]   ;;  %v9340_v4 = vld [vmem:[%s12924_s1 + $0x1244] ss:$16 sps:$4 sm:$0xff]  }
 0x20f   :  { %5285 = vmatpush1.bf16.msra.mxu0 %v9248_v14  ;;  %5818 = vmatpush1.bf16.msra.mxu1 %v9251_v52  ;;  %v9335_v14 = vld [vmem:[%s12924_s1 + $0x1228] ss:$16 sps:$4 sm:$0xff]   ;;  %v9343_v52 = vld [vmem:[%s12924_s1 + $0x124c] ss:$16 sps:$4 sm:$0xff]  }
 0x210   :  { %5286 = vmatprep.subr.bf16.mxu0 %v9256_v16  ;;  %5819 = vmatprep.subr.bf16.mxu1 %v9259_v17  ;;  %v9338_v16 = vld [vmem:[%s12924_s1 + $0x1240] ss:$16 sps:$4 sm:$0xff]   ;;  %v9341_v17 = vld [vmem:[%s12924_s1 + $0x1248] ss:$16 sps:$4 sm:$0xff]  }
 0x213   :  { %5287 = vmatpush1.bf16.msra.mxu0 %v9254_v18  ;;  %5820 = vmatpush1.bf16.msra.mxu1 %v9257_v19  ;;  %v9346_v18 = vld [vmem:[%s12924_s1 + $0x1264] ss:$16 sps:$4 sm:$0xff]   ;;  %v9349_v19 = vld [vmem:[%s12924_s1 + $0x126c] ss:$16 sps:$4 sm:$0xff]  }
 0x214   :  { %5288 = vmatprep.subr.bf16.mxu0 %v9262_v20  ;;  %5821 = vmatprep.subr.bf16.mxu1 %v9265_v21  ;;  %v9344_v20 = vld [vmem:[%s12924_s1 + $0x1260] ss:$16 sps:$4 sm:$0xff]   ;;  %v9347_v21 = vld [vmem:[%s12924_s1 + $0x1268] ss:$16 sps:$4 sm:$0xff]  }
 0x217   :  { %5289 = vmatpush1.bf16.msra.mxu0 %v9260_v22  ;;  %5822 = vmatpush1.bf16.msra.mxu1 %v9263_v23  ;;  %v9352_v22 = vld [vmem:[%s12924_s1 + $0x1284] ss:$16 sps:$4 sm:$0xff]   ;;  %v9355_v23 = vld [vmem:[%s12924_s1 + $0x128c] ss:$16 sps:$4 sm:$0xff]  }
 0x218   :  { %5290 = vmatprep.subr.bf16.mxu0 %v9268_v25  ;;  %5823 = vmatprep.subr.bf16.mxu1 %v9271_v13  ;;  %v9350_v25 = vld [vmem:[%s12924_s1 + $0x1280] ss:$16 sps:$4 sm:$0xff]   ;;  %v9353_v13 = vld [vmem:[%s12924_s1 + $0x1288] ss:$16 sps:$4 sm:$0xff]  }
 0x21b   :  { %5291 = vmatpush1.bf16.msra.mxu0 %v9266_v27  ;;  %5824 = vmatpush1.bf16.msra.mxu1 %v9269_v29  ;;  %v9358_v27 = vld [vmem:[%s12924_s1 + $0x12a4] ss:$16 sps:$4 sm:$0xff]   ;;  %v9361_v29 = vld [vmem:[%s12924_s1 + $0x12ac] ss:$16 sps:$4 sm:$0xff]  }
 0x21c   :  { %5292 = vmatprep.subr.bf16.mxu0 %v9274_v30  ;;  %5825 = vmatprep.subr.bf16.mxu1 %v9277_v31  ;;  %v9356_v30 = vld [vmem:[%s12924_s1 + $0x12a0] ss:$16 sps:$4 sm:$0xff]   ;;  %v9359_v31 = vld [vmem:[%s12924_s1 + $0x12a8] ss:$16 sps:$4 sm:$0xff]  }
 0x21f   :  { %5293 = vmatpush1.bf16.msra.mxu0 %v9272_v15  ;;  %5826 = vmatpush1.bf16.msra.mxu1 %v9275_v32  ;;  %v9364_v15 = vld [vmem:[%s12924_s1 + $0x12c4] ss:$16 sps:$4 sm:$0xff]   ;;  %v9367_v32 = vld [vmem:[%s12924_s1 + $0x12cc] ss:$16 sps:$4 sm:$0xff]  }
 0x220   :  { %5294 = vmatprep.subr.bf16.mxu0 %v9280_v33  ;;  %5827 = vmatprep.subr.bf16.mxu1 %v9283_v26  ;;  %v9362_v33 = vld [vmem:[%s12924_s1 + $0x12c0] ss:$16 sps:$4 sm:$0xff]   ;;  %v9365_v26 = vld [vmem:[%s12924_s1 + $0x12c8] ss:$16 sps:$4 sm:$0xff]  }
 0x223   :  { %5295 = vmatpush1.bf16.msra.mxu0 %v9278_v34  ;;  %5828 = vmatpush1.bf16.msra.mxu1 %v9281_v35  ;;  %v9370_v34 = vld [vmem:[%s12924_s1 + $0x12e4] ss:$16 sps:$4 sm:$0xff]   ;;  %v9373_v35 = vld [vmem:[%s12924_s1 + $0x12ec] ss:$16 sps:$4 sm:$0xff]  }
 0x224   :  { %5296 = vmatprep.subr.bf16.mxu0 %v9286_v37  ;;  %5829 = vmatprep.subr.bf16.mxu1 %v9289_v28  ;;  %v9368_v37 = vld [vmem:[%s12924_s1 + $0x12e0] ss:$16 sps:$4 sm:$0xff]   ;;  %v9371_v28 = vld [vmem:[%s12924_s1 + $0x12e8] ss:$16 sps:$4 sm:$0xff]  }
 0x227   :  { %5297 = vmatpush1.bf16.msra.mxu0 %v9284_v39  ;;  %5830 = vmatpush1.bf16.msra.mxu1 %v9287_v41  ;;  %v9376_v39 = vld [vmem:[%s12924_s1 + $0x1304] ss:$16 sps:$4 sm:$0xff]   ;;  %v9379_v41 = vld [vmem:[%s12924_s1 + $0x130c] ss:$16 sps:$4 sm:$0xff]  }
 0x228   :  { %5298 = vmatprep.subr.bf16.mxu0 %v9292_v43  ;;  %5831 = vmatprep.subr.bf16.mxu1 %v9295_v44  ;;  %v9374_v43 = vld [vmem:[%s12924_s1 + $0x1300] ss:$16 sps:$4 sm:$0xff]   ;;  %v9377_v44 = vld [vmem:[%s12924_s1 + $0x1308] ss:$16 sps:$4 sm:$0xff]  }
 0x22b   :  { %5299 = vmatpush1.bf16.msra.mxu0 %v9290_v45  ;;  %5832 = vmatpush1.bf16.msra.mxu1 %v9293_v46  ;;  %v9382_v45 = vld [vmem:[%s12924_s1 + $0x1324] ss:$16 sps:$4 sm:$0xff]   ;;  %v9385_v46 = vld [vmem:[%s12924_s1 + $0x132c] ss:$16 sps:$4 sm:$0xff]  }
 0x22c   :  { %5300 = vmatprep.subr.bf16.mxu0 %v9298_v47  ;;  %5833 = vmatprep.subr.bf16.mxu1 %v9301_v38  ;;  %v9380_v47 = vld [vmem:[%s12924_s1 + $0x1320] ss:$16 sps:$4 sm:$0xff]   ;;  %v9383_v38 = vld [vmem:[%s12924_s1 + $0x1328] ss:$16 sps:$4 sm:$0xff]  }
 0x22f   :  { %5301 = vmatpush1.bf16.msra.mxu0 %v9296_v48  ;;  %5834 = vmatpush1.bf16.msra.mxu1 %v9299_v50  ;;  %v9388_v48 = vld [vmem:[%s12924_s1 + $0x1344] ss:$16 sps:$4 sm:$0xff]   ;;  %v9391_v50 = vld [vmem:[%s12924_s1 + $0x134c] ss:$16 sps:$4 sm:$0xff]  }
 0x230   :  { %5302 = vmatprep.subr.bf16.mxu0 %v9304_v51  ;;  %5835 = vmatprep.subr.bf16.mxu1 %v9307_v53  ;;  %v9386_v51 = vld [vmem:[%s12924_s1 + $0x1340] ss:$16 sps:$4 sm:$0xff]   ;;  %v9389_v53 = vld [vmem:[%s12924_s1 + $0x1348] ss:$16 sps:$4 sm:$0xff]  }
 0x233   :  { %5303 = vmatpush1.bf16.msra.mxu0 %v9302_v40  ;;  %5836 = vmatpush1.bf16.msra.mxu1 %v9305_v56  ;;  %v9394_v40 = vld [vmem:[%s12924_s1 + $0x1364] ss:$16 sps:$4 sm:$0xff]   ;;  %v9397_v56 = vld [vmem:[%s12924_s1 + $0x136c] ss:$16 sps:$4 sm:$0xff]  }
 0x234   :  { %5304 = vmatprep.subr.bf16.mxu0 %v9310_v58  ;;  %5837 = vmatprep.subr.bf16.mxu1 %v9313_v59  ;;  %v9392_v58 = vld [vmem:[%s12924_s1 + $0x1360] ss:$16 sps:$4 sm:$0xff]   ;;  %v9395_v59 = vld [vmem:[%s12924_s1 + $0x1368] ss:$16 sps:$4 sm:$0xff]  }
 0x237   :  { %5305 = vmatpush1.bf16.msra.mxu0 %v9308_v24  ;;  %5838 = vmatpush1.bf16.msra.mxu1 %v9311_v61  ;;  %v9400_v24 = vld [vmem:[%s12924_s1 + $0x1384] ss:$16 sps:$4 sm:$0xff]   ;;  %v9403_v61 = vld [vmem:[%s12924_s1 + $0x138c] ss:$16 sps:$4 sm:$0xff]  }
 0x238   :  { %5306 = vmatprep.subr.bf16.mxu0 %v9316_v62  ;;  %5839 = vmatprep.subr.bf16.mxu1 %v9319_v63  ;;  %v9398_v62 = vld [vmem:[%s12924_s1 + $0x1380] ss:$16 sps:$4 sm:$0xff]   ;;  %v9401_v63 = vld [vmem:[%s12924_s1 + $0x1388] ss:$16 sps:$4 sm:$0xff]  }
 0x23b   :  { %5307 = vmatpush1.bf16.msra.mxu0 %v9314_v55  ;;  %5840 = vmatpush1.bf16.msra.mxu1 %v9317_v0  ;;  %v9406_v55 = vld [vmem:[%s12924_s1 + $0x13a4] ss:$16 sps:$4 sm:$0xff]   ;;  %v9409_v0 = vld [vmem:[%s12924_s1 + $0x13ac] ss:$16 sps:$4 sm:$0xff]  }
 0x23c   :  { %5308 = vmatprep.subr.bf16.mxu0 %v9322_v1  ;;  %5841 = vmatprep.subr.bf16.mxu1 %v9325_v2  ;;  %v9404_v1 = vld [vmem:[%s12924_s1 + $0x13a0] ss:$16 sps:$4 sm:$0xff]   ;;  %v9407_v2 = vld [vmem:[%s12924_s1 + $0x13a8] ss:$16 sps:$4 sm:$0xff]  }
 0x23f   :  { %5309 = vmatpush1.bf16.msra.mxu0 %v9320_v3  ;;  %5842 = vmatpush1.bf16.msra.mxu1 %v9323_v57  ;;  %v9412_v3 = vld [vmem:[%s12924_s1 + $0x13c4] ss:$16 sps:$4 sm:$0xff]   ;;  %v9415_v57 = vld [vmem:[%s12924_s1 + $0x13cc] ss:$16 sps:$4 sm:$0xff]  }
 0x240   :  { %5319 = vmatprep.subr.bf16.mxu0 %v9328_v5  ;;  %5852 = vmatprep.subr.bf16.mxu1 %v9331_v6  ;;  %v939_v5 = vcombine.high %v11514_v54, %v11514_v54  ;;  %v9410_v6 = vld [vmem:[%s12924_s1 + $0x13c0] ss:$16 sps:$4 sm:$0xff]   ;;  %v9421_v54 = vld [vmem:[%s12924_s1 + $0x13ec] ss:$16 sps:$4 sm:$0xff]  }
 0x242   :  { %5311 = vmatmul.mubr.bf16.vlgmr.msra.gmra.mrb[0].mxu0 %v11747_v7  ;;  %5844 = vmatmul.mubr.bf16.vlgmr.msra.gmra.mrb[0].mxu1 %v11747_v7 }
 0x243   :  { %5320 = vmatpush1.bf16.msra.mxu0 %v9326_v8  ;;  %5853 = vmatpush1.bf16.msra.mxu1 %v9329_v9  ;;  %v9413_v8 = vld [vmem:[%s12924_s1 + $0x13c8] ss:$16 sps:$4 sm:$0xff]   ;;  %v9418_v9 = vld [vmem:[%s12924_s1 + $0x13e4] ss:$16 sps:$4 sm:$0xff]  }
 0x244   :  { %5321 = vmatprep.subr.bf16.mxu0 %v9334_v10  ;;  %5854 = vmatprep.subr.bf16.mxu1 %v9337_v60  ;;  %v11936_v10 = vrot.slane %v939_v5, %v10043_v49  ;;  %v9416_v60 = vld [vmem:[%s12924_s1 + $0x13e0] ss:$16 sps:$4 sm:$0xff]   ;;  %v9499_v5 = vld [vmem:[%s12924_s1 + $0x158c] ss:$16 sps:$4 sm:$0xff]  }
 0x245   :  { %5351 = vmatprep.mubr.bf16.mxu0 %v986_v11  ;;  %5884 = vmatprep.mubr.bf16.mxu1 %v986_v11  ;;  %v9419_v11 = vld [vmem:[%s12924_s1 + $0x13e8] ss:$16 sps:$4 sm:$0xff]  }
 0x247   :  { %5322 = vmatpush1.bf16.msra.mxu0 %v9332_v12  ;;  %5855 = vmatpush1.bf16.msra.mxu1 %v9335_v14  ;;  %v9424_v12 = vld [vmem:[%s12924_s1 + $0x1404] ss:$16 sps:$4 sm:$0xff]   ;;  %v9427_v14 = vld [vmem:[%s12924_s1 + $0x140c] ss:$16 sps:$4 sm:$0xff]  }
 0x248   :  { %5323 = vmatprep.subr.bf16.mxu0 %v9340_v4  ;;  %5856 = vmatprep.subr.bf16.mxu1 %v9343_v52  ;;  %v955_v4 = vcombine.high %v11936_v10, %v11936_v10  ;;  %v984_v52 = vcombine.high %v11747_v7, %v11747_v7  ;;  %v9433_v7 = vld [vmem:[%s12924_s1 + $0x142c] ss:$16 sps:$4 sm:$0xff]  }
 0x24b   :  { %5324 = vmatpush1.bf16.msra.mxu0 %v9338_v16  ;;  %5857 = vmatpush1.bf16.msra.mxu1 %v9341_v17  ;;  %v9422_v16 = vld [vmem:[%s12924_s1 + $0x1400] ss:$16 sps:$4 sm:$0xff]   ;;  %v9425_v17 = vld [vmem:[%s12924_s1 + $0x1408] ss:$16 sps:$4 sm:$0xff]  }
 0x24c   :  { %5325 = vmatprep.subr.bf16.mxu0 %v9346_v18  ;;  %5858 = vmatprep.subr.bf16.mxu1 %v9349_v19  ;;  %v9430_v18 = vld [vmem:[%s12924_s1 + $0x1424] ss:$16 sps:$4 sm:$0xff]   ;;  %v11967_v19 = vrot.slane %v955_v4, %v10043_v49  ;;  %v9506_v4 = vld [vmem:[%s12924_s1 + $0x15c0] ss:$16 sps:$4 sm:$0xff]  }
 0x24f   :  { %5326 = vmatpush1.bf16.msra.mxu0 %v9344_v20  ;;  %5859 = vmatpush1.bf16.msra.mxu1 %v9347_v21  ;;  %v9428_v20 = vld [vmem:[%s12924_s1 + $0x1420] ss:$16 sps:$4 sm:$0xff]   ;;  %v9431_v21 = vld [vmem:[%s12924_s1 + $0x1428] ss:$16 sps:$4 sm:$0xff]  }
 0x250   :  { %5327 = vmatprep.subr.bf16.mxu0 %v9352_v22  ;;  %5860 = vmatprep.subr.bf16.mxu1 %v9355_v23  ;;  %v9436_v22 = vld [vmem:[%s12924_s1 + $0x1444] ss:$16 sps:$4 sm:$0xff]   ;;  %v9439_v23 = vld [vmem:[%s12924_s1 + $0x144c] ss:$16 sps:$4 sm:$0xff]  }
 0x253   :  { %5328 = vmatpush1.bf16.msra.mxu0 %v9350_v25  ;;  %5861 = vmatpush1.bf16.msra.mxu1 %v9353_v13  ;;  %v9434_v25 = vld [vmem:[%s12924_s1 + $0x1440] ss:$16 sps:$4 sm:$0xff]   ;;  %v9437_v13 = vld [vmem:[%s12924_s1 + $0x1448] ss:$16 sps:$4 sm:$0xff]  }
 0x254   :  { %5329 = vmatprep.subr.bf16.mxu0 %v9358_v27  ;;  %5862 = vmatprep.subr.bf16.mxu1 %v9361_v29  ;;  %v9442_v27 = vld [vmem:[%s12924_s1 + $0x1464] ss:$16 sps:$4 sm:$0xff]   ;;  %v9445_v29 = vld [vmem:[%s12924_s1 + $0x146c] ss:$16 sps:$4 sm:$0xff]  }
 0x257   :  { %5330 = vmatpush1.bf16.msra.mxu0 %v9356_v30  ;;  %5863 = vmatpush1.bf16.msra.mxu1 %v9359_v31  ;;  %v9440_v30 = vld [vmem:[%s12924_s1 + $0x1460] ss:$16 sps:$4 sm:$0xff]   ;;  %v9443_v31 = vld [vmem:[%s12924_s1 + $0x1468] ss:$16 sps:$4 sm:$0xff]  }
 0x258   :  { %5331 = vmatprep.subr.bf16.mxu0 %v9364_v15  ;;  %5864 = vmatprep.subr.bf16.mxu1 %v9367_v32  ;;  %v9448_v15 = vld [vmem:[%s12924_s1 + $0x1484] ss:$16 sps:$4 sm:$0xff]   ;;  %v9451_v32 = vld [vmem:[%s12924_s1 + $0x148c] ss:$16 sps:$4 sm:$0xff]  }
 0x25b   :  { %5332 = vmatpush1.bf16.msra.mxu0 %v9362_v33  ;;  %5865 = vmatpush1.bf16.msra.mxu1 %v9365_v26  ;;  %v9446_v33 = vld [vmem:[%s12924_s1 + $0x1480] ss:$16 sps:$4 sm:$0xff]   ;;  %v9449_v26 = vld [vmem:[%s12924_s1 + $0x1488] ss:$16 sps:$4 sm:$0xff]  }
 0x25c   :  { %5333 = vmatprep.subr.bf16.mxu0 %v9370_v34  ;;  %5866 = vmatprep.subr.bf16.mxu1 %v9373_v35  ;;  %v9454_v34 = vld [vmem:[%s12924_s1 + $0x14a4] ss:$16 sps:$4 sm:$0xff]   ;;  %v9457_v35 = vld [vmem:[%s12924_s1 + $0x14ac] ss:$16 sps:$4 sm:$0xff]  }
 0x25f   :  { %5334 = vmatpush1.bf16.msra.mxu0 %v9368_v37  ;;  %5867 = vmatpush1.bf16.msra.mxu1 %v9371_v28  ;;  %v9866_v37 = vmov 0   ;;  %v9452_v28 = vld [vmem:[%s12924_s1 + $0x14a0] ss:$16 sps:$4 sm:$0xff]  }
 0x260   :  { %5335 = vmatprep.subr.bf16.mxu0 %v9376_v39  ;;  %5868 = vmatprep.subr.bf16.mxu1 %v9379_v41  ;;  %v9455_v39 = vld [vmem:[%s12924_s1 + $0x14a8] ss:$16 sps:$4 sm:$0xff]   ;;  %v9460_v41 = vld [vmem:[%s12924_s1 + $0x14c4] ss:$16 sps:$4 sm:$0xff]  }
 0x261   :  { %8459 = vset.pattern.permute.xlu0 %v9866_v37 }
 0x263   :  { %5336 = vmatpush1.bf16.msra.mxu0 %v9374_v43  ;;  %5869 = vmatpush1.bf16.msra.mxu1 %v9377_v44  ;;  %v9463_v43 = vld [vmem:[%s12924_s1 + $0x14cc] ss:$16 sps:$4 sm:$0xff]   ;;  %v9458_v44 = vld [vmem:[%s12924_s1 + $0x14c0] ss:$16 sps:$4 sm:$0xff]  }
 0x264   :  { %5337 = vmatprep.subr.bf16.mxu0 %v9382_v45  ;;  %5870 = vmatprep.subr.bf16.mxu1 %v9385_v46  ;;  %v9461_v45 = vld [vmem:[%s12924_s1 + $0x14c8] ss:$16 sps:$4 sm:$0xff]   ;;  %v9466_v46 = vld [vmem:[%s12924_s1 + $0x14e4] ss:$16 sps:$4 sm:$0xff]  }
 0x267   :  { %5338 = vmatpush1.bf16.msra.mxu0 %v9380_v47  ;;  %5871 = vmatpush1.bf16.msra.mxu1 %v9383_v38  ;;  %v9469_v47 = vld [vmem:[%s12924_s1 + $0x14ec] ss:$16 sps:$4 sm:$0xff]   ;;  %v9464_v38 = vld [vmem:[%s12924_s1 + $0x14e0] ss:$16 sps:$4 sm:$0xff]  }
 0x268   :  { %5339 = vmatprep.subr.bf16.mxu0 %v9388_v48  ;;  %5872 = vmatprep.subr.bf16.mxu1 %v9391_v50  ;;  %v9467_v48 = vld [vmem:[%s12924_s1 + $0x14e8] ss:$16 sps:$4 sm:$0xff]   ;;  %v9472_v50 = vld [vmem:[%s12924_s1 + $0x1504] ss:$16 sps:$4 sm:$0xff]  }
 0x26b   :  { %5340 = vmatpush1.bf16.msra.mxu0 %v9386_v51  ;;  %5873 = vmatpush1.bf16.msra.mxu1 %v9389_v53  ;;  %v9475_v51 = vld [vmem:[%s12924_s1 + $0x150c] ss:$16 sps:$4 sm:$0xff]   ;;  %v9470_v53 = vld [vmem:[%s12924_s1 + $0x1500] ss:$16 sps:$4 sm:$0xff]  }
 0x26c   :  { %5341 = vmatprep.subr.bf16.mxu0 %v9394_v40  ;;  %5874 = vmatprep.subr.bf16.mxu1 %v9397_v56  ;;  %v9473_v40 = vld [vmem:[%s12924_s1 + $0x1508] ss:$16 sps:$4 sm:$0xff]   ;;  %v9478_v56 = vld [vmem:[%s12924_s1 + $0x1524] ss:$16 sps:$4 sm:$0xff]  }
 0x26f   :  { %5342 = vmatpush1.bf16.msra.mxu0 %v9392_v58  ;;  %5875 = vmatpush1.bf16.msra.mxu1 %v9395_v59  ;;  %v9481_v58 = vld [vmem:[%s12924_s1 + $0x152c] ss:$16 sps:$4 sm:$0xff]   ;;  %v9476_v59 = vld [vmem:[%s12924_s1 + $0x1520] ss:$16 sps:$4 sm:$0xff]  }
 0x270   :  { %5343 = vmatprep.subr.bf16.mxu0 %v9400_v24  ;;  %5876 = vmatprep.subr.bf16.mxu1 %v9403_v61  ;;  %v9479_v24 = vld [vmem:[%s12924_s1 + $0x1528] ss:$16 sps:$4 sm:$0xff]   ;;  %v9484_v61 = vld [vmem:[%s12924_s1 + $0x1544] ss:$16 sps:$4 sm:$0xff]  }
 0x273   :  { %5344 = vmatpush1.bf16.msra.mxu0 %v9398_v62  ;;  %5877 = vmatpush1.bf16.msra.mxu1 %v9401_v63  ;;  %v9487_v62 = vld [vmem:[%s12924_s1 + $0x154c] ss:$16 sps:$4 sm:$0xff]   ;;  %v9482_v63 = vld [vmem:[%s12924_s1 + $0x1540] ss:$16 sps:$4 sm:$0xff]  }
 0x274   :  { %5345 = vmatprep.subr.bf16.mxu0 %v9406_v55  ;;  %5878 = vmatprep.subr.bf16.mxu1 %v9409_v0  ;;  %v9485_v55 = vld [vmem:[%s12924_s1 + $0x1548] ss:$16 sps:$4 sm:$0xff]   ;;  %v9490_v0 = vld [vmem:[%s12924_s1 + $0x1564] ss:$16 sps:$4 sm:$0xff]  }
 0x277   :  { %5346 = vmatpush1.bf16.msra.mxu0 %v9404_v1  ;;  %5879 = vmatpush1.bf16.msra.mxu1 %v9407_v2  ;;  %v9493_v1 = vld [vmem:[%s12924_s1 + $0x156c] ss:$16 sps:$4 sm:$0xff]   ;;  %v9488_v2 = vld [vmem:[%s12924_s1 + $0x1560] ss:$16 sps:$4 sm:$0xff]  }
 0x278   :  { %5347 = vmatprep.subr.bf16.mxu0 %v9412_v3  ;;  %5880 = vmatprep.subr.bf16.mxu1 %v9415_v57  ;;  %v9491_v3 = vld [vmem:[%s12924_s1 + $0x1568] ss:$16 sps:$4 sm:$0xff]   ;;  %v9496_v57 = vld [vmem:[%s12924_s1 + $0x1584] ss:$16 sps:$4 sm:$0xff]  }
 0x27b   :  { %5348 = vmatpush1.bf16.msra.mxu0 %v9410_v6  ;;  %5881 = vmatpush1.bf16.msra.mxu1 %v9413_v8  ;;  %v9494_v6 = vld [vmem:[%s12924_s1 + $0x1580] ss:$16 sps:$4 sm:$0xff]   ;;  %v9497_v8 = vld [vmem:[%s12924_s1 + $0x1588] ss:$16 sps:$4 sm:$0xff]  }
 0x27c   :  { %5349 = vmatprep.subr.bf16.mxu0 %v9418_v9  ;;  %5882 = vmatprep.subr.bf16.mxu1 %v9421_v54  ;;  %v9502_v9 = vld [vmem:[%s12924_s1 + $0x15a4] ss:$16 sps:$4 sm:$0xff]   ;;  %v9505_v54 = vld [vmem:[%s12924_s1 + $0x15ac] ss:$16 sps:$4 sm:$0xff]  }
 0x27f   :  { %5350 = vmatpush1.bf16.msra.mxu0 %v9416_v60  ;;  %5883 = vmatpush1.bf16.msra.mxu1 %v9419_v11  ;;  %v9500_v60 = vld [vmem:[%s12924_s1 + $0x15a0] ss:$16 sps:$4 sm:$0xff]   ;;  %v9503_v11 = vld [vmem:[%s12924_s1 + $0x15a8] ss:$16 sps:$4 sm:$0xff]  }
 0x280   :  { %5360 = vmatprep.subr.bf16.mxu0 %v9424_v12  ;;  %5893 = vmatprep.subr.bf16.mxu1 %v9427_v14  ;;  %v9508_v12 = vld [vmem:[%s12924_s1 + $0x15c4] ss:$16 sps:$4 sm:$0xff]   ;;  %v9511_v14 = vld [vmem:[%s12924_s1 + $0x15cc] ss:$16 sps:$4 sm:$0xff]  }
 0x282   :  { %5352 = vmatmul.mubr.bf16.vlgmr.msra.gmra.mrb[0].mxu0 %v984_v52  ;;  %5885 = vmatmul.mubr.bf16.vlgmr.msra.gmra.mrb[0].mxu1 %v984_v52  ;;  %v9509_v52 = vld [vmem:[%s12924_s1 + $0x15c8] ss:$16 sps:$4 sm:$0xff]  }
 0x283   :  { %5361 = vmatpush1.bf16.msra.mxu0 %v9422_v16  ;;  %5894 = vmatpush1.bf16.msra.mxu1 %v9425_v17  ;;  %v9514_v16 = vld [vmem:[%s12924_s1 + $0x15e4] ss:$16 sps:$4 sm:$0xff]   ;;  %v9517_v17 = vld [vmem:[%s12924_s1 + $0x15ec] ss:$16 sps:$4 sm:$0xff]  }
 0x284   :  { %5362 = vmatprep.subr.bf16.mxu0 %v9430_v18  ;;  %5895 = vmatprep.subr.bf16.mxu1 %v9433_v7  ;;  %v9512_v18 = vld [vmem:[%s12924_s1 + $0x15e0] ss:$16 sps:$4 sm:$0xff]   ;;  %v9515_v7 = vld [vmem:[%s12924_s1 + $0x15e8] ss:$16 sps:$4 sm:$0xff]  }
 0x285   :  { %5392 = vmatprep.mubr.bf16.mxu0 %v11967_v19  ;;  %5925 = vmatprep.mubr.bf16.mxu1 %v11967_v19 }
 0x287   :  { %5363 = vmatpush1.bf16.msra.mxu0 %v9428_v20  ;;  %5896 = vmatpush1.bf16.msra.mxu1 %v9431_v21  ;;  %v9521_v20 = vld [vmem:[%s12924_s1 + $0x1604] ss:$16 sps:$4 sm:$0xff]   ;;  %v9524_v21 = vld [vmem:[%s12924_s1 + $0x160c] ss:$16 sps:$4 sm:$0xff]  }
 0x288   :  { %5364 = vmatprep.subr.bf16.mxu0 %v9436_v22  ;;  %5897 = vmatprep.subr.bf16.mxu1 %v9439_v23  ;;  %v12154_v22 = vrot.slane %v11936_v10, %v10043_v49  ;;  %v9519_v23 = vld [vmem:[%s12924_s1 + $0x1600] ss:$16 sps:$4 sm:$0xff]   ;;  %v9530_v10 = vld [vmem:[%s12924_s1 + $0x162c] ss:$16 sps:$4 sm:$0xff]  }
 0x28b   :  { %5365 = vmatpush1.bf16.msra.mxu0 %v9434_v25  ;;  %5898 = vmatpush1.bf16.msra.mxu1 %v9437_v13  ;;  %v9522_v25 = vld [vmem:[%s12924_s1 + $0x1608] ss:$16 sps:$4 sm:$0xff]   ;;  %v9527_v13 = vld [vmem:[%s12924_s1 + $0x1624] ss:$16 sps:$4 sm:$0xff]  }
 0x28c   :  { %5366 = vmatprep.subr.bf16.mxu0 %v9442_v27  ;;  %5899 = vmatprep.subr.bf16.mxu1 %v9445_v29  ;;  %v987_v27 = vcombine.high %v11967_v19, %v11967_v19  ;;  %v9525_v29 = vld [vmem:[%s12924_s1 + $0x1620] ss:$16 sps:$4 sm:$0xff]   ;;  %v9533_v19 = vld [vmem:[%s12924_s1 + $0x1644] ss:$16 sps:$4 sm:$0xff]  }
 0x28f   :  { %5367 = vmatpush1.bf16.msra.mxu0 %v9440_v30  ;;  %5900 = vmatpush1.bf16.msra.mxu1 %v9443_v31  ;;  %v9528_v30 = vld [vmem:[%s12924_s1 + $0x1628] ss:$16 sps:$4 sm:$0xff]   ;;  %v9536_v31 = vld [vmem:[%s12924_s1 + $0x164c] ss:$16 sps:$4 sm:$0xff]  }
 0x290   :  { %5368 = vmatprep.subr.bf16.mxu0 %v9448_v15  ;;  %5901 = vmatprep.subr.bf16.mxu1 %v9451_v32  ;;  %v9531_v15 = vld [vmem:[%s12924_s1 + $0x1640] ss:$16 sps:$4 sm:$0xff]   ;;  %v9534_v32 = vld [vmem:[%s12924_s1 + $0x1648] ss:$16 sps:$4 sm:$0xff]  }
 0x293   :  { %5369 = vmatpush1.bf16.msra.mxu0 %v9446_v33  ;;  %5902 = vmatpush1.bf16.msra.mxu1 %v9449_v26  ;;  %v9539_v33 = vld [vmem:[%s12924_s1 + $0x1664] ss:$16 sps:$4 sm:$0xff]   ;;  %v9542_v26 = vld [vmem:[%s12924_s1 + $0x166c] ss:$16 sps:$4 sm:$0xff]  }
 0x294   :  { %5370 = vmatprep.subr.bf16.mxu0 %v9454_v34  ;;  %5903 = vmatprep.subr.bf16.mxu1 %v9457_v35  ;;  %v9537_v34 = vld [vmem:[%s12924_s1 + $0x1660] ss:$16 sps:$4 sm:$0xff]   ;;  %v9540_v35 = vld [vmem:[%s12924_s1 + $0x1668] ss:$16 sps:$4 sm:$0xff]  }
 0x297   :  { %5371 = vmatpush1.bf16.msra.mxu0 %v9452_v28  ;;  %5904 = vmatpush1.bf16.msra.mxu1 %v9455_v39  ;;  %v9545_v28 = vld [vmem:[%s12924_s1 + $0x1684] ss:$16 sps:$4 sm:$0xff]   ;;  %v9548_v39 = vld [vmem:[%s12924_s1 + $0x168c] ss:$16 sps:$4 sm:$0xff]  }
 0x298   :  { %5372 = vmatprep.subr.bf16.mxu0 %v9460_v41  ;;  %5905 = vmatprep.subr.bf16.mxu1 %v9463_v43  ;;  %v9543_v41 = vld [vmem:[%s12924_s1 + $0x1680] ss:$16 sps:$4 sm:$0xff]   ;;  %v9546_v43 = vld [vmem:[%s12924_s1 + $0x1688] ss:$16 sps:$4 sm:$0xff]  }
 0x29b   :  { %5373 = vmatpush1.bf16.msra.mxu0 %v9458_v44  ;;  %5906 = vmatpush1.bf16.msra.mxu1 %v9461_v45  ;;  %v9551_v44 = vld [vmem:[%s12924_s1 + $0x16a4] ss:$16 sps:$4 sm:$0xff]   ;;  %v9554_v45 = vld [vmem:[%s12924_s1 + $0x16ac] ss:$16 sps:$4 sm:$0xff]  }
 0x29c   :  { %5374 = vmatprep.subr.bf16.mxu0 %v9466_v46  ;;  %5907 = vmatprep.subr.bf16.mxu1 %v9469_v47  ;;  %v9549_v46 = vld [vmem:[%s12924_s1 + $0x16a0] ss:$16 sps:$4 sm:$0xff]   ;;  %v9552_v47 = vld [vmem:[%s12924_s1 + $0x16a8] ss:$16 sps:$4 sm:$0xff]  }
 0x29f   :  { %5375 = vmatpush1.bf16.msra.mxu0 %v9464_v38  ;;  %5908 = vmatpush1.bf16.msra.mxu1 %v9467_v48  ;;  %v9557_v38 = vld [vmem:[%s12924_s1 + $0x16c4] ss:$16 sps:$4 sm:$0xff]   ;;  %v9560_v48 = vld [vmem:[%s12924_s1 + $0x16cc] ss:$16 sps:$4 sm:$0xff]  }
 0x2a0   :  { %5376 = vmatprep.subr.bf16.mxu0 %v9472_v50  ;;  %5909 = vmatprep.subr.bf16.mxu1 %v9475_v51  ;;  %v9555_v50 = vld [vmem:[%s12924_s1 + $0x16c0] ss:$16 sps:$4 sm:$0xff]   ;;  %v9558_v51 = vld [vmem:[%s12924_s1 + $0x16c8] ss:$16 sps:$4 sm:$0xff]  }
 0x2a3   :  { %5377 = vmatpush1.bf16.msra.mxu0 %v9470_v53  ;;  %5910 = vmatpush1.bf16.msra.mxu1 %v9473_v40  ;;  %v9563_v53 = vld [vmem:[%s12924_s1 + $0x16e4] ss:$16 sps:$4 sm:$0xff]   ;;  %v9566_v40 = vld [vmem:[%s12924_s1 + $0x16ec] ss:$16 sps:$4 sm:$0xff]  }
 0x2a4   :  { %5378 = vmatprep.subr.bf16.mxu0 %v9478_v56  ;;  %5911 = vmatprep.subr.bf16.mxu1 %v9481_v58  ;;  %v9561_v56 = vld [vmem:[%s12924_s1 + $0x16e0] ss:$16 sps:$4 sm:$0xff]   ;;  %v9564_v58 = vld [vmem:[%s12924_s1 + $0x16e8] ss:$16 sps:$4 sm:$0xff]  }
 0x2a7   :  { %5379 = vmatpush1.bf16.msra.mxu0 %v9476_v59  ;;  %5912 = vmatpush1.bf16.msra.mxu1 %v9479_v24  ;;  %v9569_v59 = vld [vmem:[%s12924_s1 + $0x1704] ss:$16 sps:$4 sm:$0xff]   ;;  %v9572_v24 = vld [vmem:[%s12924_s1 + $0x170c] ss:$16 sps:$4 sm:$0xff]  }
 0x2a8   :  { %5380 = vmatprep.subr.bf16.mxu0 %v9484_v61  ;;  %5913 = vmatprep.subr.bf16.mxu1 %v9487_v62  ;;  %v9567_v61 = vld [vmem:[%s12924_s1 + $0x1700] ss:$16 sps:$4 sm:$0xff]   ;;  %v9570_v62 = vld [vmem:[%s12924_s1 + $0x1708] ss:$16 sps:$4 sm:$0xff]  }
 0x2ab   :  { %5381 = vmatpush1.bf16.msra.mxu0 %v9482_v63  ;;  %5914 = vmatpush1.bf16.msra.mxu1 %v9485_v55  ;;  %v9575_v63 = vld [vmem:[%s12924_s1 + $0x1724] ss:$16 sps:$4 sm:$0xff]   ;;  %v9578_v55 = vld [vmem:[%s12924_s1 + $0x172c] ss:$16 sps:$4 sm:$0xff]  }
 0x2ac   :  { %5382 = vmatprep.subr.bf16.mxu0 %v9490_v0  ;;  %5915 = vmatprep.subr.bf16.mxu1 %v9493_v1  ;;  %v9573_v0 = vld [vmem:[%s12924_s1 + $0x1720] ss:$16 sps:$4 sm:$0xff]   ;;  %v9576_v1 = vld [vmem:[%s12924_s1 + $0x1728] ss:$16 sps:$4 sm:$0xff]  }
 0x2af   :  { %5383 = vmatpush1.bf16.msra.mxu0 %v9488_v2  ;;  %5916 = vmatpush1.bf16.msra.mxu1 %v9491_v3  ;;  %v9581_v2 = vld [vmem:[%s12924_s1 + $0x1744] ss:$16 sps:$4 sm:$0xff]   ;;  %v9584_v3 = vld [vmem:[%s12924_s1 + $0x174c] ss:$16 sps:$4 sm:$0xff]  }
 0x2b0   :  { %5384 = vmatprep.subr.bf16.mxu0 %v9496_v57  ;;  %5917 = vmatprep.subr.bf16.mxu1 %v9499_v5  ;;  %v9579_v57 = vld [vmem:[%s12924_s1 + $0x1740] ss:$16 sps:$4 sm:$0xff]   ;;  %v9582_v5 = vld [vmem:[%s12924_s1 + $0x1748] ss:$16 sps:$4 sm:$0xff]  }
 0x2b3   :  { %5385 = vmatpush1.bf16.msra.mxu0 %v9494_v6  ;;  %5918 = vmatpush1.bf16.msra.mxu1 %v9497_v8  ;;  %v9587_v6 = vld [vmem:[%s12924_s1 + $0x1764] ss:$16 sps:$4 sm:$0xff]   ;;  %v9590_v8 = vld [vmem:[%s12924_s1 + $0x176c] ss:$16 sps:$4 sm:$0xff]  }
 0x2b4   :  { %5386 = vmatprep.subr.bf16.mxu0 %v9502_v9  ;;  %5919 = vmatprep.subr.bf16.mxu1 %v9505_v54  ;;  %v9585_v9 = vld [vmem:[%s12924_s1 + $0x1760] ss:$16 sps:$4 sm:$0xff]   ;;  %v9588_v54 = vld [vmem:[%s12924_s1 + $0x1768] ss:$16 sps:$4 sm:$0xff]  }
 0x2b7   :  { %5387 = vmatpush1.bf16.msra.mxu0 %v9500_v60  ;;  %5920 = vmatpush1.bf16.msra.mxu1 %v9503_v11  ;;  %v9593_v60 = vld [vmem:[%s12924_s1 + $0x1784] ss:$16 sps:$4 sm:$0xff]   ;;  %v9596_v11 = vld [vmem:[%s12924_s1 + $0x178c] ss:$16 sps:$4 sm:$0xff]  }
 0x2b8   :  { %5388 = vmatprep.subr.bf16.mxu0 %v9508_v12  ;;  %5921 = vmatprep.subr.bf16.mxu1 %v9511_v14  ;;  %v9591_v12 = vld [vmem:[%s12924_s1 + $0x1780] ss:$16 sps:$4 sm:$0xff]   ;;  %v9594_v14 = vld [vmem:[%s12924_s1 + $0x1788] ss:$16 sps:$4 sm:$0xff]  }
 0x2bb   :  { %5389 = vmatpush1.bf16.msra.mxu0 %v9506_v4  ;;  %5922 = vmatpush1.bf16.msra.mxu1 %v9509_v52  ;;  %v9599_v4 = vld [vmem:[%s12924_s1 + $0x17a4] ss:$16 sps:$4 sm:$0xff]   ;;  %v9602_v52 = vld [vmem:[%s12924_s1 + $0x17ac] ss:$16 sps:$4 sm:$0xff]  }
 0x2bc   :  { %5390 = vmatprep.subr.bf16.mxu0 %v9514_v16  ;;  %5923 = vmatprep.subr.bf16.mxu1 %v9517_v17  ;;  %v9597_v16 = vld [vmem:[%s12924_s1 + $0x17a0] ss:$16 sps:$4 sm:$0xff]   ;;  %v9600_v17 = vld [vmem:[%s12924_s1 + $0x17a8] ss:$16 sps:$4 sm:$0xff]  }
 0x2bf   :  { %5391 = vmatpush1.bf16.msra.mxu0 %v9512_v18  ;;  %5924 = vmatpush1.bf16.msra.mxu1 %v9515_v7  ;;  %v9605_v18 = vld [vmem:[%s12924_s1 + $0x17c4] ss:$16 sps:$4 sm:$0xff]   ;;  %v9608_v7 = vld [vmem:[%s12924_s1 + $0x17cc] ss:$16 sps:$4 sm:$0xff]  }
 0x2c0   :  { %5401 = vmatprep.subr.bf16.mxu0 %v9521_v20  ;;  %5934 = vmatprep.subr.bf16.mxu1 %v9524_v21  ;;  %v9603_v20 = vld [vmem:[%s12924_s1 + $0x17c0] ss:$16 sps:$4 sm:$0xff]   ;;  %v9606_v21 = vld [vmem:[%s12924_s1 + $0x17c8] ss:$16 sps:$4 sm:$0xff]  }
 0x2c2   :  { %5393 = vmatmul.mubr.bf16.vlgmr.msra.gmra.mrb[0].mxu0 %v12154_v22  ;;  %5926 = vmatmul.mubr.bf16.vlgmr.msra.gmra.mrb[0].mxu1 %v12154_v22 }
 0x2c3   :  { %5402 = vmatpush1.bf16.msra.mxu0 %v9519_v23  ;;  %5935 = vmatpush1.bf16.msra.mxu1 %v9522_v25  ;;  %v9611_v23 = vld [vmem:[%s12924_s1 + $0x17e4] ss:$16 sps:$4 sm:$0xff]   ;;  %v9614_v25 = vld [vmem:[%s12924_s1 + $0x17ec] ss:$16 sps:$4 sm:$0xff]  }
 0x2c4   :  { %5403 = vmatprep.subr.bf16.mxu0 %v9527_v13  ;;  %5936 = vmatprep.subr.bf16.mxu1 %v9530_v10  ;;  %v9609_v13 = vld [vmem:[%s12924_s1 + $0x17e0] ss:$16 sps:$4 sm:$0xff]   ;;  %v9612_v10 = vld [vmem:[%s12924_s1 + $0x17e8] ss:$16 sps:$4 sm:$0xff]  }
 0x2c5   :  { %5433 = vmatprep.mubr.bf16.mxu0 %v987_v27  ;;  %5966 = vmatprep.mubr.bf16.mxu1 %v987_v27  ;;  %v9617_v27 = vld [vmem:[%s12924_s1 + $0x1804] ss:$16 sps:$4 sm:$0xff]  }
 0x2c7   :  { %5404 = vmatpush1.bf16.msra.mxu0 %v9525_v29  ;;  %5937 = vmatpush1.bf16.msra.mxu1 %v9528_v30  ;;  %v9620_v29 = vld [vmem:[%s12924_s1 + $0x180c] ss:$16 sps:$4 sm:$0xff]   ;;  %v985_v30 = vcombine.high %v12154_v22, %v12154_v22 }
 0x2c8   :  { %5405 = vmatprep.subr.bf16.mxu0 %v9533_v19  ;;  %5938 = vmatprep.subr.bf16.mxu1 %v9536_v31  ;;  %v9615_v19 = vld [vmem:[%s12924_s1 + $0x1800] ss:$16 sps:$4 sm:$0xff]   ;;  %v9618_v31 = vld [vmem:[%s12924_s1 + $0x1808] ss:$16 sps:$4 sm:$0xff]   ;;  %v9626_v22 = vld [vmem:[%s12924_s1 + $0x182c] ss:$16 sps:$4 sm:$0xff]  }
 0x2cb   :  { %5406 = vmatpush1.bf16.msra.mxu0 %v9531_v15  ;;  %5939 = vmatpush1.bf16.msra.mxu1 %v9534_v32  ;;  %v9623_v15 = vld [vmem:[%s12924_s1 + $0x1824] ss:$16 sps:$4 sm:$0xff]   ;;  %v9621_v32 = vld [vmem:[%s12924_s1 + $0x1820] ss:$16 sps:$4 sm:$0xff]  }
 0x2cc   :  { %5407 = vmatprep.subr.bf16.mxu0 %v9539_v33  ;;  %5940 = vmatprep.subr.bf16.mxu1 %v9542_v26  ;;  %v9624_v33 = vld [vmem:[%s12924_s1 + $0x1828] ss:$16 sps:$4 sm:$0xff]   ;;  %v9629_v26 = vld [vmem:[%s12924_s1 + $0x1844] ss:$16 sps:$4 sm:$0xff]  }
 0x2cf   :  { %5408 = vmatpush1.bf16.msra.mxu0 %v9537_v34  ;;  %5941 = vmatpush1.bf16.msra.mxu1 %v9540_v35  ;;  %v9632_v34 = vld [vmem:[%s12924_s1 + $0x184c] ss:$16 sps:$4 sm:$0xff]   ;;  %v9627_v35 = vld [vmem:[%s12924_s1 + $0x1840] ss:$16 sps:$4 sm:$0xff]  }
 0x2d0   :  { %5409 = vmatprep.subr.bf16.mxu0 %v9545_v28  ;;  %5942 = vmatprep.subr.bf16.mxu1 %v9548_v39  ;;  %v9630_v28 = vld [vmem:[%s12924_s1 + $0x1848] ss:$16 sps:$4 sm:$0xff]   ;;  %v9635_v39 = vld [vmem:[%s12924_s1 + $0x1864] ss:$16 sps:$4 sm:$0xff]  }
 0x2d3   :  { %5410 = vmatpush1.bf16.msra.mxu0 %v9543_v41  ;;  %5943 = vmatpush1.bf16.msra.mxu1 %v9546_v43  ;;  %v9633_v41 = vld [vmem:[%s12924_s1 + $0x1860] ss:$16 sps:$4 sm:$0xff]   ;;  %v9636_v43 = vld [vmem:[%s12924_s1 + $0x1868] ss:$16 sps:$4 sm:$0xff]  }
 0x2d4   :  { %5411 = vmatprep.subr.bf16.mxu0 %v9551_v44  ;;  %5944 = vmatprep.subr.bf16.mxu1 %v9554_v45  ;;  %v7353_v44 = vld.sshfl [vmem:[%s12925_s0 + $0x18] sm:$0x1 pattern:$0x75316420]  ;;  %v9641_v45 = vld [vmem:[%s12926_s3 + $0x4] ss:$16 sps:$4 sm:$0xff]  }
 0x2d7   :  { %5412 = vmatpush1.bf16.msra.mxu0 %v9549_v46  ;;  %5945 = vmatpush1.bf16.msra.mxu1 %v9552_v47  ;;  %v9644_v46 = vld [vmem:[%s12926_s3 + $0xc] ss:$16 sps:$4 sm:$0xff]   ;;  %v1001_v47 = vrot.slane %v7353_v44, %v10043_v49  ;;  %v9731_v44 = vld [vmem:[%s12926_s3 + $0x1e4] ss:$16 sps:$4 sm:$0xff]  }
 0x2d8   :  { %5413 = vmatprep.subr.bf16.mxu0 %v9557_v38  ;;  %5946 = vmatprep.subr.bf16.mxu1 %v9560_v48  ;;  %v9639_v38 = vld [vmem:[%s12926_s3] ss:$16 sps:$4 sm:$0xff]   ;;  %v9642_v48 = vld [vmem:[%s12926_s3 + $0x8] ss:$16 sps:$4 sm:$0xff]   ;;  %v9650_v49 = vld [vmem:[%s12926_s3 + $0x2c] ss:$16 sps:$4 sm:$0xff]  }
 0x2db   :  { %5414 = vmatpush1.bf16.msra.mxu0 %v9555_v50  ;;  %5947 = vmatpush1.bf16.msra.mxu1 %v9558_v51  ;;  %v9647_v50 = vld [vmem:[%s12926_s3 + $0x24] ss:$16 sps:$4 sm:$0xff]   ;;  %v9645_v51 = vld [vmem:[%s12926_s3 + $0x20] ss:$16 sps:$4 sm:$0xff]  }
 0x2dc   :  { %5415 = vmatprep.subr.bf16.mxu0 %v9563_v53  ;;  %5948 = vmatprep.subr.bf16.mxu1 %v9566_v40  ;;  %v9648_v53 = vld [vmem:[%s12926_s3 + $0x28] ss:$16 sps:$4 sm:$0xff]   ;;  %v9653_v40 = vld [vmem:[%s12926_s3 + $0x44] ss:$16 sps:$4 sm:$0xff]  }
 0x2df   :  { %5416 = vmatpush1.bf16.msra.mxu0 %v9561_v56  ;;  %5949 = vmatpush1.bf16.msra.mxu1 %v9564_v58  ;;  %v9656_v56 = vld [vmem:[%s12926_s3 + $0x4c] ss:$16 sps:$4 sm:$0xff]   ;;  %v9651_v58 = vld [vmem:[%s12926_s3 + $0x40] ss:$16 sps:$4 sm:$0xff]  }
 0x2e0   :  { %5417 = vmatprep.subr.bf16.mxu0 %v9569_v59  ;;  %5950 = vmatprep.subr.bf16.mxu1 %v9572_v24  ;;  %v9654_v59 = vld [vmem:[%s12926_s3 + $0x48] ss:$16 sps:$4 sm:$0xff]   ;;  %v9659_v24 = vld [vmem:[%s12926_s3 + $0x64] ss:$16 sps:$4 sm:$0xff]  }
 0x2e3   :  { %5418 = vmatpush1.bf16.msra.mxu0 %v9567_v61  ;;  %5951 = vmatpush1.bf16.msra.mxu1 %v9570_v62  ;;  %v9662_v61 = vld [vmem:[%s12926_s3 + $0x6c] ss:$16 sps:$4 sm:$0xff]   ;;  %v9657_v62 = vld [vmem:[%s12926_s3 + $0x60] ss:$16 sps:$4 sm:$0xff]  }
 0x2e4   :  { %5419 = vmatprep.subr.bf16.mxu0 %v9575_v63  ;;  %5952 = vmatprep.subr.bf16.mxu1 %v9578_v55  ;;  %v9660_v63 = vld [vmem:[%s12926_s3 + $0x68] ss:$16 sps:$4 sm:$0xff]   ;;  %v9665_v55 = vld [vmem:[%s12926_s3 + $0x84] ss:$16 sps:$4 sm:$0xff]  }
 0x2e7   :  { %5420 = vmatpush1.bf16.msra.mxu0 %v9573_v0  ;;  %5953 = vmatpush1.bf16.msra.mxu1 %v9576_v1  ;;  %v9668_v0 = vld [vmem:[%s12926_s3 + $0x8c] ss:$16 sps:$4 sm:$0xff]   ;;  %v9663_v1 = vld [vmem:[%s12926_s3 + $0x80] ss:$16 sps:$4 sm:$0xff]  }
 0x2e8   :  { %5421 = vmatprep.subr.bf16.mxu0 %v9581_v2  ;;  %5954 = vmatprep.subr.bf16.mxu1 %v9584_v3  ;;  %v9666_v2 = vld [vmem:[%s12926_s3 + $0x88] ss:$16 sps:$4 sm:$0xff]   ;;  %v9671_v3 = vld [vmem:[%s12926_s3 + $0xa4] ss:$16 sps:$4 sm:$0xff]  }
 0x2eb   :  { %5422 = vmatpush1.bf16.msra.mxu0 %v9579_v57  ;;  %5955 = vmatpush1.bf16.msra.mxu1 %v9582_v5  ;;  %v9674_v57 = vld [vmem:[%s12926_s3 + $0xac] ss:$16 sps:$4 sm:$0xff]   ;;  %v9669_v5 = vld [vmem:[%s12926_s3 + $0xa0] ss:$16 sps:$4 sm:$0xff]  }
 0x2ec   :  { %5423 = vmatprep.subr.bf16.mxu0 %v9587_v6  ;;  %5956 = vmatprep.subr.bf16.mxu1 %v9590_v8  ;;  %v9672_v6 = vld [vmem:[%s12926_s3 + $0xa8] ss:$16 sps:$4 sm:$0xff]   ;;  %v9677_v8 = vld [vmem:[%s12926_s3 + $0xc4] ss:$16 sps:$4 sm:$0xff]  }
 0x2ef   :  { %5424 = vmatpush1.bf16.msra.mxu0 %v9585_v9  ;;  %5957 = vmatpush1.bf16.msra.mxu1 %v9588_v54  ;;  %v9680_v9 = vld [vmem:[%s12926_s3 + $0xcc] ss:$16 sps:$4 sm:$0xff]   ;;  %v9675_v54 = vld [vmem:[%s12926_s3 + $0xc0] ss:$16 sps:$4 sm:$0xff]  }
 0x2f0   :  { %5425 = vmatprep.subr.bf16.mxu0 %v9593_v60  ;;  %5958 = vmatprep.subr.bf16.mxu1 %v9596_v11  ;;  %v9678_v60 = vld [vmem:[%s12926_s3 + $0xc8] ss:$16 sps:$4 sm:$0xff]   ;;  %v9683_v11 = vld [vmem:[%s12926_s3 + $0xe4] ss:$16 sps:$4 sm:$0xff]  }
 0x2f3   :  { %5426 = vmatpush1.bf16.msra.mxu0 %v9591_v12  ;;  %5959 = vmatpush1.bf16.msra.mxu1 %v9594_v14  ;;  %v9686_v12 = vld [vmem:[%s12926_s3 + $0xec] ss:$16 sps:$4 sm:$0xff]   ;;  %v9681_v14 = vld [vmem:[%s12926_s3 + $0xe0] ss:$16 sps:$4 sm:$0xff]  }
 0x2f4   :  { %5427 = vmatprep.subr.bf16.mxu0 %v9599_v4  ;;  %5960 = vmatprep.subr.bf16.mxu1 %v9602_v52  ;;  %v9684_v4 = vld [vmem:[%s12926_s3 + $0xe8] ss:$16 sps:$4 sm:$0xff]   ;;  %v9689_v52 = vld [vmem:[%s12926_s3 + $0x104] ss:$16 sps:$4 sm:$0xff]  }
 0x2f7   :  { %5428 = vmatpush1.bf16.msra.mxu0 %v9597_v16  ;;  %5961 = vmatpush1.bf16.msra.mxu1 %v9600_v17  ;;  %v9692_v16 = vld [vmem:[%s12926_s3 + $0x10c] ss:$16 sps:$4 sm:$0xff]   ;;  %v9687_v17 = vld [vmem:[%s12926_s3 + $0x100] ss:$16 sps:$4 sm:$0xff]  }
 0x2f8   :  { %5429 = vmatprep.subr.bf16.mxu0 %v9605_v18  ;;  %5962 = vmatprep.subr.bf16.mxu1 %v9608_v7  ;;  %v9690_v18 = vld [vmem:[%s12926_s3 + $0x108] ss:$16 sps:$4 sm:$0xff]   ;;  %v9695_v7 = vld [vmem:[%s12926_s3 + $0x124] ss:$16 sps:$4 sm:$0xff]  }
 0x2fb   :  { %5430 = vmatpush1.bf16.msra.mxu0 %v9603_v20  ;;  %5963 = vmatpush1.bf16.msra.mxu1 %v9606_v21  ;;  %v9698_v20 = vld [vmem:[%s12926_s3 + $0x12c] ss:$16 sps:$4 sm:$0xff]   ;;  %v9693_v21 = vld [vmem:[%s12926_s3 + $0x120] ss:$16 sps:$4 sm:$0xff]  }
 0x2fc   :  { %5431 = vmatprep.subr.bf16.mxu0 %v9611_v23  ;;  %5964 = vmatprep.subr.bf16.mxu1 %v9614_v25  ;;  %v9696_v23 = vld [vmem:[%s12926_s3 + $0x128] ss:$16 sps:$4 sm:$0xff]   ;;  %v9701_v25 = vld [vmem:[%s12926_s3 + $0x144] ss:$16 sps:$4 sm:$0xff]  }
 0x2ff   :  { %5432 = vmatpush1.bf16.msra.mxu0 %v9609_v13  ;;  %5965 = vmatpush1.bf16.msra.mxu1 %v9612_v10  ;;  %v9704_v13 = vld [vmem:[%s12926_s3 + $0x14c] ss:$16 sps:$4 sm:$0xff]   ;;  %v9699_v10 = vld [vmem:[%s12926_s3 + $0x140] ss:$16 sps:$4 sm:$0xff]  }
 0x300   :  { %5442 = vmatprep.subr.bf16.mxu0 %v9617_v27  ;;  %5975 = vmatprep.subr.bf16.mxu1 %v9620_v29  ;;  %v9702_v27 = vld [vmem:[%s12926_s3 + $0x148] ss:$16 sps:$4 sm:$0xff]   ;;  %v9707_v29 = vld [vmem:[%s12926_s3 + $0x164] ss:$16 sps:$4 sm:$0xff]  }
 0x302   :  { %5434 = vmatmul.mubr.bf16.vlgmr.msra.gmra.mrb[0].mxu0 %v985_v30  ;;  %5967 = vmatmul.mubr.bf16.vlgmr.msra.gmra.mrb[0].mxu1 %v985_v30  ;;  %v9710_v30 = vld [vmem:[%s12926_s3 + $0x16c] ss:$16 sps:$4 sm:$0xff]  }
 0x303   :  { %5443 = vmatpush1.bf16.msra.mxu0 %v9615_v19  ;;  %5976 = vmatpush1.bf16.msra.mxu1 %v9618_v31  ;;  %v9705_v19 = vld [vmem:[%s12926_s3 + $0x160] ss:$16 sps:$4 sm:$0xff]   ;;  %v9708_v31 = vld [vmem:[%s12926_s3 + $0x168] ss:$16 sps:$4 sm:$0xff]  }
 0x304   :  { %5444 = vmatprep.subr.bf16.mxu0 %v9623_v15  ;;  %5977 = vmatprep.subr.bf16.mxu1 %v9626_v22  ;;  %v9713_v15 = vld [vmem:[%s12926_s3 + $0x184] ss:$16 sps:$4 sm:$0xff]   ;;  %v9716_v22 = vld [vmem:[%s12926_s3 + $0x18c] ss:$16 sps:$4 sm:$0xff]  }
 0x305   :  { %5474 = vmatprep.mubr.bf16.mxu0 %v9866_v37  ;;  %6007 = vmatprep.mubr.bf16.mxu1 %v9866_v37  ;;  %v9638_v37 = vld [vmem:[%s12924_s1 + $0x186c] ss:$16 sps:$4 sm:$0xff]  }
 0x307   :  { %5445 = vmatpush1.bf16.msra.mxu0 %v9621_v32  ;;  %5978 = vmatpush1.bf16.msra.mxu1 %v9624_v33  ;;  %v9711_v32 = vld [vmem:[%s12926_s3 + $0x180] ss:$16 sps:$4 sm:$0xff]   ;;  %v9714_v33 = vld [vmem:[%s12926_s3 + $0x188] ss:$16 sps:$4 sm:$0xff]  }
 0x308   :  { %5446 = vmatprep.subr.bf16.mxu0 %v9629_v26  ;;  %5979 = vmatprep.subr.bf16.mxu1 %v9632_v34  ;;  %v9719_v26 = vld [vmem:[%s12926_s3 + $0x1a4] ss:$16 sps:$4 sm:$0xff]   ;;  %v9722_v34 = vld [vmem:[%s12926_s3 + $0x1ac] ss:$16 sps:$4 sm:$0xff]  }
 0x30b   :  { %5447 = vmatpush1.bf16.msra.mxu0 %v9627_v35  ;;  %5980 = vmatpush1.bf16.msra.mxu1 %v9630_v28  ;;  %v9717_v35 = vld [vmem:[%s12926_s3 + $0x1a0] ss:$16 sps:$4 sm:$0xff]   ;;  %v9720_v28 = vld [vmem:[%s12926_s3 + $0x1a8] ss:$16 sps:$4 sm:$0xff]  }
 0x30c   :  { %5448 = vmatprep.subr.bf16.mxu0 %v9635_v39  ;;  %5981 = vmatprep.subr.bf16.mxu1 %v9638_v37  ;;  %v9725_v39 = vld [vmem:[%s12926_s3 + $0x1c4] ss:$16 sps:$4 sm:$0xff]   ;;  %v9728_v37 = vld [vmem:[%s12926_s3 + $0x1cc] ss:$16 sps:$4 sm:$0xff]  }
 0x30f   :  { %5449 = vmatpush1.bf16.msra.mxu0 %v9633_v41  ;;  %5982 = vmatpush1.bf16.msra.mxu1 %v9636_v43  ;;  %v9723_v41 = vld [vmem:[%s12926_s3 + $0x1c0] ss:$16 sps:$4 sm:$0xff]   ;;  %v9726_v43 = vld [vmem:[%s12926_s3 + $0x1c8] ss:$16 sps:$4 sm:$0xff]  }
 0x310   :  { %6814 = vmatprep.subr.bf16.mxu0 %v9641_v45  ;;  %6896 = vmatprep.subr.bf16.mxu1 %v9644_v46  ;;  %v9734_v45 = vld [vmem:[%s12926_s3 + $0x1ec] ss:$16 sps:$4 sm:$0xff]   ;;  %v9729_v46 = vld [vmem:[%s12926_s3 + $0x1e0] ss:$16 sps:$4 sm:$0xff]  }
 0x312   :  { %8138 = vmatmul.mubr.msk.bf16.vlgmr.msra.gmra.mrb[0].mxu0 %vm4946_vm0, %v1001_v47  ;;  %8139 = vmatmul.mubr.msk.bf16.vlgmr.msra.gmra.mrb[0].mxu1 %vm4946_vm0, %v1001_v47  ;;  %v9732_v47 = vld [vmem:[%s12926_s3 + $0x1e8] ss:$16 sps:$4 sm:$0xff]  }
 0x313   :  { %6815 = vmatpush1.bf16.msra.mxu0 %v9639_v38  ;;  %6897 = vmatpush1.bf16.msra.mxu1 %v9642_v48  ;;  %v9737_v38 = vld [vmem:[%s12926_s3 + $0x204] ss:$16 sps:$4 sm:$0xff]   ;;  %v9740_v48 = vld [vmem:[%s12926_s3 + $0x20c] ss:$16 sps:$4 sm:$0xff]  }
 0x314   :  { %6816 = vmatprep.subr.bf16.mxu0 %v9647_v50  ;;  %6898 = vmatprep.subr.bf16.mxu1 %v9650_v49  ;;  %v819_v50 = vsub.s32 0, %v10025_v42  ;;  %v12604_v49 = vld [vmem:[%s12928_s2] sm:$0xf] }
 0x317   :  { %6817 = vmatpush1.bf16.msra.mxu0 %v9645_v51  ;;  %6899 = vmatpush1.bf16.msra.mxu1 %v9648_v53  ;;  %v823_v51 = vsub.s32 1, %v10025_v42  ;;  %v831_v53 = vsub.s32 3, %v10025_v42 }
 0x318   :  { %6818 = vmatprep.subr.bf16.mxu0 %v9653_v40  ;;  %6900 = vmatprep.subr.bf16.mxu1 %v9656_v56  ;;  %v820_v40 = vrot.slane %v12604_v49, %v819_v50 }
 0x319   :  { %v824_v56 = vrot.slane %v12604_v49, %v823_v51 }
 0x31b   :  { %6819 = vmatpush1.bf16.msra.mxu0 %v9651_v58  ;;  %6901 = vmatpush1.bf16.msra.mxu1 %v9654_v59  ;;  %v832_v58 = vrot.slane %v12604_v49, %v831_v53 }
 0x31c   :  { %6820 = vmatprep.subr.bf16.mxu0 %v9659_v24  ;;  %6902 = vmatprep.subr.bf16.mxu1 %v9662_v61 }
 0x31f   :  { %6821 = vmatpush1.bf16.msra.mxu0 %v9657_v62  ;;  %6903 = vmatpush1.bf16.msra.mxu1 %v9660_v63 }
 0x320   :  { %6822 = vmatprep.subr.bf16.mxu0 %v9665_v55  ;;  %6904 = vmatprep.subr.bf16.mxu1 %v9668_v0 }
 0x323   :  { %6823 = vmatpush1.bf16.msra.mxu0 %v9663_v1  ;;  %6905 = vmatpush1.bf16.msra.mxu1 %v9666_v2 }
 0x324   :  { %6824 = vmatprep.subr.bf16.mxu0 %v9671_v3  ;;  %6906 = vmatprep.subr.bf16.mxu1 %v9674_v57 }
 0x327   :  { %6825 = vmatpush1.bf16.msra.mxu0 %v9669_v5  ;;  %6907 = vmatpush1.bf16.msra.mxu1 %v9672_v6 }
 0x328   :  { %6826 = vmatprep.subr.bf16.mxu0 %v9677_v8  ;;  %6908 = vmatprep.subr.bf16.mxu1 %v9680_v9 }
 0x32b   :  { %6827 = vmatpush1.bf16.msra.mxu0 %v9675_v54  ;;  %6909 = vmatpush1.bf16.msra.mxu1 %v9678_v60  ;;  %v9735_v54 = vld [vmem:[%s12926_s3 + $0x200] ss:$16 sps:$4 sm:$0xff]   ;;  %v9738_v60 = vld [vmem:[%s12926_s3 + $0x208] ss:$16 sps:$4 sm:$0xff]  }
 0x32c   :  { %6828 = vmatprep.subr.bf16.mxu0 %v9683_v11  ;;  %6910 = vmatprep.subr.bf16.mxu1 %v9686_v12  ;;  %v9743_v12 = vld [vmem:[%s12926_s3 + $0x224] ss:$16 sps:$4 sm:$0xff]  }
 0x32f   :  { %6829 = vmatpush1.bf16.msra.mxu0 %v9681_v14  ;;  %6911 = vmatpush1.bf16.msra.mxu1 %v9684_v4  ;;  %v9746_v14 = vld [vmem:[%s12926_s3 + $0x22c] ss:$16 sps:$4 sm:$0xff]  }
 0x330   :  { %6830 = vmatprep.subr.bf16.mxu0 %v9689_v52  ;;  %6912 = vmatprep.subr.bf16.mxu1 %v9692_v16  ;;  %v9741_v52 = vld [vmem:[%s12926_s3 + $0x220] ss:$16 sps:$4 sm:$0xff]   ;;  %v9744_v16 = vld [vmem:[%s12926_s3 + $0x228] ss:$16 sps:$4 sm:$0xff]  }
 0x333   :  { %6831 = vmatpush1.bf16.msra.mxu0 %v9687_v17  ;;  %6913 = vmatpush1.bf16.msra.mxu1 %v9690_v18  ;;  %v9749_v17 = vld [vmem:[%s12926_s3 + $0x244] ss:$16 sps:$4 sm:$0xff]   ;;  %v9752_v18 = vld [vmem:[%s12926_s3 + $0x24c] ss:$16 sps:$4 sm:$0xff]  }
 0x334   :  { %6832 = vmatprep.subr.bf16.mxu0 %v9695_v7  ;;  %6914 = vmatprep.subr.bf16.mxu1 %v9698_v20  ;;  %v9747_v7 = vld [vmem:[%s12926_s3 + $0x240] ss:$16 sps:$4 sm:$0xff]   ;;  %v9750_v20 = vld [vmem:[%s12926_s3 + $0x248] ss:$16 sps:$4 sm:$0xff]  }
 0x337   :  { %6833 = vmatpush1.bf16.msra.mxu0 %v9693_v21  ;;  %6915 = vmatpush1.bf16.msra.mxu1 %v9696_v23  ;;  %v9755_v21 = vld [vmem:[%s12926_s3 + $0x264] ss:$16 sps:$4 sm:$0xff]   ;;  %v9758_v23 = vld [vmem:[%s12926_s3 + $0x26c] ss:$16 sps:$4 sm:$0xff]  }
 0x338   :  { %6834 = vmatprep.subr.bf16.mxu0 %v9701_v25  ;;  %6916 = vmatprep.subr.bf16.mxu1 %v9704_v13  ;;  %v9753_v25 = vld [vmem:[%s12926_s3 + $0x260] ss:$16 sps:$4 sm:$0xff]   ;;  %v9756_v13 = vld [vmem:[%s12926_s3 + $0x268] ss:$16 sps:$4 sm:$0xff]  }
 0x33b   :  { %6835 = vmatpush1.bf16.msra.mxu0 %v9699_v10  ;;  %6917 = vmatpush1.bf16.msra.mxu1 %v9702_v27  ;;  %v9761_v10 = vld [vmem:[%s12926_s3 + $0x284] ss:$16 sps:$4 sm:$0xff]   ;;  %v9764_v27 = vld [vmem:[%s12926_s3 + $0x28c] ss:$16 sps:$4 sm:$0xff]  }
 0x33c   :  { %6836 = vmatprep.subr.bf16.mxu0 %v9707_v29  ;;  %6918 = vmatprep.subr.bf16.mxu1 %v9710_v30  ;;  %v9759_v29 = vld [vmem:[%s12926_s3 + $0x280] ss:$16 sps:$4 sm:$0xff]   ;;  %v9762_v30 = vld [vmem:[%s12926_s3 + $0x288] ss:$16 sps:$4 sm:$0xff]  }
 0x33f   :  { %6837 = vmatpush1.bf16.msra.mxu0 %v9705_v19  ;;  %6919 = vmatpush1.bf16.msra.mxu1 %v9708_v31  ;;  %v9767_v19 = vld [vmem:[%s12926_s3 + $0x2a4] ss:$16 sps:$4 sm:$0xff]   ;;  %v9770_v31 = vld [vmem:[%s12926_s3 + $0x2ac] ss:$16 sps:$4 sm:$0xff]  }
 0x340   :  { %6838 = vmatprep.subr.bf16.mxu0 %v9713_v15  ;;  %6920 = vmatprep.subr.bf16.mxu1 %v9716_v22  ;;  %v9765_v15 = vld [vmem:[%s12926_s3 + $0x2a0] ss:$16 sps:$4 sm:$0xff]   ;;  %v9768_v22 = vld [vmem:[%s12926_s3 + $0x2a8] ss:$16 sps:$4 sm:$0xff]  }
 0x343   :  { %6839 = vmatpush1.bf16.msra.mxu0 %v9711_v32  ;;  %6921 = vmatpush1.bf16.msra.mxu1 %v9714_v33  ;;  %v9773_v32 = vld [vmem:[%s12926_s3 + $0x2c4] ss:$16 sps:$4 sm:$0xff]   ;;  %v9776_v33 = vld [vmem:[%s12926_s3 + $0x2cc] ss:$16 sps:$4 sm:$0xff]  }
 0x344   :  { %6840 = vmatprep.subr.bf16.mxu0 %v9719_v26  ;;  %6922 = vmatprep.subr.bf16.mxu1 %v9722_v34  ;;  %v9771_v26 = vld [vmem:[%s12926_s3 + $0x2c0] ss:$16 sps:$4 sm:$0xff]   ;;  %v9774_v34 = vld [vmem:[%s12926_s3 + $0x2c8] ss:$16 sps:$4 sm:$0xff]  }
 0x347   :  { %6841 = vmatpush1.bf16.msra.mxu0 %v9717_v35  ;;  %6923 = vmatpush1.bf16.msra.mxu1 %v9720_v28  ;;  %v9779_v35 = vld [vmem:[%s12926_s3 + $0x2e4] ss:$16 sps:$4 sm:$0xff]   ;;  %v9782_v28 = vld [vmem:[%s12926_s3 + $0x2ec] ss:$16 sps:$4 sm:$0xff]  }
 0x348   :  { %6842 = vmatprep.subr.bf16.mxu0 %v9725_v39  ;;  %6924 = vmatprep.subr.bf16.mxu1 %v9728_v37  ;;  %v9777_v39 = vld [vmem:[%s12926_s3 + $0x2e0] ss:$16 sps:$4 sm:$0xff]   ;;  %v9780_v37 = vld [vmem:[%s12926_s3 + $0x2e8] ss:$16 sps:$4 sm:$0xff]  }
 0x34b   :  { %6843 = vmatpush1.bf16.msra.mxu0 %v9723_v41  ;;  %6925 = vmatpush1.bf16.msra.mxu1 %v9726_v43  ;;  %v9785_v41 = vld [vmem:[%s12926_s3 + $0x304] ss:$16 sps:$4 sm:$0xff]   ;;  %v9788_v43 = vld [vmem:[%s12926_s3 + $0x30c] ss:$16 sps:$4 sm:$0xff]  }
 0x34c   :  { %6844 = vmatprep.subr.bf16.mxu0 %v9731_v44  ;;  %6926 = vmatprep.subr.bf16.mxu1 %v9734_v45  ;;  %v9783_v44 = vld [vmem:[%s12926_s3 + $0x300] ss:$16 sps:$4 sm:$0xff]   ;;  %v9786_v45 = vld [vmem:[%s12926_s3 + $0x308] ss:$16 sps:$4 sm:$0xff]  }
 0x34f   :  { %6845 = vmatpush1.bf16.msra.mxu0 %v9729_v46  ;;  %6927 = vmatpush1.bf16.msra.mxu1 %v9732_v47  ;;  %v9791_v46 = vld [vmem:[%s12926_s3 + $0x324] ss:$16 sps:$4 sm:$0xff]   ;;  %v9794_v47 = vld [vmem:[%s12926_s3 + $0x32c] ss:$16 sps:$4 sm:$0xff]  }
 0x350   :  { %6855 = vmatprep.subr.bf16.mxu0 %v9737_v38  ;;  %6937 = vmatprep.subr.bf16.mxu1 %v9740_v48  ;;  %v9789_v38 = vld [vmem:[%s12926_s3 + $0x320] ss:$16 sps:$4 sm:$0xff]   ;;  %v9792_v48 = vld [vmem:[%s12926_s3 + $0x328] ss:$16 sps:$4 sm:$0xff]  }
 0x3e5   :  { %v5476_v59 = vpop.f32.mrb[0].mxu0  ;;  %v12617_v24 = vpop.f32.mrb[0].mxu1 }
 0x3e6   :  { %v8345_v61 = vadd.f32 %v5476_v59, %v820_v40  ;;  %v5478_v62 = vpop.f32.mrb[1].mxu0  ;;  %v6011_v63 = vpop.f32.mrb[1].mxu1  ;;  %v9797_v40 = vld [vmem:[%s12926_s3 + $0x344] ss:$16 sps:$4 sm:$0xff]   ;;  %v9798_v59 = vld [vmem:[%s12926_s3 + $0x348] ss:$16 sps:$4 sm:$0xff]  }
 0x3e7   :  { %v8346_v55 = vadd.f32 %v5478_v62, %v824_v56  ;;  %v8348_v0 = vadd.f32 %v6011_v63, %v832_v58  ;;  %v5480_v1 = vpop.f32.mrb[2].mxu0  ;;  %v6013_v2 = vpop.f32.mrb[2].mxu1  ;;  %v9800_v56 = vld [vmem:[%s12926_s3 + $0x34c] ss:$16 sps:$4 sm:$0xff]   ;;  %v9795_v58 = vld [vmem:[%s12926_s3 + $0x340] ss:$16 sps:$4 sm:$0xff]  }
 0x3e8   :  { %v6016_v3 = vmax.f32 %v8345_v61, 0.0  ;;  %v5481_v57 = vpop.f32.mrb[3].mxu0  ;;  %v6014_v5 = vpop.f32.mrb[3].mxu1  ;;  %v9803_v61 = vld [vmem:[%s12926_s3 + $0x364] ss:$16 sps:$4 sm:$0xff]  }
 0x3e9   :  { %v6017_v6 = vmax.f32 %v8346_v55, 0.0  ;;  %v6019_v8 = vmax.f32 %v8348_v0, 0.0  ;;  %v9806_v62 = vld [vmem:[%s12926_s3 + $0x36c] ss:$16 sps:$4 sm:$0xff]   ;;  %v9801_v63 = vld [vmem:[%s12926_s3 + $0x360] ss:$16 sps:$4 sm:$0xff]  }
 0x3ea   :  { %v6020_v11 = vpack.c.bf16 %v6016_v3, %v6016_v3  ;;  %v9804_v55 = vld [vmem:[%s12926_s3 + $0x368] ss:$16 sps:$4 sm:$0xff]   ;;  %v9809_v0 = vld [vmem:[%s12926_s3 + $0x384] ss:$16 sps:$4 sm:$0xff]   ;;  %v9812_v1 = vld [vmem:[%s12926_s3 + $0x38c] ss:$16 sps:$4 sm:$0xff]  }
 0x3eb   :  { %v6021_v9 = vpack.c.bf16 %v6017_v6, %v6017_v6  ;;  %v6023_v4 = vpack.c.bf16 %v6019_v8, %v6019_v8  ;;  %v9807_v2 = vld [vmem:[%s12926_s3 + $0x380] ss:$16 sps:$4 sm:$0xff]   ;;  %v9810_v3 = vld [vmem:[%s12926_s3 + $0x388] ss:$16 sps:$4 sm:$0xff]   ;;  %v827_v57 = vsub.s32 2, %v10025_v42 }
 0x3ec   :  { %v9815_v5 = vld [vmem:[%s12926_s3 + $0x3a4] ss:$16 sps:$4 sm:$0xff]   ;;  %v9818_v6 = vld [vmem:[%s12926_s3 + $0x3ac] ss:$16 sps:$4 sm:$0xff]   ;;  %v9813_v8 = vld [vmem:[%s12926_s3 + $0x3a0] ss:$16 sps:$4 sm:$0xff]  }
 0x3ed   :  { %6846 = vmatprep.mubr.bf16.mxu0 %v6021_v9  ;;  %6928 = vmatprep.mubr.bf16.mxu1 %v6021_v9  ;;  %v9816_v9 = vld [vmem:[%s12926_s3 + $0x3a8] ss:$16 sps:$4 sm:$0xff]  }
 0x3ee   :  { %6847 = vmatmul.mubr.bf16.vlgmr.msra.gmra.mrb[4].mxu0 %v6020_v11  ;;  %6929 = vmatmul.mubr.bf16.vlgmr.msra.gmra.mrb[4].mxu1 %v6020_v11  ;;  %v9824_v11 = vld [vmem:[%s12926_s3 + $0x3cc] ss:$16 sps:$4 sm:$0xff]  }
 0x3ef   :  { %6856 = vmatpush1.bf16.msra.mxu0 %v9735_v54  ;;  %6938 = vmatpush1.bf16.msra.mxu1 %v9738_v60  ;;  %v828_v54 = vrot.slane %v12604_v49, %v827_v57  ;;  %v9821_v60 = vld [vmem:[%s12926_s3 + $0x3c4] ss:$16 sps:$4 sm:$0xff]   ;;  %v9822_v49 = vld [vmem:[%s12926_s3 + $0x3c8] ss:$16 sps:$4 sm:$0xff]  }
 0x3f0   :  { %6887 = vmatprep.mubr.bf16.mxu0 %v6023_v4  ;;  %6969 = vmatprep.mubr.bf16.mxu1 %v6023_v4  ;;  %v9827_v4 = vld [vmem:[%s12926_s3 + $0x3e4] ss:$16 sps:$4 sm:$0xff]  }
 0x3f1   :  { %6857 = vmatprep.subr.bf16.mxu0 %v9743_v12  ;;  %6939 = vmatprep.subr.bf16.mxu1 %v9746_v14  ;;  %v9819_v12 = vld [vmem:[%s12926_s3 + $0x3c0] ss:$16 sps:$4 sm:$0xff]   ;;  %v8347_v14 = vadd.f32 %v12617_v24, %v828_v54  ;;  %v9828_v24 = vld [vmem:[%s12926_s3 + $0x3e8] ss:$16 sps:$4 sm:$0xff]  }
 0x3f3   :  { %6858 = vmatpush1.bf16.msra.mxu0 %v9741_v52  ;;  %6940 = vmatpush1.bf16.msra.mxu1 %v9744_v16  ;;  %v9830_v52 = vld [vmem:[%s12926_s3 + $0x3ec] ss:$16 sps:$4 sm:$0xff]   ;;  %v9825_v16 = vld [vmem:[%s12926_s3 + $0x3e0] ss:$16 sps:$4 sm:$0xff]  }
 0x3f4   :  { %6859 = vmatprep.subr.bf16.mxu0 %v9749_v17  ;;  %6941 = vmatprep.subr.bf16.mxu1 %v9752_v18  ;;  %v6018_v17 = vmax.f32 %v8347_v14, 0.0  ;;  %v9831_v18 = vld [vmem:[%s12927_s5 + $0x40] sm:$0xff]  }
 0x3f7   :  { %6860 = vmatpush1.bf16.msra.mxu0 %v9747_v7  ;;  %6942 = vmatpush1.bf16.msra.mxu1 %v9750_v20  ;;  %v9832_v7 = vld [vmem:[%s12927_s5 + $0xc0] sm:$0xff]  }
 0x3f8   :  { %6861 = vmatprep.subr.bf16.mxu0 %v9755_v21  ;;  %6943 = vmatprep.subr.bf16.mxu1 %v9758_v23  ;;  %v9833_v20 = vld [vmem:[%s12927_s5] sm:$0xff]   ;;  %v6022_v23 = vpack.c.bf16 %v6018_v17, %v6018_v17 }
 0x3f9   :  { %v9834_v21 = vld [vmem:[%s12927_s5 + $0x80] sm:$0xff]  }
 0x3fb   :  { %6862 = vmatpush1.bf16.msra.mxu0 %v9753_v25  ;;  %6944 = vmatpush1.bf16.msra.mxu1 %v9756_v13  ;;  %v9835_v25 = vld [vmem:[%s12927_s5 + $0x48] sm:$0xff]  }
 0x3fc   :  { %6863 = vmatprep.subr.bf16.mxu0 %v9761_v10  ;;  %6945 = vmatprep.subr.bf16.mxu1 %v9764_v27  ;;  %v9836_v13 = vld [vmem:[%s12927_s5 + $0xc8] sm:$0xff]  }
 0x3fd   :  { %v9837_v10 = vld [vmem:[%s12927_s5 + $0x8] sm:$0xff]  }
 0x3fe   :  { %v9838_v27 = vld [vmem:[%s12927_s5 + $0x88] sm:$0xff]  }
 0x3ff   :  { %6864 = vmatpush1.bf16.msra.mxu0 %v9759_v29  ;;  %6946 = vmatpush1.bf16.msra.mxu1 %v9762_v30  ;;  %v9839_v29 = vld [vmem:[%s12927_s5 + $0x50] sm:$0xff]  }
 0x400   :  { %6865 = vmatprep.subr.bf16.mxu0 %v9767_v19  ;;  %6947 = vmatprep.subr.bf16.mxu1 %v9770_v31  ;;  %v9840_v30 = vld [vmem:[%s12927_s5 + $0xd0] sm:$0xff]  }
 0x401   :  { %v9841_v19 = vld [vmem:[%s12927_s5 + $0x10] sm:$0xff]  }
 0x402   :  { %v9842_v31 = vld [vmem:[%s12927_s5 + $0x90] sm:$0xff]  }
 0x403   :  { %6866 = vmatpush1.bf16.msra.mxu0 %v9765_v15  ;;  %6948 = vmatpush1.bf16.msra.mxu1 %v9768_v22  ;;  %v9843_v15 = vld [vmem:[%s12927_s5 + $0x58] sm:$0xff]  }
 0x404   :  { %6867 = vmatprep.subr.bf16.mxu0 %v9773_v32  ;;  %6949 = vmatprep.subr.bf16.mxu1 %v9776_v33  ;;  %v9844_v22 = vld [vmem:[%s12927_s5 + $0xd8] sm:$0xff]  }
 0x405   :  { %v9845_v32 = vld [vmem:[%s12927_s5 + $0x18] sm:$0xff]  }
 0x406   :  { %v9846_v33 = vld [vmem:[%s12927_s5 + $0x98] sm:$0xff]  }
 0x407   :  { %6868 = vmatpush1.bf16.msra.mxu0 %v9771_v26  ;;  %6950 = vmatpush1.bf16.msra.mxu1 %v9774_v34  ;;  %v9847_v26 = vld [vmem:[%s12927_s5 + $0x60] sm:$0xff]  }
 0x408   :  { %6869 = vmatprep.subr.bf16.mxu0 %v9779_v35  ;;  %6951 = vmatprep.subr.bf16.mxu1 %v9782_v28  ;;  %v9848_v34 = vld [vmem:[%s12927_s5 + $0xe0] sm:$0xff]  }
 0x409   :  { %v9849_v35 = vld [vmem:[%s12927_s5 + $0x20] sm:$0xff]  }
 0x40a   :  { %v9850_v28 = vld [vmem:[%s12927_s5 + $0xa0] sm:$0xff]  }
 0x40b   :  { %6870 = vmatpush1.bf16.msra.mxu0 %v9777_v39  ;;  %6952 = vmatpush1.bf16.msra.mxu1 %v9780_v37  ;;  %v9851_v39 = vld [vmem:[%s12927_s5 + $0x68] sm:$0xff]  }
 0x40c   :  { %6871 = vmatprep.subr.bf16.mxu0 %v9785_v41  ;;  %6953 = vmatprep.subr.bf16.mxu1 %v9788_v43  ;;  %v9852_v37 = vld [vmem:[%s12927_s5 + $0xe8] sm:$0xff]  }
 0x40d   :  { %v9853_v41 = vld [vmem:[%s12927_s5 + $0x28] sm:$0xff]  }
 0x40e   :  { %v9854_v43 = vld [vmem:[%s12927_s5 + $0xa8] sm:$0xff]  }
 0x40f   :  { %6872 = vmatpush1.bf16.msra.mxu0 %v9783_v44  ;;  %6954 = vmatpush1.bf16.msra.mxu1 %v9786_v45  ;;  %v9855_v44 = vld [vmem:[%s12927_s5 + $0x70] sm:$0xff]  }
 0x410   :  { %6873 = vmatprep.subr.bf16.mxu0 %v9791_v46  ;;  %6955 = vmatprep.subr.bf16.mxu1 %v9794_v47  ;;  %v9856_v45 = vld [vmem:[%s12927_s5 + $0xf0] sm:$0xff]  }
 0x411   :  { %v9857_v46 = vld [vmem:[%s12927_s5 + $0x30] sm:$0xff]  }
 0x412   :  { %v9858_v47 = vld [vmem:[%s12927_s5 + $0xb0] sm:$0xff]  }
 0x413   :  { %6874 = vmatpush1.bf16.msra.mxu0 %v9789_v38  ;;  %6956 = vmatpush1.bf16.msra.mxu1 %v9792_v48  ;;  %v9859_v38 = vld [vmem:[%s12927_s5 + $0x78] sm:$0xff]  }
 0x414   :  { %6875 = vmatprep.subr.bf16.mxu0 %v9797_v40  ;;  %6957 = vmatprep.subr.bf16.mxu1 %v9800_v56  ;;  %v9860_v48 = vld [vmem:[%s12927_s5 + $0xf8] sm:$0xff]  }
 0x415   :  { %v9861_v40 = vld [vmem:[%s12927_s5 + $0x38] sm:$0xff]  }
 0x416   :  { %v9862_v56 = vld [vmem:[%s12927_s5 + $0xb8] sm:$0xff]  }
 0x417   :  { %6876 = vmatpush1.bf16.msra.mxu0 %v9795_v58  ;;  %6958 = vmatpush1.bf16.msra.mxu1 %v9798_v59  ;;  %v6152_v58 = vld [vmem:[%s12929_s4] sm:$0xf] }
 0x418   :  { %6877 = vmatprep.subr.bf16.mxu0 %v9803_v61  ;;  %6959 = vmatprep.subr.bf16.mxu1 %v9806_v62  ;;  %v6157_v59 = vrot.slane %v6152_v58, %v819_v50  ;;  %v6165_v61 = vrot.slane %v6152_v58, %v827_v57  ;;  %v6161_v62 = vrot.slane %v6152_v58, %v823_v51 }
 0x41b   :  { %6878 = vmatpush1.bf16.msra.mxu0 %v9801_v63  ;;  %6960 = vmatpush1.bf16.msra.mxu1 %v9804_v55  ;;  %v6169_v63 = vrot.slane %v6152_v58, %v831_v53 }
 0x41c   :  { %6879 = vmatprep.subr.bf16.mxu0 %v9809_v0  ;;  %6961 = vmatprep.subr.bf16.mxu1 %v9812_v1 }
 0x41f   :  { %6880 = vmatpush1.bf16.msra.mxu0 %v9807_v2  ;;  %6962 = vmatpush1.bf16.msra.mxu1 %v9810_v3 }
 0x420   :  { %6881 = vmatprep.subr.bf16.mxu0 %v9815_v5  ;;  %6963 = vmatprep.subr.bf16.mxu1 %v9818_v6 }
 0x423   :  { %6882 = vmatpush1.bf16.msra.mxu0 %v9813_v8  ;;  %6964 = vmatpush1.bf16.msra.mxu1 %v9816_v9 }
 0x424   :  { %6883 = vmatprep.subr.bf16.mxu0 %v9821_v60  ;;  %6965 = vmatprep.subr.bf16.mxu1 %v9824_v11 }
 0x427   :  { %6884 = vmatpush1.bf16.msra.mxu0 %v9819_v12  ;;  %6966 = vmatpush1.bf16.msra.mxu1 %v9822_v49 }
 0x428   :  { %6885 = vmatprep.subr.bf16.mxu0 %v9827_v4  ;;  %6967 = vmatprep.subr.bf16.mxu1 %v9830_v52  ;;  %v7330_v4 = vand.u32 127, %v817_v36 }
 0x42a   :  { %vm7331_vm1 = vcmp.ge.s32.totalorder %v7330_v4, 1  ;;  %vm7332_vm2 = vcmp.le.s32.totalorder %v7330_v4, 6 }
 0x42b   :  { %6886 = vmatpush1.bf16.msra.mxu0 %v9825_v16  ;;  %6968 = vmatpush1.bf16.msra.mxu1 %v9828_v24  ;;  %v8268_v24 = vld [vmem:[%s12930_s6] ss:$0 sm:$0xff]  ;;  %vm7333_vm3 = vmand %vm7331_vm1, %vm7332_vm2 }
 0x42c   :  { %8301 = vmatprep.subr.bf16.mxu0 %v9831_v18  ;;  %8323 = vmatprep.subr.bf16.mxu1 %v9832_v7 }
 0x42e   :  { %6888 = vmatmul.mubr.bf16.vlgmr.msra.gmra.mrb[4].mxu0 %v6022_v23  ;;  %6970 = vmatmul.mubr.bf16.vlgmr.msra.gmra.mrb[4].mxu1 %v6022_v23 }
 0x42f   :  { %8302 = vmatpush3.bf16.msra.mxu0 %v9833_v20  ;;  %8324 = vmatpush3.bf16.msra.mxu1 %v9834_v21 }
 0x430   :  { %8303 = vmatprep.subr.bf16.mxu0 %v9835_v25  ;;  %8325 = vmatprep.subr.bf16.mxu1 %v9836_v13 }
 0x433   :  { %8304 = vmatpush3.bf16.msra.mxu0 %v9837_v10  ;;  %8326 = vmatpush3.bf16.msra.mxu1 %v9838_v27 }
 0x434   :  { %8305 = vmatprep.subr.bf16.mxu0 %v9839_v29  ;;  %8327 = vmatprep.subr.bf16.mxu1 %v9840_v30 }
 0x437   :  { %8306 = vmatpush3.bf16.msra.mxu0 %v9841_v19  ;;  %8328 = vmatpush3.bf16.msra.mxu1 %v9842_v31 }
 0x438   :  { %8307 = vmatprep.subr.bf16.mxu0 %v9843_v15  ;;  %8329 = vmatprep.subr.bf16.mxu1 %v9844_v22 }
 0x43b   :  { %8308 = vmatpush3.bf16.msra.mxu0 %v9845_v32  ;;  %8330 = vmatpush3.bf16.msra.mxu1 %v9846_v33 }
 0x43c   :  { %8309 = vmatprep.subr.bf16.mxu0 %v9847_v26  ;;  %8331 = vmatprep.subr.bf16.mxu1 %v9848_v34 }
 0x43f   :  { %8310 = vmatpush3.bf16.msra.mxu0 %v9849_v35  ;;  %8332 = vmatpush3.bf16.msra.mxu1 %v9850_v28 }
 0x440   :  { %8311 = vmatprep.subr.bf16.mxu0 %v9851_v39  ;;  %8333 = vmatprep.subr.bf16.mxu1 %v9852_v37 }
 0x443   :  { %8312 = vmatpush3.bf16.msra.mxu0 %v9853_v41  ;;  %8334 = vmatpush3.bf16.msra.mxu1 %v9854_v43 }
 0x444   :  { %8313 = vmatprep.subr.bf16.mxu0 %v9855_v44  ;;  %8335 = vmatprep.subr.bf16.mxu1 %v9856_v45 }
 0x447   :  { %8314 = vmatpush3.bf16.msra.mxu0 %v9857_v46  ;;  %8336 = vmatpush3.bf16.msra.mxu1 %v9858_v47 }
 0x448   :  { %8315 = vmatprep.subr.bf16.mxu0 %v9859_v38  ;;  %8337 = vmatprep.subr.bf16.mxu1 %v9860_v48 }
 0x44b   :  { %8316 = vmatpush3.bf16.msra.mxu0 %v9861_v40  ;;  %8338 = vmatpush3.bf16.msra.mxu1 %v9862_v56 }
 0x501   :  { %v6889_v55 = vpop.f32.mrb[4].mxu0  ;;  %v6971_v0 = vpop.f32.mrb[4].mxu1 }
 0x502   :  { %v8349_v1 = vadd.f32 %v6889_v55, %v6157_v59  ;;  %v8351_v2 = vadd.f32 %v6971_v0, %v6165_v61  ;;  %v6891_v3 = vpop.f32.mrb[5].mxu0  ;;  %v6973_v5 = vpop.f32.mrb[5].mxu1 }
 0x503   :  { %v8350_v6 = vadd.f32 %v6891_v3, %v6161_v62  ;;  %v8352_v8 = vadd.f32 %v6973_v5, %v6169_v63  ;;  %v6893_v9 = vpop.f32.mrb[6].mxu0  ;;  %v6975_v54 = vpop.f32.mrb[6].mxu1 }
 0x504   :  { %v6978_v50 = vmax.f32 %v8349_v1, 0.0  ;;  %v6980_v60 = vmax.f32 %v8351_v2, 0.0  ;;  %v6894_v11 = vpop.f32.mrb[7].mxu0  ;;  %v6976_v57 = vpop.f32.mrb[7].mxu1 }
 0x505   :  { %v6979_v12 = vmax.f32 %v8350_v6, 0.0  ;;  %v6981_v49 = vmax.f32 %v8352_v8, 0.0 }
 0x506   :  { %v6982_v42 = vpack.c.bf16 %v6978_v50, %v6978_v50  ;;  %v6984_v53 = vpack.c.bf16 %v6980_v60, %v6980_v60 }
 0x507   :  { %v6983_v51 = vpack.c.bf16 %v6979_v12, %v6979_v12  ;;  %v6985_v14 = vpack.c.bf16 %v6981_v49, %v6981_v49 }
 0x509   :  { %7281 = vmatprep.mubr.bf16.mxu0 %v6983_v51  ;;  %7321 = vmatprep.mubr.bf16.mxu1 %v6985_v14 }
 0x50a   :  { %7282 = vmatmul.mubr.bf16.vlgmr.msra.gmra.mrb[8].mxu0 %v6982_v42  ;;  %7322 = vmatmul.mubr.bf16.vlgmr.msra.gmra.mrb[8].mxu1 %v6984_v53 }
 0x5dd   :  { %v8317_v52 = vpop.f32.mrb[8].mxu0  ;;  %v8339_v16 = vpop.f32.mrb[8].mxu1 }
 0x5de   :  { %v8318_v17 = vpop.f32.mrb[9].mxu0  ;;  %v8340_v18 = vpop.f32.mrb[9].mxu1 }
 0x5df   :  { %v8319_v7 = vadd.f32 %v8318_v17, %v8317_v52  ;;  %v8341_v20 = vadd.f32 %v8340_v18, %v8339_v16  ;;  %v8320_v21 = vpop.f32.mrb[10].mxu0  ;;  %v8342_v23 = vpop.f32.mrb[10].mxu1 }
 0x5e0   :  { %v8321_v25 = vpop.f32.mrb[11].mxu0  ;;  %v8343_v13 = vpop.f32.mrb[11].mxu1 }
 0x5e1   :  { %v7284_v10 = vadd.f32 %v8319_v7, %v8268_v24 }
 0x5e3   :  { %v7324_v27 = vadd.f32 %v8341_v20, %v7284_v10 }
 0x5e5   :  { %v7334_v36 = vsel %vm7333_vm3, %v7324_v27, 0.0 }
 0x5e6   :  { %v7336_v29 = vsel %vm7335_vm4, %v7334_v36, 0.0 }
 0x5e7   :  { %7337 = vadd.xlane.f32.xlu0 %v7336_v29 }
 0x5fd   :  { %7342 = vperm.xlu0 %8459, %v7324_v27  }
 0x674   :  { %v7338_v30 = vpop.xlane.xlu0 %7337 }
 0x675   :  { %v7339_v31 = vmul.f32 0.16666667, %v7338_v30 }
 0x67c   :  { %v7343_v19 = vpop.permute.xlu0 %7342 }
 0x67d   :  { %v7345_v15 = vadd.f32 %v7343_v19, %v7324_v27 }
 0x67f   :  { %v7346_v22 = vsub.f32 %v7345_v15, %v7339_v31 }
 0x681   :  { %v7347_v32 = vsel %vm7333_vm3, %v7346_v22, 0.0 }
 0x682   :  { %7348 = vst [vmem:[%s12931_s7] sm:$0x3] %v7347_v32 }

</bundles_post_ra>
